<compile_context>
chip_gen: v6e
topology: v6e:2x2x1
jax: 0.10.0
libtpu: 0.0.40
codegen_flags: <defaults>
</compile_context>

<pallas_src>
import functools
import math

import jax
import jax.numpy as jnp
import numpy as np
from jax.experimental import pallas as pl
from jax.experimental.pallas import tpu as pltpu

_LANE = 128
_VMEM_LIMIT = 48 * 1024 * 1024  # <= v7x physical 64 MiB, plenty on v5e/v6e


def _round_up(v, m):
    return ((v + m - 1) // m) * m


def _apply_act(v, act):
    if act == "lrelu":
        return jnp.where(v >= 0.0, v, 0.2 * v)
    if act == "sigmoid":
        return 1.0 / (1.0 + jnp.exp(-v))
    return v


# ----------------------------- Pallas kernels ------------------------------ #
def _conv_accum(x_ref, w_ref, b_ref, *, kh, kw, stride, tr, wo, hq, has_bias):
    """Fused im2col + matmul for one (sample, row-tile).

    x_ref : (1, stride*stride*hq, wq, cin)  phase-decomposed padded input (one sample)
    w_ref : (kh*kw, cin, cout_pad)          per-tap weights (zero-padded, lane dense)
    b_ref : (1, cout_pad)                   f32 bias
    returns f32 (tr*wo, cout_pad) pre-activation for output rows [t*tr, (t+1)*tr).
    """
    t = pl.program_id(1)
    row0 = t * tr
    cin = x_ref.shape[-1]
    cout = w_ref.shape[-1]
    acc = jnp.zeros((tr * wo, cout), jnp.float32)
    for di in range(kh):
        qi, pi = di // stride, di % stride
        for dj in range(kw):
            qj, pj = dj // stride, dj % stride
            base = (pi * stride + pj) * hq + qi            # static phase/tap offset
            tile = x_ref[:, pl.ds(row0 + base, tr), pl.ds(qj, wo), :]  # (1,tr,wo,cin)
            tile = tile.reshape(tr * wo, cin)
            acc = acc + jnp.dot(tile, w_ref[di * kw + dj],
                                preferred_element_type=jnp.float32)    # MXU, f32 acc
    if has_bias:
        acc = acc + b_ref[...]
    return acc


def _conv_act_kernel(x_ref, w_ref, b_ref, y_ref, *,
                     kh, kw, stride, tr, wo, hq, has_bias, act):
    """Conv (+bias) (+activation), for layers without InstanceNorm."""
    acc = _conv_accum(x_ref, w_ref, b_ref, kh=kh, kw=kw, stride=stride,
                      tr=tr, wo=wo, hq=hq, has_bias=has_bias)
    acc = _apply_act(acc, act)
    y_ref[...] = acc.reshape(1, tr, wo, -1).astype(y_ref.dtype)


def _conv_stats_kernel(x_ref, w_ref, b_ref, y_ref, sum_ref, sq_ref, *,
                       kh, kw, stride, tr, wo, hq, has_bias):
    """Conv (+bias) + single-pass per-channel sum / sum-of-squares accumulation."""
    acc = _conv_accum(x_ref, w_ref, b_ref, kh=kh, kw=kw, stride=stride,
                      tr=tr, wo=wo, hq=hq, has_bias=has_bias)
    y_ref[...] = acc.reshape(1, tr, wo, -1).astype(y_ref.dtype)

    @pl.when(pl.program_id(1) == 0)
    def _init():
        sum_ref[...] = jnp.zeros_like(sum_ref)
        sq_ref[...] = jnp.zeros_like(sq_ref)

    sum_ref[...] += jnp.sum(acc, axis=0, keepdims=True).reshape(1, 1, -1)
    sq_ref[...] += jnp.sum(acc * acc, axis=0, keepdims=True).reshape(1, 1, -1)


def _inorm_act_kernel(y_ref, sum_ref, sq_ref, o_ref, *, m_total, eps, act):
    """InstanceNorm2d(affine=False) + activation (cheap elementwise second pass)."""
    y = y_ref[...].astype(jnp.float32)                     # (1, tr, wo, cout_pad)
    inv_m = 1.0 / m_total
    mean = sum_ref[...] * inv_m                            # (1, 1, cout_pad), f32
    var = jnp.maximum(sq_ref[...] * inv_m - mean * mean, 0.0)
    z = (y - mean) * jax.lax.rsqrt(var + eps)
    o_ref[...] = _apply_act(z, act).astype(o_ref.dtype)


# ------------------------------ JAX glue ------------------------------------ #
def space_to_phases(x, kh, kw, stride, pad):
    """Zero-pad + space-to-depth by `stride` so that every conv tap becomes a
    contiguous (unit-stride) window inside the kernel.  Output: (N, s*s*hq, wq, C)
    where row index = (phase_i*stride + phase_j)*hq + row.  1x data, no inflation."""
    N, H, W, C = x.shape
    s = stride
    ho = (H + 2 * pad - kh) // s + 1
    wo = (W + 2 * pad - kw) // s + 1
    hq = -(-(H + 2 * pad) // s)
    wq = -(-(W + 2 * pad) // s)
    xp = jnp.pad(x, ((0, 0), (pad, hq * s - H - pad), (pad, wq * s - W - pad), (0, 0)))
    xp = xp.reshape(N, hq, s, wq, s, C)
    xp = jnp.transpose(xp, (0, 2, 4, 1, 3, 5))             # (N, pi, pj, hq, wq, C)
    xp = xp.reshape(N, s * s * hq, wq, C)
    return xp, ho, wo, hq, wq


def pick_tile_rows(ho, wo, target_m):
    """Largest divisor of ho such that tr*wo <= target_m (avoids ragged tiles)."""
    tr = 1
    for d in range(1, ho + 1):
        if ho % d == 0 and d * wo <= target_m:
            tr = d
    return tr


def sn_conv_block(x_nhwc, w_oihw, bias, *, stride, pad, use_in, act, has_bias,
                  compute_dtype, target_m):
    N, H, W, cin_act = x_nhwc.shape
    cout, cin_w, kh, kw = w_oihw.shape
    cout_pad = _round_up(cout, _LANE)         # lane-dense output (incl. Cout=1 head)

    # OIHW -> (kh*kw, cin_act, cout_pad); zero rows for padded-in channels, zero
    # cols for padded-out channels (padded activations stay exactly 0).
    w_t = jnp.transpose(w_oihw, (2, 3, 1, 0)).reshape(kh * kw, cin_w, cout)
    w_k = jnp.pad(w_t, ((0, 0), (0, cin_act - cin_w), (0, cout_pad - cout)))
    w_k = w_k.astype(compute_dtype)
    b_k = jnp.pad(bias, (0, cout_pad - cout)).reshape(1, cout_pad).astype(jnp.float32)

    xp, ho, wo, hq, wq = space_to_phases(x_nhwc, kh, kw, stride, pad)
    s2 = stride * stride
    tr = pick_tile_rows(ho, wo, target_m)
    rt = ho // tr

    x_spec = pl.BlockSpec((1, s2 * hq, wq, cin_act), lambda n, t: (n, 0, 0, 0))
    w_spec = pl.BlockSpec((kh * kw, cin_act, cout_pad), lambda n, t: (0, 0, 0))
    b_spec = pl.BlockSpec((1, cout_pad), lambda n, t: (0, 0))
    y_spec = pl.BlockSpec((1, tr, wo, cout_pad), lambda n, t: (n, t, 0, 0))
    s_spec = pl.BlockSpec((1, 1, cout_pad), lambda n, t: (n, 0, 0))

    par_params = pltpu.CompilerParams(
        dimension_semantics=("parallel", "parallel"),
        vmem_limit_bytes=_VMEM_LIMIT)

    if use_in:
        conv_kernel = functools.partial(
            _conv_stats_kernel, kh=kh, kw=kw, stride=stride, tr=tr, wo=wo, hq=hq,
            has_bias=has_bias)
        y, ssum, ssq = pl.pallas_call(
            conv_kernel,
            grid=(N, rt),
            in_specs=[x_spec, w_spec, b_spec],
            out_specs=(y_spec, s_spec, s_spec),
            out_shape=(jax.ShapeDtypeStruct((N, ho, wo, cout_pad), compute_dtype),
                       jax.ShapeDtypeStruct((N, 1, cout_pad), jnp.float32),
                       jax.ShapeDtypeStruct((N, 1, cout_pad), jnp.float32)),
            compiler_params=pltpu.CompilerParams(
                dimension_semantics=("parallel", "arbitrary"),  # stats accumulate over t
                vmem_limit_bytes=_VMEM_LIMIT),
        )(xp, w_k, b_k)

        norm_kernel = functools.partial(_inorm_act_kernel, m_total=float(ho * wo),
                                        eps=1e-5, act=act)
        out = pl.pallas_call(
            norm_kernel,
            grid=(N, rt),
            in_specs=[y_spec, s_spec, s_spec],
            out_specs=y_spec,
            out_shape=jax.ShapeDtypeStruct((N, ho, wo, cout_pad), compute_dtype),
            compiler_params=par_params,
        )(y, ssum, ssq)
        return out

    conv_kernel = functools.partial(
        _conv_act_kernel, kh=kh, kw=kw, stride=stride, tr=tr, wo=wo, hq=hq,
        has_bias=has_bias, act=act)
    out = pl.pallas_call(
        conv_kernel,
        grid=(N, rt),
        in_specs=[x_spec, w_spec, b_spec],
        out_specs=y_spec,
        out_shape=jax.ShapeDtypeStruct((N, ho, wo, cout_pad), compute_dtype),
        compiler_params=par_params,
    )(xp, w_k, b_k)
    return out


# -------------------------- model config & params --------------------------- #
def build_configs(in_channel, hidden_dim, n_layers):
    cfgs = [dict(cin=in_channel, cout=hidden_dim, stride=2, use_in=False, act="lrelu")]
    mul = 1
    for n in range(1, n_layers):
        mul_prev, mul = mul, min(2 ** n, 8)
        cfgs.append(dict(cin=hidden_dim * mul_prev, cout=hidden_dim * mul,
                         stride=2, use_in=True, act="lrelu"))
    mul_prev, mul = mul, min(2 ** n_layers, 8)
    cfgs.append(dict(cin=hidden_dim * mul_prev, cout=hidden_dim * mul,
                     stride=1, use_in=True, act="lrelu"))
    cfgs.append(dict(cin=hidden_dim * mul, cout=1, stride=1, use_in=False, act="none"))
    return cfgs


def init_params(key, cfgs, use_mask):
    kw_ = 4
    use_bias = not use_mask
    params = []
    for c in cfgs:
        key, k1, k2 = jax.random.split(key, 3)
        w = 0.05 * jax.random.normal(k1, (c["cout"], c["cin"], kw_, kw_), jnp.float32)
        if use_bias:
            b = 0.05 * jax.random.normal(k2, (c["cout"],), jnp.float32)
        else:
            b = jnp.zeros((c["cout"],), jnp.float32)
        params.append((w, b))
    return params


def cycle_d_sn_forward(x_nchw, mask, params, *, cfgs, use_sigmoid, use_mask,
                       compute_dtype=jnp.bfloat16, target_m=512):
    kw_ = 4
    pad = math.ceil((kw_ - 1) / 2)                       # = 2
    x = jnp.transpose(x_nchw, (0, 2, 3, 1)).astype(jnp.float32)   # NCHW -> NHWC
    if use_mask:
        # folded mask (plain JAX, fused by XLA with the pad / phase split / cast)
        x = x * (1.0 - mask)[..., None]
    x = x.astype(compute_dtype)
    has_bias = not use_mask
    for i, (c, (w, b)) in enumerate(zip(cfgs, params)):
        act = c["act"]
        if i == len(cfgs) - 1:
            act = "sigmoid" if use_sigmoid else "none"
        x = sn_conv_block(x, w, b, stride=c["stride"], pad=pad, use_in=c["use_in"],
                          act=act, has_bias=has_bias, compute_dtype=compute_dtype,
                          target_m=target_m)
    out = x[..., :cfgs[-1]["cout"]]                       # drop lane padding (head)
    return jnp.transpose(out, (0, 3, 1, 2)).astype(jnp.float32)   # back to NCHW


# --------------------------- pure-JAX reference ------------------------------ #
def reference_forward(x_nchw, mask, cfgs, params, use_sigmoid, use_mask):
    x = x_nchw.astype(jnp.float32)
    if use_mask:
        x = x * (1.0 - mask)[:, None, :, :]
    for i, (c, (w, b)) in enumerate(zip(cfgs, params)):
        x = jax.lax.conv_general_dilated(
            x, w, window_strides=(c["stride"], c["stride"]),
            padding=[(2, 2), (2, 2)],
            dimension_numbers=("NCHW", "OIHW", "NCHW"))
        x = x + b[None, :, None, None]
        if c["use_in"]:
            mean = jnp.mean(x, axis=(2, 3), keepdims=True)
            var = jnp.mean(jnp.square(x - mean), axis=(2, 3), keepdims=True)
            x = (x - mean) * jax.lax.rsqrt(var + 1e-5)
        act = c["act"]
        if i == len(cfgs) - 1:
            act = "sigmoid" if use_sigmoid else "none"
        if act == "lrelu":
            x = jnp.where(x >= 0.0, x, 0.2 * x)
        elif act == "sigmoid":
            x = jax.nn.sigmoid(x)
    return x


# ---------------------------------- main ------------------------------------ #
if __name__ == "__main__":
    key = jax.random.PRNGKey(0)
    N, C, H, W = 2, 4, 16, 16
    hidden_dim, n_layers = 8, 3
    use_sigmoid, use_mask = True, True

    kx, km, kp = jax.random.split(key, 3)
    x = jax.random.normal(kx, (N, C, H, W), jnp.float32)
    mask = (jax.random.uniform(km, (N, H, W)) > 0.5).astype(jnp.float32)

    cfgs = build_configs(C, hidden_dim, n_layers)
    params = init_params(kp, cfgs, use_mask)

    ref = np.asarray(reference_forward(x, mask, cfgs, params, use_sigmoid, use_mask))

    # 1) f32 internal path, tiny row tiles -> exercises multi-tile conv and the
    #    two-pass (accumulated-stats) InstanceNorm path.  Tolerance covers the
    #    TPU default matmul/conv precision of the f32 baseline.
    fwd_f32 = jax.jit(functools.partial(
        cycle_d_sn_forward, cfgs=cfgs, use_sigmoid=use_sigmoid, use_mask=use_mask,
        compute_dtype=jnp.float32, target_m=8))
    out_f32 = jax.block_until_ready(fwd_f32(x, mask, params))
    np.testing.assert_allclose(np.asarray(out_f32), ref, rtol=2e-2, atol=2e-2)

    # 2) bf16 MXU operands / bf16 inter-layer activations (the fast production
    #    config), full-sample row tiles at these tiny shapes.  Tolerance reflects
    #    bf16 operand rounding (accumulation and IN stats stay in f32).
    fwd_bf16 = jax.jit(functools.partial(
        cycle_d_sn_forward, cfgs=cfgs, use_sigmoid=use_sigmoid, use_mask=use_mask,
        compute_dtype=jnp.bfloat16, target_m=512))
    out = jax.block_until_ready(fwd_bf16(x, mask, params))
    np.testing.assert_allclose(np.asarray(out), ref, rtol=5e-2, atol=5e-2)

    # TODO(synk): normalize_weight() (spectral-norm power iteration) is a training-time
    # side path never invoked by forward(); intentionally not implemented here.
    print("KERNEL_OK")
</pallas_src>

<mosaic_0001>
module attributes {stable_mosaic.version = 11 : i64} {
  func.func @_conv_act_kernel(%arg0: i32, %arg1: i32, %arg2: memref<1x40x10x4xf32, #tpu.memory_space<vmem>>, %arg3: memref<16x4x128xf32, #tpu.memory_space<vmem>>, %arg4: memref<1x128xf32, #tpu.memory_space<vmem>>, %arg5: memref<1x1x9x128xf32, #tpu.memory_space<vmem>>) attributes {dimension_semantics = [#tpu.dimension_semantics<parallel>, #tpu.dimension_semantics<parallel>], iteration_bounds = array<i64: 2, 9>, scalar_prefetch = 0 : i64, scratch_operands = 0 : i64, tpu.core_type = #tpu.core_type<tc>, window_params = [{transform_indices = @transform_0, window_bounds = array<i64: 1, 40, 10, 4>}, {pipeline_mode = #tpu.pipeline_mode<synchronous>, transform_indices = @transform_1, window_bounds = array<i64: 16, 4, 128>}, {pipeline_mode = #tpu.pipeline_mode<synchronous>, transform_indices = @transform_2, window_bounds = array<i64: 1, 128>}, {transform_indices = @transform_3, window_bounds = array<i64: 1, 1, 9, 128>}]} {
    %c1_i32 = arith.constant 1 : i32
    %0 = arith.muli %arg1, %c1_i32 : i32
    %cst = arith.constant 0.000000e+00 : f32
    %1 = vector.broadcast %cst : f32 to vector<9x128xf32>
    %c0_i32 = arith.constant 0 : i32
    %2 = arith.addi %0, %c0_i32 : i32
    %c0 = arith.constant 0 : index
    %3 = arith.index_cast %2 : i32 to index
    %c0_0 = arith.constant 0 : index
    %c0_1 = arith.constant 0 : index
    %4 = vector.load %arg2[%c0, %3, %c0_0, %c0_1] : memref<1x40x10x4xf32, #tpu.memory_space<vmem>>, vector<1x1x9x4xf32>
    %5 = vector.shape_cast %4 : vector<1x1x9x4xf32> to vector<9x4xf32>
    %c0_2 = arith.constant 0 : index
    %c0_3 = arith.constant 0 : index
    %c0_4 = arith.constant 0 : index
    %6 = vector.load %arg3[%c0_2, %c0_3, %c0_4] : memref<16x4x128xf32, #tpu.memory_space<vmem>>, vector<1x4x128xf32>
    %7 = vector.shape_cast %6 : vector<1x4x128xf32> to vector<4x128xf32>
    %cst_5 = arith.constant dense<0.000000e+00> : vector<9x128xf32>
    %8 = tpu.matmul %5, %7, %cst_5 {dimension_numbers = #tpu.dot_dimension_numbers<[1], [0], [0], [1], [0, 0, 1, 1], [], []>} : vector<9x4xf32>, vector<4x128xf32>, vector<9x128xf32> -> vector<9x128xf32>
    %9 = arith.addf %1, %8 : vector<9x128xf32>
    %c10_i32 = arith.constant 10 : i32
    %10 = arith.addi %0, %c10_i32 : i32
    %c0_6 = arith.constant 0 : index
    %11 = arith.index_cast %10 : i32 to index
    %c0_7 = arith.constant 0 : index
    %c0_8 = arith.constant 0 : index
    %12 = vector.load %arg2[%c0_6, %11, %c0_7, %c0_8] : memref<1x40x10x4xf32, #tpu.memory_space<vmem>>, vector<1x1x9x4xf32>
    %13 = vector.shape_cast %12 : vector<1x1x9x4xf32> to vector<9x4xf32>
    %c1 = arith.constant 1 : index
    %c0_9 = arith.constant 0 : index
    %c0_10 = arith.constant 0 : index
    %14 = vector.load %arg3[%c1, %c0_9, %c0_10] : memref<16x4x128xf32, #tpu.memory_space<vmem>>, vector<1x4x128xf32>
    %15 = vector.shape_cast %14 : vector<1x4x128xf32> to vector<4x128xf32>
    %cst_11 = arith.constant dense<0.000000e+00> : vector<9x128xf32>
    %16 = tpu.matmul %13, %15, %cst_11 {dimension_numbers = #tpu.dot_dimension_numbers<[1], [0], [0], [1], [0, 0, 1, 1], [], []>} : vector<9x4xf32>, vector<4x128xf32>, vector<9x128xf32> -> vector<9x128xf32>
    %17 = arith.addf %9, %16 : vector<9x128xf32>
    %c0_i32_12 = arith.constant 0 : i32
    %18 = arith.addi %0, %c0_i32_12 : i32
    %c0_13 = arith.constant 0 : index
    %19 = arith.index_cast %18 : i32 to index
    %c1_14 = arith.constant 1 : index
    %c0_15 = arith.constant 0 : index
    %20 = vector.load %arg2[%c0_13, %19, %c1_14, %c0_15] : memref<1x40x10x4xf32, #tpu.memory_space<vmem>>, vector<1x1x9x4xf32>
    %21 = vector.shape_cast %20 : vector<1x1x9x4xf32> to vector<9x4xf32>
    %c2 = arith.constant 2 : index
    %c0_16 = arith.constant 0 : index
    %c0_17 = arith.constant 0 : index
    %22 = vector.load %arg3[%c2, %c0_16, %c0_17] : memref<16x4x128xf32, #tpu.memory_space<vmem>>, vector<1x4x128xf32>
    %23 = vector.shape_cast %22 : vector<1x4x128xf32> to vector<4x128xf32>
    %cst_18 = arith.constant dense<0.000000e+00> : vector<9x128xf32>
    %24 = tpu.matmul %21, %23, %cst_18 {dimension_numbers = #tpu.dot_dimension_numbers<[1], [0], [0], [1], [0, 0, 1, 1], [], []>} : vector<9x4xf32>, vector<4x128xf32>, vector<9x128xf32> -> vector<9x128xf32>
    %25 = arith.addf %17, %24 : vector<9x128xf32>
    %c10_i32_19 = arith.constant 10 : i32
    %26 = arith.addi %0, %c10_i32_19 : i32
    %c0_20 = arith.constant 0 : index
    %27 = arith.index_cast %26 : i32 to index
    %c1_21 = arith.constant 1 : index
    %c0_22 = arith.constant 0 : index
    %28 = vector.load %arg2[%c0_20, %27, %c1_21, %c0_22] : memref<1x40x10x4xf32, #tpu.memory_space<vmem>>, vector<1x1x9x4xf32>
    %29 = vector.shape_cast %28 : vector<1x1x9x4xf32> to vector<9x4xf32>
    %c3 = arith.constant 3 : index
    %c0_23 = arith.constant 0 : index
    %c0_24 = arith.constant 0 : index
    %30 = vector.load %arg3[%c3, %c0_23, %c0_24] : memref<16x4x128xf32, #tpu.memory_space<vmem>>, vector<1x4x128xf32>
    %31 = vector.shape_cast %30 : vector<1x4x128xf32> to vector<4x128xf32>
    %cst_25 = arith.constant dense<0.000000e+00> : vector<9x128xf32>
    %32 = tpu.matmul %29, %31, %cst_25 {dimension_numbers = #tpu.dot_dimension_numbers<[1], [0], [0], [1], [0, 0, 1, 1], [], []>} : vector<9x4xf32>, vector<4x128xf32>, vector<9x128xf32> -> vector<9x128xf32>
    %33 = arith.addf %25, %32 : vector<9x128xf32>
    %c20_i32 = arith.constant 20 : i32
    %34 = arith.addi %0, %c20_i32 : i32
    %c0_26 = arith.constant 0 : index
    %35 = arith.index_cast %34 : i32 to index
    %c0_27 = arith.constant 0 : index
    %c0_28 = arith.constant 0 : index
    %36 = vector.load %arg2[%c0_26, %35, %c0_27, %c0_28] : memref<1x40x10x4xf32, #tpu.memory_space<vmem>>, vector<1x1x9x4xf32>
    %37 = vector.shape_cast %36 : vector<1x1x9x4xf32> to vector<9x4xf32>
    %c4 = arith.constant 4 : index
    %c0_29 = arith.constant 0 : index
    %c0_30 = arith.constant 0 : index
    %38 = vector.load %arg3[%c4, %c0_29, %c0_30] : memref<16x4x128xf32, #tpu.memory_space<vmem>>, vector<1x4x128xf32>
    %39 = vector.shape_cast %38 : vector<1x4x128xf32> to vector<4x128xf32>
    %cst_31 = arith.constant dense<0.000000e+00> : vector<9x128xf32>
    %40 = tpu.matmul %37, %39, %cst_31 {dimension_numbers = #tpu.dot_dimension_numbers<[1], [0], [0], [1], [0, 0, 1, 1], [], []>} : vector<9x4xf32>, vector<4x128xf32>, vector<9x128xf32> -> vector<9x128xf32>
    %41 = arith.addf %33, %40 : vector<9x128xf32>
    %c30_i32 = arith.constant 30 : i32
    %42 = arith.addi %0, %c30_i32 : i32
    %c0_32 = arith.constant 0 : index
    %43 = arith.index_cast %42 : i32 to index
    %c0_33 = arith.constant 0 : index
    %c0_34 = arith.constant 0 : index
    %44 = vector.load %arg2[%c0_32, %43, %c0_33, %c0_34] : memref<1x40x10x4xf32, #tpu.memory_space<vmem>>, vector<1x1x9x4xf32>
    %45 = vector.shape_cast %44 : vector<1x1x9x4xf32> to vector<9x4xf32>
    %c5 = arith.constant 5 : index
    %c0_35 = arith.constant 0 : index
    %c0_36 = arith.constant 0 : index
    %46 = vector.load %arg3[%c5, %c0_35, %c0_36] : memref<16x4x128xf32, #tpu.memory_space<vmem>>, vector<1x4x128xf32>
    %47 = vector.shape_cast %46 : vector<1x4x128xf32> to vector<4x128xf32>
    %cst_37 = arith.constant dense<0.000000e+00> : vector<9x128xf32>
    %48 = tpu.matmul %45, %47, %cst_37 {dimension_numbers = #tpu.dot_dimension_numbers<[1], [0], [0], [1], [0, 0, 1, 1], [], []>} : vector<9x4xf32>, vector<4x128xf32>, vector<9x128xf32> -> vector<9x128xf32>
    %49 = arith.addf %41, %48 : vector<9x128xf32>
    %c20_i32_38 = arith.constant 20 : i32
    %50 = arith.addi %0, %c20_i32_38 : i32
    %c0_39 = arith.constant 0 : index
    %51 = arith.index_cast %50 : i32 to index
    %c1_40 = arith.constant 1 : index
    %c0_41 = arith.constant 0 : index
    %52 = vector.load %arg2[%c0_39, %51, %c1_40, %c0_41] : memref<1x40x10x4xf32, #tpu.memory_space<vmem>>, vector<1x1x9x4xf32>
    %53 = vector.shape_cast %52 : vector<1x1x9x4xf32> to vector<9x4xf32>
    %c6 = arith.constant 6 : index
    %c0_42 = arith.constant 0 : index
    %c0_43 = arith.constant 0 : index
    %54 = vector.load %arg3[%c6, %c0_42, %c0_43] : memref<16x4x128xf32, #tpu.memory_space<vmem>>, vector<1x4x128xf32>
    %55 = vector.shape_cast %54 : vector<1x4x128xf32> to vector<4x128xf32>
    %cst_44 = arith.constant dense<0.000000e+00> : vector<9x128xf32>
    %56 = tpu.matmul %53, %55, %cst_44 {dimension_numbers = #tpu.dot_dimension_numbers<[1], [0], [0], [1], [0, 0, 1, 1], [], []>} : vector<9x4xf32>, vector<4x128xf32>, vector<9x128xf32> -> vector<9x128xf32>
    %57 = arith.addf %49, %56 : vector<9x128xf32>
    %c30_i32_45 = arith.constant 30 : i32
    %58 = arith.addi %0, %c30_i32_45 : i32
    %c0_46 = arith.constant 0 : index
    %59 = arith.index_cast %58 : i32 to index
    %c1_47 = arith.constant 1 : index
    %c0_48 = arith.constant 0 : index
    %60 = vector.load %arg2[%c0_46, %59, %c1_47, %c0_48] : memref<1x40x10x4xf32, #tpu.memory_space<vmem>>, vector<1x1x9x4xf32>
    %61 = vector.shape_cast %60 : vector<1x1x9x4xf32> to vector<9x4xf32>
    %c7 = arith.constant 7 : index
    %c0_49 = arith.constant 0 : index
    %c0_50 = arith.constant 0 : index
    %62 = vector.load %arg3[%c7, %c0_49, %c0_50] : memref<16x4x128xf32, #tpu.memory_space<vmem>>, vector<1x4x128xf32>
    %63 = vector.shape_cast %62 : vector<1x4x128xf32> to vector<4x128xf32>
    %cst_51 = arith.constant dense<0.000000e+00> : vector<9x128xf32>
    %64 = tpu.matmul %61, %63, %cst_51 {dimension_numbers = #tpu.dot_dimension_numbers<[1], [0], [0], [1], [0, 0, 1, 1], [], []>} : vector<9x4xf32>, vector<4x128xf32>, vector<9x128xf32> -> vector<9x128xf32>
    %65 = arith.addf %57, %64 : vector<9x128xf32>
    %c1_i32_52 = arith.constant 1 : i32
    %66 = arith.addi %0, %c1_i32_52 : i32
    %c0_53 = arith.constant 0 : index
    %67 = arith.index_cast %66 : i32 to index
    %c0_54 = arith.constant 0 : index
    %c0_55 = arith.constant 0 : index
    %68 = vector.load %arg2[%c0_53, %67, %c0_54, %c0_55] : memref<1x40x10x4xf32, #tpu.memory_space<vmem>>, vector<1x1x9x4xf32>
    %69 = vector.shape_cast %68 : vector<1x1x9x4xf32> to vector<9x4xf32>
    %c8 = arith.constant 8 : index
    %c0_56 = arith.constant 0 : index
    %c0_57 = arith.constant 0 : index
    %70 = vector.load %arg3[%c8, %c0_56, %c0_57] : memref<16x4x128xf32, #tpu.memory_space<vmem>>, vector<1x4x128xf32>
    %71 = vector.shape_cast %70 : vector<1x4x128xf32> to vector<4x128xf32>
    %cst_58 = arith.constant dense<0.000000e+00> : vector<9x128xf32>
    %72 = tpu.matmul %69, %71, %cst_58 {dimension_numbers = #tpu.dot_dimension_numbers<[1], [0], [0], [1], [0, 0, 1, 1], [], []>} : vector<9x4xf32>, vector<4x128xf32>, vector<9x128xf32> -> vector<9x128xf32>
    %73 = arith.addf %65, %72 : vector<9x128xf32>
    %c11_i32 = arith.constant 11 : i32
    %74 = arith.addi %0, %c11_i32 : i32
    %c0_59 = arith.constant 0 : index
    %75 = arith.index_cast %74 : i32 to index
    %c0_60 = arith.constant 0 : index
    %c0_61 = arith.constant 0 : index
    %76 = vector.load %arg2[%c0_59, %75, %c0_60, %c0_61] : memref<1x40x10x4xf32, #tpu.memory_space<vmem>>, vector<1x1x9x4xf32>
    %77 = vector.shape_cast %76 : vector<1x1x9x4xf32> to vector<9x4xf32>
    %c9 = arith.constant 9 : index
    %c0_62 = arith.constant 0 : index
    %c0_63 = arith.constant 0 : index
    %78 = vector.load %arg3[%c9, %c0_62, %c0_63] : memref<16x4x128xf32, #tpu.memory_space<vmem>>, vector<1x4x128xf32>
    %79 = vector.shape_cast %78 : vector<1x4x128xf32> to vector<4x128xf32>
    %cst_64 = arith.constant dense<0.000000e+00> : vector<9x128xf32>
    %80 = tpu.matmul %77, %79, %cst_64 {dimension_numbers = #tpu.dot_dimension_numbers<[1], [0], [0], [1], [0, 0, 1, 1], [], []>} : vector<9x4xf32>, vector<4x128xf32>, vector<9x128xf32> -> vector<9x128xf32>
    %81 = arith.addf %73, %80 : vector<9x128xf32>
    %c1_i32_65 = arith.constant 1 : i32
    %82 = arith.addi %0, %c1_i32_65 : i32
    %c0_66 = arith.constant 0 : index
    %83 = arith.index_cast %82 : i32 to index
    %c1_67 = arith.constant 1 : index
    %c0_68 = arith.constant 0 : index
    %84 = vector.load %arg2[%c0_66, %83, %c1_67, %c0_68] : memref<1x40x10x4xf32, #tpu.memory_space<vmem>>, vector<1x1x9x4xf32>
    %85 = vector.shape_cast %84 : vector<1x1x9x4xf32> to vector<9x4xf32>
    %c10 = arith.constant 10 : index
    %c0_69 = arith.constant 0 : index
    %c0_70 = arith.constant 0 : index
    %86 = vector.load %arg3[%c10, %c0_69, %c0_70] : memref<16x4x128xf32, #tpu.memory_space<vmem>>, vector<1x4x128xf32>
    %87 = vector.shape_cast %86 : vector<1x4x128xf32> to vector<4x128xf32>
    %cst_71 = arith.constant dense<0.000000e+00> : vector<9x128xf32>
    %88 = tpu.matmul %85, %87, %cst_71 {dimension_numbers = #tpu.dot_dimension_numbers<[1], [0], [0], [1], [0, 0, 1, 1], [], []>} : vector<9x4xf32>, vector<4x128xf32>, vector<9x128xf32> -> vector<9x128xf32>
    %89 = arith.addf %81, %88 : vector<9x128xf32>
    %c11_i32_72 = arith.constant 11 : i32
    %90 = arith.addi %0, %c11_i32_72 : i32
    %c0_73 = arith.constant 0 : index
    %91 = arith.index_cast %90 : i32 to index
    %c1_74 = arith.constant 1 : index
    %c0_75 = arith.constant 0 : index
    %92 = vector.load %arg2[%c0_73, %91, %c1_74, %c0_75] : memref<1x40x10x4xf32, #tpu.memory_space<vmem>>, vector<1x1x9x4xf32>
    %93 = vector.shape_cast %92 : vector<1x1x9x4xf32> to vector<9x4xf32>
    %c11 = arith.constant 11 : index
    %c0_76 = arith.constant 0 : index
    %c0_77 = arith.constant 0 : index
    %94 = vector.load %arg3[%c11, %c0_76, %c0_77] : memref<16x4x128xf32, #tpu.memory_space<vmem>>, vector<1x4x128xf32>
    %95 = vector.shape_cast %94 : vector<1x4x128xf32> to vector<4x128xf32>
    %cst_78 = arith.constant dense<0.000000e+00> : vector<9x128xf32>
    %96 = tpu.matmul %93, %95, %cst_78 {dimension_numbers = #tpu.dot_dimension_numbers<[1], [0], [0], [1], [0, 0, 1, 1], [], []>} : vector<9x4xf32>, vector<4x128xf32>, vector<9x128xf32> -> vector<9x128xf32>
    %97 = arith.addf %89, %96 : vector<9x128xf32>
    %c21_i32 = arith.constant 21 : i32
    %98 = arith.addi %0, %c21_i32 : i32
    %c0_79 = arith.constant 0 : index
    %99 = arith.index_cast %98 : i32 to index
    %c0_80 = arith.constant 0 : index
    %c0_81 = arith.constant 0 : index
    %100 = vector.load %arg2[%c0_79, %99, %c0_80, %c0_81] : memref<1x40x10x4xf32, #tpu.memory_space<vmem>>, vector<1x1x9x4xf32>
    %101 = vector.shape_cast %100 : vector<1x1x9x4xf32> to vector<9x4xf32>
    %c12 = arith.constant 12 : index
    %c0_82 = arith.constant 0 : index
    %c0_83 = arith.constant 0 : index
    %102 = vector.load %arg3[%c12, %c0_82, %c0_83] : memref<16x4x128xf32, #tpu.memory_space<vmem>>, vector<1x4x128xf32>
    %103 = vector.shape_cast %102 : vector<1x4x128xf32> to vector<4x128xf32>
    %cst_84 = arith.constant dense<0.000000e+00> : vector<9x128xf32>
    %104 = tpu.matmul %101, %103, %cst_84 {dimension_numbers = #tpu.dot_dimension_numbers<[1], [0], [0], [1], [0, 0, 1, 1], [], []>} : vector<9x4xf32>, vector<4x128xf32>, vector<9x128xf32> -> vector<9x128xf32>
    %105 = arith.addf %97, %104 : vector<9x128xf32>
    %c31_i32 = arith.constant 31 : i32
    %106 = arith.addi %0, %c31_i32 : i32
    %c0_85 = arith.constant 0 : index
    %107 = arith.index_cast %106 : i32 to index
    %c0_86 = arith.constant 0 : index
    %c0_87 = arith.constant 0 : index
    %108 = vector.load %arg2[%c0_85, %107, %c0_86, %c0_87] : memref<1x40x10x4xf32, #tpu.memory_space<vmem>>, vector<1x1x9x4xf32>
    %109 = vector.shape_cast %108 : vector<1x1x9x4xf32> to vector<9x4xf32>
    %c13 = arith.constant 13 : index
    %c0_88 = arith.constant 0 : index
    %c0_89 = arith.constant 0 : index
    %110 = vector.load %arg3[%c13, %c0_88, %c0_89] : memref<16x4x128xf32, #tpu.memory_space<vmem>>, vector<1x4x128xf32>
    %111 = vector.shape_cast %110 : vector<1x4x128xf32> to vector<4x128xf32>
    %cst_90 = arith.constant dense<0.000000e+00> : vector<9x128xf32>
    %112 = tpu.matmul %109, %111, %cst_90 {dimension_numbers = #tpu.dot_dimension_numbers<[1], [0], [0], [1], [0, 0, 1, 1], [], []>} : vector<9x4xf32>, vector<4x128xf32>, vector<9x128xf32> -> vector<9x128xf32>
    %113 = arith.addf %105, %112 : vector<9x128xf32>
    %c21_i32_91 = arith.constant 21 : i32
    %114 = arith.addi %0, %c21_i32_91 : i32
    %c0_92 = arith.constant 0 : index
    %115 = arith.index_cast %114 : i32 to index
    %c1_93 = arith.constant 1 : index
    %c0_94 = arith.constant 0 : index
    %116 = vector.load %arg2[%c0_92, %115, %c1_93, %c0_94] : memref<1x40x10x4xf32, #tpu.memory_space<vmem>>, vector<1x1x9x4xf32>
    %117 = vector.shape_cast %116 : vector<1x1x9x4xf32> to vector<9x4xf32>
    %c14 = arith.constant 14 : index
    %c0_95 = arith.constant 0 : index
    %c0_96 = arith.constant 0 : index
    %118 = vector.load %arg3[%c14, %c0_95, %c0_96] : memref<16x4x128xf32, #tpu.memory_space<vmem>>, vector<1x4x128xf32>
    %119 = vector.shape_cast %118 : vector<1x4x128xf32> to vector<4x128xf32>
    %cst_97 = arith.constant dense<0.000000e+00> : vector<9x128xf32>
    %120 = tpu.matmul %117, %119, %cst_97 {dimension_numbers = #tpu.dot_dimension_numbers<[1], [0], [0], [1], [0, 0, 1, 1], [], []>} : vector<9x4xf32>, vector<4x128xf32>, vector<9x128xf32> -> vector<9x128xf32>
    %121 = arith.addf %113, %120 : vector<9x128xf32>
    %c31_i32_98 = arith.constant 31 : i32
    %122 = arith.addi %0, %c31_i32_98 : i32
    %c0_99 = arith.constant 0 : index
    %123 = arith.index_cast %122 : i32 to index
    %c1_100 = arith.constant 1 : index
    %c0_101 = arith.constant 0 : index
    %124 = vector.load %arg2[%c0_99, %123, %c1_100, %c0_101] : memref<1x40x10x4xf32, #tpu.memory_space<vmem>>, vector<1x1x9x4xf32>
    %125 = vector.shape_cast %124 : vector<1x1x9x4xf32> to vector<9x4xf32>
    %c15 = arith.constant 15 : index
    %c0_102 = arith.constant 0 : index
    %c0_103 = arith.constant 0 : index
    %126 = vector.load %arg3[%c15, %c0_102, %c0_103] : memref<16x4x128xf32, #tpu.memory_space<vmem>>, vector<1x4x128xf32>
    %127 = vector.shape_cast %126 : vector<1x4x128xf32> to vector<4x128xf32>
    %cst_104 = arith.constant dense<0.000000e+00> : vector<9x128xf32>
    %128 = tpu.matmul %125, %127, %cst_104 {dimension_numbers = #tpu.dot_dimension_numbers<[1], [0], [0], [1], [0, 0, 1, 1], [], []>} : vector<9x4xf32>, vector<4x128xf32>, vector<9x128xf32> -> vector<9x128xf32>
    %129 = arith.addf %121, %128 : vector<9x128xf32>
    %cst_105 = arith.constant 0.000000e+00 : f32
    %130 = vector.broadcast %cst_105 : f32 to vector<9x128xf32>
    %131 = arith.cmpf oge, %129, %130 : vector<9x128xf32>
    %cst_106 = arith.constant 2.000000e-01 : f32
    %132 = vector.broadcast %cst_106 : f32 to vector<9x128xf32>
    %133 = arith.mulf %132, %129 : vector<9x128xf32>
    %134 = arith.select %131, %129, %133 : vector<9x128xi1>, vector<9x128xf32>
    %135 = vector.shape_cast %134 : vector<9x128xf32> to vector<1x1x9x128xf32>
    %c0_107 = arith.constant 0 : index
    %c0_108 = arith.constant 0 : index
    %c0_109 = arith.constant 0 : index
    %c0_110 = arith.constant 0 : index
    %136 = vector.load %arg5[%c0_107, %c0_108, %c0_109, %c0_110] : memref<1x1x9x128xf32, #tpu.memory_space<vmem>>, vector<1x1x9x128xf32>
    tpu.vector_store %arg5[%c0_107, %c0_108, %c0_109, %c0_110], %135 {strides = array<i32>} : memref<1x1x9x128xf32, #tpu.memory_space<vmem>>, vector<1x1x9x128xf32>,
    return
  }
  func.func @transform_0(%arg0: i32, %arg1: i32) -> (i32, i32, i32, i32) {
    %c0_i32 = arith.constant 0 : i32
    %c0_i32_0 = arith.constant 0 : i32
    %c0_i32_1 = arith.constant 0 : i32
    %c0_i32_2 = arith.constant 0 : i32
    return %arg0, %c0_i32, %c0_i32_0, %c0_i32_1 : i32, i32, i32, i32
  }
  func.func @transform_1(%arg0: i32, %arg1: i32) -> (i32, i32, i32) {
    %c0_i32 = arith.constant 0 : i32
    %c0_i32_0 = arith.constant 0 : i32
    %c0_i32_1 = arith.constant 0 : i32
    %c0_i32_2 = arith.constant 0 : i32
    return %c0_i32, %c0_i32_0, %c0_i32_1 : i32, i32, i32
  }
  func.func @transform_2(%arg0: i32, %arg1: i32) -> (i32, i32) {
    %c0_i32 = arith.constant 0 : i32
    %c0_i32_0 = arith.constant 0 : i32
    %c0_i32_1 = arith.constant 0 : i32
    return %c0_i32, %c0_i32_0 : i32, i32
  }
  func.func @transform_3(%arg0: i32, %arg1: i32) -> (i32, i32, i32, i32) {
    %c0_i32 = arith.constant 0 : i32
    %c0_i32_0 = arith.constant 0 : i32
    %c0_i32_1 = arith.constant 0 : i32
    return %arg0, %arg1, %c0_i32, %c0_i32_0 : i32, i32, i32, i32
  }
}

module attributes {stable_mosaic.version = 11 : i64} {
  func.func @_conv_stats_kernel(%arg0: i32, %arg1: i32, %arg2: memref<1x28x7x128xf32, #tpu.memory_space<vmem>>, %arg3: memref<16x128x128xf32, #tpu.memory_space<vmem>>, %arg4: memref<1x128xf32, #tpu.memory_space<vmem>>, %arg5: memref<1x1x5x128xf32, #tpu.memory_space<vmem>>, %arg6: memref<1x1x128xf32, #tpu.memory_space<vmem>>, %arg7: memref<1x1x128xf32, #tpu.memory_space<vmem>>) attributes {dimension_semantics = [#tpu.dimension_semantics<parallel>, #tpu.dimension_semantics<arbitrary>], iteration_bounds = array<i64: 2, 5>, scalar_prefetch = 0 : i64, scratch_operands = 0 : i64, tpu.core_type = #tpu.core_type<tc>, window_params = [{transform_indices = @transform_0, window_bounds = array<i64: 1, 28, 7, 128>}, {pipeline_mode = #tpu.pipeline_mode<synchronous>, transform_indices = @transform_1, window_bounds = array<i64: 16, 128, 128>}, {pipeline_mode = #tpu.pipeline_mode<synchronous>, transform_indices = @transform_2, window_bounds = array<i64: 1, 128>}, {transform_indices = @transform_3, window_bounds = array<i64: 1, 1, 5, 128>}, {transform_indices = @transform_4, window_bounds = array<i64: 1, 1, 128>}, {transform_indices = @transform_5, window_bounds = array<i64: 1, 1, 128>}]} {
    %c1_i32 = arith.constant 1 : i32
    %0 = arith.muli %arg1, %c1_i32 : i32
    %cst = arith.constant 0.000000e+00 : f32
    %1 = vector.broadcast %cst : f32 to vector<5x128xf32>
    %c0_i32 = arith.constant 0 : i32
    %2 = arith.addi %0, %c0_i32 : i32
    %c0 = arith.constant 0 : index
    %3 = arith.index_cast %2 : i32 to index
    %c0_0 = arith.constant 0 : index
    %c0_1 = arith.constant 0 : index
    %4 = vector.load %arg2[%c0, %3, %c0_0, %c0_1] : memref<1x28x7x128xf32, #tpu.memory_space<vmem>>, vector<1x1x5x128xf32>
    %5 = vector.shape_cast %4 : vector<1x1x5x128xf32> to vector<5x128xf32>
    %c0_2 = arith.constant 0 : index
    %c0_3 = arith.constant 0 : index
    %c0_4 = arith.constant 0 : index
    %6 = vector.load %arg3[%c0_2, %c0_3, %c0_4] : memref<16x128x128xf32, #tpu.memory_space<vmem>>, vector<1x128x128xf32>
    %7 = vector.shape_cast %6 : vector<1x128x128xf32> to vector<128x128xf32>
    %cst_5 = arith.constant dense<0.000000e+00> : vector<5x128xf32>
    %8 = tpu.matmul %5, %7, %cst_5 {dimension_numbers = #tpu.dot_dimension_numbers<[1], [0], [0], [1], [0, 0, 1, 1], [], []>} : vector<5x128xf32>, vector<128x128xf32>, vector<5x128xf32> -> vector<5x128xf32>
    %9 = arith.addf %1, %8 : vector<5x128xf32>
    %c7_i32 = arith.constant 7 : i32
    %10 = arith.addi %0, %c7_i32 : i32
    %c0_6 = arith.constant 0 : index
    %11 = arith.index_cast %10 : i32 to index
    %c0_7 = arith.constant 0 : index
    %c0_8 = arith.constant 0 : index
    %12 = vector.load %arg2[%c0_6, %11, %c0_7, %c0_8] : memref<1x28x7x128xf32, #tpu.memory_space<vmem>>, vector<1x1x5x128xf32>
    %13 = vector.shape_cast %12 : vector<1x1x5x128xf32> to vector<5x128xf32>
    %c1 = arith.constant 1 : index
    %c0_9 = arith.constant 0 : index
    %c0_10 = arith.constant 0 : index
    %14 = vector.load %arg3[%c1, %c0_9, %c0_10] : memref<16x128x128xf32, #tpu.memory_space<vmem>>, vector<1x128x128xf32>
    %15 = vector.shape_cast %14 : vector<1x128x128xf32> to vector<128x128xf32>
    %cst_11 = arith.constant dense<0.000000e+00> : vector<5x128xf32>
    %16 = tpu.matmul %13, %15, %cst_11 {dimension_numbers = #tpu.dot_dimension_numbers<[1], [0], [0], [1], [0, 0, 1, 1], [], []>} : vector<5x128xf32>, vector<128x128xf32>, vector<5x128xf32> -> vector<5x128xf32>
    %17 = arith.addf %9, %16 : vector<5x128xf32>
    %c0_i32_12 = arith.constant 0 : i32
    %18 = arith.addi %0, %c0_i32_12 : i32
    %c0_13 = arith.constant 0 : index
    %19 = arith.index_cast %18 : i32 to index
    %c1_14 = arith.constant 1 : index
    %c0_15 = arith.constant 0 : index
    %20 = vector.load %arg2[%c0_13, %19, %c1_14, %c0_15] : memref<1x28x7x128xf32, #tpu.memory_space<vmem>>, vector<1x1x5x128xf32>
    %21 = vector.shape_cast %20 : vector<1x1x5x128xf32> to vector<5x128xf32>
    %c2 = arith.constant 2 : index
    %c0_16 = arith.constant 0 : index
    %c0_17 = arith.constant 0 : index
    %22 = vector.load %arg3[%c2, %c0_16, %c0_17] : memref<16x128x128xf32, #tpu.memory_space<vmem>>, vector<1x128x128xf32>
    %23 = vector.shape_cast %22 : vector<1x128x128xf32> to vector<128x128xf32>
    %cst_18 = arith.constant dense<0.000000e+00> : vector<5x128xf32>
    %24 = tpu.matmul %21, %23, %cst_18 {dimension_numbers = #tpu.dot_dimension_numbers<[1], [0], [0], [1], [0, 0, 1, 1], [], []>} : vector<5x128xf32>, vector<128x128xf32>, vector<5x128xf32> -> vector<5x128xf32>
    %25 = arith.addf %17, %24 : vector<5x128xf32>
    %c7_i32_19 = arith.constant 7 : i32
    %26 = arith.addi %0, %c7_i32_19 : i32
    %c0_20 = arith.constant 0 : index
    %27 = arith.index_cast %26 : i32 to index
    %c1_21 = arith.constant 1 : index
    %c0_22 = arith.constant 0 : index
    %28 = vector.load %arg2[%c0_20, %27, %c1_21, %c0_22] : memref<1x28x7x128xf32, #tpu.memory_space<vmem>>, vector<1x1x5x128xf32>
    %29 = vector.shape_cast %28 : vector<1x1x5x128xf32> to vector<5x128xf32>
    %c3 = arith.constant 3 : index
    %c0_23 = arith.constant 0 : index
    %c0_24 = arith.constant 0 : index
    %30 = vector.load %arg3[%c3, %c0_23, %c0_24] : memref<16x128x128xf32, #tpu.memory_space<vmem>>, vector<1x128x128xf32>
    %31 = vector.shape_cast %30 : vector<1x128x128xf32> to vector<128x128xf32>
    %cst_25 = arith.constant dense<0.000000e+00> : vector<5x128xf32>
    %32 = tpu.matmul %29, %31, %cst_25 {dimension_numbers = #tpu.dot_dimension_numbers<[1], [0], [0], [1], [0, 0, 1, 1], [], []>} : vector<5x128xf32>, vector<128x128xf32>, vector<5x128xf32> -> vector<5x128xf32>
    %33 = arith.addf %25, %32 : vector<5x128xf32>
    %c14_i32 = arith.constant 14 : i32
    %34 = arith.addi %0, %c14_i32 : i32
    %c0_26 = arith.constant 0 : index
    %35 = arith.index_cast %34 : i32 to index
    %c0_27 = arith.constant 0 : index
    %c0_28 = arith.constant 0 : index
    %36 = vector.load %arg2[%c0_26, %35, %c0_27, %c0_28] : memref<1x28x7x128xf32, #tpu.memory_space<vmem>>, vector<1x1x5x128xf32>
    %37 = vector.shape_cast %36 : vector<1x1x5x128xf32> to vector<5x128xf32>
    %c4 = arith.constant 4 : index
    %c0_29 = arith.constant 0 : index
    %c0_30 = arith.constant 0 : index
    %38 = vector.load %arg3[%c4, %c0_29, %c0_30] : memref<16x128x128xf32, #tpu.memory_space<vmem>>, vector<1x128x128xf32>
    %39 = vector.shape_cast %38 : vector<1x128x128xf32> to vector<128x128xf32>
    %cst_31 = arith.constant dense<0.000000e+00> : vector<5x128xf32>
    %40 = tpu.matmul %37, %39, %cst_31 {dimension_numbers = #tpu.dot_dimension_numbers<[1], [0], [0], [1], [0, 0, 1, 1], [], []>} : vector<5x128xf32>, vector<128x128xf32>, vector<5x128xf32> -> vector<5x128xf32>
    %41 = arith.addf %33, %40 : vector<5x128xf32>
    %c21_i32 = arith.constant 21 : i32
    %42 = arith.addi %0, %c21_i32 : i32
    %c0_32 = arith.constant 0 : index
    %43 = arith.index_cast %42 : i32 to index
    %c0_33 = arith.constant 0 : index
    %c0_34 = arith.constant 0 : index
    %44 = vector.load %arg2[%c0_32, %43, %c0_33, %c0_34] : memref<1x28x7x128xf32, #tpu.memory_space<vmem>>, vector<1x1x5x128xf32>
    %45 = vector.shape_cast %44 : vector<1x1x5x128xf32> to vector<5x128xf32>
    %c5 = arith.constant 5 : index
    %c0_35 = arith.constant 0 : index
    %c0_36 = arith.constant 0 : index
    %46 = vector.load %arg3[%c5, %c0_35, %c0_36] : memref<16x128x128xf32, #tpu.memory_space<vmem>>, vector<1x128x128xf32>
    %47 = vector.shape_cast %46 : vector<1x128x128xf32> to vector<128x128xf32>
    %cst_37 = arith.constant dense<0.000000e+00> : vector<5x128xf32>
    %48 = tpu.matmul %45, %47, %cst_37 {dimension_numbers = #tpu.dot_dimension_numbers<[1], [0], [0], [1], [0, 0, 1, 1], [], []>} : vector<5x128xf32>, vector<128x128xf32>, vector<5x128xf32> -> vector<5x128xf32>
    %49 = arith.addf %41, %48 : vector<5x128xf32>
    %c14_i32_38 = arith.constant 14 : i32
    %50 = arith.addi %0, %c14_i32_38 : i32
    %c0_39 = arith.constant 0 : index
    %51 = arith.index_cast %50 : i32 to index
    %c1_40 = arith.constant 1 : index
    %c0_41 = arith.constant 0 : index
    %52 = vector.load %arg2[%c0_39, %51, %c1_40, %c0_41] : memref<1x28x7x128xf32, #tpu.memory_space<vmem>>, vector<1x1x5x128xf32>
    %53 = vector.shape_cast %52 : vector<1x1x5x128xf32> to vector<5x128xf32>
    %c6 = arith.constant 6 : index
    %c0_42 = arith.constant 0 : index
    %c0_43 = arith.constant 0 : index
    %54 = vector.load %arg3[%c6, %c0_42, %c0_43] : memref<16x128x128xf32, #tpu.memory_space<vmem>>, vector<1x128x128xf32>
    %55 = vector.shape_cast %54 : vector<1x128x128xf32> to vector<128x128xf32>
    %cst_44 = arith.constant dense<0.000000e+00> : vector<5x128xf32>
    %56 = tpu.matmul %53, %55, %cst_44 {dimension_numbers = #tpu.dot_dimension_numbers<[1], [0], [0], [1], [0, 0, 1, 1], [], []>} : vector<5x128xf32>, vector<128x128xf32>, vector<5x128xf32> -> vector<5x128xf32>
    %57 = arith.addf %49, %56 : vector<5x128xf32>
    %c21_i32_45 = arith.constant 21 : i32
    %58 = arith.addi %0, %c21_i32_45 : i32
    %c0_46 = arith.constant 0 : index
    %59 = arith.index_cast %58 : i32 to index
    %c1_47 = arith.constant 1 : index
    %c0_48 = arith.constant 0 : index
    %60 = vector.load %arg2[%c0_46, %59, %c1_47, %c0_48] : memref<1x28x7x128xf32, #tpu.memory_space<vmem>>, vector<1x1x5x128xf32>
    %61 = vector.shape_cast %60 : vector<1x1x5x128xf32> to vector<5x128xf32>
    %c7 = arith.constant 7 : index
    %c0_49 = arith.constant 0 : index
    %c0_50 = arith.constant 0 : index
    %62 = vector.load %arg3[%c7, %c0_49, %c0_50] : memref<16x128x128xf32, #tpu.memory_space<vmem>>, vector<1x128x128xf32>
    %63 = vector.shape_cast %62 : vector<1x128x128xf32> to vector<128x128xf32>
    %cst_51 = arith.constant dense<0.000000e+00> : vector<5x128xf32>
    %64 = tpu.matmul %61, %63, %cst_51 {dimension_numbers = #tpu.dot_dimension_numbers<[1], [0], [0], [1], [0, 0, 1, 1], [], []>} : vector<5x128xf32>, vector<128x128xf32>, vector<5x128xf32> -> vector<5x128xf32>
    %65 = arith.addf %57, %64 : vector<5x128xf32>
    %c1_i32_52 = arith.constant 1 : i32
    %66 = arith.addi %0, %c1_i32_52 : i32
    %c0_53 = arith.constant 0 : index
    %67 = arith.index_cast %66 : i32 to index
    %c0_54 = arith.constant 0 : index
    %c0_55 = arith.constant 0 : index
    %68 = vector.load %arg2[%c0_53, %67, %c0_54, %c0_55] : memref<1x28x7x128xf32, #tpu.memory_space<vmem>>, vector<1x1x5x128xf32>
    %69 = vector.shape_cast %68 : vector<1x1x5x128xf32> to vector<5x128xf32>
    %c8 = arith.constant 8 : index
    %c0_56 = arith.constant 0 : index
    %c0_57 = arith.constant 0 : index
    %70 = vector.load %arg3[%c8, %c0_56, %c0_57] : memref<16x128x128xf32, #tpu.memory_space<vmem>>, vector<1x128x128xf32>
    %71 = vector.shape_cast %70 : vector<1x128x128xf32> to vector<128x128xf32>
    %cst_58 = arith.constant dense<0.000000e+00> : vector<5x128xf32>
    %72 = tpu.matmul %69, %71, %cst_58 {dimension_numbers = #tpu.dot_dimension_numbers<[1], [0], [0], [1], [0, 0, 1, 1], [], []>} : vector<5x128xf32>, vector<128x128xf32>, vector<5x128xf32> -> vector<5x128xf32>
    %73 = arith.addf %65, %72 : vector<5x128xf32>
    %c8_i32 = arith.constant 8 : i32
    %74 = arith.addi %0, %c8_i32 : i32
    %c0_59 = arith.constant 0 : index
    %75 = arith.index_cast %74 : i32 to index
    %c0_60 = arith.constant 0 : index
    %c0_61 = arith.constant 0 : index
    %76 = vector.load %arg2[%c0_59, %75, %c0_60, %c0_61] : memref<1x28x7x128xf32, #tpu.memory_space<vmem>>, vector<1x1x5x128xf32>
    %77 = vector.shape_cast %76 : vector<1x1x5x128xf32> to vector<5x128xf32>
    %c9 = arith.constant 9 : index
    %c0_62 = arith.constant 0 : index
    %c0_63 = arith.constant 0 : index
    %78 = vector.load %arg3[%c9, %c0_62, %c0_63] : memref<16x128x128xf32, #tpu.memory_space<vmem>>, vector<1x128x128xf32>
    %79 = vector.shape_cast %78 : vector<1x128x128xf32> to vector<128x128xf32>
    %cst_64 = arith.constant dense<0.000000e+00> : vector<5x128xf32>
    %80 = tpu.matmul %77, %79, %cst_64 {dimension_numbers = #tpu.dot_dimension_numbers<[1], [0], [0], [1], [0, 0, 1, 1], [], []>} : vector<5x128xf32>, vector<128x128xf32>, vector<5x128xf32> -> vector<5x128xf32>
    %81 = arith.addf %73, %80 : vector<5x128xf32>
    %c1_i32_65 = arith.constant 1 : i32
    %82 = arith.addi %0, %c1_i32_65 : i32
    %c0_66 = arith.constant 0 : index
    %83 = arith.index_cast %82 : i32 to index
    %c1_67 = arith.constant 1 : index
    %c0_68 = arith.constant 0 : index
    %84 = vector.load %arg2[%c0_66, %83, %c1_67, %c0_68] : memref<1x28x7x128xf32, #tpu.memory_space<vmem>>, vector<1x1x5x128xf32>
    %85 = vector.shape_cast %84 : vector<1x1x5x128xf32> to vector<5x128xf32>
    %c10 = arith.constant 10 : index
    %c0_69 = arith.constant 0 : index
    %c0_70 = arith.constant 0 : index
    %86 = vector.load %arg3[%c10, %c0_69, %c0_70] : memref<16x128x128xf32, #tpu.memory_space<vmem>>, vector<1x128x128xf32>
    %87 = vector.shape_cast %86 : vector<1x128x128xf32> to vector<128x128xf32>
    %cst_71 = arith.constant dense<0.000000e+00> : vector<5x128xf32>
    %88 = tpu.matmul %85, %87, %cst_71 {dimension_numbers = #tpu.dot_dimension_numbers<[1], [0], [0], [1], [0, 0, 1, 1], [], []>} : vector<5x128xf32>, vector<128x128xf32>, vector<5x128xf32> -> vector<5x128xf32>
    %89 = arith.addf %81, %88 : vector<5x128xf32>
    %c8_i32_72 = arith.constant 8 : i32
    %90 = arith.addi %0, %c8_i32_72 : i32
    %c0_73 = arith.constant 0 : index
    %91 = arith.index_cast %90 : i32 to index
    %c1_74 = arith.constant 1 : index
    %c0_75 = arith.constant 0 : index
    %92 = vector.load %arg2[%c0_73, %91, %c1_74, %c0_75] : memref<1x28x7x128xf32, #tpu.memory_space<vmem>>, vector<1x1x5x128xf32>
    %93 = vector.shape_cast %92 : vector<1x1x5x128xf32> to vector<5x128xf32>
    %c11 = arith.constant 11 : index
    %c0_76 = arith.constant 0 : index
    %c0_77 = arith.constant 0 : index
    %94 = vector.load %arg3[%c11, %c0_76, %c0_77] : memref<16x128x128xf32, #tpu.memory_space<vmem>>, vector<1x128x128xf32>
    %95 = vector.shape_cast %94 : vector<1x128x128xf32> to vector<128x128xf32>
    %cst_78 = arith.constant dense<0.000000e+00> : vector<5x128xf32>
    %96 = tpu.matmul %93, %95, %cst_78 {dimension_numbers = #tpu.dot_dimension_numbers<[1], [0], [0], [1], [0, 0, 1, 1], [], []>} : vector<5x128xf32>, vector<128x128xf32>, vector<5x128xf32> -> vector<5x128xf32>
    %97 = arith.addf %89, %96 : vector<5x128xf32>
    %c15_i32 = arith.constant 15 : i32
    %98 = arith.addi %0, %c15_i32 : i32
    %c0_79 = arith.constant 0 : index
    %99 = arith.index_cast %98 : i32 to index
    %c0_80 = arith.constant 0 : index
    %c0_81 = arith.constant 0 : index
    %100 = vector.load %arg2[%c0_79, %99, %c0_80, %c0_81] : memref<1x28x7x128xf32, #tpu.memory_space<vmem>>, vector<1x1x5x128xf32>
    %101 = vector.shape_cast %100 : vector<1x1x5x128xf32> to vector<5x128xf32>
    %c12 = arith.constant 12 : index
    %c0_82 = arith.constant 0 : index
    %c0_83 = arith.constant 0 : index
    %102 = vector.load %arg3[%c12, %c0_82, %c0_83] : memref<16x128x128xf32, #tpu.memory_space<vmem>>, vector<1x128x128xf32>
    %103 = vector.shape_cast %102 : vector<1x128x128xf32> to vector<128x128xf32>
    %cst_84 = arith.constant dense<0.000000e+00> : vector<5x128xf32>
    %104 = tpu.matmul %101, %103, %cst_84 {dimension_numbers = #tpu.dot_dimension_numbers<[1], [0], [0], [1], [0, 0, 1, 1], [], []>} : vector<5x128xf32>, vector<128x128xf32>, vector<5x128xf32> -> vector<5x128xf32>
    %105 = arith.addf %97, %104 : vector<5x128xf32>
    %c22_i32 = arith.constant 22 : i32
    %106 = arith.addi %0, %c22_i32 : i32
    %c0_85 = arith.constant 0 : index
    %107 = arith.index_cast %106 : i32 to index
    %c0_86 = arith.constant 0 : index
    %c0_87 = arith.constant 0 : index
    %108 = vector.load %arg2[%c0_85, %107, %c0_86, %c0_87] : memref<1x28x7x128xf32, #tpu.memory_space<vmem>>, vector<1x1x5x128xf32>
    %109 = vector.shape_cast %108 : vector<1x1x5x128xf32> to vector<5x128xf32>
    %c13 = arith.constant 13 : index
    %c0_88 = arith.constant 0 : index
    %c0_89 = arith.constant 0 : index
    %110 = vector.load %arg3[%c13, %c0_88, %c0_89] : memref<16x128x128xf32, #tpu.memory_space<vmem>>, vector<1x128x128xf32>
    %111 = vector.shape_cast %110 : vector<1x128x128xf32> to vector<128x128xf32>
    %cst_90 = arith.constant dense<0.000000e+00> : vector<5x128xf32>
    %112 = tpu.matmul %109, %111, %cst_90 {dimension_numbers = #tpu.dot_dimension_numbers<[1], [0], [0], [1], [0, 0, 1, 1], [], []>} : vector<5x128xf32>, vector<128x128xf32>, vector<5x128xf32> -> vector<5x128xf32>
    %113 = arith.addf %105, %112 : vector<5x128xf32>
    %c15_i32_91 = arith.constant 15 : i32
    %114 = arith.addi %0, %c15_i32_91 : i32
    %c0_92 = arith.constant 0 : index
    %115 = arith.index_cast %114 : i32 to index
    %c1_93 = arith.constant 1 : index
    %c0_94 = arith.constant 0 : index
    %116 = vector.load %arg2[%c0_92, %115, %c1_93, %c0_94] : memref<1x28x7x128xf32, #tpu.memory_space<vmem>>, vector<1x1x5x128xf32>
    %117 = vector.shape_cast %116 : vector<1x1x5x128xf32> to vector<5x128xf32>
    %c14 = arith.constant 14 : index
    %c0_95 = arith.constant 0 : index
    %c0_96 = arith.constant 0 : index
    %118 = vector.load %arg3[%c14, %c0_95, %c0_96] : memref<16x128x128xf32, #tpu.memory_space<vmem>>, vector<1x128x128xf32>
    %119 = vector.shape_cast %118 : vector<1x128x128xf32> to vector<128x128xf32>
    %cst_97 = arith.constant dense<0.000000e+00> : vector<5x128xf32>
    %120 = tpu.matmul %117, %119, %cst_97 {dimension_numbers = #tpu.dot_dimension_numbers<[1], [0], [0], [1], [0, 0, 1, 1], [], []>} : vector<5x128xf32>, vector<128x128xf32>, vector<5x128xf32> -> vector<5x128xf32>
    %121 = arith.addf %113, %120 : vector<5x128xf32>
    %c22_i32_98 = arith.constant 22 : i32
    %122 = arith.addi %0, %c22_i32_98 : i32
    %c0_99 = arith.constant 0 : index
    %123 = arith.index_cast %122 : i32 to index
    %c1_100 = arith.constant 1 : index
    %c0_101 = arith.constant 0 : index
    %124 = vector.load %arg2[%c0_99, %123, %c1_100, %c0_101] : memref<1x28x7x128xf32, #tpu.memory_space<vmem>>, vector<1x1x5x128xf32>
    %125 = vector.shape_cast %124 : vector<1x1x5x128xf32> to vector<5x128xf32>
    %c15 = arith.constant 15 : index
    %c0_102 = arith.constant 0 : index
    %c0_103 = arith.constant 0 : index
    %126 = vector.load %arg3[%c15, %c0_102, %c0_103] : memref<16x128x128xf32, #tpu.memory_space<vmem>>, vector<1x128x128xf32>
    %127 = vector.shape_cast %126 : vector<1x128x128xf32> to vector<128x128xf32>
    %cst_104 = arith.constant dense<0.000000e+00> : vector<5x128xf32>
    %128 = tpu.matmul %125, %127, %cst_104 {dimension_numbers = #tpu.dot_dimension_numbers<[1], [0], [0], [1], [0, 0, 1, 1], [], []>} : vector<5x128xf32>, vector<128x128xf32>, vector<5x128xf32> -> vector<5x128xf32>
    %129 = arith.addf %121, %128 : vector<5x128xf32>
    %130 = vector.shape_cast %129 : vector<5x128xf32> to vector<1x1x5x128xf32>
    %c0_105 = arith.constant 0 : index
    %c0_106 = arith.constant 0 : index
    %c0_107 = arith.constant 0 : index
    %c0_108 = arith.constant 0 : index
    %131 = vector.load %arg5[%c0_105, %c0_106, %c0_107, %c0_108] : memref<1x1x5x128xf32, #tpu.memory_space<vmem>>, vector<1x1x5x128xf32>
    tpu.vector_store %arg5[%c0_105, %c0_106, %c0_107, %c0_108], %130 {strides = array<i32>} : memref<1x1x5x128xf32, #tpu.memory_space<vmem>>, vector<1x1x5x128xf32>,
    %c0_i32_109 = arith.constant 0 : i32
    %132 = arith.cmpi eq, %arg1, %c0_i32_109 : i32
    %133 = arith.extui %132 : i1 to i32
    %c0_i32_110 = arith.constant 0 : i32
    %134 = arith.cmpi ne, %133, %c0_i32_110 : i32
    scf.if %134 {
      %cst_125 = arith.constant 0.000000e+00 : f32
      %148 = vector.broadcast %cst_125 : f32 to vector<1x1x128xf32>
      %c0_126 = arith.constant 0 : index
      %c0_127 = arith.constant 0 : index
      %c0_128 = arith.constant 0 : index
      %149 = vector.load %arg6[%c0_126, %c0_127, %c0_128] : memref<1x1x128xf32, #tpu.memory_space<vmem>>, vector<1x1x128xf32>
      tpu.vector_store %arg6[%c0_126, %c0_127, %c0_128], %148 {strides = array<i32>} : memref<1x1x128xf32, #tpu.memory_space<vmem>>, vector<1x1x128xf32>,
      %cst_129 = arith.constant 0.000000e+00 : f32
      %150 = vector.broadcast %cst_129 : f32 to vector<1x1x128xf32>
      %c0_130 = arith.constant 0 : index
      %c0_131 = arith.constant 0 : index
      %c0_132 = arith.constant 0 : index
      %151 = vector.load %arg7[%c0_130, %c0_131, %c0_132] : memref<1x1x128xf32, #tpu.memory_space<vmem>>, vector<1x1x128xf32>
      tpu.vector_store %arg7[%c0_130, %c0_131, %c0_132], %150 {strides = array<i32>} : memref<1x1x128xf32, #tpu.memory_space<vmem>>, vector<1x1x128xf32>,
    } else {
    }
    %c0_111 = arith.constant 0 : index
    %c0_112 = arith.constant 0 : index
    %c0_113 = arith.constant 0 : index
    %135 = vector.load %arg6[%c0_111, %c0_112, %c0_113] : memref<1x1x128xf32, #tpu.memory_space<vmem>>, vector<1x1x128xf32>
    %cst_114 = arith.constant dense<0.000000e+00> : vector<128xf32>
    %136 = vector.multi_reduction <add>, %129, %cst_114 [0] : vector<5x128xf32> to vector<128xf32>
    %137 = vector.shape_cast %136 : vector<128xf32> to vector<1x128xf32>
    %138 = vector.shape_cast %137 : vector<1x128xf32> to vector<1x1x128xf32>
    %139 = arith.addf %135, %138 : vector<1x1x128xf32>
    %c0_115 = arith.constant 0 : index
    %c0_116 = arith.constant 0 : index
    %c0_117 = arith.constant 0 : index
    %140 = vector.load %arg6[%c0_115, %c0_116, %c0_117] : memref<1x1x128xf32, #tpu.memory_space<vmem>>, vector<1x1x128xf32>
    tpu.vector_store %arg6[%c0_115, %c0_116, %c0_117], %139 {strides = array<i32>} : memref<1x1x128xf32, #tpu.memory_space<vmem>>, vector<1x1x128xf32>,
    %c0_118 = arith.constant 0 : index
    %c0_119 = arith.constant 0 : index
    %c0_120 = arith.constant 0 : index
    %141 = vector.load %arg7[%c0_118, %c0_119, %c0_120] : memref<1x1x128xf32, #tpu.memory_space<vmem>>, vector<1x1x128xf32>
    %142 = arith.mulf %129, %129 : vector<5x128xf32>
    %cst_121 = arith.constant dense<0.000000e+00> : vector<128xf32>
    %143 = vector.multi_reduction <add>, %142, %cst_121 [0] : vector<5x128xf32> to vector<128xf32>
    %144 = vector.shape_cast %143 : vector<128xf32> to vector<1x128xf32>
    %145 = vector.shape_cast %144 : vector<1x128xf32> to vector<1x1x128xf32>
    %146 = arith.addf %141, %145 : vector<1x1x128xf32>
    %c0_122 = arith.constant 0 : index
    %c0_123 = arith.constant 0 : index
    %c0_124 = arith.constant 0 : index
    %147 = vector.load %arg7[%c0_122, %c0_123, %c0_124] : memref<1x1x128xf32, #tpu.memory_space<vmem>>, vector<1x1x128xf32>
    tpu.vector_store %arg7[%c0_122, %c0_123, %c0_124], %146 {strides = array<i32>} : memref<1x1x128xf32, #tpu.memory_space<vmem>>, vector<1x1x128xf32>,
    return
  }
  func.func @transform_0(%arg0: i32, %arg1: i32) -> (i32, i32, i32, i32) {
    %c0_i32 = arith.constant 0 : i32
    %c0_i32_0 = arith.constant 0 : i32
    %c0_i32_1 = arith.constant 0 : i32
    %c0_i32_2 = arith.constant 0 : i32
    return %arg0, %c0_i32, %c0_i32_0, %c0_i32_1 : i32, i32, i32, i32
  }
  func.func @transform_1(%arg0: i32, %arg1: i32) -> (i32, i32, i32) {
    %c0_i32 = arith.constant 0 : i32
    %c0_i32_0 = arith.constant 0 : i32
    %c0_i32_1 = arith.constant 0 : i32
    %c0_i32_2 = arith.constant 0 : i32
    return %c0_i32, %c0_i32_0, %c0_i32_1 : i32, i32, i32
  }
  func.func @transform_2(%arg0: i32, %arg1: i32) -> (i32, i32) {
    %c0_i32 = arith.constant 0 : i32
    %c0_i32_0 = arith.constant 0 : i32
    %c0_i32_1 = arith.constant 0 : i32
    return %c0_i32, %c0_i32_0 : i32, i32
  }
  func.func @transform_3(%arg0: i32, %arg1: i32) -> (i32, i32, i32, i32) {
    %c0_i32 = arith.constant 0 : i32
    %c0_i32_0 = arith.constant 0 : i32
    %c0_i32_1 = arith.constant 0 : i32
    return %arg0, %arg1, %c0_i32, %c0_i32_0 : i32, i32, i32, i32
  }
  func.func @transform_4(%arg0: i32, %arg1: i32) -> (i32, i32, i32) {
    %c0_i32 = arith.constant 0 : i32
    %c0_i32_0 = arith.constant 0 : i32
    %c0_i32_1 = arith.constant 0 : i32
    return %arg0, %c0_i32, %c0_i32_0 : i32, i32, i32
  }
  func.func @transform_5(%arg0: i32, %arg1: i32) -> (i32, i32, i32) {
    %c0_i32 = arith.constant 0 : i32
    %c0_i32_0 = arith.constant 0 : i32
    %c0_i32_1 = arith.constant 0 : i32
    return %arg0, %c0_i32, %c0_i32_0 : i32, i32, i32
  }
}

module attributes {stable_mosaic.version = 11 : i64} {
  func.func @_inorm_act_kernel(%arg0: i32, %arg1: i32, %arg2: memref<1x1x5x128xf32, #tpu.memory_space<vmem>>, %arg3: memref<1x1x128xf32, #tpu.memory_space<vmem>>, %arg4: memref<1x1x128xf32, #tpu.memory_space<vmem>>, %arg5: memref<1x1x5x128xf32, #tpu.memory_space<vmem>>) attributes {dimension_semantics = [#tpu.dimension_semantics<parallel>, #tpu.dimension_semantics<parallel>], iteration_bounds = array<i64: 2, 5>, scalar_prefetch = 0 : i64, scratch_operands = 0 : i64, tpu.core_type = #tpu.core_type<tc>, window_params = [{transform_indices = @transform_0, window_bounds = array<i64: 1, 1, 5, 128>}, {transform_indices = @transform_1, window_bounds = array<i64: 1, 1, 128>}, {transform_indices = @transform_2, window_bounds = array<i64: 1, 1, 128>}, {transform_indices = @transform_3, window_bounds = array<i64: 1, 1, 5, 128>}]} {
    %c0 = arith.constant 0 : index
    %c0_0 = arith.constant 0 : index
    %c0_1 = arith.constant 0 : index
    %c0_2 = arith.constant 0 : index
    %0 = vector.load %arg2[%c0, %c0_0, %c0_1, %c0_2] : memref<1x1x5x128xf32, #tpu.memory_space<vmem>>, vector<1x1x5x128xf32>
    %c0_3 = arith.constant 0 : index
    %c0_4 = arith.constant 0 : index
    %c0_5 = arith.constant 0 : index
    %1 = vector.load %arg3[%c0_3, %c0_4, %c0_5] : memref<1x1x128xf32, #tpu.memory_space<vmem>>, vector<1x1x128xf32>
    %cst = arith.constant 4.000000e-02 : f32
    %2 = vector.broadcast %cst : f32 to vector<1x1x128xf32>
    %3 = arith.mulf %1, %2 : vector<1x1x128xf32>
    %c0_6 = arith.constant 0 : index
    %c0_7 = arith.constant 0 : index
    %c0_8 = arith.constant 0 : index
    %4 = vector.load %arg4[%c0_6, %c0_7, %c0_8] : memref<1x1x128xf32, #tpu.memory_space<vmem>>, vector<1x1x128xf32>
    %cst_9 = arith.constant 4.000000e-02 : f32
    %5 = vector.broadcast %cst_9 : f32 to vector<1x1x128xf32>
    %6 = arith.mulf %4, %5 : vector<1x1x128xf32>
    %7 = arith.mulf %3, %3 : vector<1x1x128xf32>
    %8 = arith.subf %6, %7 : vector<1x1x128xf32>
    %cst_10 = arith.constant 0.000000e+00 : f32
    %9 = vector.broadcast %cst_10 : f32 to vector<1x1x128xf32>
    %10 = arith.maximumf %8, %9 : vector<1x1x128xf32>
    %11 = vector.shape_cast %3 : vector<1x1x128xf32> to vector<1x1x1x128xf32>
    %12 = vector.broadcast %11 : vector<1x1x1x128xf32> to vector<1x1x5x128xf32>
    %13 = arith.subf %0, %12 : vector<1x1x5x128xf32>
    %cst_11 = arith.constant 9.99999974E-6 : f32
    %14 = vector.broadcast %cst_11 : f32 to vector<1x1x128xf32>
    %15 = arith.addf %10, %14 : vector<1x1x128xf32>
    %16 = math.rsqrt %15 : vector<1x1x128xf32>
    %17 = vector.shape_cast %16 : vector<1x1x128xf32> to vector<1x1x1x128xf32>
    %18 = vector.broadcast %17 : vector<1x1x1x128xf32> to vector<1x1x5x128xf32>
    %19 = arith.mulf %13, %18 : vector<1x1x5x128xf32>
    %cst_12 = arith.constant 0.000000e+00 : f32
    %20 = vector.broadcast %cst_12 : f32 to vector<1x1x5x128xf32>
    %21 = arith.cmpf oge, %19, %20 : vector<1x1x5x128xf32>
    %cst_13 = arith.constant 2.000000e-01 : f32
    %22 = vector.broadcast %cst_13 : f32 to vector<1x1x5x128xf32>
    %23 = arith.mulf %22, %19 : vector<1x1x5x128xf32>
    %24 = arith.select %21, %19, %23 : vector<1x1x5x128xi1>, vector<1x1x5x128xf32>
    %c0_14 = arith.constant 0 : index
    %c0_15 = arith.constant 0 : index
    %c0_16 = arith.constant 0 : index
    %c0_17 = arith.constant 0 : index
    %25 = vector.load %arg5[%c0_14, %c0_15, %c0_16, %c0_17] : memref<1x1x5x128xf32, #tpu.memory_space<vmem>>, vector<1x1x5x128xf32>
    tpu.vector_store %arg5[%c0_14, %c0_15, %c0_16, %c0_17], %24 {strides = array<i32>} : memref<1x1x5x128xf32, #tpu.memory_space<vmem>>, vector<1x1x5x128xf32>,
    return
  }
  func.func @transform_0(%arg0: i32, %arg1: i32) -> (i32, i32, i32, i32) {
    %c0_i32 = arith.constant 0 : i32
    %c0_i32_0 = arith.constant 0 : i32
    %c0_i32_1 = arith.constant 0 : i32
    return %arg0, %arg1, %c0_i32, %c0_i32_0 : i32, i32, i32, i32
  }
  func.func @transform_1(%arg0: i32, %arg1: i32) -> (i32, i32, i32) {
    %c0_i32 = arith.constant 0 : i32
    %c0_i32_0 = arith.constant 0 : i32
    %c0_i32_1 = arith.constant 0 : i32
    return %arg0, %c0_i32, %c0_i32_0 : i32, i32, i32
  }
  func.func @transform_2(%arg0: i32, %arg1: i32) -> (i32, i32, i32) {
    %c0_i32 = arith.constant 0 : i32
    %c0_i32_0 = arith.constant 0 : i32
    %c0_i32_1 = arith.constant 0 : i32
    return %arg0, %c0_i32, %c0_i32_0 : i32, i32, i32
  }
  func.func @transform_3(%arg0: i32, %arg1: i32) -> (i32, i32, i32, i32) {
    %c0_i32 = arith.constant 0 : i32
    %c0_i32_0 = arith.constant 0 : i32
    %c0_i32_1 = arith.constant 0 : i32
    return %arg0, %arg1, %c0_i32, %c0_i32_0 : i32, i32, i32, i32
  }
}

module attributes {stable_mosaic.version = 11 : i64} {
  func.func @_conv_stats_kernel(%arg0: i32, %arg1: i32, %arg2: memref<1x20x5x128xf32, #tpu.memory_space<vmem>>, %arg3: memref<16x128x128xf32, #tpu.memory_space<vmem>>, %arg4: memref<1x128xf32, #tpu.memory_space<vmem>>, %arg5: memref<1x1x3x128xf32, #tpu.memory_space<vmem>>, %arg6: memref<1x1x128xf32, #tpu.memory_space<vmem>>, %arg7: memref<1x1x128xf32, #tpu.memory_space<vmem>>) attributes {dimension_semantics = [#tpu.dimension_semantics<parallel>, #tpu.dimension_semantics<arbitrary>], iteration_bounds = array<i64: 2, 3>, scalar_prefetch = 0 : i64, scratch_operands = 0 : i64, tpu.core_type = #tpu.core_type<tc>, window_params = [{transform_indices = @transform_0, window_bounds = array<i64: 1, 20, 5, 128>}, {pipeline_mode = #tpu.pipeline_mode<synchronous>, transform_indices = @transform_1, window_bounds = array<i64: 16, 128, 128>}, {pipeline_mode = #tpu.pipeline_mode<synchronous>, transform_indices = @transform_2, window_bounds = array<i64: 1, 128>}, {transform_indices = @transform_3, window_bounds = array<i64: 1, 1, 3, 128>}, {transform_indices = @transform_4, window_bounds = array<i64: 1, 1, 128>}, {transform_indices = @transform_5, window_bounds = array<i64: 1, 1, 128>}]} {
    %c1_i32 = arith.constant 1 : i32
    %0 = arith.muli %arg1, %c1_i32 : i32
    %cst = arith.constant 0.000000e+00 : f32
    %1 = vector.broadcast %cst : f32 to vector<3x128xf32>
    %c0_i32 = arith.constant 0 : i32
    %2 = arith.addi %0, %c0_i32 : i32
    %c0 = arith.constant 0 : index
    %3 = arith.index_cast %2 : i32 to index
    %c0_0 = arith.constant 0 : index
    %c0_1 = arith.constant 0 : index
    %4 = vector.load %arg2[%c0, %3, %c0_0, %c0_1] : memref<1x20x5x128xf32, #tpu.memory_space<vmem>>, vector<1x1x3x128xf32>
    %5 = vector.shape_cast %4 : vector<1x1x3x128xf32> to vector<3x128xf32>
    %c0_2 = arith.constant 0 : index
    %c0_3 = arith.constant 0 : index
    %c0_4 = arith.constant 0 : index
    %6 = vector.load %arg3[%c0_2, %c0_3, %c0_4] : memref<16x128x128xf32, #tpu.memory_space<vmem>>, vector<1x128x128xf32>
    %7 = vector.shape_cast %6 : vector<1x128x128xf32> to vector<128x128xf32>
    %cst_5 = arith.constant dense<0.000000e+00> : vector<3x128xf32>
    %8 = tpu.matmul %5, %7, %cst_5 {dimension_numbers = #tpu.dot_dimension_numbers<[1], [0], [0], [1], [0, 0, 1, 1], [], []>} : vector<3x128xf32>, vector<128x128xf32>, vector<3x128xf32> -> vector<3x128xf32>
    %9 = arith.addf %1, %8 : vector<3x128xf32>
    %c5_i32 = arith.constant 5 : i32
    %10 = arith.addi %0, %c5_i32 : i32
    %c0_6 = arith.constant 0 : index
    %11 = arith.index_cast %10 : i32 to index
    %c0_7 = arith.constant 0 : index
    %c0_8 = arith.constant 0 : index
    %12 = vector.load %arg2[%c0_6, %11, %c0_7, %c0_8] : memref<1x20x5x128xf32, #tpu.memory_space<vmem>>, vector<1x1x3x128xf32>
    %13 = vector.shape_cast %12 : vector<1x1x3x128xf32> to vector<3x128xf32>
    %c1 = arith.constant 1 : index
    %c0_9 = arith.constant 0 : index
    %c0_10 = arith.constant 0 : index
    %14 = vector.load %arg3[%c1, %c0_9, %c0_10] : memref<16x128x128xf32, #tpu.memory_space<vmem>>, vector<1x128x128xf32>
    %15 = vector.shape_cast %14 : vector<1x128x128xf32> to vector<128x128xf32>
    %cst_11 = arith.constant dense<0.000000e+00> : vector<3x128xf32>
    %16 = tpu.matmul %13, %15, %cst_11 {dimension_numbers = #tpu.dot_dimension_numbers<[1], [0], [0], [1], [0, 0, 1, 1], [], []>} : vector<3x128xf32>, vector<128x128xf32>, vector<3x128xf32> -> vector<3x128xf32>
    %17 = arith.addf %9, %16 : vector<3x128xf32>
    %c0_i32_12 = arith.constant 0 : i32
    %18 = arith.addi %0, %c0_i32_12 : i32
    %c0_13 = arith.constant 0 : index
    %19 = arith.index_cast %18 : i32 to index
    %c1_14 = arith.constant 1 : index
    %c0_15 = arith.constant 0 : index
    %20 = vector.load %arg2[%c0_13, %19, %c1_14, %c0_15] : memref<1x20x5x128xf32, #tpu.memory_space<vmem>>, vector<1x1x3x128xf32>
    %21 = vector.shape_cast %20 : vector<1x1x3x128xf32> to vector<3x128xf32>
    %c2 = arith.constant 2 : index
    %c0_16 = arith.constant 0 : index
    %c0_17 = arith.constant 0 : index
    %22 = vector.load %arg3[%c2, %c0_16, %c0_17] : memref<16x128x128xf32, #tpu.memory_space<vmem>>, vector<1x128x128xf32>
    %23 = vector.shape_cast %22 : vector<1x128x128xf32> to vector<128x128xf32>
    %cst_18 = arith.constant dense<0.000000e+00> : vector<3x128xf32>
    %24 = tpu.matmul %21, %23, %cst_18 {dimension_numbers = #tpu.dot_dimension_numbers<[1], [0], [0], [1], [0, 0, 1, 1], [], []>} : vector<3x128xf32>, vector<128x128xf32>, vector<3x128xf32> -> vector<3x128xf32>
    %25 = arith.addf %17, %24 : vector<3x128xf32>
    %c5_i32_19 = arith.constant 5 : i32
    %26 = arith.addi %0, %c5_i32_19 : i32
    %c0_20 = arith.constant 0 : index
    %27 = arith.index_cast %26 : i32 to index
    %c1_21 = arith.constant 1 : index
    %c0_22 = arith.constant 0 : index
    %28 = vector.load %arg2[%c0_20, %27, %c1_21, %c0_22] : memref<1x20x5x128xf32, #tpu.memory_space<vmem>>, vector<1x1x3x128xf32>
    %29 = vector.shape_cast %28 : vector<1x1x3x128xf32> to vector<3x128xf32>
    %c3 = arith.constant 3 : index
    %c0_23 = arith.constant 0 : index
    %c0_24 = arith.constant 0 : index
    %30 = vector.load %arg3[%c3, %c0_23, %c0_24] : memref<16x128x128xf32, #tpu.memory_space<vmem>>, vector<1x128x128xf32>
    %31 = vector.shape_cast %30 : vector<1x128x128xf32> to vector<128x128xf32>
    %cst_25 = arith.constant dense<0.000000e+00> : vector<3x128xf32>
    %32 = tpu.matmul %29, %31, %cst_25 {dimension_numbers = #tpu.dot_dimension_numbers<[1], [0], [0], [1], [0, 0, 1, 1], [], []>} : vector<3x128xf32>, vector<128x128xf32>, vector<3x128xf32> -> vector<3x128xf32>
    %33 = arith.addf %25, %32 : vector<3x128xf32>
    %c10_i32 = arith.constant 10 : i32
    %34 = arith.addi %0, %c10_i32 : i32
    %c0_26 = arith.constant 0 : index
    %35 = arith.index_cast %34 : i32 to index
    %c0_27 = arith.constant 0 : index
    %c0_28 = arith.constant 0 : index
    %36 = vector.load %arg2[%c0_26, %35, %c0_27, %c0_28] : memref<1x20x5x128xf32, #tpu.memory_space<vmem>>, vector<1x1x3x128xf32>
    %37 = vector.shape_cast %36 : vector<1x1x3x128xf32> to vector<3x128xf32>
    %c4 = arith.constant 4 : index
    %c0_29 = arith.constant 0 : index
    %c0_30 = arith.constant 0 : index
    %38 = vector.load %arg3[%c4, %c0_29, %c0_30] : memref<16x128x128xf32, #tpu.memory_space<vmem>>, vector<1x128x128xf32>
    %39 = vector.shape_cast %38 : vector<1x128x128xf32> to vector<128x128xf32>
    %cst_31 = arith.constant dense<0.000000e+00> : vector<3x128xf32>
    %40 = tpu.matmul %37, %39, %cst_31 {dimension_numbers = #tpu.dot_dimension_numbers<[1], [0], [0], [1], [0, 0, 1, 1], [], []>} : vector<3x128xf32>, vector<128x128xf32>, vector<3x128xf32> -> vector<3x128xf32>
    %41 = arith.addf %33, %40 : vector<3x128xf32>
    %c15_i32 = arith.constant 15 : i32
    %42 = arith.addi %0, %c15_i32 : i32
    %c0_32 = arith.constant 0 : index
    %43 = arith.index_cast %42 : i32 to index
    %c0_33 = arith.constant 0 : index
    %c0_34 = arith.constant 0 : index
    %44 = vector.load %arg2[%c0_32, %43, %c0_33, %c0_34] : memref<1x20x5x128xf32, #tpu.memory_space<vmem>>, vector<1x1x3x128xf32>
    %45 = vector.shape_cast %44 : vector<1x1x3x128xf32> to vector<3x128xf32>
    %c5 = arith.constant 5 : index
    %c0_35 = arith.constant 0 : index
    %c0_36 = arith.constant 0 : index
    %46 = vector.load %arg3[%c5, %c0_35, %c0_36] : memref<16x128x128xf32, #tpu.memory_space<vmem>>, vector<1x128x128xf32>
    %47 = vector.shape_cast %46 : vector<1x128x128xf32> to vector<128x128xf32>
    %cst_37 = arith.constant dense<0.000000e+00> : vector<3x128xf32>
    %48 = tpu.matmul %45, %47, %cst_37 {dimension_numbers = #tpu.dot_dimension_numbers<[1], [0], [0], [1], [0, 0, 1, 1], [], []>} : vector<3x128xf32>, vector<128x128xf32>, vector<3x128xf32> -> vector<3x128xf32>
    %49 = arith.addf %41, %48 : vector<3x128xf32>
    %c10_i32_38 = arith.constant 10 : i32
    %50 = arith.addi %0, %c10_i32_38 : i32
    %c0_39 = arith.constant 0 : index
    %51 = arith.index_cast %50 : i32 to index
    %c1_40 = arith.constant 1 : index
    %c0_41 = arith.constant 0 : index
    %52 = vector.load %arg2[%c0_39, %51, %c1_40, %c0_41] : memref<1x20x5x128xf32, #tpu.memory_space<vmem>>, vector<1x1x3x128xf32>
    %53 = vector.shape_cast %52 : vector<1x1x3x128xf32> to vector<3x128xf32>
    %c6 = arith.constant 6 : index
    %c0_42 = arith.constant 0 : index
    %c0_43 = arith.constant 0 : index
    %54 = vector.load %arg3[%c6, %c0_42, %c0_43] : memref<16x128x128xf32, #tpu.memory_space<vmem>>, vector<1x128x128xf32>
    %55 = vector.shape_cast %54 : vector<1x128x128xf32> to vector<128x128xf32>
    %cst_44 = arith.constant dense<0.000000e+00> : vector<3x128xf32>
    %56 = tpu.matmul %53, %55, %cst_44 {dimension_numbers = #tpu.dot_dimension_numbers<[1], [0], [0], [1], [0, 0, 1, 1], [], []>} : vector<3x128xf32>, vector<128x128xf32>, vector<3x128xf32> -> vector<3x128xf32>
    %57 = arith.addf %49, %56 : vector<3x128xf32>
    %c15_i32_45 = arith.constant 15 : i32
    %58 = arith.addi %0, %c15_i32_45 : i32
    %c0_46 = arith.constant 0 : index
    %59 = arith.index_cast %58 : i32 to index
    %c1_47 = arith.constant 1 : index
    %c0_48 = arith.constant 0 : index
    %60 = vector.load %arg2[%c0_46, %59, %c1_47, %c0_48] : memref<1x20x5x128xf32, #tpu.memory_space<vmem>>, vector<1x1x3x128xf32>
    %61 = vector.shape_cast %60 : vector<1x1x3x128xf32> to vector<3x128xf32>
    %c7 = arith.constant 7 : index
    %c0_49 = arith.constant 0 : index
    %c0_50 = arith.constant 0 : index
    %62 = vector.load %arg3[%c7, %c0_49, %c0_50] : memref<16x128x128xf32, #tpu.memory_space<vmem>>, vector<1x128x128xf32>
    %63 = vector.shape_cast %62 : vector<1x128x128xf32> to vector<128x128xf32>
    %cst_51 = arith.constant dense<0.000000e+00> : vector<3x128xf32>
    %64 = tpu.matmul %61, %63, %cst_51 {dimension_numbers = #tpu.dot_dimension_numbers<[1], [0], [0], [1], [0, 0, 1, 1], [], []>} : vector<3x128xf32>, vector<128x128xf32>, vector<3x128xf32> -> vector<3x128xf32>
    %65 = arith.addf %57, %64 : vector<3x128xf32>
    %c1_i32_52 = arith.constant 1 : i32
    %66 = arith.addi %0, %c1_i32_52 : i32
    %c0_53 = arith.constant 0 : index
    %67 = arith.index_cast %66 : i32 to index
    %c0_54 = arith.constant 0 : index
    %c0_55 = arith.constant 0 : index
    %68 = vector.load %arg2[%c0_53, %67, %c0_54, %c0_55] : memref<1x20x5x128xf32, #tpu.memory_space<vmem>>, vector<1x1x3x128xf32>
    %69 = vector.shape_cast %68 : vector<1x1x3x128xf32> to vector<3x128xf32>
    %c8 = arith.constant 8 : index
    %c0_56 = arith.constant 0 : index
    %c0_57 = arith.constant 0 : index
    %70 = vector.load %arg3[%c8, %c0_56, %c0_57] : memref<16x128x128xf32, #tpu.memory_space<vmem>>, vector<1x128x128xf32>
    %71 = vector.shape_cast %70 : vector<1x128x128xf32> to vector<128x128xf32>
    %cst_58 = arith.constant dense<0.000000e+00> : vector<3x128xf32>
    %72 = tpu.matmul %69, %71, %cst_58 {dimension_numbers = #tpu.dot_dimension_numbers<[1], [0], [0], [1], [0, 0, 1, 1], [], []>} : vector<3x128xf32>, vector<128x128xf32>, vector<3x128xf32> -> vector<3x128xf32>
    %73 = arith.addf %65, %72 : vector<3x128xf32>
    %c6_i32 = arith.constant 6 : i32
    %74 = arith.addi %0, %c6_i32 : i32
    %c0_59 = arith.constant 0 : index
    %75 = arith.index_cast %74 : i32 to index
    %c0_60 = arith.constant 0 : index
    %c0_61 = arith.constant 0 : index
    %76 = vector.load %arg2[%c0_59, %75, %c0_60, %c0_61] : memref<1x20x5x128xf32, #tpu.memory_space<vmem>>, vector<1x1x3x128xf32>
    %77 = vector.shape_cast %76 : vector<1x1x3x128xf32> to vector<3x128xf32>
    %c9 = arith.constant 9 : index
    %c0_62 = arith.constant 0 : index
    %c0_63 = arith.constant 0 : index
    %78 = vector.load %arg3[%c9, %c0_62, %c0_63] : memref<16x128x128xf32, #tpu.memory_space<vmem>>, vector<1x128x128xf32>
    %79 = vector.shape_cast %78 : vector<1x128x128xf32> to vector<128x128xf32>
    %cst_64 = arith.constant dense<0.000000e+00> : vector<3x128xf32>
    %80 = tpu.matmul %77, %79, %cst_64 {dimension_numbers = #tpu.dot_dimension_numbers<[1], [0], [0], [1], [0, 0, 1, 1], [], []>} : vector<3x128xf32>, vector<128x128xf32>, vector<3x128xf32> -> vector<3x128xf32>
    %81 = arith.addf %73, %80 : vector<3x128xf32>
    %c1_i32_65 = arith.constant 1 : i32
    %82 = arith.addi %0, %c1_i32_65 : i32
    %c0_66 = arith.constant 0 : index
    %83 = arith.index_cast %82 : i32 to index
    %c1_67 = arith.constant 1 : index
    %c0_68 = arith.constant 0 : index
    %84 = vector.load %arg2[%c0_66, %83, %c1_67, %c0_68] : memref<1x20x5x128xf32, #tpu.memory_space<vmem>>, vector<1x1x3x128xf32>
    %85 = vector.shape_cast %84 : vector<1x1x3x128xf32> to vector<3x128xf32>
    %c10 = arith.constant 10 : index
    %c0_69 = arith.constant 0 : index
    %c0_70 = arith.constant 0 : index
    %86 = vector.load %arg3[%c10, %c0_69, %c0_70] : memref<16x128x128xf32, #tpu.memory_space<vmem>>, vector<1x128x128xf32>
    %87 = vector.shape_cast %86 : vector<1x128x128xf32> to vector<128x128xf32>
    %cst_71 = arith.constant dense<0.000000e+00> : vector<3x128xf32>
    %88 = tpu.matmul %85, %87, %cst_71 {dimension_numbers = #tpu.dot_dimension_numbers<[1], [0], [0], [1], [0, 0, 1, 1], [], []>} : vector<3x128xf32>, vector<128x128xf32>, vector<3x128xf32> -> vector<3x128xf32>
    %89 = arith.addf %81, %88 : vector<3x128xf32>
    %c6_i32_72 = arith.constant 6 : i32
    %90 = arith.addi %0, %c6_i32_72 : i32
    %c0_73 = arith.constant 0 : index
    %91 = arith.index_cast %90 : i32 to index
    %c1_74 = arith.constant 1 : index
    %c0_75 = arith.constant 0 : index
    %92 = vector.load %arg2[%c0_73, %91, %c1_74, %c0_75] : memref<1x20x5x128xf32, #tpu.memory_space<vmem>>, vector<1x1x3x128xf32>
    %93 = vector.shape_cast %92 : vector<1x1x3x128xf32> to vector<3x128xf32>
    %c11 = arith.constant 11 : index
    %c0_76 = arith.constant 0 : index
    %c0_77 = arith.constant 0 : index
    %94 = vector.load %arg3[%c11, %c0_76, %c0_77] : memref<16x128x128xf32, #tpu.memory_space<vmem>>, vector<1x128x128xf32>
    %95 = vector.shape_cast %94 : vector<1x128x128xf32> to vector<128x128xf32>
    %cst_78 = arith.constant dense<0.000000e+00> : vector<3x128xf32>
    %96 = tpu.matmul %93, %95, %cst_78 {dimension_numbers = #tpu.dot_dimension_numbers<[1], [0], [0], [1], [0, 0, 1, 1], [], []>} : vector<3x128xf32>, vector<128x128xf32>, vector<3x128xf32> -> vector<3x128xf32>
    %97 = arith.addf %89, %96 : vector<3x128xf32>
    %c11_i32 = arith.constant 11 : i32
    %98 = arith.addi %0, %c11_i32 : i32
    %c0_79 = arith.constant 0 : index
    %99 = arith.index_cast %98 : i32 to index
    %c0_80 = arith.constant 0 : index
    %c0_81 = arith.constant 0 : index
    %100 = vector.load %arg2[%c0_79, %99, %c0_80, %c0_81] : memref<1x20x5x128xf32, #tpu.memory_space<vmem>>, vector<1x1x3x128xf32>
    %101 = vector.shape_cast %100 : vector<1x1x3x128xf32> to vector<3x128xf32>
    %c12 = arith.constant 12 : index
    %c0_82 = arith.constant 0 : index
    %c0_83 = arith.constant 0 : index
    %102 = vector.load %arg3[%c12, %c0_82, %c0_83] : memref<16x128x128xf32, #tpu.memory_space<vmem>>, vector<1x128x128xf32>
    %103 = vector.shape_cast %102 : vector<1x128x128xf32> to vector<128x128xf32>
    %cst_84 = arith.constant dense<0.000000e+00> : vector<3x128xf32>
    %104 = tpu.matmul %101, %103, %cst_84 {dimension_numbers = #tpu.dot_dimension_numbers<[1], [0], [0], [1], [0, 0, 1, 1], [], []>} : vector<3x128xf32>, vector<128x128xf32>, vector<3x128xf32> -> vector<3x128xf32>
    %105 = arith.addf %97, %104 : vector<3x128xf32>
    %c16_i32 = arith.constant 16 : i32
    %106 = arith.addi %0, %c16_i32 : i32
    %c0_85 = arith.constant 0 : index
    %107 = arith.index_cast %106 : i32 to index
    %c0_86 = arith.constant 0 : index
    %c0_87 = arith.constant 0 : index
    %108 = vector.load %arg2[%c0_85, %107, %c0_86, %c0_87] : memref<1x20x5x128xf32, #tpu.memory_space<vmem>>, vector<1x1x3x128xf32>
    %109 = vector.shape_cast %108 : vector<1x1x3x128xf32> to vector<3x128xf32>
    %c13 = arith.constant 13 : index
    %c0_88 = arith.constant 0 : index
    %c0_89 = arith.constant 0 : index
    %110 = vector.load %arg3[%c13, %c0_88, %c0_89] : memref<16x128x128xf32, #tpu.memory_space<vmem>>, vector<1x128x128xf32>
    %111 = vector.shape_cast %110 : vector<1x128x128xf32> to vector<128x128xf32>
    %cst_90 = arith.constant dense<0.000000e+00> : vector<3x128xf32>
    %112 = tpu.matmul %109, %111, %cst_90 {dimension_numbers = #tpu.dot_dimension_numbers<[1], [0], [0], [1], [0, 0, 1, 1], [], []>} : vector<3x128xf32>, vector<128x128xf32>, vector<3x128xf32> -> vector<3x128xf32>
    %113 = arith.addf %105, %112 : vector<3x128xf32>
    %c11_i32_91 = arith.constant 11 : i32
    %114 = arith.addi %0, %c11_i32_91 : i32
    %c0_92 = arith.constant 0 : index
    %115 = arith.index_cast %114 : i32 to index
    %c1_93 = arith.constant 1 : index
    %c0_94 = arith.constant 0 : index
    %116 = vector.load %arg2[%c0_92, %115, %c1_93, %c0_94] : memref<1x20x5x128xf32, #tpu.memory_space<vmem>>, vector<1x1x3x128xf32>
    %117 = vector.shape_cast %116 : vector<1x1x3x128xf32> to vector<3x128xf32>
    %c14 = arith.constant 14 : index
    %c0_95 = arith.constant 0 : index
    %c0_96 = arith.constant 0 : index
    %118 = vector.load %arg3[%c14, %c0_95, %c0_96] : memref<16x128x128xf32, #tpu.memory_space<vmem>>, vector<1x128x128xf32>
    %119 = vector.shape_cast %118 : vector<1x128x128xf32> to vector<128x128xf32>
    %cst_97 = arith.constant dense<0.000000e+00> : vector<3x128xf32>
    %120 = tpu.matmul %117, %119, %cst_97 {dimension_numbers = #tpu.dot_dimension_numbers<[1], [0], [0], [1], [0, 0, 1, 1], [], []>} : vector<3x128xf32>, vector<128x128xf32>, vector<3x128xf32> -> vector<3x128xf32>
    %121 = arith.addf %113, %120 : vector<3x128xf32>
    %c16_i32_98 = arith.constant 16 : i32
    %122 = arith.addi %0, %c16_i32_98 : i32
    %c0_99 = arith.constant 0 : index
    %123 = arith.index_cast %122 : i32 to index
    %c1_100 = arith.constant 1 : index
    %c0_101 = arith.constant 0 : index
    %124 = vector.load %arg2[%c0_99, %123, %c1_100, %c0_101] : memref<1x20x5x128xf32, #tpu.memory_space<vmem>>, vector<1x1x3x128xf32>
    %125 = vector.shape_cast %124 : vector<1x1x3x128xf32> to vector<3x128xf32>
    %c15 = arith.constant 15 : index
    %c0_102 = arith.constant 0 : index
    %c0_103 = arith.constant 0 : index
    %126 = vector.load %arg3[%c15, %c0_102, %c0_103] : memref<16x128x128xf32, #tpu.memory_space<vmem>>, vector<1x128x128xf32>
    %127 = vector.shape_cast %126 : vector<1x128x128xf32> to vector<128x128xf32>
    %cst_104 = arith.constant dense<0.000000e+00> : vector<3x128xf32>
    %128 = tpu.matmul %125, %127, %cst_104 {dimension_numbers = #tpu.dot_dimension_numbers<[1], [0], [0], [1], [0, 0, 1, 1], [], []>} : vector<3x128xf32>, vector<128x128xf32>, vector<3x128xf32> -> vector<3x128xf32>
    %129 = arith.addf %121, %128 : vector<3x128xf32>
    %130 = vector.shape_cast %129 : vector<3x128xf32> to vector<1x1x3x128xf32>
    %c0_105 = arith.constant 0 : index
    %c0_106 = arith.constant 0 : index
    %c0_107 = arith.constant 0 : index
    %c0_108 = arith.constant 0 : index
    %131 = vector.load %arg5[%c0_105, %c0_106, %c0_107, %c0_108] : memref<1x1x3x128xf32, #tpu.memory_space<vmem>>, vector<1x1x3x128xf32>
    tpu.vector_store %arg5[%c0_105, %c0_106, %c0_107, %c0_108], %130 {strides = array<i32>} : memref<1x1x3x128xf32, #tpu.memory_space<vmem>>, vector<1x1x3x128xf32>,
    %c0_i32_109 = arith.constant 0 : i32
    %132 = arith.cmpi eq, %arg1, %c0_i32_109 : i32
    %133 = arith.extui %132 : i1 to i32
    %c0_i32_110 = arith.constant 0 : i32
    %134 = arith.cmpi ne, %133, %c0_i32_110 : i32
    scf.if %134 {
      %cst_125 = arith.constant 0.000000e+00 : f32
      %148 = vector.broadcast %cst_125 : f32 to vector<1x1x128xf32>
      %c0_126 = arith.constant 0 : index
      %c0_127 = arith.constant 0 : index
      %c0_128 = arith.constant 0 : index
      %149 = vector.load %arg6[%c0_126, %c0_127, %c0_128] : memref<1x1x128xf32, #tpu.memory_space<vmem>>, vector<1x1x128xf32>
      tpu.vector_store %arg6[%c0_126, %c0_127, %c0_128], %148 {strides = array<i32>} : memref<1x1x128xf32, #tpu.memory_space<vmem>>, vector<1x1x128xf32>,
      %cst_129 = arith.constant 0.000000e+00 : f32
      %150 = vector.broadcast %cst_129 : f32 to vector<1x1x128xf32>
      %c0_130 = arith.constant 0 : index
      %c0_131 = arith.constant 0 : index
      %c0_132 = arith.constant 0 : index
      %151 = vector.load %arg7[%c0_130, %c0_131, %c0_132] : memref<1x1x128xf32, #tpu.memory_space<vmem>>, vector<1x1x128xf32>
      tpu.vector_store %arg7[%c0_130, %c0_131, %c0_132], %150 {strides = array<i32>} : memref<1x1x128xf32, #tpu.memory_space<vmem>>, vector<1x1x128xf32>,
    } else {
    }
    %c0_111 = arith.constant 0 : index
    %c0_112 = arith.constant 0 : index
    %c0_113 = arith.constant 0 : index
    %135 = vector.load %arg6[%c0_111, %c0_112, %c0_113] : memref<1x1x128xf32, #tpu.memory_space<vmem>>, vector<1x1x128xf32>
    %cst_114 = arith.constant dense<0.000000e+00> : vector<128xf32>
    %136 = vector.multi_reduction <add>, %129, %cst_114 [0] : vector<3x128xf32> to vector<128xf32>
    %137 = vector.shape_cast %136 : vector<128xf32> to vector<1x128xf32>
    %138 = vector.shape_cast %137 : vector<1x128xf32> to vector<1x1x128xf32>
    %139 = arith.addf %135, %138 : vector<1x1x128xf32>
    %c0_115 = arith.constant 0 : index
    %c0_116 = arith.constant 0 : index
    %c0_117 = arith.constant 0 : index
    %140 = vector.load %arg6[%c0_115, %c0_116, %c0_117] : memref<1x1x128xf32, #tpu.memory_space<vmem>>, vector<1x1x128xf32>
    tpu.vector_store %arg6[%c0_115, %c0_116, %c0_117], %139 {strides = array<i32>} : memref<1x1x128xf32, #tpu.memory_space<vmem>>, vector<1x1x128xf32>,
    %c0_118 = arith.constant 0 : index
    %c0_119 = arith.constant 0 : index
    %c0_120 = arith.constant 0 : index
    %141 = vector.load %arg7[%c0_118, %c0_119, %c0_120] : memref<1x1x128xf32, #tpu.memory_space<vmem>>, vector<1x1x128xf32>
    %142 = arith.mulf %129, %129 : vector<3x128xf32>
    %cst_121 = arith.constant dense<0.000000e+00> : vector<128xf32>
    %143 = vector.multi_reduction <add>, %142, %cst_121 [0] : vector<3x128xf32> to vector<128xf32>
    %144 = vector.shape_cast %143 : vector<128xf32> to vector<1x128xf32>
    %145 = vector.shape_cast %144 : vector<1x128xf32> to vector<1x1x128xf32>
    %146 = arith.addf %141, %145 : vector<1x1x128xf32>
    %c0_122 = arith.constant 0 : index
    %c0_123 = arith.constant 0 : index
    %c0_124 = arith.constant 0 : index
    %147 = vector.load %arg7[%c0_122, %c0_123, %c0_124] : memref<1x1x128xf32, #tpu.memory_space<vmem>>, vector<1x1x128xf32>
    tpu.vector_store %arg7[%c0_122, %c0_123, %c0_124], %146 {strides = array<i32>} : memref<1x1x128xf32, #tpu.memory_space<vmem>>, vector<1x1x128xf32>,
    return
  }
  func.func @transform_0(%arg0: i32, %arg1: i32) -> (i32, i32, i32, i32) {
    %c0_i32 = arith.constant 0 : i32
    %c0_i32_0 = arith.constant 0 : i32
    %c0_i32_1 = arith.constant 0 : i32
    %c0_i32_2 = arith.constant 0 : i32
    return %arg0, %c0_i32, %c0_i32_0, %c0_i32_1 : i32, i32, i32, i32
  }
  func.func @transform_1(%arg0: i32, %arg1: i32) -> (i32, i32, i32) {
    %c0_i32 = arith.constant 0 : i32
    %c0_i32_0 = arith.constant 0 : i32
    %c0_i32_1 = arith.constant 0 : i32
    %c0_i32_2 = arith.constant 0 : i32
    return %c0_i32, %c0_i32_0, %c0_i32_1 : i32, i32, i32
  }
  func.func @transform_2(%arg0: i32, %arg1: i32) -> (i32, i32) {
    %c0_i32 = arith.constant 0 : i32
    %c0_i32_0 = arith.constant 0 : i32
    %c0_i32_1 = arith.constant 0 : i32
    return %c0_i32, %c0_i32_0 : i32, i32
  }
  func.func @transform_3(%arg0: i32, %arg1: i32) -> (i32, i32, i32, i32) {
    %c0_i32 = arith.constant 0 : i32
    %c0_i32_0 = arith.constant 0 : i32
    %c0_i32_1 = arith.constant 0 : i32
    return %arg0, %arg1, %c0_i32, %c0_i32_0 : i32, i32, i32, i32
  }
  func.func @transform_4(%arg0: i32, %arg1: i32) -> (i32, i32, i32) {
    %c0_i32 = arith.constant 0 : i32
    %c0_i32_0 = arith.constant 0 : i32
    %c0_i32_1 = arith.constant 0 : i32
    return %arg0, %c0_i32, %c0_i32_0 : i32, i32, i32
  }
  func.func @transform_5(%arg0: i32, %arg1: i32) -> (i32, i32, i32) {
    %c0_i32 = arith.constant 0 : i32
    %c0_i32_0 = arith.constant 0 : i32
    %c0_i32_1 = arith.constant 0 : i32
    return %arg0, %c0_i32, %c0_i32_0 : i32, i32, i32
  }
}

module attributes {stable_mosaic.version = 11 : i64} {
  func.func @_inorm_act_kernel(%arg0: i32, %arg1: i32, %arg2: memref<1x1x3x128xf32, #tpu.memory_space<vmem>>, %arg3: memref<1x1x128xf32, #tpu.memory_space<vmem>>, %arg4: memref<1x1x128xf32, #tpu.memory_space<vmem>>, %arg5: memref<1x1x3x128xf32, #tpu.memory_space<vmem>>) attributes {dimension_semantics = [#tpu.dimension_semantics<parallel>, #tpu.dimension_semantics<parallel>], iteration_bounds = array<i64: 2, 3>, scalar_prefetch = 0 : i64, scratch_operands = 0 : i64, tpu.core_type = #tpu.core_type<tc>, window_params = [{transform_indices = @transform_0, window_bounds = array<i64: 1, 1, 3, 128>}, {transform_indices = @transform_1, window_bounds = array<i64: 1, 1, 128>}, {transform_indices = @transform_2, window_bounds = array<i64: 1, 1, 128>}, {transform_indices = @transform_3, window_bounds = array<i64: 1, 1, 3, 128>}]} {
    %c0 = arith.constant 0 : index
    %c0_0 = arith.constant 0 : index
    %c0_1 = arith.constant 0 : index
    %c0_2 = arith.constant 0 : index
    %0 = vector.load %arg2[%c0, %c0_0, %c0_1, %c0_2] : memref<1x1x3x128xf32, #tpu.memory_space<vmem>>, vector<1x1x3x128xf32>
    %c0_3 = arith.constant 0 : index
    %c0_4 = arith.constant 0 : index
    %c0_5 = arith.constant 0 : index
    %1 = vector.load %arg3[%c0_3, %c0_4, %c0_5] : memref<1x1x128xf32, #tpu.memory_space<vmem>>, vector<1x1x128xf32>
    %cst = arith.constant 0.111111112 : f32
    %2 = vector.broadcast %cst : f32 to vector<1x1x128xf32>
    %3 = arith.mulf %1, %2 : vector<1x1x128xf32>
    %c0_6 = arith.constant 0 : index
    %c0_7 = arith.constant 0 : index
    %c0_8 = arith.constant 0 : index
    %4 = vector.load %arg4[%c0_6, %c0_7, %c0_8] : memref<1x1x128xf32, #tpu.memory_space<vmem>>, vector<1x1x128xf32>
    %cst_9 = arith.constant 0.111111112 : f32
    %5 = vector.broadcast %cst_9 : f32 to vector<1x1x128xf32>
    %6 = arith.mulf %4, %5 : vector<1x1x128xf32>
    %7 = arith.mulf %3, %3 : vector<1x1x128xf32>
    %8 = arith.subf %6, %7 : vector<1x1x128xf32>
    %cst_10 = arith.constant 0.000000e+00 : f32
    %9 = vector.broadcast %cst_10 : f32 to vector<1x1x128xf32>
    %10 = arith.maximumf %8, %9 : vector<1x1x128xf32>
    %11 = vector.shape_cast %3 : vector<1x1x128xf32> to vector<1x1x1x128xf32>
    %12 = vector.broadcast %11 : vector<1x1x1x128xf32> to vector<1x1x3x128xf32>
    %13 = arith.subf %0, %12 : vector<1x1x3x128xf32>
    %cst_11 = arith.constant 9.99999974E-6 : f32
    %14 = vector.broadcast %cst_11 : f32 to vector<1x1x128xf32>
    %15 = arith.addf %10, %14 : vector<1x1x128xf32>
    %16 = math.rsqrt %15 : vector<1x1x128xf32>
    %17 = vector.shape_cast %16 : vector<1x1x128xf32> to vector<1x1x1x128xf32>
    %18 = vector.broadcast %17 : vector<1x1x1x128xf32> to vector<1x1x3x128xf32>
    %19 = arith.mulf %13, %18 : vector<1x1x3x128xf32>
    %cst_12 = arith.constant 0.000000e+00 : f32
    %20 = vector.broadcast %cst_12 : f32 to vector<1x1x3x128xf32>
    %21 = arith.cmpf oge, %19, %20 : vector<1x1x3x128xf32>
    %cst_13 = arith.constant 2.000000e-01 : f32
    %22 = vector.broadcast %cst_13 : f32 to vector<1x1x3x128xf32>
    %23 = arith.mulf %22, %19 : vector<1x1x3x128xf32>
    %24 = arith.select %21, %19, %23 : vector<1x1x3x128xi1>, vector<1x1x3x128xf32>
    %c0_14 = arith.constant 0 : index
    %c0_15 = arith.constant 0 : index
    %c0_16 = arith.constant 0 : index
    %c0_17 = arith.constant 0 : index
    %25 = vector.load %arg5[%c0_14, %c0_15, %c0_16, %c0_17] : memref<1x1x3x128xf32, #tpu.memory_space<vmem>>, vector<1x1x3x128xf32>
    tpu.vector_store %arg5[%c0_14, %c0_15, %c0_16, %c0_17], %24 {strides = array<i32>} : memref<1x1x3x128xf32, #tpu.memory_space<vmem>>, vector<1x1x3x128xf32>,
    return
  }
  func.func @transform_0(%arg0: i32, %arg1: i32) -> (i32, i32, i32, i32) {
    %c0_i32 = arith.constant 0 : i32
    %c0_i32_0 = arith.constant 0 : i32
    %c0_i32_1 = arith.constant 0 : i32
    return %arg0, %arg1, %c0_i32, %c0_i32_0 : i32, i32, i32, i32
  }
  func.func @transform_1(%arg0: i32, %arg1: i32) -> (i32, i32, i32) {
    %c0_i32 = arith.constant 0 : i32
    %c0_i32_0 = arith.constant 0 : i32
    %c0_i32_1 = arith.constant 0 : i32
    return %arg0, %c0_i32, %c0_i32_0 : i32, i32, i32
  }
  func.func @transform_2(%arg0: i32, %arg1: i32) -> (i32, i32, i32) {
    %c0_i32 = arith.constant 0 : i32
    %c0_i32_0 = arith.constant 0 : i32
    %c0_i32_1 = arith.constant 0 : i32
    return %arg0, %c0_i32, %c0_i32_0 : i32, i32, i32
  }
  func.func @transform_3(%arg0: i32, %arg1: i32) -> (i32, i32, i32, i32) {
    %c0_i32 = arith.constant 0 : i32
    %c0_i32_0 = arith.constant 0 : i32
    %c0_i32_1 = arith.constant 0 : i32
    return %arg0, %arg1, %c0_i32, %c0_i32_0 : i32, i32, i32, i32
  }
}

module attributes {stable_mosaic.version = 11 : i64} {
  func.func @_conv_stats_kernel(%arg0: i32, %arg1: i32, %arg2: memref<1x7x7x128xf32, #tpu.memory_space<vmem>>, %arg3: memref<16x128x128xf32, #tpu.memory_space<vmem>>, %arg4: memref<1x128xf32, #tpu.memory_space<vmem>>, %arg5: memref<1x2x4x128xf32, #tpu.memory_space<vmem>>, %arg6: memref<1x1x128xf32, #tpu.memory_space<vmem>>, %arg7: memref<1x1x128xf32, #tpu.memory_space<vmem>>) attributes {dimension_semantics = [#tpu.dimension_semantics<parallel>, #tpu.dimension_semantics<arbitrary>], iteration_bounds = array<i64: 2, 2>, scalar_prefetch = 0 : i64, scratch_operands = 0 : i64, tpu.core_type = #tpu.core_type<tc>, window_params = [{transform_indices = @transform_0, window_bounds = array<i64: 1, 7, 7, 128>}, {pipeline_mode = #tpu.pipeline_mode<synchronous>, transform_indices = @transform_1, window_bounds = array<i64: 16, 128, 128>}, {pipeline_mode = #tpu.pipeline_mode<synchronous>, transform_indices = @transform_2, window_bounds = array<i64: 1, 128>}, {transform_indices = @transform_3, window_bounds = array<i64: 1, 2, 4, 128>}, {transform_indices = @transform_4, window_bounds = array<i64: 1, 1, 128>}, {transform_indices = @transform_5, window_bounds = array<i64: 1, 1, 128>}]} {
    %c2_i32 = arith.constant 2 : i32
    %0 = arith.muli %arg1, %c2_i32 : i32
    %cst = arith.constant 0.000000e+00 : f32
    %1 = vector.broadcast %cst : f32 to vector<8x128xf32>
    %c0_i32 = arith.constant 0 : i32
    %2 = arith.addi %0, %c0_i32 : i32
    %c0 = arith.constant 0 : index
    %3 = arith.index_cast %2 : i32 to index
    %c0_0 = arith.constant 0 : index
    %c0_1 = arith.constant 0 : index
    %4 = vector.load %arg2[%c0, %3, %c0_0, %c0_1] : memref<1x7x7x128xf32, #tpu.memory_space<vmem>>, vector<1x2x4x128xf32>
    %5 = vector.shape_cast %4 : vector<1x2x4x128xf32> to vector<8x128xf32>
    %c0_2 = arith.constant 0 : index
    %c0_3 = arith.constant 0 : index
    %c0_4 = arith.constant 0 : index
    %6 = vector.load %arg3[%c0_2, %c0_3, %c0_4] : memref<16x128x128xf32, #tpu.memory_space<vmem>>, vector<1x128x128xf32>
    %7 = vector.shape_cast %6 : vector<1x128x128xf32> to vector<128x128xf32>
    %cst_5 = arith.constant dense<0.000000e+00> : vector<8x128xf32>
    %8 = tpu.matmul %5, %7, %cst_5 {dimension_numbers = #tpu.dot_dimension_numbers<[1], [0], [0], [1], [0, 0, 1, 1], [], []>} : vector<8x128xf32>, vector<128x128xf32>, vector<8x128xf32> -> vector<8x128xf32>
    %9 = arith.addf %1, %8 : vector<8x128xf32>
    %c0_i32_6 = arith.constant 0 : i32
    %10 = arith.addi %0, %c0_i32_6 : i32
    %c0_7 = arith.constant 0 : index
    %11 = arith.index_cast %10 : i32 to index
    %c1 = arith.constant 1 : index
    %c0_8 = arith.constant 0 : index
    %12 = vector.load %arg2[%c0_7, %11, %c1, %c0_8] : memref<1x7x7x128xf32, #tpu.memory_space<vmem>>, vector<1x2x4x128xf32>
    %13 = vector.shape_cast %12 : vector<1x2x4x128xf32> to vector<8x128xf32>
    %c1_9 = arith.constant 1 : index
    %c0_10 = arith.constant 0 : index
    %c0_11 = arith.constant 0 : index
    %14 = vector.load %arg3[%c1_9, %c0_10, %c0_11] : memref<16x128x128xf32, #tpu.memory_space<vmem>>, vector<1x128x128xf32>
    %15 = vector.shape_cast %14 : vector<1x128x128xf32> to vector<128x128xf32>
    %cst_12 = arith.constant dense<0.000000e+00> : vector<8x128xf32>
    %16 = tpu.matmul %13, %15, %cst_12 {dimension_numbers = #tpu.dot_dimension_numbers<[1], [0], [0], [1], [0, 0, 1, 1], [], []>} : vector<8x128xf32>, vector<128x128xf32>, vector<8x128xf32> -> vector<8x128xf32>
    %17 = arith.addf %9, %16 : vector<8x128xf32>
    %c0_i32_13 = arith.constant 0 : i32
    %18 = arith.addi %0, %c0_i32_13 : i32
    %c0_14 = arith.constant 0 : index
    %19 = arith.index_cast %18 : i32 to index
    %c2 = arith.constant 2 : index
    %c0_15 = arith.constant 0 : index
    %20 = vector.load %arg2[%c0_14, %19, %c2, %c0_15] : memref<1x7x7x128xf32, #tpu.memory_space<vmem>>, vector<1x2x4x128xf32>
    %21 = vector.shape_cast %20 : vector<1x2x4x128xf32> to vector<8x128xf32>
    %c2_16 = arith.constant 2 : index
    %c0_17 = arith.constant 0 : index
    %c0_18 = arith.constant 0 : index
    %22 = vector.load %arg3[%c2_16, %c0_17, %c0_18] : memref<16x128x128xf32, #tpu.memory_space<vmem>>, vector<1x128x128xf32>
    %23 = vector.shape_cast %22 : vector<1x128x128xf32> to vector<128x128xf32>
    %cst_19 = arith.constant dense<0.000000e+00> : vector<8x128xf32>
    %24 = tpu.matmul %21, %23, %cst_19 {dimension_numbers = #tpu.dot_dimension_numbers<[1], [0], [0], [1], [0, 0, 1, 1], [], []>} : vector<8x128xf32>, vector<128x128xf32>, vector<8x128xf32> -> vector<8x128xf32>
    %25 = arith.addf %17, %24 : vector<8x128xf32>
    %c0_i32_20 = arith.constant 0 : i32
    %26 = arith.addi %0, %c0_i32_20 : i32
    %c0_21 = arith.constant 0 : index
    %27 = arith.index_cast %26 : i32 to index
    %c3 = arith.constant 3 : index
    %c0_22 = arith.constant 0 : index
    %28 = vector.load %arg2[%c0_21, %27, %c3, %c0_22] : memref<1x7x7x128xf32, #tpu.memory_space<vmem>>, vector<1x2x4x128xf32>
    %29 = vector.shape_cast %28 : vector<1x2x4x128xf32> to vector<8x128xf32>
    %c3_23 = arith.constant 3 : index
    %c0_24 = arith.constant 0 : index
    %c0_25 = arith.constant 0 : index
    %30 = vector.load %arg3[%c3_23, %c0_24, %c0_25] : memref<16x128x128xf32, #tpu.memory_space<vmem>>, vector<1x128x128xf32>
    %31 = vector.shape_cast %30 : vector<1x128x128xf32> to vector<128x128xf32>
    %cst_26 = arith.constant dense<0.000000e+00> : vector<8x128xf32>
    %32 = tpu.matmul %29, %31, %cst_26 {dimension_numbers = #tpu.dot_dimension_numbers<[1], [0], [0], [1], [0, 0, 1, 1], [], []>} : vector<8x128xf32>, vector<128x128xf32>, vector<8x128xf32> -> vector<8x128xf32>
    %33 = arith.addf %25, %32 : vector<8x128xf32>
    %c1_i32 = arith.constant 1 : i32
    %34 = arith.addi %0, %c1_i32 : i32
    %c0_27 = arith.constant 0 : index
    %35 = arith.index_cast %34 : i32 to index
    %c0_28 = arith.constant 0 : index
    %c0_29 = arith.constant 0 : index
    %36 = vector.load %arg2[%c0_27, %35, %c0_28, %c0_29] : memref<1x7x7x128xf32, #tpu.memory_space<vmem>>, vector<1x2x4x128xf32>
    %37 = vector.shape_cast %36 : vector<1x2x4x128xf32> to vector<8x128xf32>
    %c4 = arith.constant 4 : index
    %c0_30 = arith.constant 0 : index
    %c0_31 = arith.constant 0 : index
    %38 = vector.load %arg3[%c4, %c0_30, %c0_31] : memref<16x128x128xf32, #tpu.memory_space<vmem>>, vector<1x128x128xf32>
    %39 = vector.shape_cast %38 : vector<1x128x128xf32> to vector<128x128xf32>
    %cst_32 = arith.constant dense<0.000000e+00> : vector<8x128xf32>
    %40 = tpu.matmul %37, %39, %cst_32 {dimension_numbers = #tpu.dot_dimension_numbers<[1], [0], [0], [1], [0, 0, 1, 1], [], []>} : vector<8x128xf32>, vector<128x128xf32>, vector<8x128xf32> -> vector<8x128xf32>
    %41 = arith.addf %33, %40 : vector<8x128xf32>
    %c1_i32_33 = arith.constant 1 : i32
    %42 = arith.addi %0, %c1_i32_33 : i32
    %c0_34 = arith.constant 0 : index
    %43 = arith.index_cast %42 : i32 to index
    %c1_35 = arith.constant 1 : index
    %c0_36 = arith.constant 0 : index
    %44 = vector.load %arg2[%c0_34, %43, %c1_35, %c0_36] : memref<1x7x7x128xf32, #tpu.memory_space<vmem>>, vector<1x2x4x128xf32>
    %45 = vector.shape_cast %44 : vector<1x2x4x128xf32> to vector<8x128xf32>
    %c5 = arith.constant 5 : index
    %c0_37 = arith.constant 0 : index
    %c0_38 = arith.constant 0 : index
    %46 = vector.load %arg3[%c5, %c0_37, %c0_38] : memref<16x128x128xf32, #tpu.memory_space<vmem>>, vector<1x128x128xf32>
    %47 = vector.shape_cast %46 : vector<1x128x128xf32> to vector<128x128xf32>
    %cst_39 = arith.constant dense<0.000000e+00> : vector<8x128xf32>
    %48 = tpu.matmul %45, %47, %cst_39 {dimension_numbers = #tpu.dot_dimension_numbers<[1], [0], [0], [1], [0, 0, 1, 1], [], []>} : vector<8x128xf32>, vector<128x128xf32>, vector<8x128xf32> -> vector<8x128xf32>
    %49 = arith.addf %41, %48 : vector<8x128xf32>
    %c1_i32_40 = arith.constant 1 : i32
    %50 = arith.addi %0, %c1_i32_40 : i32
    %c0_41 = arith.constant 0 : index
    %51 = arith.index_cast %50 : i32 to index
    %c2_42 = arith.constant 2 : index
    %c0_43 = arith.constant 0 : index
    %52 = vector.load %arg2[%c0_41, %51, %c2_42, %c0_43] : memref<1x7x7x128xf32, #tpu.memory_space<vmem>>, vector<1x2x4x128xf32>
    %53 = vector.shape_cast %52 : vector<1x2x4x128xf32> to vector<8x128xf32>
    %c6 = arith.constant 6 : index
    %c0_44 = arith.constant 0 : index
    %c0_45 = arith.constant 0 : index
    %54 = vector.load %arg3[%c6, %c0_44, %c0_45] : memref<16x128x128xf32, #tpu.memory_space<vmem>>, vector<1x128x128xf32>
    %55 = vector.shape_cast %54 : vector<1x128x128xf32> to vector<128x128xf32>
    %cst_46 = arith.constant dense<0.000000e+00> : vector<8x128xf32>
    %56 = tpu.matmul %53, %55, %cst_46 {dimension_numbers = #tpu.dot_dimension_numbers<[1], [0], [0], [1], [0, 0, 1, 1], [], []>} : vector<8x128xf32>, vector<128x128xf32>, vector<8x128xf32> -> vector<8x128xf32>
    %57 = arith.addf %49, %56 : vector<8x128xf32>
    %c1_i32_47 = arith.constant 1 : i32
    %58 = arith.addi %0, %c1_i32_47 : i32
    %c0_48 = arith.constant 0 : index
    %59 = arith.index_cast %58 : i32 to index
    %c3_49 = arith.constant 3 : index
    %c0_50 = arith.constant 0 : index
    %60 = vector.load %arg2[%c0_48, %59, %c3_49, %c0_50] : memref<1x7x7x128xf32, #tpu.memory_space<vmem>>, vector<1x2x4x128xf32>
    %61 = vector.shape_cast %60 : vector<1x2x4x128xf32> to vector<8x128xf32>
    %c7 = arith.constant 7 : index
    %c0_51 = arith.constant 0 : index
    %c0_52 = arith.constant 0 : index
    %62 = vector.load %arg3[%c7, %c0_51, %c0_52] : memref<16x128x128xf32, #tpu.memory_space<vmem>>, vector<1x128x128xf32>
    %63 = vector.shape_cast %62 : vector<1x128x128xf32> to vector<128x128xf32>
    %cst_53 = arith.constant dense<0.000000e+00> : vector<8x128xf32>
    %64 = tpu.matmul %61, %63, %cst_53 {dimension_numbers = #tpu.dot_dimension_numbers<[1], [0], [0], [1], [0, 0, 1, 1], [], []>} : vector<8x128xf32>, vector<128x128xf32>, vector<8x128xf32> -> vector<8x128xf32>
    %65 = arith.addf %57, %64 : vector<8x128xf32>
    %c2_i32_54 = arith.constant 2 : i32
    %66 = arith.addi %0, %c2_i32_54 : i32
    %c0_55 = arith.constant 0 : index
    %67 = arith.index_cast %66 : i32 to index
    %c0_56 = arith.constant 0 : index
    %c0_57 = arith.constant 0 : index
    %68 = vector.load %arg2[%c0_55, %67, %c0_56, %c0_57] : memref<1x7x7x128xf32, #tpu.memory_space<vmem>>, vector<1x2x4x128xf32>
    %69 = vector.shape_cast %68 : vector<1x2x4x128xf32> to vector<8x128xf32>
    %c8 = arith.constant 8 : index
    %c0_58 = arith.constant 0 : index
    %c0_59 = arith.constant 0 : index
    %70 = vector.load %arg3[%c8, %c0_58, %c0_59] : memref<16x128x128xf32, #tpu.memory_space<vmem>>, vector<1x128x128xf32>
    %71 = vector.shape_cast %70 : vector<1x128x128xf32> to vector<128x128xf32>
    %cst_60 = arith.constant dense<0.000000e+00> : vector<8x128xf32>
    %72 = tpu.matmul %69, %71, %cst_60 {dimension_numbers = #tpu.dot_dimension_numbers<[1], [0], [0], [1], [0, 0, 1, 1], [], []>} : vector<8x128xf32>, vector<128x128xf32>, vector<8x128xf32> -> vector<8x128xf32>
    %73 = arith.addf %65, %72 : vector<8x128xf32>
    %c2_i32_61 = arith.constant 2 : i32
    %74 = arith.addi %0, %c2_i32_61 : i32
    %c0_62 = arith.constant 0 : index
    %75 = arith.index_cast %74 : i32 to index
    %c1_63 = arith.constant 1 : index
    %c0_64 = arith.constant 0 : index
    %76 = vector.load %arg2[%c0_62, %75, %c1_63, %c0_64] : memref<1x7x7x128xf32, #tpu.memory_space<vmem>>, vector<1x2x4x128xf32>
    %77 = vector.shape_cast %76 : vector<1x2x4x128xf32> to vector<8x128xf32>
    %c9 = arith.constant 9 : index
    %c0_65 = arith.constant 0 : index
    %c0_66 = arith.constant 0 : index
    %78 = vector.load %arg3[%c9, %c0_65, %c0_66] : memref<16x128x128xf32, #tpu.memory_space<vmem>>, vector<1x128x128xf32>
    %79 = vector.shape_cast %78 : vector<1x128x128xf32> to vector<128x128xf32>
    %cst_67 = arith.constant dense<0.000000e+00> : vector<8x128xf32>
    %80 = tpu.matmul %77, %79, %cst_67 {dimension_numbers = #tpu.dot_dimension_numbers<[1], [0], [0], [1], [0, 0, 1, 1], [], []>} : vector<8x128xf32>, vector<128x128xf32>, vector<8x128xf32> -> vector<8x128xf32>
    %81 = arith.addf %73, %80 : vector<8x128xf32>
    %c2_i32_68 = arith.constant 2 : i32
    %82 = arith.addi %0, %c2_i32_68 : i32
    %c0_69 = arith.constant 0 : index
    %83 = arith.index_cast %82 : i32 to index
    %c2_70 = arith.constant 2 : index
    %c0_71 = arith.constant 0 : index
    %84 = vector.load %arg2[%c0_69, %83, %c2_70, %c0_71] : memref<1x7x7x128xf32, #tpu.memory_space<vmem>>, vector<1x2x4x128xf32>
    %85 = vector.shape_cast %84 : vector<1x2x4x128xf32> to vector<8x128xf32>
    %c10 = arith.constant 10 : index
    %c0_72 = arith.constant 0 : index
    %c0_73 = arith.constant 0 : index
    %86 = vector.load %arg3[%c10, %c0_72, %c0_73] : memref<16x128x128xf32, #tpu.memory_space<vmem>>, vector<1x128x128xf32>
    %87 = vector.shape_cast %86 : vector<1x128x128xf32> to vector<128x128xf32>
    %cst_74 = arith.constant dense<0.000000e+00> : vector<8x128xf32>
    %88 = tpu.matmul %85, %87, %cst_74 {dimension_numbers = #tpu.dot_dimension_numbers<[1], [0], [0], [1], [0, 0, 1, 1], [], []>} : vector<8x128xf32>, vector<128x128xf32>, vector<8x128xf32> -> vector<8x128xf32>
    %89 = arith.addf %81, %88 : vector<8x128xf32>
    %c2_i32_75 = arith.constant 2 : i32
    %90 = arith.addi %0, %c2_i32_75 : i32
    %c0_76 = arith.constant 0 : index
    %91 = arith.index_cast %90 : i32 to index
    %c3_77 = arith.constant 3 : index
    %c0_78 = arith.constant 0 : index
    %92 = vector.load %arg2[%c0_76, %91, %c3_77, %c0_78] : memref<1x7x7x128xf32, #tpu.memory_space<vmem>>, vector<1x2x4x128xf32>
    %93 = vector.shape_cast %92 : vector<1x2x4x128xf32> to vector<8x128xf32>
    %c11 = arith.constant 11 : index
    %c0_79 = arith.constant 0 : index
    %c0_80 = arith.constant 0 : index
    %94 = vector.load %arg3[%c11, %c0_79, %c0_80] : memref<16x128x128xf32, #tpu.memory_space<vmem>>, vector<1x128x128xf32>
    %95 = vector.shape_cast %94 : vector<1x128x128xf32> to vector<128x128xf32>
    %cst_81 = arith.constant dense<0.000000e+00> : vector<8x128xf32>
    %96 = tpu.matmul %93, %95, %cst_81 {dimension_numbers = #tpu.dot_dimension_numbers<[1], [0], [0], [1], [0, 0, 1, 1], [], []>} : vector<8x128xf32>, vector<128x128xf32>, vector<8x128xf32> -> vector<8x128xf32>
    %97 = arith.addf %89, %96 : vector<8x128xf32>
    %c3_i32 = arith.constant 3 : i32
    %98 = arith.addi %0, %c3_i32 : i32
    %c0_82 = arith.constant 0 : index
    %99 = arith.index_cast %98 : i32 to index
    %c0_83 = arith.constant 0 : index
    %c0_84 = arith.constant 0 : index
    %100 = vector.load %arg2[%c0_82, %99, %c0_83, %c0_84] : memref<1x7x7x128xf32, #tpu.memory_space<vmem>>, vector<1x2x4x128xf32>
    %101 = vector.shape_cast %100 : vector<1x2x4x128xf32> to vector<8x128xf32>
    %c12 = arith.constant 12 : index
    %c0_85 = arith.constant 0 : index
    %c0_86 = arith.constant 0 : index
    %102 = vector.load %arg3[%c12, %c0_85, %c0_86] : memref<16x128x128xf32, #tpu.memory_space<vmem>>, vector<1x128x128xf32>
    %103 = vector.shape_cast %102 : vector<1x128x128xf32> to vector<128x128xf32>
    %cst_87 = arith.constant dense<0.000000e+00> : vector<8x128xf32>
    %104 = tpu.matmul %101, %103, %cst_87 {dimension_numbers = #tpu.dot_dimension_numbers<[1], [0], [0], [1], [0, 0, 1, 1], [], []>} : vector<8x128xf32>, vector<128x128xf32>, vector<8x128xf32> -> vector<8x128xf32>
    %105 = arith.addf %97, %104 : vector<8x128xf32>
    %c3_i32_88 = arith.constant 3 : i32
    %106 = arith.addi %0, %c3_i32_88 : i32
    %c0_89 = arith.constant 0 : index
    %107 = arith.index_cast %106 : i32 to index
    %c1_90 = arith.constant 1 : index
    %c0_91 = arith.constant 0 : index
    %108 = vector.load %arg2[%c0_89, %107, %c1_90, %c0_91] : memref<1x7x7x128xf32, #tpu.memory_space<vmem>>, vector<1x2x4x128xf32>
    %109 = vector.shape_cast %108 : vector<1x2x4x128xf32> to vector<8x128xf32>
    %c13 = arith.constant 13 : index
    %c0_92 = arith.constant 0 : index
    %c0_93 = arith.constant 0 : index
    %110 = vector.load %arg3[%c13, %c0_92, %c0_93] : memref<16x128x128xf32, #tpu.memory_space<vmem>>, vector<1x128x128xf32>
    %111 = vector.shape_cast %110 : vector<1x128x128xf32> to vector<128x128xf32>
    %cst_94 = arith.constant dense<0.000000e+00> : vector<8x128xf32>
    %112 = tpu.matmul %109, %111, %cst_94 {dimension_numbers = #tpu.dot_dimension_numbers<[1], [0], [0], [1], [0, 0, 1, 1], [], []>} : vector<8x128xf32>, vector<128x128xf32>, vector<8x128xf32> -> vector<8x128xf32>
    %113 = arith.addf %105, %112 : vector<8x128xf32>
    %c3_i32_95 = arith.constant 3 : i32
    %114 = arith.addi %0, %c3_i32_95 : i32
    %c0_96 = arith.constant 0 : index
    %115 = arith.index_cast %114 : i32 to index
    %c2_97 = arith.constant 2 : index
    %c0_98 = arith.constant 0 : index
    %116 = vector.load %arg2[%c0_96, %115, %c2_97, %c0_98] : memref<1x7x7x128xf32, #tpu.memory_space<vmem>>, vector<1x2x4x128xf32>
    %117 = vector.shape_cast %116 : vector<1x2x4x128xf32> to vector<8x128xf32>
    %c14 = arith.constant 14 : index
    %c0_99 = arith.constant 0 : index
    %c0_100 = arith.constant 0 : index
    %118 = vector.load %arg3[%c14, %c0_99, %c0_100] : memref<16x128x128xf32, #tpu.memory_space<vmem>>, vector<1x128x128xf32>
    %119 = vector.shape_cast %118 : vector<1x128x128xf32> to vector<128x128xf32>
    %cst_101 = arith.constant dense<0.000000e+00> : vector<8x128xf32>
    %120 = tpu.matmul %117, %119, %cst_101 {dimension_numbers = #tpu.dot_dimension_numbers<[1], [0], [0], [1], [0, 0, 1, 1], [], []>} : vector<8x128xf32>, vector<128x128xf32>, vector<8x128xf32> -> vector<8x128xf32>
    %121 = arith.addf %113, %120 : vector<8x128xf32>
    %c3_i32_102 = arith.constant 3 : i32
    %122 = arith.addi %0, %c3_i32_102 : i32
    %c0_103 = arith.constant 0 : index
    %123 = arith.index_cast %122 : i32 to index
    %c3_104 = arith.constant 3 : index
    %c0_105 = arith.constant 0 : index
    %124 = vector.load %arg2[%c0_103, %123, %c3_104, %c0_105] : memref<1x7x7x128xf32, #tpu.memory_space<vmem>>, vector<1x2x4x128xf32>
    %125 = vector.shape_cast %124 : vector<1x2x4x128xf32> to vector<8x128xf32>
    %c15 = arith.constant 15 : index
    %c0_106 = arith.constant 0 : index
    %c0_107 = arith.constant 0 : index
    %126 = vector.load %arg3[%c15, %c0_106, %c0_107] : memref<16x128x128xf32, #tpu.memory_space<vmem>>, vector<1x128x128xf32>
    %127 = vector.shape_cast %126 : vector<1x128x128xf32> to vector<128x128xf32>
    %cst_108 = arith.constant dense<0.000000e+00> : vector<8x128xf32>
    %128 = tpu.matmul %125, %127, %cst_108 {dimension_numbers = #tpu.dot_dimension_numbers<[1], [0], [0], [1], [0, 0, 1, 1], [], []>} : vector<8x128xf32>, vector<128x128xf32>, vector<8x128xf32> -> vector<8x128xf32>
    %129 = arith.addf %121, %128 : vector<8x128xf32>
    %130 = vector.shape_cast %129 : vector<8x128xf32> to vector<1x2x4x128xf32>
    %c0_109 = arith.constant 0 : index
    %c0_110 = arith.constant 0 : index
    %c0_111 = arith.constant 0 : index
    %c0_112 = arith.constant 0 : index
    %131 = vector.load %arg5[%c0_109, %c0_110, %c0_111, %c0_112] : memref<1x2x4x128xf32, #tpu.memory_space<vmem>>, vector<1x2x4x128xf32>
    tpu.vector_store %arg5[%c0_109, %c0_110, %c0_111, %c0_112], %130 {strides = array<i32>} : memref<1x2x4x128xf32, #tpu.memory_space<vmem>>, vector<1x2x4x128xf32>,
    %c0_i32_113 = arith.constant 0 : i32
    %132 = arith.cmpi eq, %arg1, %c0_i32_113 : i32
    %133 = arith.extui %132 : i1 to i32
    %c0_i32_114 = arith.constant 0 : i32
    %134 = arith.cmpi ne, %133, %c0_i32_114 : i32
    scf.if %134 {
      %cst_129 = arith.constant 0.000000e+00 : f32
      %148 = vector.broadcast %cst_129 : f32 to vector<1x1x128xf32>
      %c0_130 = arith.constant 0 : index
      %c0_131 = arith.constant 0 : index
      %c0_132 = arith.constant 0 : index
      %149 = vector.load %arg6[%c0_130, %c0_131, %c0_132] : memref<1x1x128xf32, #tpu.memory_space<vmem>>, vector<1x1x128xf32>
      tpu.vector_store %arg6[%c0_130, %c0_131, %c0_132], %148 {strides = array<i32>} : memref<1x1x128xf32, #tpu.memory_space<vmem>>, vector<1x1x128xf32>,
      %cst_133 = arith.constant 0.000000e+00 : f32
      %150 = vector.broadcast %cst_133 : f32 to vector<1x1x128xf32>
      %c0_134 = arith.constant 0 : index
      %c0_135 = arith.constant 0 : index
      %c0_136 = arith.constant 0 : index
      %151 = vector.load %arg7[%c0_134, %c0_135, %c0_136] : memref<1x1x128xf32, #tpu.memory_space<vmem>>, vector<1x1x128xf32>
      tpu.vector_store %arg7[%c0_134, %c0_135, %c0_136], %150 {strides = array<i32>} : memref<1x1x128xf32, #tpu.memory_space<vmem>>, vector<1x1x128xf32>,
    } else {
    }
    %c0_115 = arith.constant 0 : index
    %c0_116 = arith.constant 0 : index
    %c0_117 = arith.constant 0 : index
    %135 = vector.load %arg6[%c0_115, %c0_116, %c0_117] : memref<1x1x128xf32, #tpu.memory_space<vmem>>, vector<1x1x128xf32>
    %cst_118 = arith.constant dense<0.000000e+00> : vector<128xf32>
    %136 = vector.multi_reduction <add>, %129, %cst_118 [0] : vector<8x128xf32> to vector<128xf32>
    %137 = vector.shape_cast %136 : vector<128xf32> to vector<1x128xf32>
    %138 = vector.shape_cast %137 : vector<1x128xf32> to vector<1x1x128xf32>
    %139 = arith.addf %135, %138 : vector<1x1x128xf32>
    %c0_119 = arith.constant 0 : index
    %c0_120 = arith.constant 0 : index
    %c0_121 = arith.constant 0 : index
    %140 = vector.load %arg6[%c0_119, %c0_120, %c0_121] : memref<1x1x128xf32, #tpu.memory_space<vmem>>, vector<1x1x128xf32>
    tpu.vector_store %arg6[%c0_119, %c0_120, %c0_121], %139 {strides = array<i32>} : memref<1x1x128xf32, #tpu.memory_space<vmem>>, vector<1x1x128xf32>,
    %c0_122 = arith.constant 0 : index
    %c0_123 = arith.constant 0 : index
    %c0_124 = arith.constant 0 : index
    %141 = vector.load %arg7[%c0_122, %c0_123, %c0_124] : memref<1x1x128xf32, #tpu.memory_space<vmem>>, vector<1x1x128xf32>
    %142 = arith.mulf %129, %129 : vector<8x128xf32>
    %cst_125 = arith.constant dense<0.000000e+00> : vector<128xf32>
    %143 = vector.multi_reduction <add>, %142, %cst_125 [0] : vector<8x128xf32> to vector<128xf32>
    %144 = vector.shape_cast %143 : vector<128xf32> to vector<1x128xf32>
    %145 = vector.shape_cast %144 : vector<1x128xf32> to vector<1x1x128xf32>
    %146 = arith.addf %141, %145 : vector<1x1x128xf32>
    %c0_126 = arith.constant 0 : index
    %c0_127 = arith.constant 0 : index
    %c0_128 = arith.constant 0 : index
    %147 = vector.load %arg7[%c0_126, %c0_127, %c0_128] : memref<1x1x128xf32, #tpu.memory_space<vmem>>, vector<1x1x128xf32>
    tpu.vector_store %arg7[%c0_126, %c0_127, %c0_128], %146 {strides = array<i32>} : memref<1x1x128xf32, #tpu.memory_space<vmem>>, vector<1x1x128xf32>,
    return
  }
  func.func @transform_0(%arg0: i32, %arg1: i32) -> (i32, i32, i32, i32) {
    %c0_i32 = arith.constant 0 : i32
    %c0_i32_0 = arith.constant 0 : i32
    %c0_i32_1 = arith.constant 0 : i32
    %c0_i32_2 = arith.constant 0 : i32
    return %arg0, %c0_i32, %c0_i32_0, %c0_i32_1 : i32, i32, i32, i32
  }
  func.func @transform_1(%arg0: i32, %arg1: i32) -> (i32, i32, i32) {
    %c0_i32 = arith.constant 0 : i32
    %c0_i32_0 = arith.constant 0 : i32
    %c0_i32_1 = arith.constant 0 : i32
    %c0_i32_2 = arith.constant 0 : i32
    return %c0_i32, %c0_i32_0, %c0_i32_1 : i32, i32, i32
  }
  func.func @transform_2(%arg0: i32, %arg1: i32) -> (i32, i32) {
    %c0_i32 = arith.constant 0 : i32
    %c0_i32_0 = arith.constant 0 : i32
    %c0_i32_1 = arith.constant 0 : i32
    return %c0_i32, %c0_i32_0 : i32, i32
  }
  func.func @transform_3(%arg0: i32, %arg1: i32) -> (i32, i32, i32, i32) {
    %c0_i32 = arith.constant 0 : i32
    %c0_i32_0 = arith.constant 0 : i32
    %c0_i32_1 = arith.constant 0 : i32
    return %arg0, %arg1, %c0_i32, %c0_i32_0 : i32, i32, i32, i32
  }
  func.func @transform_4(%arg0: i32, %arg1: i32) -> (i32, i32, i32) {
    %c0_i32 = arith.constant 0 : i32
    %c0_i32_0 = arith.constant 0 : i32
    %c0_i32_1 = arith.constant 0 : i32
    return %arg0, %c0_i32, %c0_i32_0 : i32, i32, i32
  }
  func.func @transform_5(%arg0: i32, %arg1: i32) -> (i32, i32, i32) {
    %c0_i32 = arith.constant 0 : i32
    %c0_i32_0 = arith.constant 0 : i32
    %c0_i32_1 = arith.constant 0 : i32
    return %arg0, %c0_i32, %c0_i32_0 : i32, i32, i32
  }
}

module attributes {stable_mosaic.version = 11 : i64} {
  func.func @_inorm_act_kernel(%arg0: i32, %arg1: i32, %arg2: memref<1x2x4x128xf32, #tpu.memory_space<vmem>>, %arg3: memref<1x1x128xf32, #tpu.memory_space<vmem>>, %arg4: memref<1x1x128xf32, #tpu.memory_space<vmem>>, %arg5: memref<1x2x4x128xf32, #tpu.memory_space<vmem>>) attributes {dimension_semantics = [#tpu.dimension_semantics<parallel>, #tpu.dimension_semantics<parallel>], iteration_bounds = array<i64: 2, 2>, scalar_prefetch = 0 : i64, scratch_operands = 0 : i64, tpu.core_type = #tpu.core_type<tc>, window_params = [{transform_indices = @transform_0, window_bounds = array<i64: 1, 2, 4, 128>}, {transform_indices = @transform_1, window_bounds = array<i64: 1, 1, 128>}, {transform_indices = @transform_2, window_bounds = array<i64: 1, 1, 128>}, {transform_indices = @transform_3, window_bounds = array<i64: 1, 2, 4, 128>}]} {
    %c0 = arith.constant 0 : index
    %c0_0 = arith.constant 0 : index
    %c0_1 = arith.constant 0 : index
    %c0_2 = arith.constant 0 : index
    %0 = vector.load %arg2[%c0, %c0_0, %c0_1, %c0_2] : memref<1x2x4x128xf32, #tpu.memory_space<vmem>>, vector<1x2x4x128xf32>
    %c0_3 = arith.constant 0 : index
    %c0_4 = arith.constant 0 : index
    %c0_5 = arith.constant 0 : index
    %1 = vector.load %arg3[%c0_3, %c0_4, %c0_5] : memref<1x1x128xf32, #tpu.memory_space<vmem>>, vector<1x1x128xf32>
    %cst = arith.constant 6.250000e-02 : f32
    %2 = vector.broadcast %cst : f32 to vector<1x1x128xf32>
    %3 = arith.mulf %1, %2 : vector<1x1x128xf32>
    %c0_6 = arith.constant 0 : index
    %c0_7 = arith.constant 0 : index
    %c0_8 = arith.constant 0 : index
    %4 = vector.load %arg4[%c0_6, %c0_7, %c0_8] : memref<1x1x128xf32, #tpu.memory_space<vmem>>, vector<1x1x128xf32>
    %cst_9 = arith.constant 6.250000e-02 : f32
    %5 = vector.broadcast %cst_9 : f32 to vector<1x1x128xf32>
    %6 = arith.mulf %4, %5 : vector<1x1x128xf32>
    %7 = arith.mulf %3, %3 : vector<1x1x128xf32>
    %8 = arith.subf %6, %7 : vector<1x1x128xf32>
    %cst_10 = arith.constant 0.000000e+00 : f32
    %9 = vector.broadcast %cst_10 : f32 to vector<1x1x128xf32>
    %10 = arith.maximumf %8, %9 : vector<1x1x128xf32>
    %11 = vector.shape_cast %3 : vector<1x1x128xf32> to vector<1x1x1x128xf32>
    %12 = vector.broadcast %11 : vector<1x1x1x128xf32> to vector<1x2x4x128xf32>
    %13 = arith.subf %0, %12 : vector<1x2x4x128xf32>
    %cst_11 = arith.constant 9.99999974E-6 : f32
    %14 = vector.broadcast %cst_11 : f32 to vector<1x1x128xf32>
    %15 = arith.addf %10, %14 : vector<1x1x128xf32>
    %16 = math.rsqrt %15 : vector<1x1x128xf32>
    %17 = vector.shape_cast %16 : vector<1x1x128xf32> to vector<1x1x1x128xf32>
    %18 = vector.broadcast %17 : vector<1x1x1x128xf32> to vector<1x2x4x128xf32>
    %19 = arith.mulf %13, %18 : vector<1x2x4x128xf32>
    %cst_12 = arith.constant 0.000000e+00 : f32
    %20 = vector.broadcast %cst_12 : f32 to vector<1x2x4x128xf32>
    %21 = arith.cmpf oge, %19, %20 : vector<1x2x4x128xf32>
    %cst_13 = arith.constant 2.000000e-01 : f32
    %22 = vector.broadcast %cst_13 : f32 to vector<1x2x4x128xf32>
    %23 = arith.mulf %22, %19 : vector<1x2x4x128xf32>
    %24 = arith.select %21, %19, %23 : vector<1x2x4x128xi1>, vector<1x2x4x128xf32>
    %c0_14 = arith.constant 0 : index
    %c0_15 = arith.constant 0 : index
    %c0_16 = arith.constant 0 : index
    %c0_17 = arith.constant 0 : index
    %25 = vector.load %arg5[%c0_14, %c0_15, %c0_16, %c0_17] : memref<1x2x4x128xf32, #tpu.memory_space<vmem>>, vector<1x2x4x128xf32>
    tpu.vector_store %arg5[%c0_14, %c0_15, %c0_16, %c0_17], %24 {strides = array<i32>} : memref<1x2x4x128xf32, #tpu.memory_space<vmem>>, vector<1x2x4x128xf32>,
    return
  }
  func.func @transform_0(%arg0: i32, %arg1: i32) -> (i32, i32, i32, i32) {
    %c0_i32 = arith.constant 0 : i32
    %c0_i32_0 = arith.constant 0 : i32
    %c0_i32_1 = arith.constant 0 : i32
    return %arg0, %arg1, %c0_i32, %c0_i32_0 : i32, i32, i32, i32
  }
  func.func @transform_1(%arg0: i32, %arg1: i32) -> (i32, i32, i32) {
    %c0_i32 = arith.constant 0 : i32
    %c0_i32_0 = arith.constant 0 : i32
    %c0_i32_1 = arith.constant 0 : i32
    return %arg0, %c0_i32, %c0_i32_0 : i32, i32, i32
  }
  func.func @transform_2(%arg0: i32, %arg1: i32) -> (i32, i32, i32) {
    %c0_i32 = arith.constant 0 : i32
    %c0_i32_0 = arith.constant 0 : i32
    %c0_i32_1 = arith.constant 0 : i32
    return %arg0, %c0_i32, %c0_i32_0 : i32, i32, i32
  }
  func.func @transform_3(%arg0: i32, %arg1: i32) -> (i32, i32, i32, i32) {
    %c0_i32 = arith.constant 0 : i32
    %c0_i32_0 = arith.constant 0 : i32
    %c0_i32_1 = arith.constant 0 : i32
    return %arg0, %arg1, %c0_i32, %c0_i32_0 : i32, i32, i32, i32
  }
}

module attributes {stable_mosaic.version = 11 : i64} {
  func.func @_conv_act_kernel(%arg0: i32, %arg1: i32, %arg2: memref<1x8x8x128xf32, #tpu.memory_space<vmem>>, %arg3: memref<16x128x128xf32, #tpu.memory_space<vmem>>, %arg4: memref<1x128xf32, #tpu.memory_space<vmem>>, %arg5: memref<1x1x5x128xf32, #tpu.memory_space<vmem>>) attributes {dimension_semantics = [#tpu.dimension_semantics<parallel>, #tpu.dimension_semantics<parallel>], iteration_bounds = array<i64: 2, 5>, scalar_prefetch = 0 : i64, scratch_operands = 0 : i64, tpu.core_type = #tpu.core_type<tc>, window_params = [{transform_indices = @transform_0, window_bounds = array<i64: 1, 8, 8, 128>}, {pipeline_mode = #tpu.pipeline_mode<synchronous>, transform_indices = @transform_1, window_bounds = array<i64: 16, 128, 128>}, {pipeline_mode = #tpu.pipeline_mode<synchronous>, transform_indices = @transform_2, window_bounds = array<i64: 1, 128>}, {transform_indices = @transform_3, window_bounds = array<i64: 1, 1, 5, 128>}]} {
    %c1_i32 = arith.constant 1 : i32
    %0 = arith.muli %arg1, %c1_i32 : i32
    %cst = arith.constant 0.000000e+00 : f32
    %1 = vector.broadcast %cst : f32 to vector<5x128xf32>
    %c0_i32 = arith.constant 0 : i32
    %2 = arith.addi %0, %c0_i32 : i32
    %c0 = arith.constant 0 : index
    %3 = arith.index_cast %2 : i32 to index
    %c0_0 = arith.constant 0 : index
    %c0_1 = arith.constant 0 : index
    %4 = vector.load %arg2[%c0, %3, %c0_0, %c0_1] : memref<1x8x8x128xf32, #tpu.memory_space<vmem>>, vector<1x1x5x128xf32>
    %5 = vector.shape_cast %4 : vector<1x1x5x128xf32> to vector<5x128xf32>
    %c0_2 = arith.constant 0 : index
    %c0_3 = arith.constant 0 : index
    %c0_4 = arith.constant 0 : index
    %6 = vector.load %arg3[%c0_2, %c0_3, %c0_4] : memref<16x128x128xf32, #tpu.memory_space<vmem>>, vector<1x128x128xf32>
    %7 = vector.shape_cast %6 : vector<1x128x128xf32> to vector<128x128xf32>
    %cst_5 = arith.constant dense<0.000000e+00> : vector<5x128xf32>
    %8 = tpu.matmul %5, %7, %cst_5 {dimension_numbers = #tpu.dot_dimension_numbers<[1], [0], [0], [1], [0, 0, 1, 1], [], []>} : vector<5x128xf32>, vector<128x128xf32>, vector<5x128xf32> -> vector<5x128xf32>
    %9 = arith.addf %1, %8 : vector<5x128xf32>
    %c0_i32_6 = arith.constant 0 : i32
    %10 = arith.addi %0, %c0_i32_6 : i32
    %c0_7 = arith.constant 0 : index
    %11 = arith.index_cast %10 : i32 to index
    %c1 = arith.constant 1 : index
    %c0_8 = arith.constant 0 : index
    %12 = vector.load %arg2[%c0_7, %11, %c1, %c0_8] : memref<1x8x8x128xf32, #tpu.memory_space<vmem>>, vector<1x1x5x128xf32>
    %13 = vector.shape_cast %12 : vector<1x1x5x128xf32> to vector<5x128xf32>
    %c1_9 = arith.constant 1 : index
    %c0_10 = arith.constant 0 : index
    %c0_11 = arith.constant 0 : index
    %14 = vector.load %arg3[%c1_9, %c0_10, %c0_11] : memref<16x128x128xf32, #tpu.memory_space<vmem>>, vector<1x128x128xf32>
    %15 = vector.shape_cast %14 : vector<1x128x128xf32> to vector<128x128xf32>
    %cst_12 = arith.constant dense<0.000000e+00> : vector<5x128xf32>
    %16 = tpu.matmul %13, %15, %cst_12 {dimension_numbers = #tpu.dot_dimension_numbers<[1], [0], [0], [1], [0, 0, 1, 1], [], []>} : vector<5x128xf32>, vector<128x128xf32>, vector<5x128xf32> -> vector<5x128xf32>
    %17 = arith.addf %9, %16 : vector<5x128xf32>
    %c0_i32_13 = arith.constant 0 : i32
    %18 = arith.addi %0, %c0_i32_13 : i32
    %c0_14 = arith.constant 0 : index
    %19 = arith.index_cast %18 : i32 to index
    %c2 = arith.constant 2 : index
    %c0_15 = arith.constant 0 : index
    %20 = vector.load %arg2[%c0_14, %19, %c2, %c0_15] : memref<1x8x8x128xf32, #tpu.memory_space<vmem>>, vector<1x1x5x128xf32>
    %21 = vector.shape_cast %20 : vector<1x1x5x128xf32> to vector<5x128xf32>
    %c2_16 = arith.constant 2 : index
    %c0_17 = arith.constant 0 : index
    %c0_18 = arith.constant 0 : index
    %22 = vector.load %arg3[%c2_16, %c0_17, %c0_18] : memref<16x128x128xf32, #tpu.memory_space<vmem>>, vector<1x128x128xf32>
    %23 = vector.shape_cast %22 : vector<1x128x128xf32> to vector<128x128xf32>
    %cst_19 = arith.constant dense<0.000000e+00> : vector<5x128xf32>
    %24 = tpu.matmul %21, %23, %cst_19 {dimension_numbers = #tpu.dot_dimension_numbers<[1], [0], [0], [1], [0, 0, 1, 1], [], []>} : vector<5x128xf32>, vector<128x128xf32>, vector<5x128xf32> -> vector<5x128xf32>
    %25 = arith.addf %17, %24 : vector<5x128xf32>
    %c0_i32_20 = arith.constant 0 : i32
    %26 = arith.addi %0, %c0_i32_20 : i32
    %c0_21 = arith.constant 0 : index
    %27 = arith.index_cast %26 : i32 to index
    %c3 = arith.constant 3 : index
    %c0_22 = arith.constant 0 : index
    %28 = vector.load %arg2[%c0_21, %27, %c3, %c0_22] : memref<1x8x8x128xf32, #tpu.memory_space<vmem>>, vector<1x1x5x128xf32>
    %29 = vector.shape_cast %28 : vector<1x1x5x128xf32> to vector<5x128xf32>
    %c3_23 = arith.constant 3 : index
    %c0_24 = arith.constant 0 : index
    %c0_25 = arith.constant 0 : index
    %30 = vector.load %arg3[%c3_23, %c0_24, %c0_25] : memref<16x128x128xf32, #tpu.memory_space<vmem>>, vector<1x128x128xf32>
    %31 = vector.shape_cast %30 : vector<1x128x128xf32> to vector<128x128xf32>
    %cst_26 = arith.constant dense<0.000000e+00> : vector<5x128xf32>
    %32 = tpu.matmul %29, %31, %cst_26 {dimension_numbers = #tpu.dot_dimension_numbers<[1], [0], [0], [1], [0, 0, 1, 1], [], []>} : vector<5x128xf32>, vector<128x128xf32>, vector<5x128xf32> -> vector<5x128xf32>
    %33 = arith.addf %25, %32 : vector<5x128xf32>
    %c1_i32_27 = arith.constant 1 : i32
    %34 = arith.addi %0, %c1_i32_27 : i32
    %c0_28 = arith.constant 0 : index
    %35 = arith.index_cast %34 : i32 to index
    %c0_29 = arith.constant 0 : index
    %c0_30 = arith.constant 0 : index
    %36 = vector.load %arg2[%c0_28, %35, %c0_29, %c0_30] : memref<1x8x8x128xf32, #tpu.memory_space<vmem>>, vector<1x1x5x128xf32>
    %37 = vector.shape_cast %36 : vector<1x1x5x128xf32> to vector<5x128xf32>
    %c4 = arith.constant 4 : index
    %c0_31 = arith.constant 0 : index
    %c0_32 = arith.constant 0 : index
    %38 = vector.load %arg3[%c4, %c0_31, %c0_32] : memref<16x128x128xf32, #tpu.memory_space<vmem>>, vector<1x128x128xf32>
    %39 = vector.shape_cast %38 : vector<1x128x128xf32> to vector<128x128xf32>
    %cst_33 = arith.constant dense<0.000000e+00> : vector<5x128xf32>
    %40 = tpu.matmul %37, %39, %cst_33 {dimension_numbers = #tpu.dot_dimension_numbers<[1], [0], [0], [1], [0, 0, 1, 1], [], []>} : vector<5x128xf32>, vector<128x128xf32>, vector<5x128xf32> -> vector<5x128xf32>
    %41 = arith.addf %33, %40 : vector<5x128xf32>
    %c1_i32_34 = arith.constant 1 : i32
    %42 = arith.addi %0, %c1_i32_34 : i32
    %c0_35 = arith.constant 0 : index
    %43 = arith.index_cast %42 : i32 to index
    %c1_36 = arith.constant 1 : index
    %c0_37 = arith.constant 0 : index
    %44 = vector.load %arg2[%c0_35, %43, %c1_36, %c0_37] : memref<1x8x8x128xf32, #tpu.memory_space<vmem>>, vector<1x1x5x128xf32>
    %45 = vector.shape_cast %44 : vector<1x1x5x128xf32> to vector<5x128xf32>
    %c5 = arith.constant 5 : index
    %c0_38 = arith.constant 0 : index
    %c0_39 = arith.constant 0 : index
    %46 = vector.load %arg3[%c5, %c0_38, %c0_39] : memref<16x128x128xf32, #tpu.memory_space<vmem>>, vector<1x128x128xf32>
    %47 = vector.shape_cast %46 : vector<1x128x128xf32> to vector<128x128xf32>
    %cst_40 = arith.constant dense<0.000000e+00> : vector<5x128xf32>
    %48 = tpu.matmul %45, %47, %cst_40 {dimension_numbers = #tpu.dot_dimension_numbers<[1], [0], [0], [1], [0, 0, 1, 1], [], []>} : vector<5x128xf32>, vector<128x128xf32>, vector<5x128xf32> -> vector<5x128xf32>
    %49 = arith.addf %41, %48 : vector<5x128xf32>
    %c1_i32_41 = arith.constant 1 : i32
    %50 = arith.addi %0, %c1_i32_41 : i32
    %c0_42 = arith.constant 0 : index
    %51 = arith.index_cast %50 : i32 to index
    %c2_43 = arith.constant 2 : index
    %c0_44 = arith.constant 0 : index
    %52 = vector.load %arg2[%c0_42, %51, %c2_43, %c0_44] : memref<1x8x8x128xf32, #tpu.memory_space<vmem>>, vector<1x1x5x128xf32>
    %53 = vector.shape_cast %52 : vector<1x1x5x128xf32> to vector<5x128xf32>
    %c6 = arith.constant 6 : index
    %c0_45 = arith.constant 0 : index
    %c0_46 = arith.constant 0 : index
    %54 = vector.load %arg3[%c6, %c0_45, %c0_46] : memref<16x128x128xf32, #tpu.memory_space<vmem>>, vector<1x128x128xf32>
    %55 = vector.shape_cast %54 : vector<1x128x128xf32> to vector<128x128xf32>
    %cst_47 = arith.constant dense<0.000000e+00> : vector<5x128xf32>
    %56 = tpu.matmul %53, %55, %cst_47 {dimension_numbers = #tpu.dot_dimension_numbers<[1], [0], [0], [1], [0, 0, 1, 1], [], []>} : vector<5x128xf32>, vector<128x128xf32>, vector<5x128xf32> -> vector<5x128xf32>
    %57 = arith.addf %49, %56 : vector<5x128xf32>
    %c1_i32_48 = arith.constant 1 : i32
    %58 = arith.addi %0, %c1_i32_48 : i32
    %c0_49 = arith.constant 0 : index
    %59 = arith.index_cast %58 : i32 to index
    %c3_50 = arith.constant 3 : index
    %c0_51 = arith.constant 0 : index
    %60 = vector.load %arg2[%c0_49, %59, %c3_50, %c0_51] : memref<1x8x8x128xf32, #tpu.memory_space<vmem>>, vector<1x1x5x128xf32>
    %61 = vector.shape_cast %60 : vector<1x1x5x128xf32> to vector<5x128xf32>
    %c7 = arith.constant 7 : index
    %c0_52 = arith.constant 0 : index
    %c0_53 = arith.constant 0 : index
    %62 = vector.load %arg3[%c7, %c0_52, %c0_53] : memref<16x128x128xf32, #tpu.memory_space<vmem>>, vector<1x128x128xf32>
    %63 = vector.shape_cast %62 : vector<1x128x128xf32> to vector<128x128xf32>
    %cst_54 = arith.constant dense<0.000000e+00> : vector<5x128xf32>
    %64 = tpu.matmul %61, %63, %cst_54 {dimension_numbers = #tpu.dot_dimension_numbers<[1], [0], [0], [1], [0, 0, 1, 1], [], []>} : vector<5x128xf32>, vector<128x128xf32>, vector<5x128xf32> -> vector<5x128xf32>
    %65 = arith.addf %57, %64 : vector<5x128xf32>
    %c2_i32 = arith.constant 2 : i32
    %66 = arith.addi %0, %c2_i32 : i32
    %c0_55 = arith.constant 0 : index
    %67 = arith.index_cast %66 : i32 to index
    %c0_56 = arith.constant 0 : index
    %c0_57 = arith.constant 0 : index
    %68 = vector.load %arg2[%c0_55, %67, %c0_56, %c0_57] : memref<1x8x8x128xf32, #tpu.memory_space<vmem>>, vector<1x1x5x128xf32>
    %69 = vector.shape_cast %68 : vector<1x1x5x128xf32> to vector<5x128xf32>
    %c8 = arith.constant 8 : index
    %c0_58 = arith.constant 0 : index
    %c0_59 = arith.constant 0 : index
    %70 = vector.load %arg3[%c8, %c0_58, %c0_59] : memref<16x128x128xf32, #tpu.memory_space<vmem>>, vector<1x128x128xf32>
    %71 = vector.shape_cast %70 : vector<1x128x128xf32> to vector<128x128xf32>
    %cst_60 = arith.constant dense<0.000000e+00> : vector<5x128xf32>
    %72 = tpu.matmul %69, %71, %cst_60 {dimension_numbers = #tpu.dot_dimension_numbers<[1], [0], [0], [1], [0, 0, 1, 1], [], []>} : vector<5x128xf32>, vector<128x128xf32>, vector<5x128xf32> -> vector<5x128xf32>
    %73 = arith.addf %65, %72 : vector<5x128xf32>
    %c2_i32_61 = arith.constant 2 : i32
    %74 = arith.addi %0, %c2_i32_61 : i32
    %c0_62 = arith.constant 0 : index
    %75 = arith.index_cast %74 : i32 to index
    %c1_63 = arith.constant 1 : index
    %c0_64 = arith.constant 0 : index
    %76 = vector.load %arg2[%c0_62, %75, %c1_63, %c0_64] : memref<1x8x8x128xf32, #tpu.memory_space<vmem>>, vector<1x1x5x128xf32>
    %77 = vector.shape_cast %76 : vector<1x1x5x128xf32> to vector<5x128xf32>
    %c9 = arith.constant 9 : index
    %c0_65 = arith.constant 0 : index
    %c0_66 = arith.constant 0 : index
    %78 = vector.load %arg3[%c9, %c0_65, %c0_66] : memref<16x128x128xf32, #tpu.memory_space<vmem>>, vector<1x128x128xf32>
    %79 = vector.shape_cast %78 : vector<1x128x128xf32> to vector<128x128xf32>
    %cst_67 = arith.constant dense<0.000000e+00> : vector<5x128xf32>
    %80 = tpu.matmul %77, %79, %cst_67 {dimension_numbers = #tpu.dot_dimension_numbers<[1], [0], [0], [1], [0, 0, 1, 1], [], []>} : vector<5x128xf32>, vector<128x128xf32>, vector<5x128xf32> -> vector<5x128xf32>
    %81 = arith.addf %73, %80 : vector<5x128xf32>
    %c2_i32_68 = arith.constant 2 : i32
    %82 = arith.addi %0, %c2_i32_68 : i32
    %c0_69 = arith.constant 0 : index
    %83 = arith.index_cast %82 : i32 to index
    %c2_70 = arith.constant 2 : index
    %c0_71 = arith.constant 0 : index
    %84 = vector.load %arg2[%c0_69, %83, %c2_70, %c0_71] : memref<1x8x8x128xf32, #tpu.memory_space<vmem>>, vector<1x1x5x128xf32>
    %85 = vector.shape_cast %84 : vector<1x1x5x128xf32> to vector<5x128xf32>
    %c10 = arith.constant 10 : index
    %c0_72 = arith.constant 0 : index
    %c0_73 = arith.constant 0 : index
    %86 = vector.load %arg3[%c10, %c0_72, %c0_73] : memref<16x128x128xf32, #tpu.memory_space<vmem>>, vector<1x128x128xf32>
    %87 = vector.shape_cast %86 : vector<1x128x128xf32> to vector<128x128xf32>
    %cst_74 = arith.constant dense<0.000000e+00> : vector<5x128xf32>
    %88 = tpu.matmul %85, %87, %cst_74 {dimension_numbers = #tpu.dot_dimension_numbers<[1], [0], [0], [1], [0, 0, 1, 1], [], []>} : vector<5x128xf32>, vector<128x128xf32>, vector<5x128xf32> -> vector<5x128xf32>
    %89 = arith.addf %81, %88 : vector<5x128xf32>
    %c2_i32_75 = arith.constant 2 : i32
    %90 = arith.addi %0, %c2_i32_75 : i32
    %c0_76 = arith.constant 0 : index
    %91 = arith.index_cast %90 : i32 to index
    %c3_77 = arith.constant 3 : index
    %c0_78 = arith.constant 0 : index
    %92 = vector.load %arg2[%c0_76, %91, %c3_77, %c0_78] : memref<1x8x8x128xf32, #tpu.memory_space<vmem>>, vector<1x1x5x128xf32>
    %93 = vector.shape_cast %92 : vector<1x1x5x128xf32> to vector<5x128xf32>
    %c11 = arith.constant 11 : index
    %c0_79 = arith.constant 0 : index
    %c0_80 = arith.constant 0 : index
    %94 = vector.load %arg3[%c11, %c0_79, %c0_80] : memref<16x128x128xf32, #tpu.memory_space<vmem>>, vector<1x128x128xf32>
    %95 = vector.shape_cast %94 : vector<1x128x128xf32> to vector<128x128xf32>
    %cst_81 = arith.constant dense<0.000000e+00> : vector<5x128xf32>
    %96 = tpu.matmul %93, %95, %cst_81 {dimension_numbers = #tpu.dot_dimension_numbers<[1], [0], [0], [1], [0, 0, 1, 1], [], []>} : vector<5x128xf32>, vector<128x128xf32>, vector<5x128xf32> -> vector<5x128xf32>
    %97 = arith.addf %89, %96 : vector<5x128xf32>
    %c3_i32 = arith.constant 3 : i32
    %98 = arith.addi %0, %c3_i32 : i32
    %c0_82 = arith.constant 0 : index
    %99 = arith.index_cast %98 : i32 to index
    %c0_83 = arith.constant 0 : index
    %c0_84 = arith.constant 0 : index
    %100 = vector.load %arg2[%c0_82, %99, %c0_83, %c0_84] : memref<1x8x8x128xf32, #tpu.memory_space<vmem>>, vector<1x1x5x128xf32>
    %101 = vector.shape_cast %100 : vector<1x1x5x128xf32> to vector<5x128xf32>
    %c12 = arith.constant 12 : index
    %c0_85 = arith.constant 0 : index
    %c0_86 = arith.constant 0 : index
    %102 = vector.load %arg3[%c12, %c0_85, %c0_86] : memref<16x128x128xf32, #tpu.memory_space<vmem>>, vector<1x128x128xf32>
    %103 = vector.shape_cast %102 : vector<1x128x128xf32> to vector<128x128xf32>
    %cst_87 = arith.constant dense<0.000000e+00> : vector<5x128xf32>
    %104 = tpu.matmul %101, %103, %cst_87 {dimension_numbers = #tpu.dot_dimension_numbers<[1], [0], [0], [1], [0, 0, 1, 1], [], []>} : vector<5x128xf32>, vector<128x128xf32>, vector<5x128xf32> -> vector<5x128xf32>
    %105 = arith.addf %97, %104 : vector<5x128xf32>
    %c3_i32_88 = arith.constant 3 : i32
    %106 = arith.addi %0, %c3_i32_88 : i32
    %c0_89 = arith.constant 0 : index
    %107 = arith.index_cast %106 : i32 to index
    %c1_90 = arith.constant 1 : index
    %c0_91 = arith.constant 0 : index
    %108 = vector.load %arg2[%c0_89, %107, %c1_90, %c0_91] : memref<1x8x8x128xf32, #tpu.memory_space<vmem>>, vector<1x1x5x128xf32>
    %109 = vector.shape_cast %108 : vector<1x1x5x128xf32> to vector<5x128xf32>
    %c13 = arith.constant 13 : index
    %c0_92 = arith.constant 0 : index
    %c0_93 = arith.constant 0 : index
    %110 = vector.load %arg3[%c13, %c0_92, %c0_93] : memref<16x128x128xf32, #tpu.memory_space<vmem>>, vector<1x128x128xf32>
    %111 = vector.shape_cast %110 : vector<1x128x128xf32> to vector<128x128xf32>
    %cst_94 = arith.constant dense<0.000000e+00> : vector<5x128xf32>
    %112 = tpu.matmul %109, %111, %cst_94 {dimension_numbers = #tpu.dot_dimension_numbers<[1], [0], [0], [1], [0, 0, 1, 1], [], []>} : vector<5x128xf32>, vector<128x128xf32>, vector<5x128xf32> -> vector<5x128xf32>
    %113 = arith.addf %105, %112 : vector<5x128xf32>
    %c3_i32_95 = arith.constant 3 : i32
    %114 = arith.addi %0, %c3_i32_95 : i32
    %c0_96 = arith.constant 0 : index
    %115 = arith.index_cast %114 : i32 to index
    %c2_97 = arith.constant 2 : index
    %c0_98 = arith.constant 0 : index
    %116 = vector.load %arg2[%c0_96, %115, %c2_97, %c0_98] : memref<1x8x8x128xf32, #tpu.memory_space<vmem>>, vector<1x1x5x128xf32>
    %117 = vector.shape_cast %116 : vector<1x1x5x128xf32> to vector<5x128xf32>
    %c14 = arith.constant 14 : index
    %c0_99 = arith.constant 0 : index
    %c0_100 = arith.constant 0 : index
    %118 = vector.load %arg3[%c14, %c0_99, %c0_100] : memref<16x128x128xf32, #tpu.memory_space<vmem>>, vector<1x128x128xf32>
    %119 = vector.shape_cast %118 : vector<1x128x128xf32> to vector<128x128xf32>
    %cst_101 = arith.constant dense<0.000000e+00> : vector<5x128xf32>
    %120 = tpu.matmul %117, %119, %cst_101 {dimension_numbers = #tpu.dot_dimension_numbers<[1], [0], [0], [1], [0, 0, 1, 1], [], []>} : vector<5x128xf32>, vector<128x128xf32>, vector<5x128xf32> -> vector<5x128xf32>
    %121 = arith.addf %113, %120 : vector<5x128xf32>
    %c3_i32_102 = arith.constant 3 : i32
    %122 = arith.addi %0, %c3_i32_102 : i32
    %c0_103 = arith.constant 0 : index
    %123 = arith.index_cast %122 : i32 to index
    %c3_104 = arith.constant 3 : index
    %c0_105 = arith.constant 0 : index
    %124 = vector.load %arg2[%c0_103, %123, %c3_104, %c0_105] : memref<1x8x8x128xf32, #tpu.memory_space<vmem>>, vector<1x1x5x128xf32>
    %125 = vector.shape_cast %124 : vector<1x1x5x128xf32> to vector<5x128xf32>
    %c15 = arith.constant 15 : index
    %c0_106 = arith.constant 0 : index
    %c0_107 = arith.constant 0 : index
    %126 = vector.load %arg3[%c15, %c0_106, %c0_107] : memref<16x128x128xf32, #tpu.memory_space<vmem>>, vector<1x128x128xf32>
    %127 = vector.shape_cast %126 : vector<1x128x128xf32> to vector<128x128xf32>
    %cst_108 = arith.constant dense<0.000000e+00> : vector<5x128xf32>
    %128 = tpu.matmul %125, %127, %cst_108 {dimension_numbers = #tpu.dot_dimension_numbers<[1], [0], [0], [1], [0, 0, 1, 1], [], []>} : vector<5x128xf32>, vector<128x128xf32>, vector<5x128xf32> -> vector<5x128xf32>
    %129 = arith.addf %121, %128 : vector<5x128xf32>
    %cst_109 = arith.constant 0.000000e+00 : f32
    %130 = vector.broadcast %cst_109 : f32 to vector<5x128xf32>
    %131 = arith.subf %130, %129 : vector<5x128xf32>
    %132 = math.exp %131 : vector<5x128xf32>
    %cst_110 = arith.constant 1.000000e+00 : f32
    %133 = vector.broadcast %cst_110 : f32 to vector<5x128xf32>
    %134 = arith.addf %133, %132 : vector<5x128xf32>
    %cst_111 = arith.constant 1.000000e+00 : f32
    %135 = vector.broadcast %cst_111 : f32 to vector<5x128xf32>
    %136 = arith.divf %135, %134 : vector<5x128xf32>
    %137 = vector.shape_cast %136 : vector<5x128xf32> to vector<1x1x5x128xf32>
    %c0_112 = arith.constant 0 : index
    %c0_113 = arith.constant 0 : index
    %c0_114 = arith.constant 0 : index
    %c0_115 = arith.constant 0 : index
    %138 = vector.load %arg5[%c0_112, %c0_113, %c0_114, %c0_115] : memref<1x1x5x128xf32, #tpu.memory_space<vmem>>, vector<1x1x5x128xf32>
    tpu.vector_store %arg5[%c0_112, %c0_113, %c0_114, %c0_115], %137 {strides = array<i32>} : memref<1x1x5x128xf32, #tpu.memory_space<vmem>>, vector<1x1x5x128xf32>,
    return
  }
  func.func @transform_0(%arg0: i32, %arg1: i32) -> (i32, i32, i32, i32) {
    %c0_i32 = arith.constant 0 : i32
    %c0_i32_0 = arith.constant 0 : i32
    %c0_i32_1 = arith.constant 0 : i32
    %c0_i32_2 = arith.constant 0 : i32
    return %arg0, %c0_i32, %c0_i32_0, %c0_i32_1 : i32, i32, i32, i32
  }
  func.func @transform_1(%arg0: i32, %arg1: i32) -> (i32, i32, i32) {
    %c0_i32 = arith.constant 0 : i32
    %c0_i32_0 = arith.constant 0 : i32
    %c0_i32_1 = arith.constant 0 : i32
    %c0_i32_2 = arith.constant 0 : i32
    return %c0_i32, %c0_i32_0, %c0_i32_1 : i32, i32, i32
  }
  func.func @transform_2(%arg0: i32, %arg1: i32) -> (i32, i32) {
    %c0_i32 = arith.constant 0 : i32
    %c0_i32_0 = arith.constant 0 : i32
    %c0_i32_1 = arith.constant 0 : i32
    return %c0_i32, %c0_i32_0 : i32, i32
  }
  func.func @transform_3(%arg0: i32, %arg1: i32) -> (i32, i32, i32, i32) {
    %c0_i32 = arith.constant 0 : i32
    %c0_i32_0 = arith.constant 0 : i32
    %c0_i32_1 = arith.constant 0 : i32
    return %arg0, %arg1, %c0_i32, %c0_i32_0 : i32, i32, i32, i32
  }
}

</mosaic_0001>

<bundles_post_ra>
// kernel: cycle_d_sn_forward.10
= control target key start
LH: loop header
LB: loop body
LE: loop exit
PB: predicated region body
PF: predicated region fallthrough
CT: control target
= control target key end

     0   :  { %s474_s12 = smov 0   ;;  %s476_s13 = smov 0   ;;  %s531_s0 = inlined_call_operand.vmem [shape: f32[2,5,5,128], index: 0, kind: input, shape index: {}]   ;;  %s532_s1 = inlined_call_operand.vmem [shape: f32[2,1,128], index: 1, kind: input, shape index: {}]   ;;  %s533_s2 = inlined_call_operand.vmem [shape: f32[2,1,128], index: 2, kind: input, shape index: {}]   ;;  %s534_s3 = inlined_call_operand.vmem [shape: f32[2,5,5,128], index: 3, kind: output, shape index: {}]  }
   0x1   :  { %s478_s14 = smov 0   ;;  %s480_s15 = smov 0  }
   0x2   :  { %s482_s16 = smov 0  }
   0x3 LB: > { %s22_s17 = sadd.s32 1, %s444_s14  ;;  %s25_s18 = sadd.s32 1, %s448_s15  ;;  %s452_s16 = sphi %s482_s16, %s13_s16   ;;  %s448_s15 = sphi %s480_s15, %s538_s15   ;;  %s444_s14 = sphi %s478_s14, %s537_s14   ;;  %s440_s13 = sphi %s476_s13, %s536_s13   ;;  %s436_s12 = sphi %s474_s12, %s535_s12  }
   0x4   : > { %p23_p0 = scmp.ge.s32.totalorder %s22_s17, 5  ;;  %p366_p1 = scmp.ge.s32.totalorder %s452_s16, 1 }
   0x5   : > { %p172_p2 = scmp.lt.s32.totalorder %s452_s16, 11 }
   0x6   : > { %s540_s17 = smov (%p23_p0, %s22_s17), 0  ;;  %s542_s18 = smov (!%p23_p0, %s25_s18), %s448_s15 }
   0x7   : > { %p173_p3 = pnand %p366_p1, %p172_p2  ;;  %p27_p4 = scmp.ge.s32.totalorder %s542_s18, 2 }
   0x8   : > { %p208_p5 = scmp.lt.s32.totalorder (!%p173_p3), %s440_s13, 1  ;;  %p210_p6 = scmp.lt.s32.totalorder (!%p173_p3), %s436_s12, 4 }
   0x9   : > { %s544_s18 = smov (%p27_p4, %s542_s18), 0  ;;  %176 = sbr.rel (%p173_p3) target bundleno = 49 (0x31), region = 32 }
   0xe   : > { %s546_s13 = smov (!%p208_p5, %s440_s13), 1  ;;  %s548_s12 = smov (!%p210_p6, %s436_s12), 4  ;;  %v239_v7 = vlaneseq }
   0xf   : > { %s218_s21 = scalar_lea.vmem %s532_s1, %s546_s13  ;;  %s221_s24 = scalar_lea.vmem %s533_s2, %s546_s13 }
  0x10   : > { %v231_v0 = vld [vmem:[%s218_s21] sm:$0x1]  ;;  %s371_s25 = smul.u32 5, %s546_s13  ;;  %v240_v9 = vshrl.u32 %v239_v7, 7 }
  0x11   : > { %v232_v1 = vmul.f32 0.04, %v231_v0  ;;  %v233_v2 = vld [vmem:[%s221_s24] sm:$0x1] }
  0x12   : > { %v234_v3 = vmul.f32 0.04, %v233_v2  ;;  %s213_s26 = sadd.s32 %s371_s25, %s548_s12  ;;  %v241_v10 = vsub.s32 0, %v240_v9 }
  0x13   : > { %v235_v4 = vmul.f32 %v232_v1, %v232_v1  ;;  %s367_s27 = sshll.u32 %s213_s26, 3 }
  0x14   : > { %s215_s30 = scalar_lea.vmem %s531_s0, %s367_s27  ;;  %v242_v11 = vrot.slane %v232_v1, %v241_v10  ;;  %s229_s6 = scalar_lea.vmem %s534_s3, %s367_s27 }
  0x15   : > { %v236_v5 = vsub.f32 %v234_v3, %v235_v4  ;;  %v230_v12 = vld [vmem:[%s215_s30] sm:$0x1f] }
  0x16   : > { %v244_v13 = vsub.f32 %v230_v12, %v242_v11 }
  0x17   : > { %v237_v6 = vmax.f32 %v236_v5, 0.0 }
  0x19   : > { %v245_v8 = vadd.f32 1e-05, %v237_v6 }
  0x1b   : > { %412 = vrsqrt.f32 %v245_v8 }
  0x28   : > { %v413_v14 = vpop.eup %412 }
  0x29   : > { %v251_v15 = vrot.slane %v413_v14, %v241_v10 }
  0x2b   : > { %v253_v16 = vmul.f32 %v251_v15, %v244_v13 }
  0x2d   : > { %vm254_vm0 = vcmp.ge.f32.partialorder %v253_v16, 0.0  ;;  %v255_v17 = vmul.f32 0.2, %v253_v16 }
  0x2f   : > { %v256_v18 = vsel %vm254_vm0, %v253_v16, %v255_v17 }
  0x30   : > { %257 = vst [vmem:[%s229_s6] sm:$0x1f] %v256_v18 }
  0x31 PF: > { %s13_s16 = sadd.s32 1, %s452_s16   ;;  %s535_s12 = smov %s444_s14 }
  0x32   : > { %p10_p7 = scmp.ge.s32.totalorder %s13_s16, 12   ;;  %s536_s13 = smov %s448_s15 }
  0x33   : > { %s537_s14 = smov %s540_s17  ;;  %s538_s15 = smov %s544_s18 }
  0x34   :  { %12 = sbr.rel (!%p10_p7) target bundleno = 3 (0x3), region = 68 }

// kernel: cycle_d_sn_forward.8
= control target key start
LH: loop header
LB: loop body
LE: loop exit
PB: predicated region body
PF: predicated region fallthrough
CT: control target
= control target key end

     0   :  { %s2109_s12 = smov 0   ;;  %s2111_s13 = smov 0   ;;  %s2315_s0 = inlined_call_operand.vmem [shape: f32[2,40,10,4], index: 0, kind: input, shape index: {}]   ;;  %s2316_s1 = inlined_call_operand.vmem [shape: f32[16,4,128], index: 1, kind: input, shape index: {}]   ;;  %s2317_s2 = inlined_call_operand.vmem [shape: f32[1,128], index: 2, kind: input, shape index: {}]   ;;  %s2318_s3 = inlined_call_operand.vmem [shape: f32[2,9,9,128], index: 3, kind: output, shape index: {}]  }
   0x1   :  { %s2113_s14 = smov 0   ;;  %s2115_s15 = smov 0  }
   0x2   :  { %s2117_s16 = smov 0  }
   0x3 LB: > { %s22_s2 = sadd.s32 1, %s2079_s14  ;;  %s25_s17 = sadd.s32 1, %s2083_s15  ;;  %s2087_s16 = sphi %s2117_s16, %s13_s16   ;;  %s2083_s15 = sphi %s2115_s15, %s2322_s15   ;;  %s2079_s14 = sphi %s2113_s14, %s2321_s14   ;;  %s2075_s13 = sphi %s2111_s13, %s2320_s13   ;;  %s2071_s12 = sphi %s2109_s12, %s2319_s12  }
   0x4   : > { %p23_p0 = scmp.ge.s32.totalorder %s22_s2, 9  ;;  %p1774_p1 = scmp.ge.s32.totalorder %s2087_s16, 1 }
   0x5   : > { %p151_p2 = scmp.lt.s32.totalorder %s2087_s16, 19 }
   0x6   : > { %s2324_s2 = smov (%p23_p0, %s22_s2), 0  ;;  %s2326_s17 = smov (!%p23_p0, %s25_s17), %s2083_s15 }
   0x7   : > { %p152_p3 = pnand %p1774_p1, %p151_p2  ;;  %p27_p4 = scmp.ge.s32.totalorder %s2326_s17, 2 }
   0x8   : > { %p179_p5 = scmp.lt.s32.totalorder (!%p152_p3), %s2075_s13, 1  ;;  %s1778_s27 = sshll.u32 (!%p152_p3), %s2071_s12, 4 }
   0x9   : > { %s2328_s17 = smov (%p27_p4, %s2326_s17), 0  ;;  %155 = sbr.rel (%p152_p3) target bundleno = 252 (0xfc), region = 32 }
   0xa   : > { %p186_p6 = scmp.lt.s32.totalorder (!%p152_p3), %s2071_s12, 8 }
   0xe   : > { %v1782_v0 = vld [vmem:[%s2316_s1 + $0x4] sm:$0xf]  ;;  %vm212_vm0 = vcmask 1043456   ;;  %v197_v1 = vld [vmem:[%s2316_s1] sm:$0xf]  ;;  %s2330_s13 = smov (!%p179_p5, %s2075_s13), 1 }
   0xf   : > { %1927 = vmatprep.subr.msk.mxu0 %vm212_vm0, %v1782_v0  ;;  %1932 = vmatprep.subr.msk.mxu1 %vm212_vm0, %v197_v1  ;;  %v1789_v2 = vld [vmem:[%s2316_s1 + $0x8] sm:$0xf]  ;;  %v1795_v3 = vld [vmem:[%s2316_s1 + $0xc] sm:$0xf]  ;;  %s2007_s26 = smul.u32 640, %s2330_s13  ;;  %vm205_vm1 = vcmask 31744  }
  0x10   : > { %1928 = vmatpush3.msk.msra.mxu0 %vm212_vm0, %v1782_v0  ;;  %1933 = vmatpush3.msk.msra.mxu1 %vm212_vm0, %v197_v1  ;;  %v1802_v10 = vld [vmem:[%s2316_s1 + $0x10] sm:$0xf]  ;;  %v1809_v11 = vld [vmem:[%s2316_s1 + $0x14] sm:$0xf]  ;;  %v1815_v16 = vld [vmem:[%s2316_s1 + $0x18] sm:$0xf] }
  0x11   : > { %1937 = vmatprep.subr.msk.mxu0 %vm212_vm0, %v1789_v2  ;;  %1942 = vmatprep.subr.msk.mxu1 %vm212_vm0, %v1795_v3  ;;  %s183_s30 = scalar_lea.vmem %s2315_s0, %s2007_s26  ;;  %v1821_v17 = vld [vmem:[%s2316_s1 + $0x1c] sm:$0xf]  ;;  %v1828_v22 = vld [vmem:[%s2316_s1 + $0x20] sm:$0xf]  ;;  %v1835_v23 = vld [vmem:[%s2316_s1 + $0x24] sm:$0xf] }
  0x12   : > { %s2166_s4 = scalar_lea.vmem %s183_s30, %s1778_s27  ;;  %v1841_v28 = vld [vmem:[%s2316_s1 + $0x28] sm:$0xf]  ;;  %v1847_v29 = vld [vmem:[%s2316_s1 + $0x2c] sm:$0xf]  ;;  %v1854_v34 = vld [vmem:[%s2316_s1 + $0x30] sm:$0xf] }
  0x13   : > { %v1780_v4 = vld [vmem:[%s2166_s4 + $0xa0] sm:$0xff]  ;;  %v1781_v6 = vld [vmem:[%s2166_s4 + $0xa8] sm:$0x1]  ;;  %v376_v12 = vld [vmem:[%s2166_s4 + $0x9] sm:$0x1]  ;;  %s2332_s12 = smov (!%p186_p6, %s2071_s12), 8 }
  0x14   : > { %v195_v5 = vld [vmem:[%s2166_s4] sm:$0xff]  ;;  %1929 = vmatprep.mubr.msk.f32.mxu0 %vm205_vm1, %v1780_v4  ;;  %v196_v7 = vld [vmem:[%s2166_s4 + $0x8] sm:$0x1]  ;;  %v1794_v13 = vld [vmem:[%s2166_s4 + $0xa9] sm:$0x1]  ;;  %s1776_s9 = sshll.u32 %s2332_s12, 1 }
  0x15   : > { %1934 = vmatprep.mubr.msk.f32.mxu1 %vm205_vm1, %v195_v5  ;;  %v375_v8 = vld [vmem:[%s2166_s4 + $0x1] sm:$0xff]  ;;  %1930 = vmatmul.mubr.msk.f32.vlgmr.msra.gmra.mxu0 %vm205_vm1, %v1781_v6  ;;  %v1814_v24 = vld [vmem:[%s2166_s4 + $0x149] sm:$0x1]  ;;  %v1826_v26 = vld [vmem:[%s2166_s4 + $0x10] sm:$0xff] }
  0x16   : > { %v1793_v9 = vld [vmem:[%s2166_s4 + $0xa1] sm:$0xff]  ;;  %1935 = vmatmul.mubr.msk.f32.vlgmr.msra.gmra.mxu1 %vm205_vm1, %v196_v7  ;;  %1938 = vmatpush3.msk.msra.mxu0 %vm212_vm0, %v1789_v2  ;;  %v1820_v25 = vld [vmem:[%s2166_s4 + $0x1e9] sm:$0x1]  ;;  %v1833_v27 = vld [vmem:[%s2166_s4 + $0xb0] sm:$0xff] }
  0x17   : > { %1943 = vmatpush3.msk.msra.mxu1 %vm212_vm0, %v1795_v3  ;;  %1939 = vmatprep.mubr.msk.f32.mxu0 %vm205_vm1, %v375_v8  ;;  %v1800_v14 = vld [vmem:[%s2166_s4 + $0x140] sm:$0xff]  ;;  %v1801_v18 = vld [vmem:[%s2166_s4 + $0x148] sm:$0x1]  ;;  %v1827_v30 = vld [vmem:[%s2166_s4 + $0x18] sm:$0x1] }
  0x18   : > { %1944 = vmatprep.mubr.msk.f32.mxu1 %vm205_vm1, %v1793_v9  ;;  %1947 = vmatprep.subr.msk.mxu0 %vm212_vm0, %v1802_v10  ;;  %v1807_v15 = vld [vmem:[%s2166_s4 + $0x1e0] sm:$0xff]  ;;  %v1808_v19 = vld [vmem:[%s2166_s4 + $0x1e8] sm:$0x1]  ;;  %v1834_v31 = vld [vmem:[%s2166_s4 + $0xb8] sm:$0x1] }
  0x19   : > { %1952 = vmatprep.subr.msk.mxu1 %vm212_vm0, %v1809_v11  ;;  %1940 = vmatmul.mubr.msk.f32.vlgmr.msra.gmra.mxu0 %vm205_vm1, %v376_v12  ;;  %v1813_v20 = vld [vmem:[%s2166_s4 + $0x141] sm:$0xff]  ;;  %v1839_v32 = vld [vmem:[%s2166_s4 + $0x11] sm:$0xff]  ;;  %v1840_v36 = vld [vmem:[%s2166_s4 + $0x19] sm:$0x1] }
  0x1a   : > { %1945 = vmatmul.mubr.msk.f32.vlgmr.msra.gmra.mxu1 %vm205_vm1, %v1794_v13  ;;  %1948 = vmatpush3.msk.msra.mxu0 %vm212_vm0, %v1802_v10  ;;  %v1819_v21 = vld [vmem:[%s2166_s4 + $0x1e1] sm:$0xff]  ;;  %v1845_v33 = vld [vmem:[%s2166_s4 + $0xb1] sm:$0xff]  ;;  %v1846_v37 = vld [vmem:[%s2166_s4 + $0xb9] sm:$0x1] }
  0x1b   : > { %1953 = vmatpush3.msk.msra.mxu1 %vm212_vm0, %v1809_v11  ;;  %1949 = vmatprep.mubr.msk.f32.mxu0 %vm205_vm1, %v1800_v14  ;;  %v1861_v35 = vld [vmem:[%s2316_s1 + $0x34] sm:$0xf]  ;;  %v1867_v40 = vld [vmem:[%s2316_s1 + $0x38] sm:$0xf]  ;;  %v1873_v41 = vld [vmem:[%s2316_s1 + $0x3c] sm:$0xf] }
  0x1c   : > { %1954 = vmatprep.mubr.msk.f32.mxu1 %vm205_vm1, %v1807_v15  ;;  %1957 = vmatprep.subr.msk.mxu0 %vm212_vm0, %v1815_v16  ;;  %v1852_v38 = vld [vmem:[%s2166_s4 + $0x150] sm:$0xff]  ;;  %v1853_v42 = vld [vmem:[%s2166_s4 + $0x158] sm:$0x1]  ;;  %v1866_v46 = vld [vmem:[%s2166_s4 + $0x159] sm:$0x1] }
  0x1d   : > { %1962 = vmatprep.subr.msk.mxu1 %vm212_vm0, %v1821_v17  ;;  %1950 = vmatmul.mubr.msk.f32.vlgmr.msra.gmra.mxu0 %vm205_vm1, %v1801_v18  ;;  %v1859_v39 = vld [vmem:[%s2166_s4 + $0x1f0] sm:$0xff]  ;;  %v1860_v43 = vld [vmem:[%s2166_s4 + $0x1f8] sm:$0x1]  ;;  %v1872_v47 = vld [vmem:[%s2166_s4 + $0x1f9] sm:$0x1] }
  0x1e   : > { %1955 = vmatmul.mubr.msk.f32.vlgmr.msra.gmra.mxu1 %vm205_vm1, %v1808_v19  ;;  %1958 = vmatpush3.msk.msra.mxu0 %vm212_vm0, %v1815_v16  ;;  %v1865_v44 = vld [vmem:[%s2166_s4 + $0x151] sm:$0xff] }
  0x1f   : > { %1963 = vmatpush3.msk.msra.mxu1 %vm212_vm0, %v1821_v17  ;;  %1959 = vmatprep.mubr.msk.f32.mxu0 %vm205_vm1, %v1813_v20  ;;  %v1871_v45 = vld [vmem:[%s2166_s4 + $0x1f1] sm:$0xff]  ;;  %s2008_s4 = smul.u32 18, %s2330_s13 }
  0x20   : > { %1964 = vmatprep.mubr.msk.f32.mxu1 %vm205_vm1, %v1819_v21  ;;  %1967 = vmatprep.subr.msk.mxu0 %vm212_vm0, %v1828_v22 }
  0x21   : > { %1972 = vmatprep.subr.msk.mxu1 %vm212_vm0, %v1835_v23  ;;  %1960 = vmatmul.mubr.msk.f32.vlgmr.msra.gmra.mxu0 %vm205_vm1, %v1814_v24  ;;  %s190_s10 = sadd.s32 %s2008_s4, %s1776_s9 }
  0x22   : > { %1965 = vmatmul.mubr.msk.f32.vlgmr.msra.gmra.mxu1 %vm205_vm1, %v1820_v25  ;;  %1968 = vmatpush3.msk.msra.mxu0 %vm212_vm0, %v1828_v22  ;;  %s1777_s11 = sshll.u32 %s190_s10, 3 }
  0x23   : > { %1973 = vmatpush3.msk.msra.mxu1 %vm212_vm0, %v1835_v23  ;;  %1969 = vmatprep.mubr.msk.f32.mxu0 %vm205_vm1, %v1826_v26  ;;  %s192_s12 = scalar_lea.vmem %s2318_s3, %s1777_s11 }
  0x24   : > { %1974 = vmatprep.mubr.msk.f32.mxu1 %vm205_vm1, %v1833_v27  ;;  %1977 = vmatprep.subr.msk.mxu0 %vm212_vm0, %v1841_v28 }
  0x25   : > { %1982 = vmatprep.subr.msk.mxu1 %vm212_vm0, %v1847_v29  ;;  %1970 = vmatmul.mubr.msk.f32.vlgmr.msra.gmra.mxu0 %vm205_vm1, %v1827_v30 }
  0x26   : > { %1975 = vmatmul.mubr.msk.f32.vlgmr.msra.gmra.mxu1 %vm205_vm1, %v1834_v31  ;;  %1978 = vmatpush3.msk.msra.mxu0 %vm212_vm0, %v1841_v28 }
  0x27   : > { %1983 = vmatpush3.msk.msra.mxu1 %vm212_vm0, %v1847_v29  ;;  %1979 = vmatprep.mubr.msk.f32.mxu0 %vm205_vm1, %v1839_v32 }
  0x28   : > { %1984 = vmatprep.mubr.msk.f32.mxu1 %vm205_vm1, %v1845_v33  ;;  %1987 = vmatprep.subr.msk.mxu0 %vm212_vm0, %v1854_v34 }
  0x29   : > { %1992 = vmatprep.subr.msk.mxu1 %vm212_vm0, %v1861_v35  ;;  %1980 = vmatmul.mubr.msk.f32.vlgmr.msra.gmra.mxu0 %vm205_vm1, %v1840_v36 }
  0x2a   : > { %1985 = vmatmul.mubr.msk.f32.vlgmr.msra.gmra.mxu1 %vm205_vm1, %v1846_v37  ;;  %1988 = vmatpush3.msk.msra.mxu0 %vm212_vm0, %v1854_v34 }
  0x2b   : > { %1993 = vmatpush3.msk.msra.mxu1 %vm212_vm0, %v1861_v35  ;;  %1989 = vmatprep.mubr.msk.f32.mxu0 %vm205_vm1, %v1852_v38 }
  0x2c   : > { %1994 = vmatprep.mubr.msk.f32.mxu1 %vm205_vm1, %v1859_v39  ;;  %1997 = vmatprep.subr.msk.mxu0 %vm212_vm0, %v1867_v40 }
  0x2d   : > { %2002 = vmatprep.subr.msk.mxu1 %vm212_vm0, %v1873_v41  ;;  %1990 = vmatmul.mubr.msk.f32.vlgmr.msra.gmra.mxu0 %vm205_vm1, %v1853_v42 }
  0x2e   : > { %1995 = vmatmul.mubr.msk.f32.vlgmr.msra.gmra.mxu1 %vm205_vm1, %v1860_v43  ;;  %1998 = vmatpush3.msk.msra.mxu0 %vm212_vm0, %v1867_v40 }
  0x2f   : > { %2003 = vmatpush3.msk.msra.mxu1 %vm212_vm0, %v1873_v41  ;;  %1999 = vmatprep.mubr.msk.f32.mxu0 %vm205_vm1, %v1865_v44 }
  0x30   : > { %2004 = vmatprep.mubr.msk.f32.mxu1 %vm205_vm1, %v1871_v45 }
  0x31   : > { %2000 = vmatmul.mubr.msk.f32.vlgmr.msra.gmra.mxu0 %vm205_vm1, %v1866_v46 }
  0x32   : > { %2005 = vmatmul.mubr.msk.f32.vlgmr.msra.gmra.mxu1 %vm205_vm1, %v1872_v47 }
  0xd5   : > { %v1931_v48 = vpop.f32.mrf.mxu0 }
  0xd6   : > { %v1936_v49 = vpop.f32.mrf.mxu1 }
  0xd7   : > { %v282_v50 = vpop.f32.mrf.mxu0  ;;  %v372_v52 = vadd.f32 %v1936_v49, %v1931_v48 }
  0xd8   : > { %v366_v51 = vpop.f32.mrf.mxu1 }
  0xd9   : > { %v1941_v53 = vpop.f32.mrf.mxu0  ;;  %v367_v55 = vadd.f32 %v366_v51, %v282_v50 }
  0xda   : > { %v1946_v54 = vpop.f32.mrf.mxu1  ;;  %v464_v56 = vadd.f32 %v1941_v53, %v372_v52 }
  0xdb   : > { %v454_v57 = vpop.f32.mrf.mxu0 }
  0xdc   : > { %v544_v58 = vpop.f32.mrf.mxu1  ;;  %v554_v59 = vadd.f32 %v1946_v54, %v464_v56  ;;  %v463_v60 = vadd.f32 %v454_v57, %v367_v55 }
  0xdd   : > { %v1951_v61 = vpop.f32.mrf.mxu0 }
  0xde   : > { %v1956_v62 = vpop.f32.mrf.mxu1  ;;  %v553_v63 = vadd.f32 %v544_v58, %v463_v60  ;;  %v647_v0 = vadd.f32 %v1951_v61, %v554_v59 }
  0xdf   : > { %v637_v1 = vpop.f32.mrf.mxu0 }
  0xe0   : > { %v730_v2 = vpop.f32.mrf.mxu1  ;;  %v740_v3 = vadd.f32 %v1956_v62, %v647_v0  ;;  %v646_v4 = vadd.f32 %v637_v1, %v553_v63 }
  0xe1   : > { %v1961_v5 = vpop.f32.mrf.mxu0 }
  0xe2   : > { %v1966_v6 = vpop.f32.mrf.mxu1  ;;  %v739_v7 = vadd.f32 %v730_v2, %v646_v4  ;;  %v830_v8 = vadd.f32 %v1961_v5, %v740_v3 }
  0xe3   : > { %v820_v9 = vpop.f32.mrf.mxu0 }
  0xe4   : > { %v910_v10 = vpop.f32.mrf.mxu1  ;;  %v920_v11 = vadd.f32 %v1966_v6, %v830_v8  ;;  %v829_v12 = vadd.f32 %v820_v9, %v739_v7 }
  0xe5   : > { %v1971_v13 = vpop.f32.mrf.mxu0 }
  0xe6   : > { %v1976_v14 = vpop.f32.mrf.mxu1  ;;  %v919_v15 = vadd.f32 %v910_v10, %v829_v12  ;;  %v1013_v16 = vadd.f32 %v1971_v13, %v920_v11 }
  0xe7   : > { %v1003_v17 = vpop.f32.mrf.mxu0 }
  0xe8   : > { %v1096_v18 = vpop.f32.mrf.mxu1  ;;  %v1106_v19 = vadd.f32 %v1976_v14, %v1013_v16  ;;  %v1012_v20 = vadd.f32 %v1003_v17, %v919_v15 }
  0xe9   : > { %v1981_v21 = vpop.f32.mrf.mxu0 }
  0xea   : > { %v1986_v22 = vpop.f32.mrf.mxu1  ;;  %v1105_v23 = vadd.f32 %v1096_v18, %v1012_v20  ;;  %v1196_v24 = vadd.f32 %v1981_v21, %v1106_v19 }
  0xeb   : > { %v1186_v25 = vpop.f32.mrf.mxu0 }
  0xec   : > { %v1276_v26 = vpop.f32.mrf.mxu1  ;;  %v1286_v27 = vadd.f32 %v1986_v22, %v1196_v24  ;;  %v1195_v28 = vadd.f32 %v1186_v25, %v1105_v23 }
  0xed   : > { %v1991_v29 = vpop.f32.mrf.mxu0 }
  0xee   : > { %v1996_v30 = vpop.f32.mrf.mxu1  ;;  %v1285_v31 = vadd.f32 %v1276_v26, %v1195_v28  ;;  %v1379_v32 = vadd.f32 %v1991_v29, %v1286_v27 }
  0xef   : > { %v1369_v33 = vpop.f32.mrf.mxu0 }
  0xf0   : > { %v1462_v34 = vpop.f32.mrf.mxu1  ;;  %v1472_v35 = vadd.f32 %v1996_v30, %v1379_v32  ;;  %v1378_v36 = vadd.f32 %v1369_v33, %v1285_v31 }
  0xf1   : > { %v2001_v37 = vpop.f32.mrf.mxu0 }
  0xf2   : > { %v2006_v38 = vpop.f32.mrf.mxu1  ;;  %v1471_v39 = vadd.f32 %v1462_v34, %v1378_v36  ;;  %v1562_v40 = vadd.f32 %v2001_v37, %v1472_v35 }
  0xf3   : > { %v1552_v41 = vpop.f32.mrf.mxu0 }
  0xf4   : > { %v1652_v42 = vadd.f32 %v2006_v38, %v1562_v40  ;;  %v1561_v43 = vadd.f32 %v1552_v41, %v1471_v39  ;;  %v1642_v44 = vpop.f32.mrf.mxu1 }
  0xf6   : > { %vm1654_vm2 = vcmp.ge.f32.partialorder %v1652_v42, 0.0  ;;  %v1656_v45 = vmul.f32 0.2, %v1652_v42  ;;  %v1651_v46 = vadd.f32 %v1642_v44, %v1561_v43 }
  0xf8   : > { %v1658_v47 = vsel %vm1654_vm2, %v1652_v42, %v1656_v45  ;;  %vm1653_vm3 = vcmp.ge.f32.partialorder %v1651_v46, 0.0  ;;  %v1655_v48 = vmul.f32 0.2, %v1651_v46 }
  0xf9   : > { %1660 = vst [vmem:[%s192_s12 + $0x8] sm:$0x1] %v1658_v47 }
  0xfa   : > { %v1657_v49 = vsel %vm1653_vm3, %v1651_v46, %v1655_v48 }
  0xfb   : > { %1659 = vst [vmem:[%s192_s12] sm:$0xff] %v1657_v49 }
  0xfc PF: > { %s13_s16 = sadd.s32 1, %s2087_s16   ;;  %s2319_s12 = smov %s2079_s14 }
  0xfd   : > { %p10_p7 = scmp.ge.s32.totalorder %s13_s16, 20   ;;  %s2320_s13 = smov %s2083_s15 }
  0xfe   : > { %s2321_s14 = smov %s2324_s2  ;;  %s2322_s15 = smov %s2328_s17 }
  0xff   :  { %12 = sbr.rel (!%p10_p7) target bundleno = 3 (0x3), region = 85 }

// kernel: cycle_d_sn_forward.9
= control target key start
LH: loop header
LB: loop body
LE: loop exit
PB: predicated region body
PF: predicated region fallthrough
CT: control target
= control target key end

     0   :  { %s3110_s18 = smov 0   ;;  %s3112_s19 = smov 0   ;;  %s4266_s0 = inlined_call_operand.vmem [shape: f32[2,28,7,128], index: 0, kind: input, shape index: {}]   ;;  %s4267_s1 = inlined_call_operand.vmem [shape: f32[16,128,128], index: 1, kind: input, shape index: {}]   ;;  %s4268_s2 = inlined_call_operand.vmem [shape: f32[1,128], index: 2, kind: input, shape index: {}]   ;;  %s4269_s3 = inlined_call_operand.vmem [shape: f32[2,5,5,128], index: 3, kind: output, shape index: {0}]   ;;  %s4270_s4 = inlined_call_operand.vmem [shape: f32[2,1,128], index: 4, kind: output, shape index: {1}]   ;;  %s4271_s5 = inlined_call_operand.vmem [shape: f32[2,1,128], index: 5, kind: output, shape index: {2}]  }
   0x1   :  { %s3114_s20 = smov 0   ;;  %s3116_s21 = smov 0  }
   0x2   :  { %s3118_s22 = smov 0  }
   0x3 LB: > { %s25_s2 = sadd.s32 1, %s3067_s20  ;;  %s28_s23 = sadd.s32 1, %s3071_s21  ;;  %s3075_s22 = sphi %s3118_s22, %s16_s22   ;;  %s3071_s21 = sphi %s3116_s21, %s4275_s21   ;;  %s3067_s20 = sphi %s3114_s20, %s4274_s20   ;;  %s3063_s19 = sphi %s3112_s19, %s4273_s19   ;;  %s3059_s18 = sphi %s3110_s18, %s4272_s18  }
   0x4   : > { %p26_p0 = scmp.ge.s32.totalorder %s25_s2, 5  ;;  %p1892_p1 = scmp.ge.s32.totalorder %s3075_s22, 1 }
   0x5   : > { %p206_p2 = scmp.lt.s32.totalorder %s3075_s22, 11 }
   0x6   : > { %s4277_s2 = smov (%p26_p0, %s25_s2), 0  ;;  %s4279_s23 = smov (!%p26_p0, %s28_s23), %s3071_s21 }
   0x7   : > { %p207_p3 = pnand %p1892_p1, %p206_p2  ;;  %p30_p4 = scmp.ge.s32.totalorder %s4279_s23, 2 }
   0x8   : > { %p243_p5 = scmp.lt.s32.totalorder (!%p207_p3), %s3063_s19, 1  ;;  %s1895_s8 = sshll.u32 (!%p207_p3), %s3059_s18, 3 }
   0x9   : > { %s4281_s23 = smov (%p30_p4, %s4279_s23), 0  ;;  %210 = sbr.rel (%p207_p3) target bundleno = 504 (0x1f8), region = 32 }
   0xa   : > { %p250_p6 = scmp.lt.s32.totalorder (!%p207_p3), %s3059_s18, 4  ;;  %p2157_p7 = scmp.ne.s32.totalorder (!%p207_p3), %s3059_s18, 0 }
   0xe   : > { %v1913_v0 = vld [vmem:[%s4267_s1 + $0xf8] sm:$0xff]  ;;  %v3077_v2 = vmov 0.0   ;;  %v1912_v3 = vld [vmem:[%s4267_s1 + $0xf0] sm:$0xff]  ;;  %s4283_s19 = smov (!%p243_p5, %s3063_s19), 1  ;;  %v1911_v5 = vld [vmem:[%s4267_s1 + $0xe8] sm:$0xff]  ;;  %vm3078_vm0 = vmmov 0  }
   0xf   : > { %v280_v1 = vld [vmem:[%s4267_s1 + $0x78] sm:$0xff]  ;;  %2432 = vmatprep.subr.mxu0 %v3077_v2  ;;  %2467 = vmatprep.subr.mxu1 %v3077_v2  ;;  %v279_v4 = vld [vmem:[%s4267_s1 + $0x70] sm:$0xff]  ;;  %v278_v6 = vld [vmem:[%s4267_s1 + $0x68] sm:$0xff]  ;;  %s3170_s13 = scalar_lea.vmem %s4270_s4, %s4283_s19  ;;  %s3184_s26 = scalar_lea.vmem %s4271_s5, %s4283_s19 }
  0x10   : > { %2433 = vmatpush3.msra.mxu0 %v1913_v0  ;;  %2468 = vmatpush3.msra.mxu1 %v280_v1  ;;  %v1910_v7 = vld [vmem:[%s4267_s1 + $0xe0] sm:$0xff]  ;;  %v1909_v9 = vld [vmem:[%s4267_s1 + $0xd8] sm:$0xff]  ;;  %v1908_v11 = vld [vmem:[%s4267_s1 + $0xd0] sm:$0xff]  ;;  %s2992_s14 = smul.u32 224, %s4283_s19 }
  0x11   : > { %2434 = vmatprep.subr.mxu0 %v3077_v2  ;;  %2469 = vmatprep.subr.mxu1 %v3077_v2  ;;  %v277_v8 = vld [vmem:[%s4267_s1 + $0x60] sm:$0xff]  ;;  %v276_v10 = vld [vmem:[%s4267_s1 + $0x58] sm:$0xff]  ;;  %v275_v12 = vld [vmem:[%s4267_s1 + $0x50] sm:$0xff]  ;;  %s2993_s30 = smul.u32 5, %s4283_s19 }
  0x12   : > { %2435 = vmatpush3.msra.mxu0 %v1912_v3  ;;  %2470 = vmatpush3.msra.mxu1 %v279_v4  ;;  %v1907_v13 = vld [vmem:[%s4267_s1 + $0xc8] sm:$0xff]  ;;  %v1906_v15 = vld [vmem:[%s4267_s1 + $0xc0] sm:$0xff]  ;;  %v1905_v17 = vld [vmem:[%s4267_s1 + $0xb8] sm:$0xff]  ;;  %s247_s7 = scalar_lea.vmem %s4266_s0, %s2992_s14 }
  0x13   : > { %2436 = vmatprep.subr.mxu0 %v3077_v2  ;;  %2471 = vmatprep.subr.mxu1 %v3077_v2  ;;  %v274_v14 = vld [vmem:[%s4267_s1 + $0x48] sm:$0xff]  ;;  %v273_v16 = vld [vmem:[%s4267_s1 + $0x40] sm:$0xff]  ;;  %v272_v18 = vld [vmem:[%s4267_s1 + $0x38] sm:$0xff]  ;;  %s3279_s24 = scalar_lea.vmem %s247_s7, %s1895_s8 }
  0x14   : > { %2437 = vmatpush3.msra.mxu0 %v1911_v5  ;;  %2472 = vmatpush3.msra.mxu1 %v278_v6  ;;  %v1904_v19 = vld [vmem:[%s4267_s1 + $0xb0] sm:$0xff]  ;;  %v1903_v21 = vld [vmem:[%s4267_s1 + $0xa8] sm:$0xff]  ;;  %v1902_v23 = vld [vmem:[%s4267_s1 + $0xa0] sm:$0xff] }
  0x15   : > { %2438 = vmatprep.subr.mxu0 %v3077_v2  ;;  %2473 = vmatprep.subr.mxu1 %v3077_v2  ;;  %v271_v20 = vld [vmem:[%s4267_s1 + $0x30] sm:$0xff]  ;;  %v270_v22 = vld [vmem:[%s4267_s1 + $0x28] sm:$0xff]  ;;  %v269_v24 = vld [vmem:[%s4267_s1 + $0x20] sm:$0xff] }
  0x16   : > { %2439 = vmatpush3.msra.mxu0 %v1910_v7  ;;  %2474 = vmatpush3.msra.mxu1 %v277_v8  ;;  %v1901_v25 = vld [vmem:[%s4267_s1 + $0x98] sm:$0xff]  ;;  %v1900_v27 = vld [vmem:[%s4267_s1 + $0x90] sm:$0xff]  ;;  %v1899_v29 = vld [vmem:[%s4267_s1 + $0x88] sm:$0xff] }
  0x17   : > { %2440 = vmatprep.subr.mxu0 %v3077_v2  ;;  %2475 = vmatprep.subr.mxu1 %v3077_v2  ;;  %v268_v26 = vld [vmem:[%s4267_s1 + $0x18] sm:$0xff]  ;;  %v267_v28 = vld [vmem:[%s4267_s1 + $0x10] sm:$0xff]  ;;  %v266_v30 = vld [vmem:[%s4267_s1 + $0x8] sm:$0xff] }
  0x18   : > { %2441 = vmatpush3.msra.mxu0 %v1909_v9  ;;  %2476 = vmatpush3.msra.mxu1 %v276_v10  ;;  %v1898_v31 = vld [vmem:[%s4267_s1 + $0x80] sm:$0xff]  ;;  %v1897_v33 = vld [vmem:[%s3279_s24 + $0x38] sm:$0x1f]  ;;  %v1928_v37 = vld [vmem:[%s4267_s1 + $0x170] sm:$0xff] }
  0x19   : > { %2442 = vmatprep.subr.mxu0 %v3077_v2  ;;  %2477 = vmatprep.subr.mxu1 %v3077_v2  ;;  %v265_v32 = vld [vmem:[%s4267_s1] sm:$0xff]  ;;  %v1929_v35 = vld [vmem:[%s4267_s1 + $0x178] sm:$0xff]  ;;  %v1945_v38 = vld [vmem:[%s4267_s1 + $0x1f0] sm:$0xff] }
  0x1a   : > { %2443 = vmatpush3.msra.mxu0 %v1908_v11  ;;  %2478 = vmatpush3.msra.mxu1 %v275_v12  ;;  %v264_v34 = vld [vmem:[%s3279_s24] sm:$0x1f]  ;;  %v1946_v36 = vld [vmem:[%s4267_s1 + $0x1f8] sm:$0xff]  ;;  %v1927_v39 = vld [vmem:[%s4267_s1 + $0x168] sm:$0xff] }
  0x1b   : > { %2444 = vmatprep.subr.mxu0 %v3077_v2  ;;  %2479 = vmatprep.subr.mxu1 %v3077_v2  ;;  %v1944_v40 = vld [vmem:[%s4267_s1 + $0x1e8] sm:$0xff]  ;;  %v1926_v41 = vld [vmem:[%s4267_s1 + $0x160] sm:$0xff]  ;;  %v1925_v43 = vld [vmem:[%s4267_s1 + $0x158] sm:$0xff] }
  0x1c   : > { %2445 = vmatpush3.msra.mxu0 %v1907_v13  ;;  %2480 = vmatpush3.msra.mxu1 %v274_v14  ;;  %v1943_v42 = vld [vmem:[%s4267_s1 + $0x1e0] sm:$0xff]  ;;  %v1942_v44 = vld [vmem:[%s4267_s1 + $0x1d8] sm:$0xff]  ;;  %v1924_v45 = vld [vmem:[%s4267_s1 + $0x150] sm:$0xff] }
  0x1d   : > { %2446 = vmatprep.subr.mxu0 %v3077_v2  ;;  %2481 = vmatprep.subr.mxu1 %v3077_v2  ;;  %v1941_v46 = vld [vmem:[%s4267_s1 + $0x1d0] sm:$0xff]  ;;  %v1923_v47 = vld [vmem:[%s4267_s1 + $0x148] sm:$0xff]  ;;  %v1922_v49 = vld [vmem:[%s4267_s1 + $0x140] sm:$0xff] }
  0x1e   : > { %2447 = vmatpush3.msra.mxu0 %v1906_v15  ;;  %2482 = vmatpush3.msra.mxu1 %v273_v16  ;;  %v1940_v48 = vld [vmem:[%s4267_s1 + $0x1c8] sm:$0xff]  ;;  %v1939_v50 = vld [vmem:[%s4267_s1 + $0x1c0] sm:$0xff]  ;;  %v1921_v51 = vld [vmem:[%s4267_s1 + $0x138] sm:$0xff] }
  0x1f   : > { %2448 = vmatprep.subr.mxu0 %v3077_v2  ;;  %2483 = vmatprep.subr.mxu1 %v3077_v2  ;;  %v1938_v52 = vld [vmem:[%s4267_s1 + $0x1b8] sm:$0xff]  ;;  %v1920_v53 = vld [vmem:[%s4267_s1 + $0x130] sm:$0xff]  ;;  %v1919_v55 = vld [vmem:[%s4267_s1 + $0x128] sm:$0xff] }
  0x20   : > { %2449 = vmatpush3.msra.mxu0 %v1905_v17  ;;  %2484 = vmatpush3.msra.mxu1 %v272_v18  ;;  %v1937_v54 = vld [vmem:[%s4267_s1 + $0x1b0] sm:$0xff]  ;;  %v1936_v56 = vld [vmem:[%s4267_s1 + $0x1a8] sm:$0xff]  ;;  %v1918_v57 = vld [vmem:[%s4267_s1 + $0x120] sm:$0xff] }
  0x21   : > { %2450 = vmatprep.subr.mxu0 %v3077_v2  ;;  %2485 = vmatprep.subr.mxu1 %v3077_v2  ;;  %v1935_v58 = vld [vmem:[%s4267_s1 + $0x1a0] sm:$0xff]  ;;  %v1917_v59 = vld [vmem:[%s4267_s1 + $0x118] sm:$0xff]  ;;  %v1916_v61 = vld [vmem:[%s4267_s1 + $0x110] sm:$0xff] }
  0x22   : > { %2451 = vmatpush3.msra.mxu0 %v1904_v19  ;;  %2486 = vmatpush3.msra.mxu1 %v271_v20  ;;  %v1934_v60 = vld [vmem:[%s4267_s1 + $0x198] sm:$0xff]  ;;  %v1933_v62 = vld [vmem:[%s4267_s1 + $0x190] sm:$0xff]  ;;  %v1915_v63 = vld [vmem:[%s4267_s1 + $0x108] sm:$0xff] }
  0x23   : > { %2452 = vmatprep.subr.mxu0 %v3077_v2  ;;  %2487 = vmatprep.subr.mxu1 %v3077_v2  ;;  %v1932_v0 = vld [vmem:[%s4267_s1 + $0x188] sm:$0xff]  ;;  %v1914_v1 = vld [vmem:[%s4267_s1 + $0x100] sm:$0xff]  ;;  %v1930_v5 = vld [vmem:[%s3279_s24 + $0x39] sm:$0x1f] }
  0x24   : > { %2453 = vmatpush3.msra.mxu0 %v1903_v21  ;;  %2488 = vmatpush3.msra.mxu1 %v270_v22  ;;  %v1931_v3 = vld [vmem:[%s4267_s1 + $0x180] sm:$0xff]  ;;  %v1964_v6 = vld [vmem:[%s4267_s1 + $0x278] sm:$0xff]  ;;  %v1963_v8 = vld [vmem:[%s4267_s1 + $0x270] sm:$0xff] }
  0x25   : > { %2454 = vmatprep.subr.mxu0 %v3077_v2  ;;  %2489 = vmatprep.subr.mxu1 %v3077_v2  ;;  %v442_v4 = vld [vmem:[%s3279_s24 + $0x1] sm:$0x1f]  ;;  %v1982_v7 = vld [vmem:[%s4267_s1 + $0x2f8] sm:$0xff]  ;;  %v1981_v9 = vld [vmem:[%s4267_s1 + $0x2f0] sm:$0xff] }
  0x26   : > { %2455 = vmatpush3.msra.mxu0 %v1902_v23  ;;  %2490 = vmatpush3.msra.mxu1 %v269_v24  ;;  %v1962_v10 = vld [vmem:[%s4267_s1 + $0x268] sm:$0xff]  ;;  %v1961_v12 = vld [vmem:[%s4267_s1 + $0x260] sm:$0xff]  ;;  %v1960_v14 = vld [vmem:[%s4267_s1 + $0x258] sm:$0xff] }
  0x27   : > { %2456 = vmatprep.subr.mxu0 %v3077_v2  ;;  %2491 = vmatprep.subr.mxu1 %v3077_v2  ;;  %v1980_v11 = vld [vmem:[%s4267_s1 + $0x2e8] sm:$0xff]  ;;  %v1979_v13 = vld [vmem:[%s4267_s1 + $0x2e0] sm:$0xff]  ;;  %v1978_v15 = vld [vmem:[%s4267_s1 + $0x2d8] sm:$0xff] }
  0x28   : > { %2457 = vmatpush3.msra.mxu0 %v1901_v25  ;;  %2492 = vmatpush3.msra.mxu1 %v268_v26  ;;  %v1959_v16 = vld [vmem:[%s4267_s1 + $0x250] sm:$0xff]  ;;  %v1958_v18 = vld [vmem:[%s4267_s1 + $0x248] sm:$0xff]  ;;  %v1957_v20 = vld [vmem:[%s4267_s1 + $0x240] sm:$0xff] }
  0x29   : > { %2458 = vmatprep.subr.mxu0 %v3077_v2  ;;  %2493 = vmatprep.subr.mxu1 %v3077_v2  ;;  %v1977_v17 = vld [vmem:[%s4267_s1 + $0x2d0] sm:$0xff]  ;;  %v1976_v19 = vld [vmem:[%s4267_s1 + $0x2c8] sm:$0xff]  ;;  %v1975_v21 = vld [vmem:[%s4267_s1 + $0x2c0] sm:$0xff] }
  0x2a   : > { %2459 = vmatpush3.msra.mxu0 %v1900_v27  ;;  %2494 = vmatpush3.msra.mxu1 %v267_v28  ;;  %v1956_v22 = vld [vmem:[%s4267_s1 + $0x238] sm:$0xff]  ;;  %v1955_v24 = vld [vmem:[%s4267_s1 + $0x230] sm:$0xff]  ;;  %v1954_v26 = vld [vmem:[%s4267_s1 + $0x228] sm:$0xff] }
  0x2b   : > { %2460 = vmatprep.subr.mxu0 %v3077_v2  ;;  %2495 = vmatprep.subr.mxu1 %v3077_v2  ;;  %v1974_v23 = vld [vmem:[%s4267_s1 + $0x2b8] sm:$0xff]  ;;  %v1973_v25 = vld [vmem:[%s4267_s1 + $0x2b0] sm:$0xff]  ;;  %v1972_v27 = vld [vmem:[%s4267_s1 + $0x2a8] sm:$0xff] }
  0x2c   : > { %2461 = vmatpush3.msra.mxu0 %v1899_v29  ;;  %2496 = vmatpush3.msra.mxu1 %v266_v30  ;;  %v1953_v28 = vld [vmem:[%s4267_s1 + $0x220] sm:$0xff]  ;;  %v1952_v30 = vld [vmem:[%s4267_s1 + $0x218] sm:$0xff] }
  0x2d   : > { %2462 = vmatprep.subr.mxu0 %v3077_v2  ;;  %2497 = vmatprep.subr.mxu1 %v3077_v2  ;;  %v1971_v29 = vld [vmem:[%s4267_s1 + $0x2a0] sm:$0xff] }
  0x2e   : > { %2463 = vmatpush3.msra.mxu0 %v1898_v31  ;;  %2464 = vmatprep.mubr.msk.f32.mxu0 %vm3078_vm0, %v3077_v2  ;;  %v1970_v31 = vld [vmem:[%s4267_s1 + $0x298] sm:$0xff] }
  0x2f   : > { %2498 = vmatpush3.msra.mxu1 %v265_v32  ;;  %2465 = vmatmul.mubr.f32.vlgmr.msra.gmra.mxu0 %v1897_v33  ;;  %v1951_v32 = vld [vmem:[%s4267_s1 + $0x210] sm:$0xff] }
  0x30   : > { %2499 = vmatprep.mubr.msk.f32.mxu1 %vm3078_vm0, %v3077_v2  ;;  %2502 = vmatprep.subr.mxu0 %v3077_v2  ;;  %v1969_v33 = vld [vmem:[%s4267_s1 + $0x290] sm:$0xff] }
  0x31   : > { %2537 = vmatprep.subr.mxu1 %v3077_v2  ;;  %2500 = vmatmul.mubr.f32.vlgmr.msra.gmra.mxu1 %v264_v34  ;;  %v1950_v34 = vld [vmem:[%s4267_s1 + $0x208] sm:$0xff] }
  0x32   : > { %2503 = vmatpush3.msra.mxu0 %v1929_v35  ;;  %2538 = vmatpush3.msra.mxu1 %v1946_v36  ;;  %v1968_v35 = vld [vmem:[%s4267_s1 + $0x288] sm:$0xff]  ;;  %v1949_v36 = vld [vmem:[%s4267_s1 + $0x200] sm:$0xff] }
  0x33   : > { %2504 = vmatprep.subr.mxu0 %v3077_v2  ;;  %2539 = vmatprep.subr.mxu1 %v3077_v2 }
  0x34   : > { %2505 = vmatpush3.msra.mxu0 %v1928_v37  ;;  %2540 = vmatpush3.msra.mxu1 %v1945_v38  ;;  %v1967_v37 = vld [vmem:[%s4267_s1 + $0x280] sm:$0xff]  ;;  %v1948_v38 = vld [vmem:[%s3279_s24 + $0x70] sm:$0x1f] }
  0x35   : > { %2506 = vmatprep.subr.mxu0 %v3077_v2  ;;  %2541 = vmatprep.subr.mxu1 %v3077_v2 }
  0x36   : > { %2507 = vmatpush3.msra.mxu0 %v1927_v39  ;;  %2542 = vmatpush3.msra.mxu1 %v1944_v40  ;;  %v1966_v39 = vld [vmem:[%s3279_s24 + $0xa8] sm:$0x1f]  ;;  %v1999_v40 = vld [vmem:[%s4267_s1 + $0x378] sm:$0xff] }
  0x37   : > { %2508 = vmatprep.subr.mxu0 %v3077_v2  ;;  %2543 = vmatprep.subr.mxu1 %v3077_v2 }
  0x38   : > { %2509 = vmatpush3.msra.mxu0 %v1926_v41  ;;  %2544 = vmatpush3.msra.mxu1 %v1943_v42  ;;  %v2016_v41 = vld [vmem:[%s4267_s1 + $0x3f8] sm:$0xff]  ;;  %v1998_v42 = vld [vmem:[%s4267_s1 + $0x370] sm:$0xff] }
  0x39   : > { %2510 = vmatprep.subr.mxu0 %v3077_v2  ;;  %2545 = vmatprep.subr.mxu1 %v3077_v2 }
  0x3a   : > { %2511 = vmatpush3.msra.mxu0 %v1925_v43  ;;  %2546 = vmatpush3.msra.mxu1 %v1942_v44  ;;  %v2015_v43 = vld [vmem:[%s4267_s1 + $0x3f0] sm:$0xff]  ;;  %v1997_v44 = vld [vmem:[%s4267_s1 + $0x368] sm:$0xff] }
  0x3b   : > { %2512 = vmatprep.subr.mxu0 %v3077_v2  ;;  %2547 = vmatprep.subr.mxu1 %v3077_v2 }
  0x3c   : > { %2513 = vmatpush3.msra.mxu0 %v1924_v45  ;;  %2548 = vmatpush3.msra.mxu1 %v1941_v46  ;;  %v2014_v45 = vld [vmem:[%s4267_s1 + $0x3e8] sm:$0xff]  ;;  %v1996_v46 = vld [vmem:[%s4267_s1 + $0x360] sm:$0xff] }
  0x3d   : > { %2514 = vmatprep.subr.mxu0 %v3077_v2  ;;  %2549 = vmatprep.subr.mxu1 %v3077_v2 }
  0x3e   : > { %2515 = vmatpush3.msra.mxu0 %v1923_v47  ;;  %2550 = vmatpush3.msra.mxu1 %v1940_v48  ;;  %v2013_v47 = vld [vmem:[%s4267_s1 + $0x3e0] sm:$0xff]  ;;  %v1995_v48 = vld [vmem:[%s4267_s1 + $0x358] sm:$0xff] }
  0x3f   : > { %2516 = vmatprep.subr.mxu0 %v3077_v2  ;;  %2551 = vmatprep.subr.mxu1 %v3077_v2 }
  0x40   : > { %2517 = vmatpush3.msra.mxu0 %v1922_v49  ;;  %2552 = vmatpush3.msra.mxu1 %v1939_v50  ;;  %v2012_v49 = vld [vmem:[%s4267_s1 + $0x3d8] sm:$0xff]  ;;  %v1994_v50 = vld [vmem:[%s4267_s1 + $0x350] sm:$0xff] }
  0x41   : > { %2518 = vmatprep.subr.mxu0 %v3077_v2  ;;  %2553 = vmatprep.subr.mxu1 %v3077_v2 }
  0x42   : > { %2519 = vmatpush3.msra.mxu0 %v1921_v51  ;;  %2554 = vmatpush3.msra.mxu1 %v1938_v52  ;;  %v2011_v51 = vld [vmem:[%s4267_s1 + $0x3d0] sm:$0xff]  ;;  %v1993_v52 = vld [vmem:[%s4267_s1 + $0x348] sm:$0xff] }
  0x43   : > { %2520 = vmatprep.subr.mxu0 %v3077_v2  ;;  %2555 = vmatprep.subr.mxu1 %v3077_v2 }
  0x44   : > { %2521 = vmatpush3.msra.mxu0 %v1920_v53  ;;  %2556 = vmatpush3.msra.mxu1 %v1937_v54  ;;  %v2010_v53 = vld [vmem:[%s4267_s1 + $0x3c8] sm:$0xff]  ;;  %v1992_v54 = vld [vmem:[%s4267_s1 + $0x340] sm:$0xff] }
  0x45   : > { %2522 = vmatprep.subr.mxu0 %v3077_v2  ;;  %2557 = vmatprep.subr.mxu1 %v3077_v2 }
  0x46   : > { %2523 = vmatpush3.msra.mxu0 %v1919_v55  ;;  %2558 = vmatpush3.msra.mxu1 %v1936_v56  ;;  %v2009_v55 = vld [vmem:[%s4267_s1 + $0x3c0] sm:$0xff]  ;;  %v1991_v56 = vld [vmem:[%s4267_s1 + $0x338] sm:$0xff] }
  0x47   : > { %2524 = vmatprep.subr.mxu0 %v3077_v2  ;;  %2559 = vmatprep.subr.mxu1 %v3077_v2 }
  0x48   : > { %2525 = vmatpush3.msra.mxu0 %v1918_v57  ;;  %2560 = vmatpush3.msra.mxu1 %v1935_v58  ;;  %v2008_v57 = vld [vmem:[%s4267_s1 + $0x3b8] sm:$0xff]  ;;  %v1990_v58 = vld [vmem:[%s4267_s1 + $0x330] sm:$0xff] }
  0x49   : > { %2526 = vmatprep.subr.mxu0 %v3077_v2  ;;  %2561 = vmatprep.subr.mxu1 %v3077_v2 }
  0x4a   : > { %2527 = vmatpush3.msra.mxu0 %v1917_v59  ;;  %2562 = vmatpush3.msra.mxu1 %v1934_v60  ;;  %v2007_v59 = vld [vmem:[%s4267_s1 + $0x3b0] sm:$0xff]  ;;  %v1989_v60 = vld [vmem:[%s4267_s1 + $0x328] sm:$0xff] }
  0x4b   : > { %2528 = vmatprep.subr.mxu0 %v3077_v2  ;;  %2563 = vmatprep.subr.mxu1 %v3077_v2 }
  0x4c   : > { %2529 = vmatpush3.msra.mxu0 %v1916_v61  ;;  %2564 = vmatpush3.msra.mxu1 %v1933_v62  ;;  %v2006_v61 = vld [vmem:[%s4267_s1 + $0x3a8] sm:$0xff]  ;;  %v1988_v62 = vld [vmem:[%s4267_s1 + $0x320] sm:$0xff] }
  0x4d   : > { %2530 = vmatprep.subr.mxu0 %v3077_v2  ;;  %2565 = vmatprep.subr.mxu1 %v3077_v2 }
  0x4e   : > { %2531 = vmatpush3.msra.mxu0 %v1915_v63  ;;  %2566 = vmatpush3.msra.mxu1 %v1932_v0  ;;  %v2005_v63 = vld [vmem:[%s4267_s1 + $0x3a0] sm:$0xff]  ;;  %v1987_v0 = vld [vmem:[%s4267_s1 + $0x318] sm:$0xff] }
  0x4f   : > { %2532 = vmatprep.subr.mxu0 %v3077_v2  ;;  %2567 = vmatprep.subr.mxu1 %v3077_v2 }
  0x50   : > { %2533 = vmatpush3.msra.mxu0 %v1914_v1  ;;  %2534 = vmatprep.mubr.msk.f32.mxu0 %vm3078_vm0, %v3077_v2  ;;  %v2004_v1 = vld [vmem:[%s4267_s1 + $0x398] sm:$0xff] }
  0x51   : > { %2568 = vmatpush3.msra.mxu1 %v1931_v3  ;;  %2535 = vmatmul.mubr.f32.vlgmr.msra.gmra.mxu0 %v442_v4  ;;  %v1986_v3 = vld [vmem:[%s4267_s1 + $0x310] sm:$0xff] }
  0x52   : > { %2569 = vmatprep.mubr.msk.f32.mxu1 %vm3078_vm0, %v3077_v2  ;;  %2572 = vmatprep.subr.mxu0 %v3077_v2  ;;  %v2003_v4 = vld [vmem:[%s4267_s1 + $0x390] sm:$0xff] }
  0x53   : > { %2607 = vmatprep.subr.mxu1 %v3077_v2  ;;  %2570 = vmatmul.mubr.f32.vlgmr.msra.gmra.mxu1 %v1930_v5  ;;  %v1985_v5 = vld [vmem:[%s4267_s1 + $0x308] sm:$0xff] }
  0x54   : > { %2573 = vmatpush3.msra.mxu0 %v1964_v6  ;;  %2608 = vmatpush3.msra.mxu1 %v1982_v7  ;;  %v2002_v6 = vld [vmem:[%s4267_s1 + $0x388] sm:$0xff]  ;;  %v1984_v7 = vld [vmem:[%s4267_s1 + $0x300] sm:$0xff] }
  0x55   : > { %2574 = vmatprep.subr.mxu0 %v3077_v2  ;;  %2609 = vmatprep.subr.mxu1 %v3077_v2 }
  0x56   : > { %2575 = vmatpush3.msra.mxu0 %v1963_v8  ;;  %2610 = vmatpush3.msra.mxu1 %v1981_v9  ;;  %v2001_v8 = vld [vmem:[%s4267_s1 + $0x380] sm:$0xff]  ;;  %v1983_v9 = vld [vmem:[%s3279_s24 + $0x71] sm:$0x1f] }
  0x57   : > { %2576 = vmatprep.subr.mxu0 %v3077_v2  ;;  %2611 = vmatprep.subr.mxu1 %v3077_v2 }
  0x58   : > { %2577 = vmatpush3.msra.mxu0 %v1962_v10  ;;  %2612 = vmatpush3.msra.mxu1 %v1980_v11  ;;  %v2000_v10 = vld [vmem:[%s3279_s24 + $0xa9] sm:$0x1f]  ;;  %v2034_v11 = vld [vmem:[%s4267_s1 + $0x478] sm:$0xff] }
  0x59   : > { %2578 = vmatprep.subr.mxu0 %v3077_v2  ;;  %2613 = vmatprep.subr.mxu1 %v3077_v2 }
  0x5a   : > { %2579 = vmatpush3.msra.mxu0 %v1961_v12  ;;  %2614 = vmatpush3.msra.mxu1 %v1979_v13  ;;  %v2052_v12 = vld [vmem:[%s4267_s1 + $0x4f8] sm:$0xff]  ;;  %v2033_v13 = vld [vmem:[%s4267_s1 + $0x470] sm:$0xff] }
  0x5b   : > { %2580 = vmatprep.subr.mxu0 %v3077_v2  ;;  %2615 = vmatprep.subr.mxu1 %v3077_v2 }
  0x5c   : > { %2581 = vmatpush3.msra.mxu0 %v1960_v14  ;;  %2616 = vmatpush3.msra.mxu1 %v1978_v15  ;;  %v2051_v14 = vld [vmem:[%s4267_s1 + $0x4f0] sm:$0xff]  ;;  %v2032_v15 = vld [vmem:[%s4267_s1 + $0x468] sm:$0xff] }
  0x5d   : > { %2582 = vmatprep.subr.mxu0 %v3077_v2  ;;  %2617 = vmatprep.subr.mxu1 %v3077_v2 }
  0x5e   : > { %2583 = vmatpush3.msra.mxu0 %v1959_v16  ;;  %2618 = vmatpush3.msra.mxu1 %v1977_v17  ;;  %v2050_v16 = vld [vmem:[%s4267_s1 + $0x4e8] sm:$0xff]  ;;  %v2031_v17 = vld [vmem:[%s4267_s1 + $0x460] sm:$0xff] }
  0x5f   : > { %2584 = vmatprep.subr.mxu0 %v3077_v2  ;;  %2619 = vmatprep.subr.mxu1 %v3077_v2 }
  0x60   : > { %2585 = vmatpush3.msra.mxu0 %v1958_v18  ;;  %2620 = vmatpush3.msra.mxu1 %v1976_v19  ;;  %v2049_v18 = vld [vmem:[%s4267_s1 + $0x4e0] sm:$0xff]  ;;  %v2030_v19 = vld [vmem:[%s4267_s1 + $0x458] sm:$0xff] }
  0x61   : > { %2586 = vmatprep.subr.mxu0 %v3077_v2  ;;  %2621 = vmatprep.subr.mxu1 %v3077_v2 }
  0x62   : > { %2587 = vmatpush3.msra.mxu0 %v1957_v20  ;;  %2622 = vmatpush3.msra.mxu1 %v1975_v21  ;;  %v2048_v20 = vld [vmem:[%s4267_s1 + $0x4d8] sm:$0xff]  ;;  %v2029_v21 = vld [vmem:[%s4267_s1 + $0x450] sm:$0xff] }
  0x63   : > { %2588 = vmatprep.subr.mxu0 %v3077_v2  ;;  %2623 = vmatprep.subr.mxu1 %v3077_v2 }
  0x64   : > { %2589 = vmatpush3.msra.mxu0 %v1956_v22  ;;  %2624 = vmatpush3.msra.mxu1 %v1974_v23  ;;  %v2047_v22 = vld [vmem:[%s4267_s1 + $0x4d0] sm:$0xff]  ;;  %v2028_v23 = vld [vmem:[%s4267_s1 + $0x448] sm:$0xff] }
  0x65   : > { %2590 = vmatprep.subr.mxu0 %v3077_v2  ;;  %2625 = vmatprep.subr.mxu1 %v3077_v2 }
  0x66   : > { %2591 = vmatpush3.msra.mxu0 %v1955_v24  ;;  %2626 = vmatpush3.msra.mxu1 %v1973_v25  ;;  %v2046_v24 = vld [vmem:[%s4267_s1 + $0x4c8] sm:$0xff]  ;;  %v2027_v25 = vld [vmem:[%s4267_s1 + $0x440] sm:$0xff] }
  0x67   : > { %2592 = vmatprep.subr.mxu0 %v3077_v2  ;;  %2627 = vmatprep.subr.mxu1 %v3077_v2 }
  0x68   : > { %2593 = vmatpush3.msra.mxu0 %v1954_v26  ;;  %2628 = vmatpush3.msra.mxu1 %v1972_v27  ;;  %v2045_v26 = vld [vmem:[%s4267_s1 + $0x4c0] sm:$0xff]  ;;  %v2026_v27 = vld [vmem:[%s4267_s1 + $0x438] sm:$0xff] }
  0x69   : > { %2594 = vmatprep.subr.mxu0 %v3077_v2  ;;  %2629 = vmatprep.subr.mxu1 %v3077_v2 }
  0x6a   : > { %2595 = vmatpush3.msra.mxu0 %v1953_v28  ;;  %2630 = vmatpush3.msra.mxu1 %v1971_v29  ;;  %v2044_v28 = vld [vmem:[%s4267_s1 + $0x4b8] sm:$0xff]  ;;  %v2025_v29 = vld [vmem:[%s4267_s1 + $0x430] sm:$0xff] }
  0x6b   : > { %2596 = vmatprep.subr.mxu0 %v3077_v2  ;;  %2631 = vmatprep.subr.mxu1 %v3077_v2 }
  0x6c   : > { %2597 = vmatpush3.msra.mxu0 %v1952_v30  ;;  %2632 = vmatpush3.msra.mxu1 %v1970_v31  ;;  %v2043_v30 = vld [vmem:[%s4267_s1 + $0x4b0] sm:$0xff]  ;;  %v2024_v31 = vld [vmem:[%s4267_s1 + $0x428] sm:$0xff] }
  0x6d   : > { %2598 = vmatprep.subr.mxu0 %v3077_v2  ;;  %2633 = vmatprep.subr.mxu1 %v3077_v2 }
  0x6e   : > { %2599 = vmatpush3.msra.mxu0 %v1951_v32  ;;  %2634 = vmatpush3.msra.mxu1 %v1969_v33  ;;  %v2042_v32 = vld [vmem:[%s4267_s1 + $0x4a8] sm:$0xff]  ;;  %v2023_v33 = vld [vmem:[%s4267_s1 + $0x420] sm:$0xff] }
  0x6f   : > { %2600 = vmatprep.subr.mxu0 %v3077_v2  ;;  %2635 = vmatprep.subr.mxu1 %v3077_v2 }
  0x70   : > { %2601 = vmatpush3.msra.mxu0 %v1950_v34  ;;  %2636 = vmatpush3.msra.mxu1 %v1968_v35  ;;  %v2041_v34 = vld [vmem:[%s4267_s1 + $0x4a0] sm:$0xff]  ;;  %v2022_v35 = vld [vmem:[%s4267_s1 + $0x418] sm:$0xff] }
  0x71   : > { %2602 = vmatprep.subr.mxu0 %v3077_v2  ;;  %2637 = vmatprep.subr.mxu1 %v3077_v2 }
  0x72   : > { %2603 = vmatpush3.msra.mxu0 %v1949_v36  ;;  %2604 = vmatprep.mubr.msk.f32.mxu0 %vm3078_vm0, %v3077_v2  ;;  %v2040_v36 = vld [vmem:[%s4267_s1 + $0x498] sm:$0xff] }
  0x73   : > { %2638 = vmatpush3.msra.mxu1 %v1967_v37  ;;  %2605 = vmatmul.mubr.f32.vlgmr.msra.gmra.mxu0 %v1948_v38  ;;  %v2021_v37 = vld [vmem:[%s4267_s1 + $0x410] sm:$0xff] }
  0x74   : > { %2639 = vmatprep.mubr.msk.f32.mxu1 %vm3078_vm0, %v3077_v2  ;;  %2642 = vmatprep.subr.mxu0 %v3077_v2  ;;  %v2039_v38 = vld [vmem:[%s4267_s1 + $0x490] sm:$0xff] }
  0x75   : > { %2677 = vmatprep.subr.mxu1 %v3077_v2  ;;  %2640 = vmatmul.mubr.f32.vlgmr.msra.gmra.mxu1 %v1966_v39  ;;  %v2020_v39 = vld [vmem:[%s4267_s1 + $0x408] sm:$0xff] }
  0x76   : > { %2643 = vmatpush3.msra.mxu0 %v1999_v40  ;;  %2678 = vmatpush3.msra.mxu1 %v2016_v41  ;;  %v2038_v40 = vld [vmem:[%s4267_s1 + $0x488] sm:$0xff]  ;;  %v2019_v41 = vld [vmem:[%s4267_s1 + $0x400] sm:$0xff] }
  0x77   : > { %2644 = vmatprep.subr.mxu0 %v3077_v2  ;;  %2679 = vmatprep.subr.mxu1 %v3077_v2 }
  0x78   : > { %2645 = vmatpush3.msra.mxu0 %v1998_v42  ;;  %2680 = vmatpush3.msra.mxu1 %v2015_v43  ;;  %v2037_v42 = vld [vmem:[%s4267_s1 + $0x480] sm:$0xff]  ;;  %v2018_v43 = vld [vmem:[%s3279_s24 + $0x8] sm:$0x1f] }
  0x79   : > { %2646 = vmatprep.subr.mxu0 %v3077_v2  ;;  %2681 = vmatprep.subr.mxu1 %v3077_v2 }
  0x7a   : > { %2647 = vmatpush3.msra.mxu0 %v1997_v44  ;;  %2682 = vmatpush3.msra.mxu1 %v2014_v45  ;;  %v2036_v44 = vld [vmem:[%s3279_s24 + $0x40] sm:$0x1f]  ;;  %v2069_v45 = vld [vmem:[%s4267_s1 + $0x578] sm:$0xff] }
  0x7b   : > { %2648 = vmatprep.subr.mxu0 %v3077_v2  ;;  %2683 = vmatprep.subr.mxu1 %v3077_v2 }
  0x7c   : > { %2649 = vmatpush3.msra.mxu0 %v1996_v46  ;;  %2684 = vmatpush3.msra.mxu1 %v2013_v47  ;;  %v2086_v46 = vld [vmem:[%s4267_s1 + $0x5f8] sm:$0xff]  ;;  %v2068_v47 = vld [vmem:[%s4267_s1 + $0x570] sm:$0xff] }
  0x7d   : > { %2650 = vmatprep.subr.mxu0 %v3077_v2  ;;  %2685 = vmatprep.subr.mxu1 %v3077_v2 }
  0x7e   : > { %2651 = vmatpush3.msra.mxu0 %v1995_v48  ;;  %2686 = vmatpush3.msra.mxu1 %v2012_v49  ;;  %v2085_v48 = vld [vmem:[%s4267_s1 + $0x5f0] sm:$0xff]  ;;  %v2067_v49 = vld [vmem:[%s4267_s1 + $0x568] sm:$0xff] }
  0x7f   : > { %2652 = vmatprep.subr.mxu0 %v3077_v2  ;;  %2687 = vmatprep.subr.mxu1 %v3077_v2 }
  0x80   : > { %2653 = vmatpush3.msra.mxu0 %v1994_v50  ;;  %2688 = vmatpush3.msra.mxu1 %v2011_v51  ;;  %v2084_v50 = vld [vmem:[%s4267_s1 + $0x5e8] sm:$0xff]  ;;  %v2066_v51 = vld [vmem:[%s4267_s1 + $0x560] sm:$0xff] }
  0x81   : > { %2654 = vmatprep.subr.mxu0 %v3077_v2  ;;  %2689 = vmatprep.subr.mxu1 %v3077_v2 }
  0x82   : > { %2655 = vmatpush3.msra.mxu0 %v1993_v52  ;;  %2690 = vmatpush3.msra.mxu1 %v2010_v53  ;;  %v2083_v52 = vld [vmem:[%s4267_s1 + $0x5e0] sm:$0xff]  ;;  %v2065_v53 = vld [vmem:[%s4267_s1 + $0x558] sm:$0xff] }
  0x83   : > { %2656 = vmatprep.subr.mxu0 %v3077_v2  ;;  %2691 = vmatprep.subr.mxu1 %v3077_v2 }
  0x84   : > { %2657 = vmatpush3.msra.mxu0 %v1992_v54  ;;  %2692 = vmatpush3.msra.mxu1 %v2009_v55  ;;  %v2082_v54 = vld [vmem:[%s4267_s1 + $0x5d8] sm:$0xff]  ;;  %v2064_v55 = vld [vmem:[%s4267_s1 + $0x550] sm:$0xff] }
  0x85   : > { %2658 = vmatprep.subr.mxu0 %v3077_v2  ;;  %2693 = vmatprep.subr.mxu1 %v3077_v2 }
  0x86   : > { %2659 = vmatpush3.msra.mxu0 %v1991_v56  ;;  %2694 = vmatpush3.msra.mxu1 %v2008_v57  ;;  %v2081_v56 = vld [vmem:[%s4267_s1 + $0x5d0] sm:$0xff]  ;;  %v2063_v57 = vld [vmem:[%s4267_s1 + $0x548] sm:$0xff] }
  0x87   : > { %2660 = vmatprep.subr.mxu0 %v3077_v2  ;;  %2695 = vmatprep.subr.mxu1 %v3077_v2 }
  0x88   : > { %2661 = vmatpush3.msra.mxu0 %v1990_v58  ;;  %2696 = vmatpush3.msra.mxu1 %v2007_v59  ;;  %v2080_v58 = vld [vmem:[%s4267_s1 + $0x5c8] sm:$0xff]  ;;  %v2062_v59 = vld [vmem:[%s4267_s1 + $0x540] sm:$0xff] }
  0x89   : > { %2662 = vmatprep.subr.mxu0 %v3077_v2  ;;  %2697 = vmatprep.subr.mxu1 %v3077_v2 }
  0x8a   : > { %2663 = vmatpush3.msra.mxu0 %v1989_v60  ;;  %2698 = vmatpush3.msra.mxu1 %v2006_v61  ;;  %v2079_v60 = vld [vmem:[%s4267_s1 + $0x5c0] sm:$0xff]  ;;  %v2061_v61 = vld [vmem:[%s4267_s1 + $0x538] sm:$0xff] }
  0x8b   : > { %2664 = vmatprep.subr.mxu0 %v3077_v2  ;;  %2699 = vmatprep.subr.mxu1 %v3077_v2 }
  0x8c   : > { %2665 = vmatpush3.msra.mxu0 %v1988_v62  ;;  %2700 = vmatpush3.msra.mxu1 %v2005_v63  ;;  %v2078_v62 = vld [vmem:[%s4267_s1 + $0x5b8] sm:$0xff]  ;;  %v2060_v63 = vld [vmem:[%s4267_s1 + $0x530] sm:$0xff] }
  0x8d   : > { %2666 = vmatprep.subr.mxu0 %v3077_v2  ;;  %2701 = vmatprep.subr.mxu1 %v3077_v2 }
  0x8e   : > { %2667 = vmatpush3.msra.mxu0 %v1987_v0  ;;  %2702 = vmatpush3.msra.mxu1 %v2004_v1  ;;  %v2077_v0 = vld [vmem:[%s4267_s1 + $0x5b0] sm:$0xff]  ;;  %v2059_v1 = vld [vmem:[%s4267_s1 + $0x528] sm:$0xff] }
  0x8f   : > { %2668 = vmatprep.subr.mxu0 %v3077_v2  ;;  %2703 = vmatprep.subr.mxu1 %v3077_v2 }
  0x90   : > { %2669 = vmatpush3.msra.mxu0 %v1986_v3  ;;  %2704 = vmatpush3.msra.mxu1 %v2003_v4  ;;  %v2076_v3 = vld [vmem:[%s4267_s1 + $0x5a8] sm:$0xff]  ;;  %v2058_v4 = vld [vmem:[%s4267_s1 + $0x520] sm:$0xff] }
  0x91   : > { %2670 = vmatprep.subr.mxu0 %v3077_v2  ;;  %2705 = vmatprep.subr.mxu1 %v3077_v2 }
  0x92   : > { %2671 = vmatpush3.msra.mxu0 %v1985_v5  ;;  %2706 = vmatpush3.msra.mxu1 %v2002_v6  ;;  %v2075_v5 = vld [vmem:[%s4267_s1 + $0x5a0] sm:$0xff]  ;;  %v2057_v6 = vld [vmem:[%s4267_s1 + $0x518] sm:$0xff] }
  0x93   : > { %2672 = vmatprep.subr.mxu0 %v3077_v2  ;;  %2707 = vmatprep.subr.mxu1 %v3077_v2 }
  0x94   : > { %2673 = vmatpush3.msra.mxu0 %v1984_v7  ;;  %2674 = vmatprep.mubr.msk.f32.mxu0 %vm3078_vm0, %v3077_v2  ;;  %v2074_v7 = vld [vmem:[%s4267_s1 + $0x598] sm:$0xff] }
  0x95   : > { %2708 = vmatpush3.msra.mxu1 %v2001_v8  ;;  %2675 = vmatmul.mubr.f32.vlgmr.msra.gmra.mxu0 %v1983_v9  ;;  %v2056_v8 = vld [vmem:[%s4267_s1 + $0x510] sm:$0xff] }
  0x96   : > { %2709 = vmatprep.mubr.msk.f32.mxu1 %vm3078_vm0, %v3077_v2  ;;  %2712 = vmatprep.subr.mxu0 %v3077_v2  ;;  %v2073_v9 = vld [vmem:[%s4267_s1 + $0x590] sm:$0xff] }
  0x97   : > { %2747 = vmatprep.subr.mxu1 %v3077_v2  ;;  %2710 = vmatmul.mubr.f32.vlgmr.msra.gmra.mxu1 %v2000_v10  ;;  %v2055_v10 = vld [vmem:[%s4267_s1 + $0x508] sm:$0xff] }
  0x98   : > { %2713 = vmatpush3.msra.mxu0 %v2034_v11  ;;  %2748 = vmatpush3.msra.mxu1 %v2052_v12  ;;  %v2072_v11 = vld [vmem:[%s4267_s1 + $0x588] sm:$0xff]  ;;  %v2054_v12 = vld [vmem:[%s4267_s1 + $0x500] sm:$0xff] }
  0x99   : > { %2714 = vmatprep.subr.mxu0 %v3077_v2  ;;  %2749 = vmatprep.subr.mxu1 %v3077_v2 }
  0x9a   : > { %2715 = vmatpush3.msra.mxu0 %v2033_v13  ;;  %2750 = vmatpush3.msra.mxu1 %v2051_v14  ;;  %v2071_v13 = vld [vmem:[%s4267_s1 + $0x580] sm:$0xff]  ;;  %v2053_v14 = vld [vmem:[%s3279_s24 + $0x9] sm:$0x1f] }
  0x9b   : > { %2716 = vmatprep.subr.mxu0 %v3077_v2  ;;  %2751 = vmatprep.subr.mxu1 %v3077_v2 }
  0x9c   : > { %2717 = vmatpush3.msra.mxu0 %v2032_v15  ;;  %2752 = vmatpush3.msra.mxu1 %v2050_v16  ;;  %v2070_v15 = vld [vmem:[%s3279_s24 + $0x41] sm:$0x1f]  ;;  %v2104_v16 = vld [vmem:[%s4267_s1 + $0x678] sm:$0xff] }
  0x9d   : > { %2718 = vmatprep.subr.mxu0 %v3077_v2  ;;  %2753 = vmatprep.subr.mxu1 %v3077_v2 }
  0x9e   : > { %2719 = vmatpush3.msra.mxu0 %v2031_v17  ;;  %2754 = vmatpush3.msra.mxu1 %v2049_v18  ;;  %v2122_v17 = vld [vmem:[%s4267_s1 + $0x6f8] sm:$0xff]  ;;  %v2103_v18 = vld [vmem:[%s4267_s1 + $0x670] sm:$0xff] }
  0x9f   : > { %2720 = vmatprep.subr.mxu0 %v3077_v2  ;;  %2755 = vmatprep.subr.mxu1 %v3077_v2 }
  0xa0   : > { %2721 = vmatpush3.msra.mxu0 %v2030_v19  ;;  %2756 = vmatpush3.msra.mxu1 %v2048_v20  ;;  %v2121_v19 = vld [vmem:[%s4267_s1 + $0x6f0] sm:$0xff]  ;;  %v2102_v20 = vld [vmem:[%s4267_s1 + $0x668] sm:$0xff] }
  0xa1   : > { %2722 = vmatprep.subr.mxu0 %v3077_v2  ;;  %2757 = vmatprep.subr.mxu1 %v3077_v2 }
  0xa2   : > { %2723 = vmatpush3.msra.mxu0 %v2029_v21  ;;  %2758 = vmatpush3.msra.mxu1 %v2047_v22  ;;  %v2120_v21 = vld [vmem:[%s4267_s1 + $0x6e8] sm:$0xff]  ;;  %v2101_v22 = vld [vmem:[%s4267_s1 + $0x660] sm:$0xff] }
  0xa3   : > { %2724 = vmatprep.subr.mxu0 %v3077_v2  ;;  %2759 = vmatprep.subr.mxu1 %v3077_v2 }
  0xa4   : > { %2725 = vmatpush3.msra.mxu0 %v2028_v23  ;;  %2760 = vmatpush3.msra.mxu1 %v2046_v24  ;;  %v2119_v23 = vld [vmem:[%s4267_s1 + $0x6e0] sm:$0xff]  ;;  %v2100_v24 = vld [vmem:[%s4267_s1 + $0x658] sm:$0xff] }
  0xa5   : > { %2726 = vmatprep.subr.mxu0 %v3077_v2  ;;  %2761 = vmatprep.subr.mxu1 %v3077_v2 }
  0xa6   : > { %2727 = vmatpush3.msra.mxu0 %v2027_v25  ;;  %2762 = vmatpush3.msra.mxu1 %v2045_v26  ;;  %v2118_v25 = vld [vmem:[%s4267_s1 + $0x6d8] sm:$0xff]  ;;  %v2099_v26 = vld [vmem:[%s4267_s1 + $0x650] sm:$0xff] }
  0xa7   : > { %2728 = vmatprep.subr.mxu0 %v3077_v2  ;;  %2763 = vmatprep.subr.mxu1 %v3077_v2 }
  0xa8   : > { %2729 = vmatpush3.msra.mxu0 %v2026_v27  ;;  %2764 = vmatpush3.msra.mxu1 %v2044_v28  ;;  %v2117_v27 = vld [vmem:[%s4267_s1 + $0x6d0] sm:$0xff]  ;;  %v2098_v28 = vld [vmem:[%s4267_s1 + $0x648] sm:$0xff] }
  0xa9   : > { %2730 = vmatprep.subr.mxu0 %v3077_v2  ;;  %2765 = vmatprep.subr.mxu1 %v3077_v2 }
  0xaa   : > { %2731 = vmatpush3.msra.mxu0 %v2025_v29  ;;  %2766 = vmatpush3.msra.mxu1 %v2043_v30  ;;  %v2116_v29 = vld [vmem:[%s4267_s1 + $0x6c8] sm:$0xff]  ;;  %v2097_v30 = vld [vmem:[%s4267_s1 + $0x640] sm:$0xff] }
  0xab   : > { %2732 = vmatprep.subr.mxu0 %v3077_v2  ;;  %2767 = vmatprep.subr.mxu1 %v3077_v2 }
  0xac   : > { %2733 = vmatpush3.msra.mxu0 %v2024_v31  ;;  %2768 = vmatpush3.msra.mxu1 %v2042_v32  ;;  %v2115_v31 = vld [vmem:[%s4267_s1 + $0x6c0] sm:$0xff]  ;;  %v2096_v32 = vld [vmem:[%s4267_s1 + $0x638] sm:$0xff] }
  0xad   : > { %2734 = vmatprep.subr.mxu0 %v3077_v2  ;;  %2769 = vmatprep.subr.mxu1 %v3077_v2 }
  0xae   : > { %2735 = vmatpush3.msra.mxu0 %v2023_v33  ;;  %2770 = vmatpush3.msra.mxu1 %v2041_v34  ;;  %v2114_v33 = vld [vmem:[%s4267_s1 + $0x6b8] sm:$0xff]  ;;  %v2095_v34 = vld [vmem:[%s4267_s1 + $0x630] sm:$0xff] }
  0xaf   : > { %2736 = vmatprep.subr.mxu0 %v3077_v2  ;;  %2771 = vmatprep.subr.mxu1 %v3077_v2 }
  0xb0   : > { %2737 = vmatpush3.msra.mxu0 %v2022_v35  ;;  %2772 = vmatpush3.msra.mxu1 %v2040_v36  ;;  %v2113_v35 = vld [vmem:[%s4267_s1 + $0x6b0] sm:$0xff]  ;;  %v2094_v36 = vld [vmem:[%s4267_s1 + $0x628] sm:$0xff] }
  0xb1   : > { %2738 = vmatprep.subr.mxu0 %v3077_v2  ;;  %2773 = vmatprep.subr.mxu1 %v3077_v2 }
  0xb2   : > { %2739 = vmatpush3.msra.mxu0 %v2021_v37  ;;  %2774 = vmatpush3.msra.mxu1 %v2039_v38  ;;  %v2112_v37 = vld [vmem:[%s4267_s1 + $0x6a8] sm:$0xff]  ;;  %v2093_v38 = vld [vmem:[%s4267_s1 + $0x620] sm:$0xff] }
  0xb3   : > { %2740 = vmatprep.subr.mxu0 %v3077_v2  ;;  %2775 = vmatprep.subr.mxu1 %v3077_v2 }
  0xb4   : > { %2741 = vmatpush3.msra.mxu0 %v2020_v39  ;;  %2776 = vmatpush3.msra.mxu1 %v2038_v40  ;;  %v2111_v39 = vld [vmem:[%s4267_s1 + $0x6a0] sm:$0xff] }
  0xb5   : > { %2742 = vmatprep.subr.mxu0 %v3077_v2  ;;  %2777 = vmatprep.subr.mxu1 %v3077_v2 }
  0xb6   : > { %2743 = vmatpush3.msra.mxu0 %v2019_v41  ;;  %2744 = vmatprep.mubr.msk.f32.mxu0 %vm3078_vm0, %v3077_v2  ;;  %v2092_v41 = vld [vmem:[%s4267_s1 + $0x618] sm:$0xff] }
  0xb7   : > { %2778 = vmatpush3.msra.mxu1 %v2037_v42  ;;  %2745 = vmatmul.mubr.f32.vlgmr.msra.gmra.mxu0 %v2018_v43  ;;  %v2110_v42 = vld [vmem:[%s4267_s1 + $0x698] sm:$0xff] }
  0xb8   : > { %2779 = vmatprep.mubr.msk.f32.mxu1 %vm3078_vm0, %v3077_v2  ;;  %2782 = vmatprep.subr.mxu0 %v3077_v2 }
  0xb9   : > { %2817 = vmatprep.subr.mxu1 %v3077_v2  ;;  %2780 = vmatmul.mubr.f32.vlgmr.msra.gmra.mxu1 %v2036_v44 }
  0xba   : > { %2783 = vmatpush3.msra.mxu0 %v2069_v45  ;;  %2818 = vmatpush3.msra.mxu1 %v2086_v46  ;;  %v2091_v46 = vld [vmem:[%s4267_s1 + $0x610] sm:$0xff] }
  0xbb   : > { %2784 = vmatprep.subr.mxu0 %v3077_v2  ;;  %2819 = vmatprep.subr.mxu1 %v3077_v2 }
  0xbc   : > { %2785 = vmatpush3.msra.mxu0 %v2068_v47  ;;  %2820 = vmatpush3.msra.mxu1 %v2085_v48  ;;  %v2109_v47 = vld [vmem:[%s4267_s1 + $0x690] sm:$0xff] }
  0xbd   : > { %2786 = vmatprep.subr.mxu0 %v3077_v2  ;;  %2821 = vmatprep.subr.mxu1 %v3077_v2 }
  0xbe   : > { %2787 = vmatpush3.msra.mxu0 %v2067_v49  ;;  %2822 = vmatpush3.msra.mxu1 %v2084_v50  ;;  %v2090_v49 = vld [vmem:[%s4267_s1 + $0x608] sm:$0xff] }
  0xbf   : > { %2788 = vmatprep.subr.mxu0 %v3077_v2  ;;  %2823 = vmatprep.subr.mxu1 %v3077_v2  ;;  %v2108_v50 = vld [vmem:[%s4267_s1 + $0x688] sm:$0xff] }
  0xc0   : > { %2789 = vmatpush3.msra.mxu0 %v2066_v51  ;;  %2824 = vmatpush3.msra.mxu1 %v2083_v52  ;;  %v2089_v51 = vld [vmem:[%s4267_s1 + $0x600] sm:$0xff] }
  0xc1   : > { %2790 = vmatprep.subr.mxu0 %v3077_v2  ;;  %2825 = vmatprep.subr.mxu1 %v3077_v2  ;;  %v2107_v52 = vld [vmem:[%s4267_s1 + $0x680] sm:$0xff] }
  0xc2   : > { %2791 = vmatpush3.msra.mxu0 %v2065_v53  ;;  %2826 = vmatpush3.msra.mxu1 %v2082_v54  ;;  %v2088_v53 = vld [vmem:[%s3279_s24 + $0x78] sm:$0x1f]  ;;  %v2106_v54 = vld [vmem:[%s3279_s24 + $0xb0] sm:$0x1f] }
  0xc3   : > { %2792 = vmatprep.subr.mxu0 %v3077_v2  ;;  %2827 = vmatprep.subr.mxu1 %v3077_v2 }
  0xc4   : > { %2793 = vmatpush3.msra.mxu0 %v2064_v55  ;;  %2828 = vmatpush3.msra.mxu1 %v2081_v56  ;;  %v2139_v55 = vld [vmem:[%s4267_s1 + $0x778] sm:$0xff] }
  0xc5   : > { %2794 = vmatprep.subr.mxu0 %v3077_v2  ;;  %2829 = vmatprep.subr.mxu1 %v3077_v2  ;;  %v2156_v56 = vld [vmem:[%s4267_s1 + $0x7f8] sm:$0xff] }
  0xc6   : > { %2795 = vmatpush3.msra.mxu0 %v2063_v57  ;;  %2830 = vmatpush3.msra.mxu1 %v2080_v58  ;;  %v2138_v57 = vld [vmem:[%s4267_s1 + $0x770] sm:$0xff] }
  0xc7   : > { %2796 = vmatprep.subr.mxu0 %v3077_v2  ;;  %2831 = vmatprep.subr.mxu1 %v3077_v2  ;;  %v2155_v58 = vld [vmem:[%s4267_s1 + $0x7f0] sm:$0xff] }
  0xc8   : > { %2797 = vmatpush3.msra.mxu0 %v2062_v59  ;;  %2832 = vmatpush3.msra.mxu1 %v2079_v60  ;;  %v2137_v59 = vld [vmem:[%s4267_s1 + $0x768] sm:$0xff] }
  0xc9   : > { %2798 = vmatprep.subr.mxu0 %v3077_v2  ;;  %2833 = vmatprep.subr.mxu1 %v3077_v2  ;;  %v2154_v60 = vld [vmem:[%s4267_s1 + $0x7e8] sm:$0xff] }
  0xca   : > { %2799 = vmatpush3.msra.mxu0 %v2061_v61  ;;  %2834 = vmatpush3.msra.mxu1 %v2078_v62  ;;  %v2136_v61 = vld [vmem:[%s4267_s1 + $0x760] sm:$0xff] }
  0xcb   : > { %2800 = vmatprep.subr.mxu0 %v3077_v2  ;;  %2835 = vmatprep.subr.mxu1 %v3077_v2  ;;  %v2153_v62 = vld [vmem:[%s4267_s1 + $0x7e0] sm:$0xff] }
  0xcc   : > { %2801 = vmatpush3.msra.mxu0 %v2060_v63  ;;  %2836 = vmatpush3.msra.mxu1 %v2077_v0  ;;  %v2135_v63 = vld [vmem:[%s4267_s1 + $0x758] sm:$0xff] }
  0xcd   : > { %2802 = vmatprep.subr.mxu0 %v3077_v2  ;;  %2837 = vmatprep.subr.mxu1 %v3077_v2  ;;  %v2152_v0 = vld [vmem:[%s4267_s1 + $0x7d8] sm:$0xff] }
  0xce   : > { %2803 = vmatpush3.msra.mxu0 %v2059_v1  ;;  %2838 = vmatpush3.msra.mxu1 %v2076_v3  ;;  %v2134_v1 = vld [vmem:[%s4267_s1 + $0x750] sm:$0xff] }
  0xcf   : > { %2804 = vmatprep.subr.mxu0 %v3077_v2  ;;  %2839 = vmatprep.subr.mxu1 %v3077_v2  ;;  %v2151_v3 = vld [vmem:[%s4267_s1 + $0x7d0] sm:$0xff] }
  0xd0   : > { %2805 = vmatpush3.msra.mxu0 %v2058_v4  ;;  %2840 = vmatpush3.msra.mxu1 %v2075_v5  ;;  %v2133_v4 = vld [vmem:[%s4267_s1 + $0x748] sm:$0xff] }
  0xd1   : > { %2806 = vmatprep.subr.mxu0 %v3077_v2  ;;  %2841 = vmatprep.subr.mxu1 %v3077_v2  ;;  %v2150_v5 = vld [vmem:[%s4267_s1 + $0x7c8] sm:$0xff] }
  0xd2   : > { %2807 = vmatpush3.msra.mxu0 %v2057_v6  ;;  %2842 = vmatpush3.msra.mxu1 %v2074_v7  ;;  %v2132_v6 = vld [vmem:[%s4267_s1 + $0x740] sm:$0xff] }
  0xd3   : > { %2808 = vmatprep.subr.mxu0 %v3077_v2  ;;  %2843 = vmatprep.subr.mxu1 %v3077_v2  ;;  %v2149_v7 = vld [vmem:[%s4267_s1 + $0x7c0] sm:$0xff] }
  0xd4   : > { %2809 = vmatpush3.msra.mxu0 %v2056_v8  ;;  %2844 = vmatpush3.msra.mxu1 %v2073_v9  ;;  %v2131_v8 = vld [vmem:[%s4267_s1 + $0x738] sm:$0xff] }
  0xd5   : > { %2810 = vmatprep.subr.mxu0 %v3077_v2  ;;  %2845 = vmatprep.subr.mxu1 %v3077_v2  ;;  %v2148_v9 = vld [vmem:[%s4267_s1 + $0x7b8] sm:$0xff] }
  0xd6   : > { %2811 = vmatpush3.msra.mxu0 %v2055_v10  ;;  %2846 = vmatpush3.msra.mxu1 %v2072_v11  ;;  %v2130_v10 = vld [vmem:[%s4267_s1 + $0x730] sm:$0xff] }
  0xd7   : > { %2812 = vmatprep.subr.mxu0 %v3077_v2  ;;  %2847 = vmatprep.subr.mxu1 %v3077_v2  ;;  %v2147_v11 = vld [vmem:[%s4267_s1 + $0x7b0] sm:$0xff] }
  0xd8   : > { %2813 = vmatpush3.msra.mxu0 %v2054_v12  ;;  %2814 = vmatprep.mubr.msk.f32.mxu0 %vm3078_vm0, %v3077_v2  ;;  %v2129_v12 = vld [vmem:[%s4267_s1 + $0x728] sm:$0xff] }
  0xd9   : > { %2848 = vmatpush3.msra.mxu1 %v2071_v13  ;;  %2815 = vmatmul.mubr.f32.vlgmr.msra.gmra.mxu0 %v2053_v14  ;;  %v2146_v13 = vld [vmem:[%s4267_s1 + $0x7a8] sm:$0xff]  ;;  %v2128_v14 = vld [vmem:[%s4267_s1 + $0x720] sm:$0xff] }
  0xda   : > { %2849 = vmatprep.mubr.msk.f32.mxu1 %vm3078_vm0, %v3077_v2  ;;  %2852 = vmatprep.subr.mxu0 %v3077_v2 }
  0xdb   : > { %2887 = vmatprep.subr.mxu1 %v3077_v2  ;;  %2850 = vmatmul.mubr.f32.vlgmr.msra.gmra.mxu1 %v2070_v15  ;;  %v2145_v15 = vld [vmem:[%s4267_s1 + $0x7a0] sm:$0xff] }
  0xdc   : > { %2853 = vmatpush3.msra.mxu0 %v2104_v16  ;;  %2888 = vmatpush3.msra.mxu1 %v2122_v17 }
  0xdd   : > { %2854 = vmatprep.subr.mxu0 %v3077_v2  ;;  %2889 = vmatprep.subr.mxu1 %v3077_v2 }
  0xde   : > { %2855 = vmatpush3.msra.mxu0 %v2103_v18  ;;  %2890 = vmatpush3.msra.mxu1 %v2121_v19  ;;  %v2127_v18 = vld [vmem:[%s4267_s1 + $0x718] sm:$0xff] }
  0xdf   : > { %2856 = vmatprep.subr.mxu0 %v3077_v2  ;;  %2891 = vmatprep.subr.mxu1 %v3077_v2  ;;  %v2144_v19 = vld [vmem:[%s4267_s1 + $0x798] sm:$0xff] }
  0xe0   : > { %2857 = vmatpush3.msra.mxu0 %v2102_v20  ;;  %2892 = vmatpush3.msra.mxu1 %v2120_v21 }
  0xe1   : > { %2858 = vmatprep.subr.mxu0 %v3077_v2  ;;  %2893 = vmatprep.subr.mxu1 %v3077_v2 }
  0xe2   : > { %2859 = vmatpush3.msra.mxu0 %v2101_v22  ;;  %2894 = vmatpush3.msra.mxu1 %v2119_v23  ;;  %v2126_v23 = vld [vmem:[%s4267_s1 + $0x710] sm:$0xff] }
  0xe3   : > { %2860 = vmatprep.subr.mxu0 %v3077_v2  ;;  %2895 = vmatprep.subr.mxu1 %v3077_v2 }
  0xe4   : > { %2861 = vmatpush3.msra.mxu0 %v2100_v24  ;;  %2896 = vmatpush3.msra.mxu1 %v2118_v25  ;;  %v2143_v24 = vld [vmem:[%s4267_s1 + $0x790] sm:$0xff] }
  0xe5   : > { %2862 = vmatprep.subr.mxu0 %v3077_v2  ;;  %2897 = vmatprep.subr.mxu1 %v3077_v2 }
  0xe6   : > { %2863 = vmatpush3.msra.mxu0 %v2099_v26  ;;  %2898 = vmatpush3.msra.mxu1 %v2117_v27  ;;  %v2125_v26 = vld [vmem:[%s4267_s1 + $0x708] sm:$0xff] }
  0xe7   : > { %2864 = vmatprep.subr.mxu0 %v3077_v2  ;;  %2899 = vmatprep.subr.mxu1 %v3077_v2  ;;  %v2142_v27 = vld [vmem:[%s4267_s1 + $0x788] sm:$0xff] }
  0xe8   : > { %2865 = vmatpush3.msra.mxu0 %v2098_v28  ;;  %2900 = vmatpush3.msra.mxu1 %v2116_v29  ;;  %v2124_v28 = vld [vmem:[%s4267_s1 + $0x700] sm:$0xff] }
  0xe9   : > { %2866 = vmatprep.subr.mxu0 %v3077_v2  ;;  %2901 = vmatprep.subr.mxu1 %v3077_v2  ;;  %v2141_v29 = vld [vmem:[%s4267_s1 + $0x780] sm:$0xff] }
  0xea   : > { %2867 = vmatpush3.msra.mxu0 %v2097_v30  ;;  %2902 = vmatpush3.msra.mxu1 %v2115_v31  ;;  %v2123_v30 = vld [vmem:[%s3279_s24 + $0x79] sm:$0x1f]  ;;  %v2140_v31 = vld [vmem:[%s3279_s24 + $0xb1] sm:$0x1f]  ;;  %s251_s24 = scalar_select %p250_p6, %s3059_s18, 4 }
  0xeb   : > { %2868 = vmatprep.subr.mxu0 %v3077_v2  ;;  %2903 = vmatprep.subr.mxu1 %v3077_v2 }
  0xec   : > { %2869 = vmatpush3.msra.mxu0 %v2096_v32  ;;  %2904 = vmatpush3.msra.mxu1 %v2114_v33  ;;  %s253_s6 = sadd.s32 %s2993_s30, %s251_s24 }
  0xed   : > { %2870 = vmatprep.subr.mxu0 %v3077_v2  ;;  %2905 = vmatprep.subr.mxu1 %v3077_v2  ;;  %s1894_s7 = sshll.u32 %s253_s6, 3 }
  0xee   : > { %2871 = vmatpush3.msra.mxu0 %v2095_v34  ;;  %2906 = vmatpush3.msra.mxu1 %v2113_v35  ;;  %s255_s10 = scalar_lea.vmem %s4269_s3, %s1894_s7 }
  0xef   : > { %2872 = vmatprep.subr.mxu0 %v3077_v2  ;;  %2907 = vmatprep.subr.mxu1 %v3077_v2  ;;  %v368_v40 = vpop.f32.mrf.mxu0 }
  0xf0   : > { %2873 = vmatpush3.msra.mxu0 %v2094_v36  ;;  %2908 = vmatpush3.msra.mxu1 %v2112_v37 }
  0xf1   : > { %2874 = vmatprep.subr.mxu0 %v3077_v2  ;;  %2909 = vmatprep.subr.mxu1 %v3077_v2  ;;  %v438_v43 = vpop.f32.mrf.mxu1  ;;  %v2466_v44 = vpop.f32.mrf.mxu0 }
  0xf2   : > { %2875 = vmatpush3.msra.mxu0 %v2093_v38  ;;  %2910 = vmatpush3.msra.mxu1 %v2111_v39  ;;  %v4069_v45 = vadd.f32 %v438_v43, %v368_v40 }
  0xf3   : > { %2876 = vmatprep.subr.mxu0 %v3077_v2  ;;  %2911 = vmatprep.subr.mxu1 %v3077_v2  ;;  %v2501_v48 = vpop.f32.mrf.mxu1 }
  0xf4   : > { %2877 = vmatpush3.msra.mxu0 %v2092_v41  ;;  %2912 = vmatpush3.msra.mxu1 %v2110_v42 }
  0xf5   : > { %2878 = vmatprep.subr.mxu0 %v3077_v2  ;;  %2913 = vmatprep.subr.mxu1 %v3077_v2 }
  0xf6   : > { %2879 = vmatpush3.msra.mxu0 %v2091_v46  ;;  %2914 = vmatpush3.msra.mxu1 %v2109_v47 }
  0xf7   : > { %2880 = vmatprep.subr.mxu0 %v3077_v2  ;;  %2915 = vmatprep.subr.mxu1 %v3077_v2 }
  0xf8   : > { %2881 = vmatpush3.msra.mxu0 %v2090_v49  ;;  %2916 = vmatpush3.msra.mxu1 %v2108_v50 }
  0xf9   : > { %2882 = vmatprep.subr.mxu0 %v3077_v2  ;;  %2917 = vmatprep.subr.mxu1 %v3077_v2 }
  0xfa   : > { %2883 = vmatpush3.msra.mxu0 %v2089_v51  ;;  %2884 = vmatprep.mubr.msk.f32.mxu0 %vm3078_vm0, %v3077_v2 }
  0xfb   : > { %2918 = vmatpush3.msra.mxu1 %v2107_v52  ;;  %2885 = vmatmul.mubr.f32.vlgmr.msra.gmra.mxu0 %v2088_v53 }
  0xfc   : > { %2919 = vmatprep.mubr.msk.f32.mxu1 %vm3078_vm0, %v3077_v2  ;;  %2922 = vmatprep.subr.mxu0 %v3077_v2 }
  0xfd   : > { %2957 = vmatprep.subr.mxu1 %v3077_v2  ;;  %2920 = vmatmul.mubr.f32.vlgmr.msra.gmra.mxu1 %v2106_v54 }
  0xfe   : > { %2923 = vmatpush3.msra.mxu0 %v2139_v55  ;;  %2958 = vmatpush3.msra.mxu1 %v2156_v56 }
  0xff   : > { %2924 = vmatprep.subr.mxu0 %v3077_v2  ;;  %2959 = vmatprep.subr.mxu1 %v3077_v2 }
 0x100   : > { %2925 = vmatpush3.msra.mxu0 %v2138_v57  ;;  %2960 = vmatpush3.msra.mxu1 %v2155_v58 }
 0x101   : > { %2926 = vmatprep.subr.mxu0 %v3077_v2  ;;  %2961 = vmatprep.subr.mxu1 %v3077_v2 }
 0x102   : > { %2927 = vmatpush3.msra.mxu0 %v2137_v59  ;;  %2962 = vmatpush3.msra.mxu1 %v2154_v60 }
 0x103   : > { %2928 = vmatprep.subr.mxu0 %v3077_v2  ;;  %2963 = vmatprep.subr.mxu1 %v3077_v2 }
 0x104   : > { %2929 = vmatpush3.msra.mxu0 %v2136_v61  ;;  %2964 = vmatpush3.msra.mxu1 %v2153_v62 }
 0x105   : > { %2930 = vmatprep.subr.mxu0 %v3077_v2  ;;  %2965 = vmatprep.subr.mxu1 %v3077_v2 }
 0x106   : > { %2931 = vmatpush3.msra.mxu0 %v2135_v63  ;;  %2966 = vmatpush3.msra.mxu1 %v2152_v0 }
 0x107   : > { %2932 = vmatprep.subr.mxu0 %v3077_v2  ;;  %2967 = vmatprep.subr.mxu1 %v3077_v2 }
 0x108   : > { %2933 = vmatpush3.msra.mxu0 %v2134_v1  ;;  %2968 = vmatpush3.msra.mxu1 %v2151_v3 }
 0x109   : > { %2934 = vmatprep.subr.mxu0 %v3077_v2  ;;  %2969 = vmatprep.subr.mxu1 %v3077_v2 }
 0x10a   : > { %2935 = vmatpush3.msra.mxu0 %v2133_v4  ;;  %2970 = vmatpush3.msra.mxu1 %v2150_v5 }
 0x10b   : > { %2936 = vmatprep.subr.mxu0 %v3077_v2  ;;  %2971 = vmatprep.subr.mxu1 %v3077_v2 }
 0x10c   : > { %2937 = vmatpush3.msra.mxu0 %v2132_v6  ;;  %2972 = vmatpush3.msra.mxu1 %v2149_v7 }
 0x10d   : > { %2938 = vmatprep.subr.mxu0 %v3077_v2  ;;  %2973 = vmatprep.subr.mxu1 %v3077_v2 }
 0x10e   : > { %2939 = vmatpush3.msra.mxu0 %v2131_v8  ;;  %2974 = vmatpush3.msra.mxu1 %v2148_v9 }
 0x10f   : > { %2940 = vmatprep.subr.mxu0 %v3077_v2  ;;  %2975 = vmatprep.subr.mxu1 %v3077_v2 }
 0x110   : > { %2941 = vmatpush3.msra.mxu0 %v2130_v10  ;;  %2976 = vmatpush3.msra.mxu1 %v2147_v11 }
 0x111   : > { %2942 = vmatprep.subr.mxu0 %v3077_v2  ;;  %2977 = vmatprep.subr.mxu1 %v3077_v2  ;;  %v526_v16 = vpop.f32.mrf.mxu0 }
 0x112   : > { %2943 = vmatpush3.msra.mxu0 %v2129_v12  ;;  %2978 = vmatpush3.msra.mxu1 %v2146_v13  ;;  %v530_v17 = vadd.f32 %v526_v16, %v4069_v45 }
 0x113   : > { %2944 = vmatprep.subr.mxu0 %v3077_v2  ;;  %2979 = vmatprep.subr.mxu1 %v3077_v2  ;;  %v615_v20 = vpop.f32.mrf.mxu1  ;;  %v2536_v21 = vpop.f32.mrf.mxu0 }
 0x114   : > { %2945 = vmatpush3.msra.mxu0 %v2128_v14  ;;  %2980 = vmatpush3.msra.mxu1 %v2145_v15  ;;  %v619_v22 = vadd.f32 %v615_v20, %v530_v17 }
 0x115   : > { %2946 = vmatprep.subr.mxu0 %v3077_v2  ;;  %2981 = vmatprep.subr.mxu1 %v3077_v2  ;;  %v2571_v25 = vpop.f32.mrf.mxu1 }
 0x116   : > { %2947 = vmatpush3.msra.mxu0 %v2127_v18  ;;  %2982 = vmatpush3.msra.mxu1 %v2144_v19 }
 0x117   : > { %2948 = vmatprep.subr.mxu0 %v3077_v2  ;;  %2983 = vmatprep.subr.mxu1 %v3077_v2 }
 0x118   : > { %2949 = vmatpush3.msra.mxu0 %v2126_v23  ;;  %2984 = vmatpush3.msra.mxu1 %v2143_v24 }
 0x119   : > { %2950 = vmatprep.subr.mxu0 %v3077_v2  ;;  %2985 = vmatprep.subr.mxu1 %v3077_v2 }
 0x11a   : > { %2951 = vmatpush3.msra.mxu0 %v2125_v26  ;;  %2986 = vmatpush3.msra.mxu1 %v2142_v27 }
 0x11b   : > { %2952 = vmatprep.subr.mxu0 %v3077_v2  ;;  %2987 = vmatprep.subr.mxu1 %v3077_v2 }
 0x11c   : > { %2953 = vmatpush3.msra.mxu0 %v2124_v28  ;;  %2954 = vmatprep.mubr.msk.f32.mxu0 %vm3078_vm0, %v3077_v2 }
 0x11d   : > { %2988 = vmatpush3.msra.mxu1 %v2141_v29  ;;  %2989 = vmatprep.mubr.msk.f32.mxu1 %vm3078_vm0, %v3077_v2 }
 0x11e   : > { %2955 = vmatmul.mubr.f32.vlgmr.msra.gmra.mxu0 %v2123_v30  ;;  %2990 = vmatmul.mubr.f32.vlgmr.msra.gmra.mxu1 %v2140_v31 }
 0x133   : > { %v707_v32 = vpop.f32.mrf.mxu0 }
 0x134   : > { %v711_v33 = vadd.f32 %v707_v32, %v619_v22 }
 0x135   : > { %v799_v34 = vpop.f32.mrf.mxu1  ;;  %v2606_v35 = vpop.f32.mrf.mxu0 }
 0x136   : > { %v803_v36 = vadd.f32 %v799_v34, %v711_v33 }
 0x137   : > { %v2641_v37 = vpop.f32.mrf.mxu1 }
 0x155   : > { %v888_v38 = vpop.f32.mrf.mxu0 }
 0x156   : > { %v892_v39 = vadd.f32 %v888_v38, %v803_v36 }
 0x157   : > { %v977_v40 = vpop.f32.mrf.mxu1  ;;  %v2676_v41 = vpop.f32.mrf.mxu0 }
 0x158   : > { %v981_v42 = vadd.f32 %v977_v40, %v892_v39 }
 0x159   : > { %v2711_v43 = vpop.f32.mrf.mxu1 }
 0x177   : > { %v1069_v44 = vpop.f32.mrf.mxu0 }
 0x178   : > { %v1073_v45 = vadd.f32 %v1069_v44, %v981_v42 }
 0x179   : > { %v1161_v2 = vpop.f32.mrf.mxu1  ;;  %v2746_v46 = vpop.f32.mrf.mxu0 }
 0x17a   : > { %v1165_v47 = vadd.f32 %v1161_v2, %v1073_v45 }
 0x17b   : > { %v2781_v48 = vpop.f32.mrf.mxu1 }
 0x199   : > { %v1250_v49 = vpop.f32.mrf.mxu0 }
 0x19a   : > { %v1254_v57 = vadd.f32 %v1250_v49, %v1165_v47 }
 0x19b   : > { %v1339_v50 = vpop.f32.mrf.mxu1  ;;  %v2816_v51 = vpop.f32.mrf.mxu0 }
 0x19c   : > { %v1343_v58 = vadd.f32 %v1339_v50, %v1254_v57 }
 0x19d   : > { %v2851_v52 = vpop.f32.mrf.mxu1 }
 0x1bb   : > { %v1431_v53 = vpop.f32.mrf.mxu0 }
 0x1bc   : > { %v1435_v59 = vadd.f32 %v1431_v53, %v1343_v58 }
 0x1bd   : > { %v1523_v54 = vpop.f32.mrf.mxu1  ;;  %v2886_v55 = vpop.f32.mrf.mxu0 }
 0x1be   : > { %v1527_v60 = vadd.f32 %v1523_v54, %v1435_v59 }
 0x1bf   : > { %v2921_v56 = vpop.f32.mrf.mxu1 }
 0x1de   : > { %v1612_v61 = vpop.f32.mrf.mxu0  ;;  %v1701_v62 = vpop.f32.mrf.mxu1 }
 0x1df   : > { %v1616_v63 = vadd.f32 %v1612_v61, %v1527_v60  ;;  %1710 = sbr.rel (%p2157_p7) target bundleno = 486 (0x1e6), region = 36 }
 0x1e0   : > { %v2956_v0 = vpop.f32.mrf.mxu0  ;;  %v2991_v1 = vpop.f32.mrf.mxu1 }
 0x1e1   : > { %v1705_v3 = vadd.f32 %v1701_v62, %v1616_v63 }
 0x1e3   : > { %1706 = vst [vmem:[%s255_s10] sm:$0x1f] %v1705_v3 }
 0x1e4   : > { %v3079_v4 = vmov 0.0  }
 0x1e5   : > { %1711 = vst [vmem:[%s3170_s13] sm:$0x1] %v3079_v4  ;;  %1712 = vst [vmem:[%s3184_s26] sm:$0x1] %v3079_v4 }
 0x1e6 PF: > { %vm1714_vm1 = vcmask 1044480   ;;  %v1725_v5 = vmul.f32 %v1705_v3, %v1705_v3 }
 0x1e7   : > { %v1715_v6 = vsel %vm1714_vm1, %v1705_v3, 0.0 }
 0x1e8   : > { %v1716_v7 = vrot.slane %v1715_v6, 4  ;;  %v1726_v8 = vsel %vm1714_vm1, %v1725_v5, 0.0 }
 0x1e9   : > { %v1727_v9 = vrot.slane %v1726_v8, 4 }
 0x1ea   : > { %v1717_v10 = vadd.f32 %v1716_v7, %v1715_v6 }
 0x1eb   : > { %v1728_v11 = vadd.f32 %v1727_v9, %v1726_v8 }
 0x1ec   : > { %v1718_v12 = vrot.slane %v1717_v10, 2  ;;  %v1713_v17 = vld [vmem:[%s3170_s13] sm:$0x1] }
 0x1ed   : > { %v1729_v13 = vrot.slane %v1728_v11, 2  ;;  %v1724_v20 = vld [vmem:[%s3184_s26] sm:$0x1] }
 0x1ee   : > { %v1719_v14 = vadd.f32 %v1718_v12, %v1717_v10 }
 0x1ef   : > { %v1730_v15 = vadd.f32 %v1729_v13, %v1728_v11 }
 0x1f0   : > { %v1720_v16 = vrot.slane %v1719_v14, 1 }
 0x1f1   : > { %v1731_v18 = vrot.slane %v1730_v15, 1 }
 0x1f2   : > { %v1721_v19 = vadd.f32 %v1720_v16, %v1719_v14 }
 0x1f3   : > { %v1732_v21 = vadd.f32 %v1731_v18, %v1730_v15 }
 0x1f4   : > { %v1722_v22 = vadd.f32 %v1721_v19, %v1713_v17 }
 0x1f5   : > { %v1733_v23 = vadd.f32 %v1732_v21, %v1724_v20 }
 0x1f6   : > { %1723 = vst [vmem:[%s3170_s13] sm:$0x1] %v1722_v22 }
 0x1f7   : > { %1734 = vst [vmem:[%s3184_s26] sm:$0x1] %v1733_v23 }
 0x1f8 PF: > { %s16_s22 = sadd.s32 1, %s3075_s22   ;;  %s4272_s18 = smov %s3067_s20 }
 0x1f9   : > { %p13_p8 = scmp.ge.s32.totalorder %s16_s22, 12   ;;  %s4273_s19 = smov %s3071_s21 }
 0x1fa   : > { %s4274_s20 = smov %s4277_s2  ;;  %s4275_s21 = smov %s4281_s23 }
 0x1fb   :  { %15 = sbr.rel (!%p13_p8) target bundleno = 3 (0x3), region = 113 }

// kernel: cycle_d_sn_forward.12
= control target key start
LH: loop header
LB: loop body
LE: loop exit
PB: predicated region body
PF: predicated region fallthrough
CT: control target
= control target key end

     0   :  { %s474_s12 = smov 0   ;;  %s476_s13 = smov 0   ;;  %s531_s0 = inlined_call_operand.vmem [shape: f32[2,3,3,128], index: 0, kind: input, shape index: {}]   ;;  %s532_s1 = inlined_call_operand.vmem [shape: f32[2,1,128], index: 1, kind: input, shape index: {}]   ;;  %s533_s2 = inlined_call_operand.vmem [shape: f32[2,1,128], index: 2, kind: input, shape index: {}]   ;;  %s534_s3 = inlined_call_operand.vmem [shape: f32[2,3,3,128], index: 3, kind: output, shape index: {}]  }
   0x1   :  { %s478_s14 = smov 0   ;;  %s480_s15 = smov 0  }
   0x2   :  { %s482_s16 = smov 0  }
   0x3 LB: > { %s22_s17 = sadd.s32 1, %s444_s14  ;;  %s25_s18 = sadd.s32 1, %s448_s15  ;;  %s452_s16 = sphi %s482_s16, %s13_s16   ;;  %s448_s15 = sphi %s480_s15, %s538_s15   ;;  %s444_s14 = sphi %s478_s14, %s537_s14   ;;  %s440_s13 = sphi %s476_s13, %s536_s13   ;;  %s436_s12 = sphi %s474_s12, %s535_s12  }
   0x4   : > { %p23_p0 = scmp.ge.s32.totalorder %s22_s17, 3  ;;  %p366_p1 = scmp.ge.s32.totalorder %s452_s16, 1 }
   0x5   : > { %p172_p2 = scmp.lt.s32.totalorder %s452_s16, 7 }
   0x6   : > { %s540_s17 = smov (%p23_p0, %s22_s17), 0  ;;  %s542_s18 = smov (!%p23_p0, %s25_s18), %s448_s15 }
   0x7   : > { %p173_p3 = pnand %p366_p1, %p172_p2  ;;  %p27_p4 = scmp.ge.s32.totalorder %s542_s18, 2 }
   0x8   : > { %p208_p5 = scmp.lt.s32.totalorder (!%p173_p3), %s440_s13, 1  ;;  %p210_p6 = scmp.lt.s32.totalorder (!%p173_p3), %s436_s12, 2 }
   0x9   : > { %s544_s18 = smov (%p27_p4, %s542_s18), 0  ;;  %176 = sbr.rel (%p173_p3) target bundleno = 49 (0x31), region = 32 }
   0xe   : > { %s546_s13 = smov (!%p208_p5, %s440_s13), 1  ;;  %s548_s12 = smov (!%p210_p6, %s436_s12), 2  ;;  %v239_v7 = vlaneseq }
   0xf   : > { %s218_s21 = scalar_lea.vmem %s532_s1, %s546_s13  ;;  %s221_s24 = scalar_lea.vmem %s533_s2, %s546_s13 }
  0x10   : > { %v231_v0 = vld [vmem:[%s218_s21] sm:$0x1]  ;;  %s371_s25 = smul.u32 3, %s546_s13  ;;  %v240_v9 = vshrl.u32 %v239_v7, 7 }
  0x11   : > { %v232_v1 = vmul.f32 0.11111111, %v231_v0  ;;  %v233_v2 = vld [vmem:[%s221_s24] sm:$0x1] }
  0x12   : > { %v234_v3 = vmul.f32 0.11111111, %v233_v2  ;;  %s213_s26 = sadd.s32 %s371_s25, %s548_s12  ;;  %v241_v10 = vsub.s32 0, %v240_v9 }
  0x13   : > { %v235_v4 = vmul.f32 %v232_v1, %v232_v1  ;;  %s367_s27 = sshll.u32 %s213_s26, 2 }
  0x14   : > { %s215_s30 = scalar_lea.vmem %s531_s0, %s367_s27  ;;  %v242_v11 = vrot.slane %v232_v1, %v241_v10  ;;  %s229_s6 = scalar_lea.vmem %s534_s3, %s367_s27 }
  0x15   : > { %v236_v5 = vsub.f32 %v234_v3, %v235_v4  ;;  %v230_v12 = vld [vmem:[%s215_s30] sm:$0x7] }
  0x16   : > { %v244_v13 = vsub.f32 %v230_v12, %v242_v11 }
  0x17   : > { %v237_v6 = vmax.f32 %v236_v5, 0.0 }
  0x19   : > { %v245_v8 = vadd.f32 1e-05, %v237_v6 }
  0x1b   : > { %412 = vrsqrt.f32 %v245_v8 }
  0x28   : > { %v413_v14 = vpop.eup %412 }
  0x29   : > { %v251_v15 = vrot.slane %v413_v14, %v241_v10 }
  0x2b   : > { %v253_v16 = vmul.f32 %v251_v15, %v244_v13 }
  0x2d   : > { %vm254_vm0 = vcmp.ge.f32.partialorder %v253_v16, 0.0  ;;  %v255_v17 = vmul.f32 0.2, %v253_v16 }
  0x2f   : > { %v256_v18 = vsel %vm254_vm0, %v253_v16, %v255_v17 }
  0x30   : > { %257 = vst [vmem:[%s229_s6] sm:$0x7] %v256_v18 }
  0x31 PF: > { %s13_s16 = sadd.s32 1, %s452_s16   ;;  %s535_s12 = smov %s444_s14 }
  0x32   : > { %p10_p7 = scmp.ge.s32.totalorder %s13_s16, 8   ;;  %s536_s13 = smov %s448_s15 }
  0x33   : > { %s537_s14 = smov %s540_s17  ;;  %s538_s15 = smov %s544_s18 }
  0x34   :  { %12 = sbr.rel (!%p10_p7) target bundleno = 3 (0x3), region = 68 }

// kernel: cycle_d_sn_forward.11
= control target key start
LH: loop header
LB: loop body
LE: loop exit
PB: predicated region body
PF: predicated region fallthrough
CT: control target
= control target key end

     0   :  { %s3110_s18 = smov 0   ;;  %s3112_s19 = smov 0   ;;  %s4266_s0 = inlined_call_operand.vmem [shape: f32[2,20,5,128], index: 0, kind: input, shape index: {}]   ;;  %s4267_s1 = inlined_call_operand.vmem [shape: f32[16,128,128], index: 1, kind: input, shape index: {}]   ;;  %s4268_s2 = inlined_call_operand.vmem [shape: f32[1,128], index: 2, kind: input, shape index: {}]   ;;  %s4269_s3 = inlined_call_operand.vmem [shape: f32[2,3,3,128], index: 3, kind: output, shape index: {0}]   ;;  %s4270_s4 = inlined_call_operand.vmem [shape: f32[2,1,128], index: 4, kind: output, shape index: {1}]   ;;  %s4271_s5 = inlined_call_operand.vmem [shape: f32[2,1,128], index: 5, kind: output, shape index: {2}]  }
   0x1   :  { %s3114_s20 = smov 0   ;;  %s3116_s21 = smov 0  }
   0x2   :  { %s3118_s22 = smov 0  }
   0x3 LB: > { %s25_s2 = sadd.s32 1, %s3067_s20  ;;  %s28_s23 = sadd.s32 1, %s3071_s21  ;;  %s3075_s22 = sphi %s3118_s22, %s16_s22   ;;  %s3071_s21 = sphi %s3116_s21, %s4275_s21   ;;  %s3067_s20 = sphi %s3114_s20, %s4274_s20   ;;  %s3063_s19 = sphi %s3112_s19, %s4273_s19   ;;  %s3059_s18 = sphi %s3110_s18, %s4272_s18  }
   0x4   : > { %p26_p0 = scmp.ge.s32.totalorder %s25_s2, 3  ;;  %p1892_p1 = scmp.ge.s32.totalorder %s3075_s22, 1 }
   0x5   : > { %p206_p2 = scmp.lt.s32.totalorder %s3075_s22, 7 }
   0x6   : > { %s4277_s2 = smov (%p26_p0, %s25_s2), 0  ;;  %s4279_s23 = smov (!%p26_p0, %s28_s23), %s3071_s21 }
   0x7   : > { %p207_p3 = pnand %p1892_p1, %p206_p2  ;;  %p30_p4 = scmp.ge.s32.totalorder %s4279_s23, 2 }
   0x8   : > { %p243_p5 = scmp.lt.s32.totalorder (!%p207_p3), %s3063_s19, 1  ;;  %s1895_s8 = sshll.u32 (!%p207_p3), %s3059_s18, 3 }
   0x9   : > { %s4281_s23 = smov (%p30_p4, %s4279_s23), 0  ;;  %210 = sbr.rel (%p207_p3) target bundleno = 504 (0x1f8), region = 32 }
   0xa   : > { %p250_p6 = scmp.lt.s32.totalorder (!%p207_p3), %s3059_s18, 2  ;;  %p2157_p7 = scmp.ne.s32.totalorder (!%p207_p3), %s3059_s18, 0 }
   0xe   : > { %v1913_v0 = vld [vmem:[%s4267_s1 + $0xf8] sm:$0xff]  ;;  %v3077_v2 = vmov 0.0   ;;  %v1912_v3 = vld [vmem:[%s4267_s1 + $0xf0] sm:$0xff]  ;;  %s4283_s19 = smov (!%p243_p5, %s3063_s19), 1  ;;  %v1911_v5 = vld [vmem:[%s4267_s1 + $0xe8] sm:$0xff]  ;;  %vm3078_vm0 = vmmov 0  }
   0xf   : > { %v280_v1 = vld [vmem:[%s4267_s1 + $0x78] sm:$0xff]  ;;  %2432 = vmatprep.subr.mxu0 %v3077_v2  ;;  %2467 = vmatprep.subr.mxu1 %v3077_v2  ;;  %v279_v4 = vld [vmem:[%s4267_s1 + $0x70] sm:$0xff]  ;;  %v278_v6 = vld [vmem:[%s4267_s1 + $0x68] sm:$0xff]  ;;  %s3170_s13 = scalar_lea.vmem %s4270_s4, %s4283_s19  ;;  %s3184_s26 = scalar_lea.vmem %s4271_s5, %s4283_s19 }
  0x10   : > { %2433 = vmatpush3.msra.mxu0 %v1913_v0  ;;  %2468 = vmatpush3.msra.mxu1 %v280_v1  ;;  %v1910_v7 = vld [vmem:[%s4267_s1 + $0xe0] sm:$0xff]  ;;  %v1909_v9 = vld [vmem:[%s4267_s1 + $0xd8] sm:$0xff]  ;;  %v1908_v11 = vld [vmem:[%s4267_s1 + $0xd0] sm:$0xff]  ;;  %s2992_s14 = smul.u32 160, %s4283_s19 }
  0x11   : > { %2434 = vmatprep.subr.mxu0 %v3077_v2  ;;  %2469 = vmatprep.subr.mxu1 %v3077_v2  ;;  %v277_v8 = vld [vmem:[%s4267_s1 + $0x60] sm:$0xff]  ;;  %v276_v10 = vld [vmem:[%s4267_s1 + $0x58] sm:$0xff]  ;;  %v275_v12 = vld [vmem:[%s4267_s1 + $0x50] sm:$0xff]  ;;  %s2993_s30 = smul.u32 3, %s4283_s19 }
  0x12   : > { %2435 = vmatpush3.msra.mxu0 %v1912_v3  ;;  %2470 = vmatpush3.msra.mxu1 %v279_v4  ;;  %v1907_v13 = vld [vmem:[%s4267_s1 + $0xc8] sm:$0xff]  ;;  %v1906_v15 = vld [vmem:[%s4267_s1 + $0xc0] sm:$0xff]  ;;  %v1905_v17 = vld [vmem:[%s4267_s1 + $0xb8] sm:$0xff]  ;;  %s247_s7 = scalar_lea.vmem %s4266_s0, %s2992_s14 }
  0x13   : > { %2436 = vmatprep.subr.mxu0 %v3077_v2  ;;  %2471 = vmatprep.subr.mxu1 %v3077_v2  ;;  %v274_v14 = vld [vmem:[%s4267_s1 + $0x48] sm:$0xff]  ;;  %v273_v16 = vld [vmem:[%s4267_s1 + $0x40] sm:$0xff]  ;;  %v272_v18 = vld [vmem:[%s4267_s1 + $0x38] sm:$0xff]  ;;  %s3279_s24 = scalar_lea.vmem %s247_s7, %s1895_s8 }
  0x14   : > { %2437 = vmatpush3.msra.mxu0 %v1911_v5  ;;  %2472 = vmatpush3.msra.mxu1 %v278_v6  ;;  %v1904_v19 = vld [vmem:[%s4267_s1 + $0xb0] sm:$0xff]  ;;  %v1903_v21 = vld [vmem:[%s4267_s1 + $0xa8] sm:$0xff]  ;;  %v1902_v23 = vld [vmem:[%s4267_s1 + $0xa0] sm:$0xff] }
  0x15   : > { %2438 = vmatprep.subr.mxu0 %v3077_v2  ;;  %2473 = vmatprep.subr.mxu1 %v3077_v2  ;;  %v271_v20 = vld [vmem:[%s4267_s1 + $0x30] sm:$0xff]  ;;  %v270_v22 = vld [vmem:[%s4267_s1 + $0x28] sm:$0xff]  ;;  %v269_v24 = vld [vmem:[%s4267_s1 + $0x20] sm:$0xff] }
  0x16   : > { %2439 = vmatpush3.msra.mxu0 %v1910_v7  ;;  %2474 = vmatpush3.msra.mxu1 %v277_v8  ;;  %v1901_v25 = vld [vmem:[%s4267_s1 + $0x98] sm:$0xff]  ;;  %v1900_v27 = vld [vmem:[%s4267_s1 + $0x90] sm:$0xff]  ;;  %v1899_v29 = vld [vmem:[%s4267_s1 + $0x88] sm:$0xff] }
  0x17   : > { %2440 = vmatprep.subr.mxu0 %v3077_v2  ;;  %2475 = vmatprep.subr.mxu1 %v3077_v2  ;;  %v268_v26 = vld [vmem:[%s4267_s1 + $0x18] sm:$0xff]  ;;  %v267_v28 = vld [vmem:[%s4267_s1 + $0x10] sm:$0xff]  ;;  %v266_v30 = vld [vmem:[%s4267_s1 + $0x8] sm:$0xff] }
  0x18   : > { %2441 = vmatpush3.msra.mxu0 %v1909_v9  ;;  %2476 = vmatpush3.msra.mxu1 %v276_v10  ;;  %v1898_v31 = vld [vmem:[%s4267_s1 + $0x80] sm:$0xff]  ;;  %v1897_v33 = vld [vmem:[%s3279_s24 + $0x28] sm:$0x7]  ;;  %v1929_v35 = vld [vmem:[%s4267_s1 + $0x178] sm:$0xff] }
  0x19   : > { %2442 = vmatprep.subr.mxu0 %v3077_v2  ;;  %2477 = vmatprep.subr.mxu1 %v3077_v2  ;;  %v265_v32 = vld [vmem:[%s4267_s1] sm:$0xff]  ;;  %v1946_v36 = vld [vmem:[%s4267_s1 + $0x1f8] sm:$0xff]  ;;  %v1928_v37 = vld [vmem:[%s4267_s1 + $0x170] sm:$0xff] }
  0x1a   : > { %2443 = vmatpush3.msra.mxu0 %v1908_v11  ;;  %2478 = vmatpush3.msra.mxu1 %v275_v12  ;;  %v264_v34 = vld [vmem:[%s3279_s24] sm:$0x7]  ;;  %v1945_v38 = vld [vmem:[%s4267_s1 + $0x1f0] sm:$0xff]  ;;  %v1927_v39 = vld [vmem:[%s4267_s1 + $0x168] sm:$0xff] }
  0x1b   : > { %2444 = vmatprep.subr.mxu0 %v3077_v2  ;;  %2479 = vmatprep.subr.mxu1 %v3077_v2  ;;  %v1944_v40 = vld [vmem:[%s4267_s1 + $0x1e8] sm:$0xff]  ;;  %v1926_v41 = vld [vmem:[%s4267_s1 + $0x160] sm:$0xff]  ;;  %v1925_v43 = vld [vmem:[%s4267_s1 + $0x158] sm:$0xff] }
  0x1c   : > { %2445 = vmatpush3.msra.mxu0 %v1907_v13  ;;  %2480 = vmatpush3.msra.mxu1 %v274_v14  ;;  %v1943_v42 = vld [vmem:[%s4267_s1 + $0x1e0] sm:$0xff]  ;;  %v1942_v44 = vld [vmem:[%s4267_s1 + $0x1d8] sm:$0xff]  ;;  %v1924_v45 = vld [vmem:[%s4267_s1 + $0x150] sm:$0xff] }
  0x1d   : > { %2446 = vmatprep.subr.mxu0 %v3077_v2  ;;  %2481 = vmatprep.subr.mxu1 %v3077_v2  ;;  %v1941_v46 = vld [vmem:[%s4267_s1 + $0x1d0] sm:$0xff]  ;;  %v1923_v47 = vld [vmem:[%s4267_s1 + $0x148] sm:$0xff]  ;;  %v1922_v49 = vld [vmem:[%s4267_s1 + $0x140] sm:$0xff] }
  0x1e   : > { %2447 = vmatpush3.msra.mxu0 %v1906_v15  ;;  %2482 = vmatpush3.msra.mxu1 %v273_v16  ;;  %v1940_v48 = vld [vmem:[%s4267_s1 + $0x1c8] sm:$0xff]  ;;  %v1939_v50 = vld [vmem:[%s4267_s1 + $0x1c0] sm:$0xff]  ;;  %v1921_v51 = vld [vmem:[%s4267_s1 + $0x138] sm:$0xff] }
  0x1f   : > { %2448 = vmatprep.subr.mxu0 %v3077_v2  ;;  %2483 = vmatprep.subr.mxu1 %v3077_v2  ;;  %v1938_v52 = vld [vmem:[%s4267_s1 + $0x1b8] sm:$0xff]  ;;  %v1920_v53 = vld [vmem:[%s4267_s1 + $0x130] sm:$0xff]  ;;  %v1919_v55 = vld [vmem:[%s4267_s1 + $0x128] sm:$0xff] }
  0x20   : > { %2449 = vmatpush3.msra.mxu0 %v1905_v17  ;;  %2484 = vmatpush3.msra.mxu1 %v272_v18  ;;  %v1937_v54 = vld [vmem:[%s4267_s1 + $0x1b0] sm:$0xff]  ;;  %v1936_v56 = vld [vmem:[%s4267_s1 + $0x1a8] sm:$0xff]  ;;  %v1918_v57 = vld [vmem:[%s4267_s1 + $0x120] sm:$0xff] }
  0x21   : > { %2450 = vmatprep.subr.mxu0 %v3077_v2  ;;  %2485 = vmatprep.subr.mxu1 %v3077_v2  ;;  %v1935_v58 = vld [vmem:[%s4267_s1 + $0x1a0] sm:$0xff]  ;;  %v1917_v59 = vld [vmem:[%s4267_s1 + $0x118] sm:$0xff]  ;;  %v1916_v61 = vld [vmem:[%s4267_s1 + $0x110] sm:$0xff] }
  0x22   : > { %2451 = vmatpush3.msra.mxu0 %v1904_v19  ;;  %2486 = vmatpush3.msra.mxu1 %v271_v20  ;;  %v1934_v60 = vld [vmem:[%s4267_s1 + $0x198] sm:$0xff]  ;;  %v1933_v62 = vld [vmem:[%s4267_s1 + $0x190] sm:$0xff]  ;;  %v1915_v63 = vld [vmem:[%s4267_s1 + $0x108] sm:$0xff] }
  0x23   : > { %2452 = vmatprep.subr.mxu0 %v3077_v2  ;;  %2487 = vmatprep.subr.mxu1 %v3077_v2  ;;  %v1932_v0 = vld [vmem:[%s4267_s1 + $0x188] sm:$0xff]  ;;  %v1914_v1 = vld [vmem:[%s4267_s1 + $0x100] sm:$0xff]  ;;  %v1964_v6 = vld [vmem:[%s4267_s1 + $0x278] sm:$0xff] }
  0x24   : > { %2453 = vmatpush3.msra.mxu0 %v1903_v21  ;;  %2488 = vmatpush3.msra.mxu1 %v270_v22  ;;  %v1931_v3 = vld [vmem:[%s4267_s1 + $0x180] sm:$0xff]  ;;  %v1930_v5 = vld [vmem:[%s3279_s24 + $0x29] sm:$0x7]  ;;  %v1982_v7 = vld [vmem:[%s4267_s1 + $0x2f8] sm:$0xff] }
  0x25   : > { %2454 = vmatprep.subr.mxu0 %v3077_v2  ;;  %2489 = vmatprep.subr.mxu1 %v3077_v2  ;;  %v442_v4 = vld [vmem:[%s3279_s24 + $0x1] sm:$0x7]  ;;  %v1963_v8 = vld [vmem:[%s4267_s1 + $0x270] sm:$0xff]  ;;  %v1962_v10 = vld [vmem:[%s4267_s1 + $0x268] sm:$0xff] }
  0x26   : > { %2455 = vmatpush3.msra.mxu0 %v1902_v23  ;;  %2490 = vmatpush3.msra.mxu1 %v269_v24  ;;  %v1981_v9 = vld [vmem:[%s4267_s1 + $0x2f0] sm:$0xff]  ;;  %v1980_v11 = vld [vmem:[%s4267_s1 + $0x2e8] sm:$0xff]  ;;  %v1961_v12 = vld [vmem:[%s4267_s1 + $0x260] sm:$0xff] }
  0x27   : > { %2456 = vmatprep.subr.mxu0 %v3077_v2  ;;  %2491 = vmatprep.subr.mxu1 %v3077_v2  ;;  %v1979_v13 = vld [vmem:[%s4267_s1 + $0x2e0] sm:$0xff]  ;;  %v1960_v14 = vld [vmem:[%s4267_s1 + $0x258] sm:$0xff]  ;;  %v1959_v16 = vld [vmem:[%s4267_s1 + $0x250] sm:$0xff] }
  0x28   : > { %2457 = vmatpush3.msra.mxu0 %v1901_v25  ;;  %2492 = vmatpush3.msra.mxu1 %v268_v26  ;;  %v1978_v15 = vld [vmem:[%s4267_s1 + $0x2d8] sm:$0xff]  ;;  %v1977_v17 = vld [vmem:[%s4267_s1 + $0x2d0] sm:$0xff]  ;;  %v1958_v18 = vld [vmem:[%s4267_s1 + $0x248] sm:$0xff] }
  0x29   : > { %2458 = vmatprep.subr.mxu0 %v3077_v2  ;;  %2493 = vmatprep.subr.mxu1 %v3077_v2  ;;  %v1976_v19 = vld [vmem:[%s4267_s1 + $0x2c8] sm:$0xff]  ;;  %v1957_v20 = vld [vmem:[%s4267_s1 + $0x240] sm:$0xff]  ;;  %v1956_v22 = vld [vmem:[%s4267_s1 + $0x238] sm:$0xff] }
  0x2a   : > { %2459 = vmatpush3.msra.mxu0 %v1900_v27  ;;  %2494 = vmatpush3.msra.mxu1 %v267_v28  ;;  %v1975_v21 = vld [vmem:[%s4267_s1 + $0x2c0] sm:$0xff]  ;;  %v1974_v23 = vld [vmem:[%s4267_s1 + $0x2b8] sm:$0xff]  ;;  %v1955_v24 = vld [vmem:[%s4267_s1 + $0x230] sm:$0xff] }
  0x2b   : > { %2460 = vmatprep.subr.mxu0 %v3077_v2  ;;  %2495 = vmatprep.subr.mxu1 %v3077_v2  ;;  %v1973_v25 = vld [vmem:[%s4267_s1 + $0x2b0] sm:$0xff]  ;;  %v1954_v26 = vld [vmem:[%s4267_s1 + $0x228] sm:$0xff]  ;;  %v1953_v28 = vld [vmem:[%s4267_s1 + $0x220] sm:$0xff] }
  0x2c   : > { %2461 = vmatpush3.msra.mxu0 %v1899_v29  ;;  %2496 = vmatpush3.msra.mxu1 %v266_v30  ;;  %v1972_v27 = vld [vmem:[%s4267_s1 + $0x2a8] sm:$0xff]  ;;  %v1971_v29 = vld [vmem:[%s4267_s1 + $0x2a0] sm:$0xff]  ;;  %v1952_v30 = vld [vmem:[%s4267_s1 + $0x218] sm:$0xff] }
  0x2d   : > { %2462 = vmatprep.subr.mxu0 %v3077_v2  ;;  %2497 = vmatprep.subr.mxu1 %v3077_v2 }
  0x2e   : > { %2463 = vmatpush3.msra.mxu0 %v1898_v31  ;;  %2464 = vmatprep.mubr.msk.f32.mxu0 %vm3078_vm0, %v3077_v2  ;;  %v1970_v31 = vld [vmem:[%s4267_s1 + $0x298] sm:$0xff] }
  0x2f   : > { %2498 = vmatpush3.msra.mxu1 %v265_v32  ;;  %2465 = vmatmul.mubr.f32.vlgmr.msra.gmra.mxu0 %v1897_v33  ;;  %v1951_v32 = vld [vmem:[%s4267_s1 + $0x210] sm:$0xff] }
  0x30   : > { %2499 = vmatprep.mubr.msk.f32.mxu1 %vm3078_vm0, %v3077_v2  ;;  %2502 = vmatprep.subr.mxu0 %v3077_v2  ;;  %v1969_v33 = vld [vmem:[%s4267_s1 + $0x290] sm:$0xff] }
  0x31   : > { %2537 = vmatprep.subr.mxu1 %v3077_v2  ;;  %2500 = vmatmul.mubr.f32.vlgmr.msra.gmra.mxu1 %v264_v34  ;;  %v1950_v34 = vld [vmem:[%s4267_s1 + $0x208] sm:$0xff] }
  0x32   : > { %2503 = vmatpush3.msra.mxu0 %v1929_v35  ;;  %2538 = vmatpush3.msra.mxu1 %v1946_v36  ;;  %v1968_v35 = vld [vmem:[%s4267_s1 + $0x288] sm:$0xff]  ;;  %v1949_v36 = vld [vmem:[%s4267_s1 + $0x200] sm:$0xff] }
  0x33   : > { %2504 = vmatprep.subr.mxu0 %v3077_v2  ;;  %2539 = vmatprep.subr.mxu1 %v3077_v2 }
  0x34   : > { %2505 = vmatpush3.msra.mxu0 %v1928_v37  ;;  %2540 = vmatpush3.msra.mxu1 %v1945_v38  ;;  %v1967_v37 = vld [vmem:[%s4267_s1 + $0x280] sm:$0xff]  ;;  %v1948_v38 = vld [vmem:[%s3279_s24 + $0x50] sm:$0x7] }
  0x35   : > { %2506 = vmatprep.subr.mxu0 %v3077_v2  ;;  %2541 = vmatprep.subr.mxu1 %v3077_v2 }
  0x36   : > { %2507 = vmatpush3.msra.mxu0 %v1927_v39  ;;  %2542 = vmatpush3.msra.mxu1 %v1944_v40  ;;  %v1966_v39 = vld [vmem:[%s3279_s24 + $0x78] sm:$0x7] }
  0x37   : > { %2508 = vmatprep.subr.mxu0 %v3077_v2  ;;  %2543 = vmatprep.subr.mxu1 %v3077_v2  ;;  %v1999_v40 = vld [vmem:[%s4267_s1 + $0x378] sm:$0xff] }
  0x38   : > { %2509 = vmatpush3.msra.mxu0 %v1926_v41  ;;  %2544 = vmatpush3.msra.mxu1 %v1943_v42  ;;  %v2016_v41 = vld [vmem:[%s4267_s1 + $0x3f8] sm:$0xff]  ;;  %v1998_v42 = vld [vmem:[%s4267_s1 + $0x370] sm:$0xff] }
  0x39   : > { %2510 = vmatprep.subr.mxu0 %v3077_v2  ;;  %2545 = vmatprep.subr.mxu1 %v3077_v2 }
  0x3a   : > { %2511 = vmatpush3.msra.mxu0 %v1925_v43  ;;  %2546 = vmatpush3.msra.mxu1 %v1942_v44  ;;  %v2015_v43 = vld [vmem:[%s4267_s1 + $0x3f0] sm:$0xff]  ;;  %v1997_v44 = vld [vmem:[%s4267_s1 + $0x368] sm:$0xff] }
  0x3b   : > { %2512 = vmatprep.subr.mxu0 %v3077_v2  ;;  %2547 = vmatprep.subr.mxu1 %v3077_v2 }
  0x3c   : > { %2513 = vmatpush3.msra.mxu0 %v1924_v45  ;;  %2548 = vmatpush3.msra.mxu1 %v1941_v46  ;;  %v2014_v45 = vld [vmem:[%s4267_s1 + $0x3e8] sm:$0xff]  ;;  %v1996_v46 = vld [vmem:[%s4267_s1 + $0x360] sm:$0xff] }
  0x3d   : > { %2514 = vmatprep.subr.mxu0 %v3077_v2  ;;  %2549 = vmatprep.subr.mxu1 %v3077_v2 }
  0x3e   : > { %2515 = vmatpush3.msra.mxu0 %v1923_v47  ;;  %2550 = vmatpush3.msra.mxu1 %v1940_v48  ;;  %v2013_v47 = vld [vmem:[%s4267_s1 + $0x3e0] sm:$0xff]  ;;  %v1995_v48 = vld [vmem:[%s4267_s1 + $0x358] sm:$0xff] }
  0x3f   : > { %2516 = vmatprep.subr.mxu0 %v3077_v2  ;;  %2551 = vmatprep.subr.mxu1 %v3077_v2 }
  0x40   : > { %2517 = vmatpush3.msra.mxu0 %v1922_v49  ;;  %2552 = vmatpush3.msra.mxu1 %v1939_v50  ;;  %v2012_v49 = vld [vmem:[%s4267_s1 + $0x3d8] sm:$0xff]  ;;  %v1994_v50 = vld [vmem:[%s4267_s1 + $0x350] sm:$0xff] }
  0x41   : > { %2518 = vmatprep.subr.mxu0 %v3077_v2  ;;  %2553 = vmatprep.subr.mxu1 %v3077_v2 }
  0x42   : > { %2519 = vmatpush3.msra.mxu0 %v1921_v51  ;;  %2554 = vmatpush3.msra.mxu1 %v1938_v52  ;;  %v2011_v51 = vld [vmem:[%s4267_s1 + $0x3d0] sm:$0xff]  ;;  %v1993_v52 = vld [vmem:[%s4267_s1 + $0x348] sm:$0xff] }
  0x43   : > { %2520 = vmatprep.subr.mxu0 %v3077_v2  ;;  %2555 = vmatprep.subr.mxu1 %v3077_v2 }
  0x44   : > { %2521 = vmatpush3.msra.mxu0 %v1920_v53  ;;  %2556 = vmatpush3.msra.mxu1 %v1937_v54  ;;  %v2010_v53 = vld [vmem:[%s4267_s1 + $0x3c8] sm:$0xff]  ;;  %v1992_v54 = vld [vmem:[%s4267_s1 + $0x340] sm:$0xff] }
  0x45   : > { %2522 = vmatprep.subr.mxu0 %v3077_v2  ;;  %2557 = vmatprep.subr.mxu1 %v3077_v2 }
  0x46   : > { %2523 = vmatpush3.msra.mxu0 %v1919_v55  ;;  %2558 = vmatpush3.msra.mxu1 %v1936_v56  ;;  %v2009_v55 = vld [vmem:[%s4267_s1 + $0x3c0] sm:$0xff]  ;;  %v1991_v56 = vld [vmem:[%s4267_s1 + $0x338] sm:$0xff] }
  0x47   : > { %2524 = vmatprep.subr.mxu0 %v3077_v2  ;;  %2559 = vmatprep.subr.mxu1 %v3077_v2 }
  0x48   : > { %2525 = vmatpush3.msra.mxu0 %v1918_v57  ;;  %2560 = vmatpush3.msra.mxu1 %v1935_v58  ;;  %v2008_v57 = vld [vmem:[%s4267_s1 + $0x3b8] sm:$0xff]  ;;  %v1990_v58 = vld [vmem:[%s4267_s1 + $0x330] sm:$0xff] }
  0x49   : > { %2526 = vmatprep.subr.mxu0 %v3077_v2  ;;  %2561 = vmatprep.subr.mxu1 %v3077_v2 }
  0x4a   : > { %2527 = vmatpush3.msra.mxu0 %v1917_v59  ;;  %2562 = vmatpush3.msra.mxu1 %v1934_v60  ;;  %v2007_v59 = vld [vmem:[%s4267_s1 + $0x3b0] sm:$0xff]  ;;  %v1989_v60 = vld [vmem:[%s4267_s1 + $0x328] sm:$0xff] }
  0x4b   : > { %2528 = vmatprep.subr.mxu0 %v3077_v2  ;;  %2563 = vmatprep.subr.mxu1 %v3077_v2 }
  0x4c   : > { %2529 = vmatpush3.msra.mxu0 %v1916_v61  ;;  %2564 = vmatpush3.msra.mxu1 %v1933_v62  ;;  %v2006_v61 = vld [vmem:[%s4267_s1 + $0x3a8] sm:$0xff]  ;;  %v1988_v62 = vld [vmem:[%s4267_s1 + $0x320] sm:$0xff] }
  0x4d   : > { %2530 = vmatprep.subr.mxu0 %v3077_v2  ;;  %2565 = vmatprep.subr.mxu1 %v3077_v2 }
  0x4e   : > { %2531 = vmatpush3.msra.mxu0 %v1915_v63  ;;  %2566 = vmatpush3.msra.mxu1 %v1932_v0  ;;  %v2005_v63 = vld [vmem:[%s4267_s1 + $0x3a0] sm:$0xff]  ;;  %v1987_v0 = vld [vmem:[%s4267_s1 + $0x318] sm:$0xff] }
  0x4f   : > { %2532 = vmatprep.subr.mxu0 %v3077_v2  ;;  %2567 = vmatprep.subr.mxu1 %v3077_v2 }
  0x50   : > { %2533 = vmatpush3.msra.mxu0 %v1914_v1  ;;  %2534 = vmatprep.mubr.msk.f32.mxu0 %vm3078_vm0, %v3077_v2  ;;  %v2004_v1 = vld [vmem:[%s4267_s1 + $0x398] sm:$0xff] }
  0x51   : > { %2568 = vmatpush3.msra.mxu1 %v1931_v3  ;;  %2535 = vmatmul.mubr.f32.vlgmr.msra.gmra.mxu0 %v442_v4  ;;  %v1986_v3 = vld [vmem:[%s4267_s1 + $0x310] sm:$0xff] }
  0x52   : > { %2569 = vmatprep.mubr.msk.f32.mxu1 %vm3078_vm0, %v3077_v2  ;;  %2572 = vmatprep.subr.mxu0 %v3077_v2  ;;  %v2003_v4 = vld [vmem:[%s4267_s1 + $0x390] sm:$0xff] }
  0x53   : > { %2607 = vmatprep.subr.mxu1 %v3077_v2  ;;  %2570 = vmatmul.mubr.f32.vlgmr.msra.gmra.mxu1 %v1930_v5  ;;  %v1985_v5 = vld [vmem:[%s4267_s1 + $0x308] sm:$0xff] }
  0x54   : > { %2573 = vmatpush3.msra.mxu0 %v1964_v6  ;;  %2608 = vmatpush3.msra.mxu1 %v1982_v7  ;;  %v2002_v6 = vld [vmem:[%s4267_s1 + $0x388] sm:$0xff]  ;;  %v1984_v7 = vld [vmem:[%s4267_s1 + $0x300] sm:$0xff] }
  0x55   : > { %2574 = vmatprep.subr.mxu0 %v3077_v2  ;;  %2609 = vmatprep.subr.mxu1 %v3077_v2 }
  0x56   : > { %2575 = vmatpush3.msra.mxu0 %v1963_v8  ;;  %2610 = vmatpush3.msra.mxu1 %v1981_v9  ;;  %v2001_v8 = vld [vmem:[%s4267_s1 + $0x380] sm:$0xff]  ;;  %v1983_v9 = vld [vmem:[%s3279_s24 + $0x51] sm:$0x7] }
  0x57   : > { %2576 = vmatprep.subr.mxu0 %v3077_v2  ;;  %2611 = vmatprep.subr.mxu1 %v3077_v2 }
  0x58   : > { %2577 = vmatpush3.msra.mxu0 %v1962_v10  ;;  %2612 = vmatpush3.msra.mxu1 %v1980_v11  ;;  %v2000_v10 = vld [vmem:[%s3279_s24 + $0x79] sm:$0x7] }
  0x59   : > { %2578 = vmatprep.subr.mxu0 %v3077_v2  ;;  %2613 = vmatprep.subr.mxu1 %v3077_v2  ;;  %v2034_v11 = vld [vmem:[%s4267_s1 + $0x478] sm:$0xff] }
  0x5a   : > { %2579 = vmatpush3.msra.mxu0 %v1961_v12  ;;  %2614 = vmatpush3.msra.mxu1 %v1979_v13  ;;  %v2052_v12 = vld [vmem:[%s4267_s1 + $0x4f8] sm:$0xff]  ;;  %v2033_v13 = vld [vmem:[%s4267_s1 + $0x470] sm:$0xff] }
  0x5b   : > { %2580 = vmatprep.subr.mxu0 %v3077_v2  ;;  %2615 = vmatprep.subr.mxu1 %v3077_v2 }
  0x5c   : > { %2581 = vmatpush3.msra.mxu0 %v1960_v14  ;;  %2616 = vmatpush3.msra.mxu1 %v1978_v15  ;;  %v2051_v14 = vld [vmem:[%s4267_s1 + $0x4f0] sm:$0xff]  ;;  %v2032_v15 = vld [vmem:[%s4267_s1 + $0x468] sm:$0xff] }
  0x5d   : > { %2582 = vmatprep.subr.mxu0 %v3077_v2  ;;  %2617 = vmatprep.subr.mxu1 %v3077_v2 }
  0x5e   : > { %2583 = vmatpush3.msra.mxu0 %v1959_v16  ;;  %2618 = vmatpush3.msra.mxu1 %v1977_v17  ;;  %v2050_v16 = vld [vmem:[%s4267_s1 + $0x4e8] sm:$0xff]  ;;  %v2031_v17 = vld [vmem:[%s4267_s1 + $0x460] sm:$0xff] }
  0x5f   : > { %2584 = vmatprep.subr.mxu0 %v3077_v2  ;;  %2619 = vmatprep.subr.mxu1 %v3077_v2 }
  0x60   : > { %2585 = vmatpush3.msra.mxu0 %v1958_v18  ;;  %2620 = vmatpush3.msra.mxu1 %v1976_v19  ;;  %v2049_v18 = vld [vmem:[%s4267_s1 + $0x4e0] sm:$0xff]  ;;  %v2030_v19 = vld [vmem:[%s4267_s1 + $0x458] sm:$0xff] }
  0x61   : > { %2586 = vmatprep.subr.mxu0 %v3077_v2  ;;  %2621 = vmatprep.subr.mxu1 %v3077_v2 }
  0x62   : > { %2587 = vmatpush3.msra.mxu0 %v1957_v20  ;;  %2622 = vmatpush3.msra.mxu1 %v1975_v21  ;;  %v2048_v20 = vld [vmem:[%s4267_s1 + $0x4d8] sm:$0xff]  ;;  %v2029_v21 = vld [vmem:[%s4267_s1 + $0x450] sm:$0xff] }
  0x63   : > { %2588 = vmatprep.subr.mxu0 %v3077_v2  ;;  %2623 = vmatprep.subr.mxu1 %v3077_v2 }
  0x64   : > { %2589 = vmatpush3.msra.mxu0 %v1956_v22  ;;  %2624 = vmatpush3.msra.mxu1 %v1974_v23  ;;  %v2047_v22 = vld [vmem:[%s4267_s1 + $0x4d0] sm:$0xff]  ;;  %v2028_v23 = vld [vmem:[%s4267_s1 + $0x448] sm:$0xff] }
  0x65   : > { %2590 = vmatprep.subr.mxu0 %v3077_v2  ;;  %2625 = vmatprep.subr.mxu1 %v3077_v2 }
  0x66   : > { %2591 = vmatpush3.msra.mxu0 %v1955_v24  ;;  %2626 = vmatpush3.msra.mxu1 %v1973_v25  ;;  %v2046_v24 = vld [vmem:[%s4267_s1 + $0x4c8] sm:$0xff]  ;;  %v2027_v25 = vld [vmem:[%s4267_s1 + $0x440] sm:$0xff] }
  0x67   : > { %2592 = vmatprep.subr.mxu0 %v3077_v2  ;;  %2627 = vmatprep.subr.mxu1 %v3077_v2 }
  0x68   : > { %2593 = vmatpush3.msra.mxu0 %v1954_v26  ;;  %2628 = vmatpush3.msra.mxu1 %v1972_v27  ;;  %v2045_v26 = vld [vmem:[%s4267_s1 + $0x4c0] sm:$0xff]  ;;  %v2026_v27 = vld [vmem:[%s4267_s1 + $0x438] sm:$0xff] }
  0x69   : > { %2594 = vmatprep.subr.mxu0 %v3077_v2  ;;  %2629 = vmatprep.subr.mxu1 %v3077_v2 }
  0x6a   : > { %2595 = vmatpush3.msra.mxu0 %v1953_v28  ;;  %2630 = vmatpush3.msra.mxu1 %v1971_v29  ;;  %v2044_v28 = vld [vmem:[%s4267_s1 + $0x4b8] sm:$0xff]  ;;  %v2025_v29 = vld [vmem:[%s4267_s1 + $0x430] sm:$0xff] }
  0x6b   : > { %2596 = vmatprep.subr.mxu0 %v3077_v2  ;;  %2631 = vmatprep.subr.mxu1 %v3077_v2 }
  0x6c   : > { %2597 = vmatpush3.msra.mxu0 %v1952_v30  ;;  %2632 = vmatpush3.msra.mxu1 %v1970_v31  ;;  %v2043_v30 = vld [vmem:[%s4267_s1 + $0x4b0] sm:$0xff]  ;;  %v2024_v31 = vld [vmem:[%s4267_s1 + $0x428] sm:$0xff] }
  0x6d   : > { %2598 = vmatprep.subr.mxu0 %v3077_v2  ;;  %2633 = vmatprep.subr.mxu1 %v3077_v2 }
  0x6e   : > { %2599 = vmatpush3.msra.mxu0 %v1951_v32  ;;  %2634 = vmatpush3.msra.mxu1 %v1969_v33  ;;  %v2042_v32 = vld [vmem:[%s4267_s1 + $0x4a8] sm:$0xff]  ;;  %v2023_v33 = vld [vmem:[%s4267_s1 + $0x420] sm:$0xff] }
  0x6f   : > { %2600 = vmatprep.subr.mxu0 %v3077_v2  ;;  %2635 = vmatprep.subr.mxu1 %v3077_v2 }
  0x70   : > { %2601 = vmatpush3.msra.mxu0 %v1950_v34  ;;  %2636 = vmatpush3.msra.mxu1 %v1968_v35  ;;  %v2041_v34 = vld [vmem:[%s4267_s1 + $0x4a0] sm:$0xff]  ;;  %v2022_v35 = vld [vmem:[%s4267_s1 + $0x418] sm:$0xff] }
  0x71   : > { %2602 = vmatprep.subr.mxu0 %v3077_v2  ;;  %2637 = vmatprep.subr.mxu1 %v3077_v2 }
  0x72   : > { %2603 = vmatpush3.msra.mxu0 %v1949_v36  ;;  %2604 = vmatprep.mubr.msk.f32.mxu0 %vm3078_vm0, %v3077_v2  ;;  %v2040_v36 = vld [vmem:[%s4267_s1 + $0x498] sm:$0xff] }
  0x73   : > { %2638 = vmatpush3.msra.mxu1 %v1967_v37  ;;  %2605 = vmatmul.mubr.f32.vlgmr.msra.gmra.mxu0 %v1948_v38  ;;  %v2021_v37 = vld [vmem:[%s4267_s1 + $0x410] sm:$0xff] }
  0x74   : > { %2639 = vmatprep.mubr.msk.f32.mxu1 %vm3078_vm0, %v3077_v2  ;;  %2642 = vmatprep.subr.mxu0 %v3077_v2  ;;  %v2039_v38 = vld [vmem:[%s4267_s1 + $0x490] sm:$0xff] }
  0x75   : > { %2677 = vmatprep.subr.mxu1 %v3077_v2  ;;  %2640 = vmatmul.mubr.f32.vlgmr.msra.gmra.mxu1 %v1966_v39  ;;  %v2020_v39 = vld [vmem:[%s4267_s1 + $0x408] sm:$0xff] }
  0x76   : > { %2643 = vmatpush3.msra.mxu0 %v1999_v40  ;;  %2678 = vmatpush3.msra.mxu1 %v2016_v41  ;;  %v2038_v40 = vld [vmem:[%s4267_s1 + $0x488] sm:$0xff]  ;;  %v2019_v41 = vld [vmem:[%s4267_s1 + $0x400] sm:$0xff] }
  0x77   : > { %2644 = vmatprep.subr.mxu0 %v3077_v2  ;;  %2679 = vmatprep.subr.mxu1 %v3077_v2 }
  0x78   : > { %2645 = vmatpush3.msra.mxu0 %v1998_v42  ;;  %2680 = vmatpush3.msra.mxu1 %v2015_v43  ;;  %v2037_v42 = vld [vmem:[%s4267_s1 + $0x480] sm:$0xff]  ;;  %v2018_v43 = vld [vmem:[%s3279_s24 + $0x8] sm:$0x7] }
  0x79   : > { %2646 = vmatprep.subr.mxu0 %v3077_v2  ;;  %2681 = vmatprep.subr.mxu1 %v3077_v2 }
  0x7a   : > { %2647 = vmatpush3.msra.mxu0 %v1997_v44  ;;  %2682 = vmatpush3.msra.mxu1 %v2014_v45  ;;  %v2036_v44 = vld [vmem:[%s3279_s24 + $0x30] sm:$0x7]  ;;  %v2069_v45 = vld [vmem:[%s4267_s1 + $0x578] sm:$0xff] }
  0x7b   : > { %2648 = vmatprep.subr.mxu0 %v3077_v2  ;;  %2683 = vmatprep.subr.mxu1 %v3077_v2 }
  0x7c   : > { %2649 = vmatpush3.msra.mxu0 %v1996_v46  ;;  %2684 = vmatpush3.msra.mxu1 %v2013_v47  ;;  %v2086_v46 = vld [vmem:[%s4267_s1 + $0x5f8] sm:$0xff]  ;;  %v2068_v47 = vld [vmem:[%s4267_s1 + $0x570] sm:$0xff] }
  0x7d   : > { %2650 = vmatprep.subr.mxu0 %v3077_v2  ;;  %2685 = vmatprep.subr.mxu1 %v3077_v2 }
  0x7e   : > { %2651 = vmatpush3.msra.mxu0 %v1995_v48  ;;  %2686 = vmatpush3.msra.mxu1 %v2012_v49  ;;  %v2085_v48 = vld [vmem:[%s4267_s1 + $0x5f0] sm:$0xff]  ;;  %v2067_v49 = vld [vmem:[%s4267_s1 + $0x568] sm:$0xff] }
  0x7f   : > { %2652 = vmatprep.subr.mxu0 %v3077_v2  ;;  %2687 = vmatprep.subr.mxu1 %v3077_v2 }
  0x80   : > { %2653 = vmatpush3.msra.mxu0 %v1994_v50  ;;  %2688 = vmatpush3.msra.mxu1 %v2011_v51  ;;  %v2084_v50 = vld [vmem:[%s4267_s1 + $0x5e8] sm:$0xff]  ;;  %v2066_v51 = vld [vmem:[%s4267_s1 + $0x560] sm:$0xff] }
  0x81   : > { %2654 = vmatprep.subr.mxu0 %v3077_v2  ;;  %2689 = vmatprep.subr.mxu1 %v3077_v2 }
  0x82   : > { %2655 = vmatpush3.msra.mxu0 %v1993_v52  ;;  %2690 = vmatpush3.msra.mxu1 %v2010_v53  ;;  %v2083_v52 = vld [vmem:[%s4267_s1 + $0x5e0] sm:$0xff]  ;;  %v2065_v53 = vld [vmem:[%s4267_s1 + $0x558] sm:$0xff] }
  0x83   : > { %2656 = vmatprep.subr.mxu0 %v3077_v2  ;;  %2691 = vmatprep.subr.mxu1 %v3077_v2 }
  0x84   : > { %2657 = vmatpush3.msra.mxu0 %v1992_v54  ;;  %2692 = vmatpush3.msra.mxu1 %v2009_v55  ;;  %v2082_v54 = vld [vmem:[%s4267_s1 + $0x5d8] sm:$0xff]  ;;  %v2064_v55 = vld [vmem:[%s4267_s1 + $0x550] sm:$0xff] }
  0x85   : > { %2658 = vmatprep.subr.mxu0 %v3077_v2  ;;  %2693 = vmatprep.subr.mxu1 %v3077_v2 }
  0x86   : > { %2659 = vmatpush3.msra.mxu0 %v1991_v56  ;;  %2694 = vmatpush3.msra.mxu1 %v2008_v57  ;;  %v2081_v56 = vld [vmem:[%s4267_s1 + $0x5d0] sm:$0xff]  ;;  %v2063_v57 = vld [vmem:[%s4267_s1 + $0x548] sm:$0xff] }
  0x87   : > { %2660 = vmatprep.subr.mxu0 %v3077_v2  ;;  %2695 = vmatprep.subr.mxu1 %v3077_v2 }
  0x88   : > { %2661 = vmatpush3.msra.mxu0 %v1990_v58  ;;  %2696 = vmatpush3.msra.mxu1 %v2007_v59  ;;  %v2080_v58 = vld [vmem:[%s4267_s1 + $0x5c8] sm:$0xff]  ;;  %v2062_v59 = vld [vmem:[%s4267_s1 + $0x540] sm:$0xff] }
  0x89   : > { %2662 = vmatprep.subr.mxu0 %v3077_v2  ;;  %2697 = vmatprep.subr.mxu1 %v3077_v2 }
  0x8a   : > { %2663 = vmatpush3.msra.mxu0 %v1989_v60  ;;  %2698 = vmatpush3.msra.mxu1 %v2006_v61  ;;  %v2079_v60 = vld [vmem:[%s4267_s1 + $0x5c0] sm:$0xff]  ;;  %v2061_v61 = vld [vmem:[%s4267_s1 + $0x538] sm:$0xff] }
  0x8b   : > { %2664 = vmatprep.subr.mxu0 %v3077_v2  ;;  %2699 = vmatprep.subr.mxu1 %v3077_v2 }
  0x8c   : > { %2665 = vmatpush3.msra.mxu0 %v1988_v62  ;;  %2700 = vmatpush3.msra.mxu1 %v2005_v63  ;;  %v2078_v62 = vld [vmem:[%s4267_s1 + $0x5b8] sm:$0xff]  ;;  %v2060_v63 = vld [vmem:[%s4267_s1 + $0x530] sm:$0xff] }
  0x8d   : > { %2666 = vmatprep.subr.mxu0 %v3077_v2  ;;  %2701 = vmatprep.subr.mxu1 %v3077_v2 }
  0x8e   : > { %2667 = vmatpush3.msra.mxu0 %v1987_v0  ;;  %2702 = vmatpush3.msra.mxu1 %v2004_v1  ;;  %v2077_v0 = vld [vmem:[%s4267_s1 + $0x5b0] sm:$0xff]  ;;  %v2059_v1 = vld [vmem:[%s4267_s1 + $0x528] sm:$0xff] }
  0x8f   : > { %2668 = vmatprep.subr.mxu0 %v3077_v2  ;;  %2703 = vmatprep.subr.mxu1 %v3077_v2 }
  0x90   : > { %2669 = vmatpush3.msra.mxu0 %v1986_v3  ;;  %2704 = vmatpush3.msra.mxu1 %v2003_v4  ;;  %v2076_v3 = vld [vmem:[%s4267_s1 + $0x5a8] sm:$0xff]  ;;  %v2058_v4 = vld [vmem:[%s4267_s1 + $0x520] sm:$0xff] }
  0x91   : > { %2670 = vmatprep.subr.mxu0 %v3077_v2  ;;  %2705 = vmatprep.subr.mxu1 %v3077_v2 }
  0x92   : > { %2671 = vmatpush3.msra.mxu0 %v1985_v5  ;;  %2706 = vmatpush3.msra.mxu1 %v2002_v6  ;;  %v2075_v5 = vld [vmem:[%s4267_s1 + $0x5a0] sm:$0xff]  ;;  %v2057_v6 = vld [vmem:[%s4267_s1 + $0x518] sm:$0xff] }
  0x93   : > { %2672 = vmatprep.subr.mxu0 %v3077_v2  ;;  %2707 = vmatprep.subr.mxu1 %v3077_v2 }
  0x94   : > { %2673 = vmatpush3.msra.mxu0 %v1984_v7  ;;  %2674 = vmatprep.mubr.msk.f32.mxu0 %vm3078_vm0, %v3077_v2  ;;  %v2074_v7 = vld [vmem:[%s4267_s1 + $0x598] sm:$0xff] }
  0x95   : > { %2708 = vmatpush3.msra.mxu1 %v2001_v8  ;;  %2675 = vmatmul.mubr.f32.vlgmr.msra.gmra.mxu0 %v1983_v9  ;;  %v2056_v8 = vld [vmem:[%s4267_s1 + $0x510] sm:$0xff] }
  0x96   : > { %2709 = vmatprep.mubr.msk.f32.mxu1 %vm3078_vm0, %v3077_v2  ;;  %2712 = vmatprep.subr.mxu0 %v3077_v2  ;;  %v2073_v9 = vld [vmem:[%s4267_s1 + $0x590] sm:$0xff] }
  0x97   : > { %2747 = vmatprep.subr.mxu1 %v3077_v2  ;;  %2710 = vmatmul.mubr.f32.vlgmr.msra.gmra.mxu1 %v2000_v10  ;;  %v2055_v10 = vld [vmem:[%s4267_s1 + $0x508] sm:$0xff] }
  0x98   : > { %2713 = vmatpush3.msra.mxu0 %v2034_v11  ;;  %2748 = vmatpush3.msra.mxu1 %v2052_v12  ;;  %v2072_v11 = vld [vmem:[%s4267_s1 + $0x588] sm:$0xff]  ;;  %v2054_v12 = vld [vmem:[%s4267_s1 + $0x500] sm:$0xff] }
  0x99   : > { %2714 = vmatprep.subr.mxu0 %v3077_v2  ;;  %2749 = vmatprep.subr.mxu1 %v3077_v2 }
  0x9a   : > { %2715 = vmatpush3.msra.mxu0 %v2033_v13  ;;  %2750 = vmatpush3.msra.mxu1 %v2051_v14  ;;  %v2071_v13 = vld [vmem:[%s4267_s1 + $0x580] sm:$0xff]  ;;  %v2053_v14 = vld [vmem:[%s3279_s24 + $0x9] sm:$0x7] }
  0x9b   : > { %2716 = vmatprep.subr.mxu0 %v3077_v2  ;;  %2751 = vmatprep.subr.mxu1 %v3077_v2 }
  0x9c   : > { %2717 = vmatpush3.msra.mxu0 %v2032_v15  ;;  %2752 = vmatpush3.msra.mxu1 %v2050_v16  ;;  %v2070_v15 = vld [vmem:[%s3279_s24 + $0x31] sm:$0x7]  ;;  %v2104_v16 = vld [vmem:[%s4267_s1 + $0x678] sm:$0xff] }
  0x9d   : > { %2718 = vmatprep.subr.mxu0 %v3077_v2  ;;  %2753 = vmatprep.subr.mxu1 %v3077_v2 }
  0x9e   : > { %2719 = vmatpush3.msra.mxu0 %v2031_v17  ;;  %2754 = vmatpush3.msra.mxu1 %v2049_v18  ;;  %v2122_v17 = vld [vmem:[%s4267_s1 + $0x6f8] sm:$0xff]  ;;  %v2103_v18 = vld [vmem:[%s4267_s1 + $0x670] sm:$0xff] }
  0x9f   : > { %2720 = vmatprep.subr.mxu0 %v3077_v2  ;;  %2755 = vmatprep.subr.mxu1 %v3077_v2 }
  0xa0   : > { %2721 = vmatpush3.msra.mxu0 %v2030_v19  ;;  %2756 = vmatpush3.msra.mxu1 %v2048_v20  ;;  %v2121_v19 = vld [vmem:[%s4267_s1 + $0x6f0] sm:$0xff]  ;;  %v2102_v20 = vld [vmem:[%s4267_s1 + $0x668] sm:$0xff] }
  0xa1   : > { %2722 = vmatprep.subr.mxu0 %v3077_v2  ;;  %2757 = vmatprep.subr.mxu1 %v3077_v2 }
  0xa2   : > { %2723 = vmatpush3.msra.mxu0 %v2029_v21  ;;  %2758 = vmatpush3.msra.mxu1 %v2047_v22  ;;  %v2120_v21 = vld [vmem:[%s4267_s1 + $0x6e8] sm:$0xff]  ;;  %v2101_v22 = vld [vmem:[%s4267_s1 + $0x660] sm:$0xff] }
  0xa3   : > { %2724 = vmatprep.subr.mxu0 %v3077_v2  ;;  %2759 = vmatprep.subr.mxu1 %v3077_v2 }
  0xa4   : > { %2725 = vmatpush3.msra.mxu0 %v2028_v23  ;;  %2760 = vmatpush3.msra.mxu1 %v2046_v24  ;;  %v2119_v23 = vld [vmem:[%s4267_s1 + $0x6e0] sm:$0xff]  ;;  %v2100_v24 = vld [vmem:[%s4267_s1 + $0x658] sm:$0xff] }
  0xa5   : > { %2726 = vmatprep.subr.mxu0 %v3077_v2  ;;  %2761 = vmatprep.subr.mxu1 %v3077_v2 }
  0xa6   : > { %2727 = vmatpush3.msra.mxu0 %v2027_v25  ;;  %2762 = vmatpush3.msra.mxu1 %v2045_v26  ;;  %v2118_v25 = vld [vmem:[%s4267_s1 + $0x6d8] sm:$0xff]  ;;  %v2099_v26 = vld [vmem:[%s4267_s1 + $0x650] sm:$0xff] }
  0xa7   : > { %2728 = vmatprep.subr.mxu0 %v3077_v2  ;;  %2763 = vmatprep.subr.mxu1 %v3077_v2 }
  0xa8   : > { %2729 = vmatpush3.msra.mxu0 %v2026_v27  ;;  %2764 = vmatpush3.msra.mxu1 %v2044_v28  ;;  %v2117_v27 = vld [vmem:[%s4267_s1 + $0x6d0] sm:$0xff]  ;;  %v2098_v28 = vld [vmem:[%s4267_s1 + $0x648] sm:$0xff] }
  0xa9   : > { %2730 = vmatprep.subr.mxu0 %v3077_v2  ;;  %2765 = vmatprep.subr.mxu1 %v3077_v2 }
  0xaa   : > { %2731 = vmatpush3.msra.mxu0 %v2025_v29  ;;  %2766 = vmatpush3.msra.mxu1 %v2043_v30  ;;  %v2116_v29 = vld [vmem:[%s4267_s1 + $0x6c8] sm:$0xff]  ;;  %v2097_v30 = vld [vmem:[%s4267_s1 + $0x640] sm:$0xff] }
  0xab   : > { %2732 = vmatprep.subr.mxu0 %v3077_v2  ;;  %2767 = vmatprep.subr.mxu1 %v3077_v2 }
  0xac   : > { %2733 = vmatpush3.msra.mxu0 %v2024_v31  ;;  %2768 = vmatpush3.msra.mxu1 %v2042_v32  ;;  %v2115_v31 = vld [vmem:[%s4267_s1 + $0x6c0] sm:$0xff]  ;;  %v2096_v32 = vld [vmem:[%s4267_s1 + $0x638] sm:$0xff] }
  0xad   : > { %2734 = vmatprep.subr.mxu0 %v3077_v2  ;;  %2769 = vmatprep.subr.mxu1 %v3077_v2 }
  0xae   : > { %2735 = vmatpush3.msra.mxu0 %v2023_v33  ;;  %2770 = vmatpush3.msra.mxu1 %v2041_v34  ;;  %v2114_v33 = vld [vmem:[%s4267_s1 + $0x6b8] sm:$0xff]  ;;  %v2095_v34 = vld [vmem:[%s4267_s1 + $0x630] sm:$0xff] }
  0xaf   : > { %2736 = vmatprep.subr.mxu0 %v3077_v2  ;;  %2771 = vmatprep.subr.mxu1 %v3077_v2 }
  0xb0   : > { %2737 = vmatpush3.msra.mxu0 %v2022_v35  ;;  %2772 = vmatpush3.msra.mxu1 %v2040_v36  ;;  %v2113_v35 = vld [vmem:[%s4267_s1 + $0x6b0] sm:$0xff]  ;;  %v2094_v36 = vld [vmem:[%s4267_s1 + $0x628] sm:$0xff] }
  0xb1   : > { %2738 = vmatprep.subr.mxu0 %v3077_v2  ;;  %2773 = vmatprep.subr.mxu1 %v3077_v2 }
  0xb2   : > { %2739 = vmatpush3.msra.mxu0 %v2021_v37  ;;  %2774 = vmatpush3.msra.mxu1 %v2039_v38  ;;  %v2112_v37 = vld [vmem:[%s4267_s1 + $0x6a8] sm:$0xff]  ;;  %v2093_v38 = vld [vmem:[%s4267_s1 + $0x620] sm:$0xff] }
  0xb3   : > { %2740 = vmatprep.subr.mxu0 %v3077_v2  ;;  %2775 = vmatprep.subr.mxu1 %v3077_v2 }
  0xb4   : > { %2741 = vmatpush3.msra.mxu0 %v2020_v39  ;;  %2776 = vmatpush3.msra.mxu1 %v2038_v40  ;;  %v2111_v39 = vld [vmem:[%s4267_s1 + $0x6a0] sm:$0xff] }
  0xb5   : > { %2742 = vmatprep.subr.mxu0 %v3077_v2  ;;  %2777 = vmatprep.subr.mxu1 %v3077_v2 }
  0xb6   : > { %2743 = vmatpush3.msra.mxu0 %v2019_v41  ;;  %2744 = vmatprep.mubr.msk.f32.mxu0 %vm3078_vm0, %v3077_v2  ;;  %v2092_v41 = vld [vmem:[%s4267_s1 + $0x618] sm:$0xff] }
  0xb7   : > { %2778 = vmatpush3.msra.mxu1 %v2037_v42  ;;  %2745 = vmatmul.mubr.f32.vlgmr.msra.gmra.mxu0 %v2018_v43  ;;  %v2110_v42 = vld [vmem:[%s4267_s1 + $0x698] sm:$0xff] }
  0xb8   : > { %2779 = vmatprep.mubr.msk.f32.mxu1 %vm3078_vm0, %v3077_v2  ;;  %2782 = vmatprep.subr.mxu0 %v3077_v2 }
  0xb9   : > { %2817 = vmatprep.subr.mxu1 %v3077_v2  ;;  %2780 = vmatmul.mubr.f32.vlgmr.msra.gmra.mxu1 %v2036_v44 }
  0xba   : > { %2783 = vmatpush3.msra.mxu0 %v2069_v45  ;;  %2818 = vmatpush3.msra.mxu1 %v2086_v46  ;;  %v2091_v46 = vld [vmem:[%s4267_s1 + $0x610] sm:$0xff] }
  0xbb   : > { %2784 = vmatprep.subr.mxu0 %v3077_v2  ;;  %2819 = vmatprep.subr.mxu1 %v3077_v2 }
  0xbc   : > { %2785 = vmatpush3.msra.mxu0 %v2068_v47  ;;  %2820 = vmatpush3.msra.mxu1 %v2085_v48  ;;  %v2109_v47 = vld [vmem:[%s4267_s1 + $0x690] sm:$0xff] }
  0xbd   : > { %2786 = vmatprep.subr.mxu0 %v3077_v2  ;;  %2821 = vmatprep.subr.mxu1 %v3077_v2 }
  0xbe   : > { %2787 = vmatpush3.msra.mxu0 %v2067_v49  ;;  %2822 = vmatpush3.msra.mxu1 %v2084_v50  ;;  %v2090_v49 = vld [vmem:[%s4267_s1 + $0x608] sm:$0xff] }
  0xbf   : > { %2788 = vmatprep.subr.mxu0 %v3077_v2  ;;  %2823 = vmatprep.subr.mxu1 %v3077_v2  ;;  %v2108_v50 = vld [vmem:[%s4267_s1 + $0x688] sm:$0xff] }
  0xc0   : > { %2789 = vmatpush3.msra.mxu0 %v2066_v51  ;;  %2824 = vmatpush3.msra.mxu1 %v2083_v52  ;;  %v2089_v51 = vld [vmem:[%s4267_s1 + $0x600] sm:$0xff] }
  0xc1   : > { %2790 = vmatprep.subr.mxu0 %v3077_v2  ;;  %2825 = vmatprep.subr.mxu1 %v3077_v2  ;;  %v2107_v52 = vld [vmem:[%s4267_s1 + $0x680] sm:$0xff] }
  0xc2   : > { %2791 = vmatpush3.msra.mxu0 %v2065_v53  ;;  %2826 = vmatpush3.msra.mxu1 %v2082_v54  ;;  %v2088_v53 = vld [vmem:[%s3279_s24 + $0x58] sm:$0x7]  ;;  %v2106_v54 = vld [vmem:[%s3279_s24 + $0x80] sm:$0x7] }
  0xc3   : > { %2792 = vmatprep.subr.mxu0 %v3077_v2  ;;  %2827 = vmatprep.subr.mxu1 %v3077_v2 }
  0xc4   : > { %2793 = vmatpush3.msra.mxu0 %v2064_v55  ;;  %2828 = vmatpush3.msra.mxu1 %v2081_v56  ;;  %v2139_v55 = vld [vmem:[%s4267_s1 + $0x778] sm:$0xff] }
  0xc5   : > { %2794 = vmatprep.subr.mxu0 %v3077_v2  ;;  %2829 = vmatprep.subr.mxu1 %v3077_v2  ;;  %v2156_v56 = vld [vmem:[%s4267_s1 + $0x7f8] sm:$0xff] }
  0xc6   : > { %2795 = vmatpush3.msra.mxu0 %v2063_v57  ;;  %2830 = vmatpush3.msra.mxu1 %v2080_v58  ;;  %v2138_v57 = vld [vmem:[%s4267_s1 + $0x770] sm:$0xff] }
  0xc7   : > { %2796 = vmatprep.subr.mxu0 %v3077_v2  ;;  %2831 = vmatprep.subr.mxu1 %v3077_v2  ;;  %v2155_v58 = vld [vmem:[%s4267_s1 + $0x7f0] sm:$0xff] }
  0xc8   : > { %2797 = vmatpush3.msra.mxu0 %v2062_v59  ;;  %2832 = vmatpush3.msra.mxu1 %v2079_v60  ;;  %v2137_v59 = vld [vmem:[%s4267_s1 + $0x768] sm:$0xff] }
  0xc9   : > { %2798 = vmatprep.subr.mxu0 %v3077_v2  ;;  %2833 = vmatprep.subr.mxu1 %v3077_v2  ;;  %v2154_v60 = vld [vmem:[%s4267_s1 + $0x7e8] sm:$0xff] }
  0xca   : > { %2799 = vmatpush3.msra.mxu0 %v2061_v61  ;;  %2834 = vmatpush3.msra.mxu1 %v2078_v62  ;;  %v2136_v61 = vld [vmem:[%s4267_s1 + $0x760] sm:$0xff] }
  0xcb   : > { %2800 = vmatprep.subr.mxu0 %v3077_v2  ;;  %2835 = vmatprep.subr.mxu1 %v3077_v2  ;;  %v2153_v62 = vld [vmem:[%s4267_s1 + $0x7e0] sm:$0xff] }
  0xcc   : > { %2801 = vmatpush3.msra.mxu0 %v2060_v63  ;;  %2836 = vmatpush3.msra.mxu1 %v2077_v0  ;;  %v2135_v63 = vld [vmem:[%s4267_s1 + $0x758] sm:$0xff] }
  0xcd   : > { %2802 = vmatprep.subr.mxu0 %v3077_v2  ;;  %2837 = vmatprep.subr.mxu1 %v3077_v2  ;;  %v2152_v0 = vld [vmem:[%s4267_s1 + $0x7d8] sm:$0xff] }
  0xce   : > { %2803 = vmatpush3.msra.mxu0 %v2059_v1  ;;  %2838 = vmatpush3.msra.mxu1 %v2076_v3  ;;  %v2134_v1 = vld [vmem:[%s4267_s1 + $0x750] sm:$0xff] }
  0xcf   : > { %2804 = vmatprep.subr.mxu0 %v3077_v2  ;;  %2839 = vmatprep.subr.mxu1 %v3077_v2  ;;  %v2151_v3 = vld [vmem:[%s4267_s1 + $0x7d0] sm:$0xff] }
  0xd0   : > { %2805 = vmatpush3.msra.mxu0 %v2058_v4  ;;  %2840 = vmatpush3.msra.mxu1 %v2075_v5  ;;  %v2133_v4 = vld [vmem:[%s4267_s1 + $0x748] sm:$0xff] }
  0xd1   : > { %2806 = vmatprep.subr.mxu0 %v3077_v2  ;;  %2841 = vmatprep.subr.mxu1 %v3077_v2  ;;  %v2150_v5 = vld [vmem:[%s4267_s1 + $0x7c8] sm:$0xff] }
  0xd2   : > { %2807 = vmatpush3.msra.mxu0 %v2057_v6  ;;  %2842 = vmatpush3.msra.mxu1 %v2074_v7  ;;  %v2132_v6 = vld [vmem:[%s4267_s1 + $0x740] sm:$0xff] }
  0xd3   : > { %2808 = vmatprep.subr.mxu0 %v3077_v2  ;;  %2843 = vmatprep.subr.mxu1 %v3077_v2  ;;  %v2149_v7 = vld [vmem:[%s4267_s1 + $0x7c0] sm:$0xff] }
  0xd4   : > { %2809 = vmatpush3.msra.mxu0 %v2056_v8  ;;  %2844 = vmatpush3.msra.mxu1 %v2073_v9  ;;  %v2131_v8 = vld [vmem:[%s4267_s1 + $0x738] sm:$0xff] }
  0xd5   : > { %2810 = vmatprep.subr.mxu0 %v3077_v2  ;;  %2845 = vmatprep.subr.mxu1 %v3077_v2  ;;  %v2148_v9 = vld [vmem:[%s4267_s1 + $0x7b8] sm:$0xff] }
  0xd6   : > { %2811 = vmatpush3.msra.mxu0 %v2055_v10  ;;  %2846 = vmatpush3.msra.mxu1 %v2072_v11  ;;  %v2130_v10 = vld [vmem:[%s4267_s1 + $0x730] sm:$0xff] }
  0xd7   : > { %2812 = vmatprep.subr.mxu0 %v3077_v2  ;;  %2847 = vmatprep.subr.mxu1 %v3077_v2  ;;  %v2147_v11 = vld [vmem:[%s4267_s1 + $0x7b0] sm:$0xff] }
  0xd8   : > { %2813 = vmatpush3.msra.mxu0 %v2054_v12  ;;  %2814 = vmatprep.mubr.msk.f32.mxu0 %vm3078_vm0, %v3077_v2  ;;  %v2129_v12 = vld [vmem:[%s4267_s1 + $0x728] sm:$0xff] }
  0xd9   : > { %2848 = vmatpush3.msra.mxu1 %v2071_v13  ;;  %2815 = vmatmul.mubr.f32.vlgmr.msra.gmra.mxu0 %v2053_v14  ;;  %v2146_v13 = vld [vmem:[%s4267_s1 + $0x7a8] sm:$0xff]  ;;  %v2128_v14 = vld [vmem:[%s4267_s1 + $0x720] sm:$0xff] }
  0xda   : > { %2849 = vmatprep.mubr.msk.f32.mxu1 %vm3078_vm0, %v3077_v2  ;;  %2852 = vmatprep.subr.mxu0 %v3077_v2 }
  0xdb   : > { %2887 = vmatprep.subr.mxu1 %v3077_v2  ;;  %2850 = vmatmul.mubr.f32.vlgmr.msra.gmra.mxu1 %v2070_v15  ;;  %v2145_v15 = vld [vmem:[%s4267_s1 + $0x7a0] sm:$0xff] }
  0xdc   : > { %2853 = vmatpush3.msra.mxu0 %v2104_v16  ;;  %2888 = vmatpush3.msra.mxu1 %v2122_v17 }
  0xdd   : > { %2854 = vmatprep.subr.mxu0 %v3077_v2  ;;  %2889 = vmatprep.subr.mxu1 %v3077_v2 }
  0xde   : > { %2855 = vmatpush3.msra.mxu0 %v2103_v18  ;;  %2890 = vmatpush3.msra.mxu1 %v2121_v19  ;;  %v2127_v18 = vld [vmem:[%s4267_s1 + $0x718] sm:$0xff] }
  0xdf   : > { %2856 = vmatprep.subr.mxu0 %v3077_v2  ;;  %2891 = vmatprep.subr.mxu1 %v3077_v2  ;;  %v2144_v19 = vld [vmem:[%s4267_s1 + $0x798] sm:$0xff] }
  0xe0   : > { %2857 = vmatpush3.msra.mxu0 %v2102_v20  ;;  %2892 = vmatpush3.msra.mxu1 %v2120_v21 }
  0xe1   : > { %2858 = vmatprep.subr.mxu0 %v3077_v2  ;;  %2893 = vmatprep.subr.mxu1 %v3077_v2 }
  0xe2   : > { %2859 = vmatpush3.msra.mxu0 %v2101_v22  ;;  %2894 = vmatpush3.msra.mxu1 %v2119_v23  ;;  %v2126_v23 = vld [vmem:[%s4267_s1 + $0x710] sm:$0xff] }
  0xe3   : > { %2860 = vmatprep.subr.mxu0 %v3077_v2  ;;  %2895 = vmatprep.subr.mxu1 %v3077_v2 }
  0xe4   : > { %2861 = vmatpush3.msra.mxu0 %v2100_v24  ;;  %2896 = vmatpush3.msra.mxu1 %v2118_v25  ;;  %v2143_v24 = vld [vmem:[%s4267_s1 + $0x790] sm:$0xff] }
  0xe5   : > { %2862 = vmatprep.subr.mxu0 %v3077_v2  ;;  %2897 = vmatprep.subr.mxu1 %v3077_v2 }
  0xe6   : > { %2863 = vmatpush3.msra.mxu0 %v2099_v26  ;;  %2898 = vmatpush3.msra.mxu1 %v2117_v27  ;;  %v2125_v26 = vld [vmem:[%s4267_s1 + $0x708] sm:$0xff] }
  0xe7   : > { %2864 = vmatprep.subr.mxu0 %v3077_v2  ;;  %2899 = vmatprep.subr.mxu1 %v3077_v2  ;;  %v2142_v27 = vld [vmem:[%s4267_s1 + $0x788] sm:$0xff] }
  0xe8   : > { %2865 = vmatpush3.msra.mxu0 %v2098_v28  ;;  %2900 = vmatpush3.msra.mxu1 %v2116_v29  ;;  %v2124_v28 = vld [vmem:[%s4267_s1 + $0x700] sm:$0xff] }
  0xe9   : > { %2866 = vmatprep.subr.mxu0 %v3077_v2  ;;  %2901 = vmatprep.subr.mxu1 %v3077_v2  ;;  %v2141_v29 = vld [vmem:[%s4267_s1 + $0x780] sm:$0xff] }
  0xea   : > { %2867 = vmatpush3.msra.mxu0 %v2097_v30  ;;  %2902 = vmatpush3.msra.mxu1 %v2115_v31  ;;  %v2123_v30 = vld [vmem:[%s3279_s24 + $0x59] sm:$0x7]  ;;  %v2140_v31 = vld [vmem:[%s3279_s24 + $0x81] sm:$0x7]  ;;  %s251_s24 = scalar_select %p250_p6, %s3059_s18, 2 }
  0xeb   : > { %2868 = vmatprep.subr.mxu0 %v3077_v2  ;;  %2903 = vmatprep.subr.mxu1 %v3077_v2 }
  0xec   : > { %2869 = vmatpush3.msra.mxu0 %v2096_v32  ;;  %2904 = vmatpush3.msra.mxu1 %v2114_v33  ;;  %s253_s6 = sadd.s32 %s2993_s30, %s251_s24 }
  0xed   : > { %2870 = vmatprep.subr.mxu0 %v3077_v2  ;;  %2905 = vmatprep.subr.mxu1 %v3077_v2  ;;  %s1894_s7 = sshll.u32 %s253_s6, 2 }
  0xee   : > { %2871 = vmatpush3.msra.mxu0 %v2095_v34  ;;  %2906 = vmatpush3.msra.mxu1 %v2113_v35  ;;  %s255_s10 = scalar_lea.vmem %s4269_s3, %s1894_s7 }
  0xef   : > { %2872 = vmatprep.subr.mxu0 %v3077_v2  ;;  %2907 = vmatprep.subr.mxu1 %v3077_v2  ;;  %v368_v40 = vpop.f32.mrf.mxu0 }
  0xf0   : > { %2873 = vmatpush3.msra.mxu0 %v2094_v36  ;;  %2908 = vmatpush3.msra.mxu1 %v2112_v37 }
  0xf1   : > { %2874 = vmatprep.subr.mxu0 %v3077_v2  ;;  %2909 = vmatprep.subr.mxu1 %v3077_v2  ;;  %v438_v43 = vpop.f32.mrf.mxu1  ;;  %v2466_v44 = vpop.f32.mrf.mxu0 }
  0xf2   : > { %2875 = vmatpush3.msra.mxu0 %v2093_v38  ;;  %2910 = vmatpush3.msra.mxu1 %v2111_v39  ;;  %v4069_v45 = vadd.f32 %v438_v43, %v368_v40 }
  0xf3   : > { %2876 = vmatprep.subr.mxu0 %v3077_v2  ;;  %2911 = vmatprep.subr.mxu1 %v3077_v2  ;;  %v2501_v48 = vpop.f32.mrf.mxu1 }
  0xf4   : > { %2877 = vmatpush3.msra.mxu0 %v2092_v41  ;;  %2912 = vmatpush3.msra.mxu1 %v2110_v42 }
  0xf5   : > { %2878 = vmatprep.subr.mxu0 %v3077_v2  ;;  %2913 = vmatprep.subr.mxu1 %v3077_v2 }
  0xf6   : > { %2879 = vmatpush3.msra.mxu0 %v2091_v46  ;;  %2914 = vmatpush3.msra.mxu1 %v2109_v47 }
  0xf7   : > { %2880 = vmatprep.subr.mxu0 %v3077_v2  ;;  %2915 = vmatprep.subr.mxu1 %v3077_v2 }
  0xf8   : > { %2881 = vmatpush3.msra.mxu0 %v2090_v49  ;;  %2916 = vmatpush3.msra.mxu1 %v2108_v50 }
  0xf9   : > { %2882 = vmatprep.subr.mxu0 %v3077_v2  ;;  %2917 = vmatprep.subr.mxu1 %v3077_v2 }
  0xfa   : > { %2883 = vmatpush3.msra.mxu0 %v2089_v51  ;;  %2884 = vmatprep.mubr.msk.f32.mxu0 %vm3078_vm0, %v3077_v2 }
  0xfb   : > { %2918 = vmatpush3.msra.mxu1 %v2107_v52  ;;  %2885 = vmatmul.mubr.f32.vlgmr.msra.gmra.mxu0 %v2088_v53 }
  0xfc   : > { %2919 = vmatprep.mubr.msk.f32.mxu1 %vm3078_vm0, %v3077_v2  ;;  %2922 = vmatprep.subr.mxu0 %v3077_v2 }
  0xfd   : > { %2957 = vmatprep.subr.mxu1 %v3077_v2  ;;  %2920 = vmatmul.mubr.f32.vlgmr.msra.gmra.mxu1 %v2106_v54 }
  0xfe   : > { %2923 = vmatpush3.msra.mxu0 %v2139_v55  ;;  %2958 = vmatpush3.msra.mxu1 %v2156_v56 }
  0xff   : > { %2924 = vmatprep.subr.mxu0 %v3077_v2  ;;  %2959 = vmatprep.subr.mxu1 %v3077_v2 }
 0x100   : > { %2925 = vmatpush3.msra.mxu0 %v2138_v57  ;;  %2960 = vmatpush3.msra.mxu1 %v2155_v58 }
 0x101   : > { %2926 = vmatprep.subr.mxu0 %v3077_v2  ;;  %2961 = vmatprep.subr.mxu1 %v3077_v2 }
 0x102   : > { %2927 = vmatpush3.msra.mxu0 %v2137_v59  ;;  %2962 = vmatpush3.msra.mxu1 %v2154_v60 }
 0x103   : > { %2928 = vmatprep.subr.mxu0 %v3077_v2  ;;  %2963 = vmatprep.subr.mxu1 %v3077_v2 }
 0x104   : > { %2929 = vmatpush3.msra.mxu0 %v2136_v61  ;;  %2964 = vmatpush3.msra.mxu1 %v2153_v62 }
 0x105   : > { %2930 = vmatprep.subr.mxu0 %v3077_v2  ;;  %2965 = vmatprep.subr.mxu1 %v3077_v2 }
 0x106   : > { %2931 = vmatpush3.msra.mxu0 %v2135_v63  ;;  %2966 = vmatpush3.msra.mxu1 %v2152_v0 }
 0x107   : > { %2932 = vmatprep.subr.mxu0 %v3077_v2  ;;  %2967 = vmatprep.subr.mxu1 %v3077_v2 }
 0x108   : > { %2933 = vmatpush3.msra.mxu0 %v2134_v1  ;;  %2968 = vmatpush3.msra.mxu1 %v2151_v3 }
 0x109   : > { %2934 = vmatprep.subr.mxu0 %v3077_v2  ;;  %2969 = vmatprep.subr.mxu1 %v3077_v2 }
 0x10a   : > { %2935 = vmatpush3.msra.mxu0 %v2133_v4  ;;  %2970 = vmatpush3.msra.mxu1 %v2150_v5 }
 0x10b   : > { %2936 = vmatprep.subr.mxu0 %v3077_v2  ;;  %2971 = vmatprep.subr.mxu1 %v3077_v2 }
 0x10c   : > { %2937 = vmatpush3.msra.mxu0 %v2132_v6  ;;  %2972 = vmatpush3.msra.mxu1 %v2149_v7 }
 0x10d   : > { %2938 = vmatprep.subr.mxu0 %v3077_v2  ;;  %2973 = vmatprep.subr.mxu1 %v3077_v2 }
 0x10e   : > { %2939 = vmatpush3.msra.mxu0 %v2131_v8  ;;  %2974 = vmatpush3.msra.mxu1 %v2148_v9 }
 0x10f   : > { %2940 = vmatprep.subr.mxu0 %v3077_v2  ;;  %2975 = vmatprep.subr.mxu1 %v3077_v2 }
 0x110   : > { %2941 = vmatpush3.msra.mxu0 %v2130_v10  ;;  %2976 = vmatpush3.msra.mxu1 %v2147_v11 }
 0x111   : > { %2942 = vmatprep.subr.mxu0 %v3077_v2  ;;  %2977 = vmatprep.subr.mxu1 %v3077_v2  ;;  %v526_v16 = vpop.f32.mrf.mxu0 }
 0x112   : > { %2943 = vmatpush3.msra.mxu0 %v2129_v12  ;;  %2978 = vmatpush3.msra.mxu1 %v2146_v13  ;;  %v530_v17 = vadd.f32 %v526_v16, %v4069_v45 }
 0x113   : > { %2944 = vmatprep.subr.mxu0 %v3077_v2  ;;  %2979 = vmatprep.subr.mxu1 %v3077_v2  ;;  %v615_v20 = vpop.f32.mrf.mxu1  ;;  %v2536_v21 = vpop.f32.mrf.mxu0 }
 0x114   : > { %2945 = vmatpush3.msra.mxu0 %v2128_v14  ;;  %2980 = vmatpush3.msra.mxu1 %v2145_v15  ;;  %v619_v22 = vadd.f32 %v615_v20, %v530_v17 }
 0x115   : > { %2946 = vmatprep.subr.mxu0 %v3077_v2  ;;  %2981 = vmatprep.subr.mxu1 %v3077_v2  ;;  %v2571_v25 = vpop.f32.mrf.mxu1 }
 0x116   : > { %2947 = vmatpush3.msra.mxu0 %v2127_v18  ;;  %2982 = vmatpush3.msra.mxu1 %v2144_v19 }
 0x117   : > { %2948 = vmatprep.subr.mxu0 %v3077_v2  ;;  %2983 = vmatprep.subr.mxu1 %v3077_v2 }
 0x118   : > { %2949 = vmatpush3.msra.mxu0 %v2126_v23  ;;  %2984 = vmatpush3.msra.mxu1 %v2143_v24 }
 0x119   : > { %2950 = vmatprep.subr.mxu0 %v3077_v2  ;;  %2985 = vmatprep.subr.mxu1 %v3077_v2 }
 0x11a   : > { %2951 = vmatpush3.msra.mxu0 %v2125_v26  ;;  %2986 = vmatpush3.msra.mxu1 %v2142_v27 }
 0x11b   : > { %2952 = vmatprep.subr.mxu0 %v3077_v2  ;;  %2987 = vmatprep.subr.mxu1 %v3077_v2 }
 0x11c   : > { %2953 = vmatpush3.msra.mxu0 %v2124_v28  ;;  %2954 = vmatprep.mubr.msk.f32.mxu0 %vm3078_vm0, %v3077_v2 }
 0x11d   : > { %2988 = vmatpush3.msra.mxu1 %v2141_v29  ;;  %2989 = vmatprep.mubr.msk.f32.mxu1 %vm3078_vm0, %v3077_v2 }
 0x11e   : > { %2955 = vmatmul.mubr.f32.vlgmr.msra.gmra.mxu0 %v2123_v30  ;;  %2990 = vmatmul.mubr.f32.vlgmr.msra.gmra.mxu1 %v2140_v31 }
 0x133   : > { %v707_v32 = vpop.f32.mrf.mxu0 }
 0x134   : > { %v711_v33 = vadd.f32 %v707_v32, %v619_v22 }
 0x135   : > { %v799_v34 = vpop.f32.mrf.mxu1  ;;  %v2606_v35 = vpop.f32.mrf.mxu0 }
 0x136   : > { %v803_v36 = vadd.f32 %v799_v34, %v711_v33 }
 0x137   : > { %v2641_v37 = vpop.f32.mrf.mxu1 }
 0x155   : > { %v888_v38 = vpop.f32.mrf.mxu0 }
 0x156   : > { %v892_v39 = vadd.f32 %v888_v38, %v803_v36 }
 0x157   : > { %v977_v40 = vpop.f32.mrf.mxu1  ;;  %v2676_v41 = vpop.f32.mrf.mxu0 }
 0x158   : > { %v981_v42 = vadd.f32 %v977_v40, %v892_v39 }
 0x159   : > { %v2711_v43 = vpop.f32.mrf.mxu1 }
 0x177   : > { %v1069_v44 = vpop.f32.mrf.mxu0 }
 0x178   : > { %v1073_v45 = vadd.f32 %v1069_v44, %v981_v42 }
 0x179   : > { %v1161_v2 = vpop.f32.mrf.mxu1  ;;  %v2746_v46 = vpop.f32.mrf.mxu0 }
 0x17a   : > { %v1165_v47 = vadd.f32 %v1161_v2, %v1073_v45 }
 0x17b   : > { %v2781_v48 = vpop.f32.mrf.mxu1 }
 0x199   : > { %v1250_v49 = vpop.f32.mrf.mxu0 }
 0x19a   : > { %v1254_v57 = vadd.f32 %v1250_v49, %v1165_v47 }
 0x19b   : > { %v1339_v50 = vpop.f32.mrf.mxu1  ;;  %v2816_v51 = vpop.f32.mrf.mxu0 }
 0x19c   : > { %v1343_v58 = vadd.f32 %v1339_v50, %v1254_v57 }
 0x19d   : > { %v2851_v52 = vpop.f32.mrf.mxu1 }
 0x1bb   : > { %v1431_v53 = vpop.f32.mrf.mxu0 }
 0x1bc   : > { %v1435_v59 = vadd.f32 %v1431_v53, %v1343_v58 }
 0x1bd   : > { %v1523_v54 = vpop.f32.mrf.mxu1  ;;  %v2886_v55 = vpop.f32.mrf.mxu0 }
 0x1be   : > { %v1527_v60 = vadd.f32 %v1523_v54, %v1435_v59 }
 0x1bf   : > { %v2921_v56 = vpop.f32.mrf.mxu1 }
 0x1de   : > { %v1612_v61 = vpop.f32.mrf.mxu0  ;;  %v1701_v62 = vpop.f32.mrf.mxu1 }
 0x1df   : > { %v1616_v63 = vadd.f32 %v1612_v61, %v1527_v60  ;;  %1710 = sbr.rel (%p2157_p7) target bundleno = 486 (0x1e6), region = 36 }
 0x1e0   : > { %v2956_v0 = vpop.f32.mrf.mxu0  ;;  %v2991_v1 = vpop.f32.mrf.mxu1 }
 0x1e1   : > { %v1705_v3 = vadd.f32 %v1701_v62, %v1616_v63 }
 0x1e3   : > { %1706 = vst [vmem:[%s255_s10] sm:$0x7] %v1705_v3 }
 0x1e4   : > { %v3079_v4 = vmov 0.0  }
 0x1e5   : > { %1711 = vst [vmem:[%s3170_s13] sm:$0x1] %v3079_v4  ;;  %1712 = vst [vmem:[%s3184_s26] sm:$0x1] %v3079_v4 }
 0x1e6 PF: > { %vm1714_vm1 = vcmask 1042432   ;;  %v1725_v5 = vmul.f32 %v1705_v3, %v1705_v3 }
 0x1e7   : > { %v1715_v6 = vsel %vm1714_vm1, %v1705_v3, 0.0 }
 0x1e8   : > { %v1716_v7 = vrot.slane %v1715_v6, 4  ;;  %v1726_v8 = vsel %vm1714_vm1, %v1725_v5, 0.0 }
 0x1e9   : > { %v1727_v9 = vrot.slane %v1726_v8, 4 }
 0x1ea   : > { %v1717_v10 = vadd.f32 %v1716_v7, %v1715_v6 }
 0x1eb   : > { %v1728_v11 = vadd.f32 %v1727_v9, %v1726_v8 }
 0x1ec   : > { %v1718_v12 = vrot.slane %v1717_v10, 2  ;;  %v1713_v17 = vld [vmem:[%s3170_s13] sm:$0x1] }
 0x1ed   : > { %v1729_v13 = vrot.slane %v1728_v11, 2  ;;  %v1724_v20 = vld [vmem:[%s3184_s26] sm:$0x1] }
 0x1ee   : > { %v1719_v14 = vadd.f32 %v1718_v12, %v1717_v10 }
 0x1ef   : > { %v1730_v15 = vadd.f32 %v1729_v13, %v1728_v11 }
 0x1f0   : > { %v1720_v16 = vrot.slane %v1719_v14, 1 }
 0x1f1   : > { %v1731_v18 = vrot.slane %v1730_v15, 1 }
 0x1f2   : > { %v1721_v19 = vadd.f32 %v1720_v16, %v1719_v14 }
 0x1f3   : > { %v1732_v21 = vadd.f32 %v1731_v18, %v1730_v15 }
 0x1f4   : > { %v1722_v22 = vadd.f32 %v1721_v19, %v1713_v17 }
 0x1f5   : > { %v1733_v23 = vadd.f32 %v1732_v21, %v1724_v20 }
 0x1f6   : > { %1723 = vst [vmem:[%s3170_s13] sm:$0x1] %v1722_v22 }
 0x1f7   : > { %1734 = vst [vmem:[%s3184_s26] sm:$0x1] %v1733_v23 }
 0x1f8 PF: > { %s16_s22 = sadd.s32 1, %s3075_s22   ;;  %s4272_s18 = smov %s3067_s20 }
 0x1f9   : > { %p13_p8 = scmp.ge.s32.totalorder %s16_s22, 8   ;;  %s4273_s19 = smov %s3071_s21 }
 0x1fa   : > { %s4274_s20 = smov %s4277_s2  ;;  %s4275_s21 = smov %s4281_s23 }
 0x1fb   :  { %15 = sbr.rel (!%p13_p8) target bundleno = 3 (0x3), region = 113 }

// kernel: cycle_d_sn_forward.14
= control target key start
LH: loop header
LB: loop body
LE: loop exit
PB: predicated region body
PF: predicated region fallthrough
CT: control target
= control target key end

     0   :  { %s496_s12 = smov 0   ;;  %s498_s13 = smov 0   ;;  %s553_s0 = inlined_call_operand.vmem [shape: f32[2,4,4,128], index: 0, kind: input, shape index: {}]   ;;  %s554_s1 = inlined_call_operand.vmem [shape: f32[2,1,128], index: 1, kind: input, shape index: {}]   ;;  %s555_s2 = inlined_call_operand.vmem [shape: f32[2,1,128], index: 2, kind: input, shape index: {}]   ;;  %s556_s3 = inlined_call_operand.vmem [shape: f32[2,4,4,128], index: 3, kind: output, shape index: {}]  }
   0x1   :  { %s500_s14 = smov 0   ;;  %s502_s15 = smov 0  }
   0x2   :  { %s504_s16 = smov 0  }
   0x3 LB: > { %s22_s17 = sadd.s32 1, %s466_s14  ;;  %s25_s18 = sadd.s32 1, %s470_s15  ;;  %s474_s16 = sphi %s504_s16, %s13_s16   ;;  %s470_s15 = sphi %s502_s15, %s560_s15   ;;  %s466_s14 = sphi %s500_s14, %s559_s14   ;;  %s462_s13 = sphi %s498_s13, %s558_s13   ;;  %s458_s12 = sphi %s496_s12, %s557_s12  }
   0x4   : > { %p23_p0 = scmp.ge.s32.totalorder %s22_s17, 2  ;;  %p385_p1 = scmp.ge.s32.totalorder %s474_s16, 1 }
   0x5   : > { %p174_p2 = scmp.lt.s32.totalorder %s474_s16, 5 }
   0x6   : > { %s562_s17 = smov (%p23_p0, %s22_s17), 0  ;;  %s564_s18 = smov (!%p23_p0, %s25_s18), %s470_s15 }
   0x7   : > { %p175_p3 = pnand %p385_p1, %p174_p2  ;;  %p27_p4 = scmp.ge.s32.totalorder %s564_s18, 2 }
   0x8   : > { %p213_p5 = scmp.lt.s32.totalorder (!%p175_p3), %s462_s13, 1  ;;  %s386_s22 = sshll.u32 (!%p175_p3), %s458_s12, 1 }
   0x9   : > { %s566_s18 = smov (%p27_p4, %s564_s18), 0  ;;  %178 = sbr.rel (%p175_p3) target bundleno = 49 (0x31), region = 32 }
   0xa   : > { %p215_p6 = scmp.lt.s32.totalorder (!%p175_p3), %s386_s22, 3 }
   0xe   : > { %s568_s13 = smov (!%p213_p5, %s462_s13), 1  ;;  %s570_s22 = smov (!%p215_p6, %s386_s22), 3  ;;  %v248_v7 = vlaneseq }
   0xf   : > { %s224_s21 = scalar_lea.vmem %s554_s1, %s568_s13  ;;  %s227_s25 = scalar_lea.vmem %s555_s2, %s568_s13 }
  0x10   : > { %v240_v0 = vld [vmem:[%s224_s21] sm:$0x1]  ;;  %s387_s26 = sshll.u32 %s568_s13, 2  ;;  %v249_v9 = vshrl.u32 %v248_v7, 7 }
  0x11   : > { %v241_v1 = vmul.f32 0.0625, %v240_v0  ;;  %v242_v2 = vld [vmem:[%s227_s25] sm:$0x1]  ;;  %s218_s27 = sadd.s32 %s387_s26, %s570_s22 }
  0x12   : > { %v243_v3 = vmul.f32 0.0625, %v242_v2  ;;  %s388_s28 = sshll.u32 %s218_s27, 2  ;;  %v250_v10 = vsub.s32 0, %v249_v9 }
  0x13   : > { %v244_v4 = vmul.f32 %v241_v1, %v241_v1  ;;  %s220_s4 = scalar_lea.vmem %s553_s0, %s388_s28  ;;  %s236_s7 = scalar_lea.vmem %s556_s3, %s388_s28 }
  0x14   : > { %v251_v11 = vrot.slane %v241_v1, %v250_v10  ;;  %v238_v12 = vld [vmem:[%s220_s4] sm:$0xf]  ;;  %v239_v13 = vld [vmem:[%s220_s4 + $0x4] sm:$0xf] }
  0x15   : > { %v245_v5 = vsub.f32 %v243_v3, %v244_v4 }
  0x16   : > { %v253_v14 = vsub.f32 %v238_v12, %v251_v11  ;;  %v254_v15 = vsub.f32 %v239_v13, %v251_v11 }
  0x17   : > { %v246_v6 = vmax.f32 %v245_v5, 0.0 }
  0x19   : > { %v255_v8 = vadd.f32 1e-05, %v246_v6 }
  0x1b   : > { %434 = vrsqrt.f32 %v255_v8 }
  0x28   : > { %v435_v16 = vpop.eup %434 }
  0x29   : > { %v261_v17 = vrot.slane %v435_v16, %v250_v10 }
  0x2b   : > { %v263_v18 = vmul.f32 %v261_v17, %v253_v14  ;;  %v264_v19 = vmul.f32 %v261_v17, %v254_v15 }
  0x2d   : > { %vm265_vm0 = vcmp.ge.f32.partialorder %v263_v18, 0.0  ;;  %v267_v20 = vmul.f32 0.2, %v263_v18  ;;  %vm266_vm1 = vcmp.ge.f32.partialorder %v264_v19, 0.0  ;;  %v268_v21 = vmul.f32 0.2, %v264_v19 }
  0x2f   : > { %v269_v22 = vsel %vm265_vm0, %v263_v18, %v267_v20  ;;  %v270_v23 = vsel %vm266_vm1, %v264_v19, %v268_v21 }
  0x30   : > { %271 = vst [vmem:[%s236_s7] sm:$0xf] %v269_v22  ;;  %272 = vst [vmem:[%s236_s7 + $0x4] sm:$0xf] %v270_v23 }
  0x31 PF: > { %s13_s16 = sadd.s32 1, %s474_s16   ;;  %s557_s12 = smov %s466_s14 }
  0x32   : > { %p10_p7 = scmp.ge.s32.totalorder %s13_s16, 6   ;;  %s558_s13 = smov %s470_s15 }
  0x33   : > { %s559_s14 = smov %s562_s17  ;;  %s560_s15 = smov %s566_s18 }
  0x34   :  { %12 = sbr.rel (!%p10_p7) target bundleno = 3 (0x3), region = 68 }

// kernel: cycle_d_sn_forward.13
= control target key start
LH: loop header
LB: loop body
LE: loop exit
PB: predicated region body
PF: predicated region fallthrough
CT: control target
= control target key end

     0   :  { %s3209_s18 = smov 0   ;;  %s3211_s19 = smov 0   ;;  %s4364_s0 = inlined_call_operand.vmem [shape: f32[2,7,7,128], index: 0, kind: input, shape index: {}]   ;;  %s4365_s1 = inlined_call_operand.vmem [shape: f32[16,128,128], index: 1, kind: input, shape index: {}]   ;;  %s4366_s2 = inlined_call_operand.vmem [shape: f32[1,128], index: 2, kind: input, shape index: {}]   ;;  %s4367_s3 = inlined_call_operand.vmem [shape: f32[2,4,4,128], index: 3, kind: output, shape index: {0}]   ;;  %s4368_s4 = inlined_call_operand.vmem [shape: f32[2,1,128], index: 4, kind: output, shape index: {1}]   ;;  %s4369_s5 = inlined_call_operand.vmem [shape: f32[2,1,128], index: 5, kind: output, shape index: {2}]  }
   0x1   :  { %s3213_s20 = smov 0   ;;  %s3215_s21 = smov 0  }
   0x2   :  { %s3217_s22 = smov 0  }
   0x3 LB: > { %s25_s2 = sadd.s32 1, %s3166_s20  ;;  %s28_s23 = sadd.s32 1, %s3170_s21  ;;  %s3174_s22 = sphi %s3217_s22, %s16_s22   ;;  %s3170_s21 = sphi %s3215_s21, %s4373_s21   ;;  %s3166_s20 = sphi %s3213_s20, %s4372_s20   ;;  %s3162_s19 = sphi %s3211_s19, %s4371_s19   ;;  %s3158_s18 = sphi %s3209_s18, %s4370_s18  }
   0x4   : > { %p26_p0 = scmp.ge.s32.totalorder %s25_s2, 2  ;;  %p1960_p1 = scmp.ge.s32.totalorder %s3174_s22, 1 }
   0x5   : > { %p206_p2 = scmp.lt.s32.totalorder %s3174_s22, 5 }
   0x6   : > { %s4375_s2 = smov (%p26_p0, %s25_s2), 0  ;;  %s4377_s23 = smov (!%p26_p0, %s28_s23), %s3170_s21 }
   0x7   : > { %p207_p3 = pnand %p1960_p1, %p206_p2  ;;  %p30_p4 = scmp.ge.s32.totalorder %s4377_s23, 2 }
   0x8   : > { %p244_p5 = scmp.lt.s32.totalorder (!%p207_p3), %s3162_s19, 1  ;;  %s2240_s6 = sshll.u32 (!%p207_p3), %s3158_s18, 4 }
   0x9   : > { %s4379_s23 = smov (%p30_p4, %s4377_s23), 0  ;;  %210 = sbr.rel (%p207_p3) target bundleno = 505 (0x1f9), region = 32 }
   0xa   : > { %p2237_p7 = scmp.ne.s32.totalorder (!%p207_p3), %s3158_s18, 0 }
   0xe   : > { %v1982_v0 = vld [vmem:[%s4365_s1 + $0xf8] sm:$0xff]  ;;  %v3176_v2 = vmov 0.0   ;;  %v1981_v3 = vld [vmem:[%s4365_s1 + $0xf0] sm:$0xff]  ;;  %s4381_s19 = smov (!%p244_p5, %s3162_s19), 1  ;;  %v1980_v5 = vld [vmem:[%s4365_s1 + $0xe8] sm:$0xff]  ;;  %vm3177_vm0 = vmmov 0  }
   0xf   : > { %v285_v1 = vld [vmem:[%s4365_s1 + $0x78] sm:$0xff]  ;;  %2516 = vmatprep.subr.mxu0 %v3176_v2  ;;  %2551 = vmatprep.subr.mxu1 %v3176_v2  ;;  %v284_v4 = vld [vmem:[%s4365_s1 + $0x70] sm:$0xff]  ;;  %v283_v6 = vld [vmem:[%s4365_s1 + $0x68] sm:$0xff]  ;;  %s3076_s11 = smul.u32 56, %s4381_s19  ;;  %s3270_s14 = scalar_lea.vmem %s4368_s4, %s4381_s19 }
  0x10   : > { %2517 = vmatpush3.msra.mxu0 %v1982_v0  ;;  %2552 = vmatpush3.msra.mxu1 %v285_v1  ;;  %v1979_v7 = vld [vmem:[%s4365_s1 + $0xe0] sm:$0xff]  ;;  %s3284_s27 = scalar_lea.vmem %s4369_s5, %s4381_s19  ;;  %v1978_v9 = vld [vmem:[%s4365_s1 + $0xd8] sm:$0xff]  ;;  %v1977_v11 = vld [vmem:[%s4365_s1 + $0xd0] sm:$0xff]  ;;  %s1963_s7 = sshll.u32 %s4381_s19, 2 }
  0x11   : > { %2518 = vmatprep.subr.mxu0 %v3176_v2  ;;  %2553 = vmatprep.subr.mxu1 %v3176_v2  ;;  %v282_v8 = vld [vmem:[%s4365_s1 + $0x60] sm:$0xff]  ;;  %s248_s30 = scalar_lea.vmem %s4364_s0, %s3076_s11  ;;  %v281_v10 = vld [vmem:[%s4365_s1 + $0x58] sm:$0xff]  ;;  %v280_v12 = vld [vmem:[%s4365_s1 + $0x50] sm:$0xff] }
  0x12   : > { %2519 = vmatpush3.msra.mxu0 %v1981_v3  ;;  %2554 = vmatpush3.msra.mxu1 %v284_v4  ;;  %s3306_s16 = scalar_lea.vmem %s248_s30, %s2240_s6  ;;  %v1976_v13 = vld [vmem:[%s4365_s1 + $0xc8] sm:$0xff]  ;;  %v1975_v15 = vld [vmem:[%s4365_s1 + $0xc0] sm:$0xff]  ;;  %v1974_v17 = vld [vmem:[%s4365_s1 + $0xb8] sm:$0xff] }
  0x13   : > { %2520 = vmatprep.subr.mxu0 %v3176_v2  ;;  %2555 = vmatprep.subr.mxu1 %v3176_v2  ;;  %v279_v14 = vld [vmem:[%s4365_s1 + $0x48] sm:$0xff]  ;;  %v278_v16 = vld [vmem:[%s4365_s1 + $0x40] sm:$0xff]  ;;  %v277_v18 = vld [vmem:[%s4365_s1 + $0x38] sm:$0xff] }
  0x14   : > { %2521 = vmatpush3.msra.mxu0 %v1980_v5  ;;  %2556 = vmatpush3.msra.mxu1 %v283_v6  ;;  %v1973_v19 = vld [vmem:[%s4365_s1 + $0xb0] sm:$0xff]  ;;  %v1972_v21 = vld [vmem:[%s4365_s1 + $0xa8] sm:$0xff]  ;;  %v1971_v23 = vld [vmem:[%s4365_s1 + $0xa0] sm:$0xff] }
  0x15   : > { %2522 = vmatprep.subr.mxu0 %v3176_v2  ;;  %2557 = vmatprep.subr.mxu1 %v3176_v2  ;;  %v276_v20 = vld [vmem:[%s4365_s1 + $0x30] sm:$0xff]  ;;  %v275_v22 = vld [vmem:[%s4365_s1 + $0x28] sm:$0xff]  ;;  %v274_v24 = vld [vmem:[%s4365_s1 + $0x20] sm:$0xff] }
  0x16   : > { %2523 = vmatpush3.msra.mxu0 %v1979_v7  ;;  %2558 = vmatpush3.msra.mxu1 %v282_v8  ;;  %v1970_v25 = vld [vmem:[%s4365_s1 + $0x98] sm:$0xff]  ;;  %v1969_v27 = vld [vmem:[%s4365_s1 + $0x90] sm:$0xff]  ;;  %v1968_v29 = vld [vmem:[%s4365_s1 + $0x88] sm:$0xff] }
  0x17   : > { %2524 = vmatprep.subr.mxu0 %v3176_v2  ;;  %2559 = vmatprep.subr.mxu1 %v3176_v2  ;;  %v273_v26 = vld [vmem:[%s4365_s1 + $0x18] sm:$0xff]  ;;  %v272_v28 = vld [vmem:[%s4365_s1 + $0x10] sm:$0xff]  ;;  %v271_v30 = vld [vmem:[%s4365_s1 + $0x8] sm:$0xff] }
  0x18   : > { %2525 = vmatpush3.msra.mxu0 %v1978_v9  ;;  %2560 = vmatpush3.msra.mxu1 %v281_v10  ;;  %v1967_v31 = vld [vmem:[%s4365_s1 + $0x80] sm:$0xff]  ;;  %v1998_v35 = vld [vmem:[%s4365_s1 + $0x178] sm:$0xff]  ;;  %v1997_v37 = vld [vmem:[%s4365_s1 + $0x170] sm:$0xff] }
  0x19   : > { %2526 = vmatprep.subr.mxu0 %v3176_v2  ;;  %2561 = vmatprep.subr.mxu1 %v3176_v2  ;;  %v3120_v32 = vld [vmem:[%s3306_s16 + $0x1] ss:$8 sps:$4 sm:$0xff]   ;;  %v2014_v36 = vld [vmem:[%s4365_s1 + $0x1f8] sm:$0xff]  ;;  %v2013_v38 = vld [vmem:[%s4365_s1 + $0x1f0] sm:$0xff] }
  0x1a   : > { %2527 = vmatpush3.msra.mxu0 %v1977_v11  ;;  %2562 = vmatpush3.msra.mxu1 %v280_v12  ;;  %v270_v33 = vld [vmem:[%s4365_s1] sm:$0xff]  ;;  %v1996_v39 = vld [vmem:[%s4365_s1 + $0x168] sm:$0xff]  ;;  %v1994_v43 = vld [vmem:[%s4365_s1 + $0x158] sm:$0xff] }
  0x1b   : > { %2528 = vmatprep.subr.mxu0 %v3176_v2  ;;  %2563 = vmatprep.subr.mxu1 %v3176_v2  ;;  %v3121_v34 = vld [vmem:[%s3306_s16] ss:$8 sps:$4 sm:$0xff]   ;;  %v2010_v44 = vld [vmem:[%s4365_s1 + $0x1d8] sm:$0xff]  ;;  %v1993_v45 = vld [vmem:[%s4365_s1 + $0x150] sm:$0xff] }
  0x1c   : > { %2529 = vmatpush3.msra.mxu0 %v1976_v13  ;;  %2564 = vmatpush3.msra.mxu1 %v279_v14  ;;  %v2012_v40 = vld [vmem:[%s4365_s1 + $0x1e8] sm:$0xff]  ;;  %v1995_v41 = vld [vmem:[%s4365_s1 + $0x160] sm:$0xff]  ;;  %v2009_v46 = vld [vmem:[%s4365_s1 + $0x1d0] sm:$0xff] }
  0x1d   : > { %2530 = vmatprep.subr.mxu0 %v3176_v2  ;;  %2565 = vmatprep.subr.mxu1 %v3176_v2  ;;  %v2011_v42 = vld [vmem:[%s4365_s1 + $0x1e0] sm:$0xff]  ;;  %v1992_v47 = vld [vmem:[%s4365_s1 + $0x148] sm:$0xff]  ;;  %v1990_v51 = vld [vmem:[%s4365_s1 + $0x138] sm:$0xff] }
  0x1e   : > { %2531 = vmatpush3.msra.mxu0 %v1975_v15  ;;  %2566 = vmatpush3.msra.mxu1 %v278_v16  ;;  %v2008_v48 = vld [vmem:[%s4365_s1 + $0x1c8] sm:$0xff]  ;;  %v1991_v49 = vld [vmem:[%s4365_s1 + $0x140] sm:$0xff]  ;;  %v2006_v52 = vld [vmem:[%s4365_s1 + $0x1b8] sm:$0xff] }
  0x1f   : > { %2532 = vmatprep.subr.mxu0 %v3176_v2  ;;  %2567 = vmatprep.subr.mxu1 %v3176_v2  ;;  %v2007_v50 = vld [vmem:[%s4365_s1 + $0x1c0] sm:$0xff]  ;;  %v1989_v53 = vld [vmem:[%s4365_s1 + $0x130] sm:$0xff]  ;;  %v1988_v55 = vld [vmem:[%s4365_s1 + $0x128] sm:$0xff] }
  0x20   : > { %2533 = vmatpush3.msra.mxu0 %v1974_v17  ;;  %2568 = vmatpush3.msra.mxu1 %v277_v18  ;;  %v2005_v54 = vld [vmem:[%s4365_s1 + $0x1b0] sm:$0xff]  ;;  %v2004_v56 = vld [vmem:[%s4365_s1 + $0x1a8] sm:$0xff]  ;;  %v1987_v57 = vld [vmem:[%s4365_s1 + $0x120] sm:$0xff] }
  0x21   : > { %2534 = vmatprep.subr.mxu0 %v3176_v2  ;;  %2569 = vmatprep.subr.mxu1 %v3176_v2  ;;  %v2003_v58 = vld [vmem:[%s4365_s1 + $0x1a0] sm:$0xff]  ;;  %v1986_v59 = vld [vmem:[%s4365_s1 + $0x118] sm:$0xff]  ;;  %v1985_v61 = vld [vmem:[%s4365_s1 + $0x110] sm:$0xff] }
  0x22   : > { %2535 = vmatpush3.msra.mxu0 %v1973_v19  ;;  %2570 = vmatpush3.msra.mxu1 %v276_v20  ;;  %v2002_v60 = vld [vmem:[%s4365_s1 + $0x198] sm:$0xff]  ;;  %v2001_v62 = vld [vmem:[%s4365_s1 + $0x190] sm:$0xff]  ;;  %v1984_v63 = vld [vmem:[%s4365_s1 + $0x108] sm:$0xff] }
  0x23   : > { %2536 = vmatprep.subr.mxu0 %v3176_v2  ;;  %2571 = vmatprep.subr.mxu1 %v3176_v2  ;;  %v2000_v0 = vld [vmem:[%s4365_s1 + $0x188] sm:$0xff]  ;;  %v1983_v1 = vld [vmem:[%s4365_s1 + $0x100] sm:$0xff]  ;;  %v2034_v6 = vld [vmem:[%s4365_s1 + $0x278] sm:$0xff] }
  0x24   : > { %2537 = vmatpush3.msra.mxu0 %v1972_v21  ;;  %2572 = vmatpush3.msra.mxu1 %v275_v22  ;;  %v3122_v3 = vld [vmem:[%s3306_s16 + $0x2] ss:$8 sps:$4 sm:$0xff]   ;;  %v2052_v7 = vld [vmem:[%s4365_s1 + $0x2f8] sm:$0xff]  ;;  %v2033_v8 = vld [vmem:[%s4365_s1 + $0x270] sm:$0xff] }
  0x25   : > { %2538 = vmatprep.subr.mxu0 %v3176_v2  ;;  %2573 = vmatprep.subr.mxu1 %v3176_v2  ;;  %v1999_v4 = vld [vmem:[%s4365_s1 + $0x180] sm:$0xff]  ;;  %v2051_v9 = vld [vmem:[%s4365_s1 + $0x2f0] sm:$0xff]  ;;  %v2032_v10 = vld [vmem:[%s4365_s1 + $0x268] sm:$0xff] }
  0x26   : > { %2539 = vmatpush3.msra.mxu0 %v1971_v23  ;;  %2574 = vmatpush3.msra.mxu1 %v274_v24  ;;  %v3123_v5 = vld [vmem:[%s3306_s16 + $0x3] ss:$8 sps:$4 sm:$0xff]   ;;  %v2030_v14 = vld [vmem:[%s4365_s1 + $0x258] sm:$0xff]  ;;  %v2029_v16 = vld [vmem:[%s4365_s1 + $0x250] sm:$0xff] }
  0x27   : > { %2540 = vmatprep.subr.mxu0 %v3176_v2  ;;  %2575 = vmatprep.subr.mxu1 %v3176_v2  ;;  %v2050_v11 = vld [vmem:[%s4365_s1 + $0x2e8] sm:$0xff]  ;;  %v2031_v12 = vld [vmem:[%s4365_s1 + $0x260] sm:$0xff]  ;;  %v2048_v15 = vld [vmem:[%s4365_s1 + $0x2d8] sm:$0xff] }
  0x28   : > { %2541 = vmatpush3.msra.mxu0 %v1970_v25  ;;  %2576 = vmatpush3.msra.mxu1 %v273_v26  ;;  %v2049_v13 = vld [vmem:[%s4365_s1 + $0x2e0] sm:$0xff]  ;;  %v2047_v17 = vld [vmem:[%s4365_s1 + $0x2d0] sm:$0xff]  ;;  %v2028_v18 = vld [vmem:[%s4365_s1 + $0x248] sm:$0xff] }
  0x29   : > { %2542 = vmatprep.subr.mxu0 %v3176_v2  ;;  %2577 = vmatprep.subr.mxu1 %v3176_v2  ;;  %v2046_v19 = vld [vmem:[%s4365_s1 + $0x2c8] sm:$0xff]  ;;  %v2027_v20 = vld [vmem:[%s4365_s1 + $0x240] sm:$0xff]  ;;  %v2026_v22 = vld [vmem:[%s4365_s1 + $0x238] sm:$0xff] }
  0x2a   : > { %2543 = vmatpush3.msra.mxu0 %v1969_v27  ;;  %2578 = vmatpush3.msra.mxu1 %v272_v28  ;;  %v2045_v21 = vld [vmem:[%s4365_s1 + $0x2c0] sm:$0xff]  ;;  %v2044_v23 = vld [vmem:[%s4365_s1 + $0x2b8] sm:$0xff]  ;;  %v2025_v24 = vld [vmem:[%s4365_s1 + $0x230] sm:$0xff] }
  0x2b   : > { %2544 = vmatprep.subr.mxu0 %v3176_v2  ;;  %2579 = vmatprep.subr.mxu1 %v3176_v2  ;;  %v2043_v25 = vld [vmem:[%s4365_s1 + $0x2b0] sm:$0xff]  ;;  %v2024_v26 = vld [vmem:[%s4365_s1 + $0x228] sm:$0xff]  ;;  %v2023_v28 = vld [vmem:[%s4365_s1 + $0x220] sm:$0xff] }
  0x2c   : > { %2545 = vmatpush3.msra.mxu0 %v1968_v29  ;;  %2580 = vmatpush3.msra.mxu1 %v271_v30  ;;  %v2042_v27 = vld [vmem:[%s4365_s1 + $0x2a8] sm:$0xff]  ;;  %v2041_v29 = vld [vmem:[%s4365_s1 + $0x2a0] sm:$0xff]  ;;  %v2022_v30 = vld [vmem:[%s4365_s1 + $0x218] sm:$0xff] }
  0x2d   : > { %2546 = vmatprep.subr.mxu0 %v3176_v2  ;;  %2581 = vmatprep.subr.mxu1 %v3176_v2 }
  0x2e   : > { %2547 = vmatpush3.msra.mxu0 %v1967_v31  ;;  %2548 = vmatprep.mubr.msk.f32.mxu0 %vm3177_vm0, %v3176_v2  ;;  %v2040_v31 = vld [vmem:[%s4365_s1 + $0x298] sm:$0xff] }
  0x2f   : > { %2582 = vmatpush3.msra.mxu1 %v270_v33  ;;  %2549 = vmatmul.mubr.f32.vlgmr.msra.gmra.mxu0 %v3120_v32  ;;  %v2021_v32 = vld [vmem:[%s4365_s1 + $0x210] sm:$0xff] }
  0x30   : > { %2583 = vmatprep.mubr.msk.f32.mxu1 %vm3177_vm0, %v3176_v2  ;;  %2586 = vmatprep.subr.mxu0 %v3176_v2  ;;  %v2039_v33 = vld [vmem:[%s4365_s1 + $0x290] sm:$0xff] }
  0x31   : > { %2621 = vmatprep.subr.mxu1 %v3176_v2  ;;  %2584 = vmatmul.mubr.f32.vlgmr.msra.gmra.mxu1 %v3121_v34  ;;  %v2020_v34 = vld [vmem:[%s4365_s1 + $0x208] sm:$0xff] }
  0x32   : > { %2587 = vmatpush3.msra.mxu0 %v1998_v35  ;;  %2622 = vmatpush3.msra.mxu1 %v2014_v36  ;;  %v2038_v35 = vld [vmem:[%s4365_s1 + $0x288] sm:$0xff]  ;;  %v2019_v36 = vld [vmem:[%s4365_s1 + $0x200] sm:$0xff] }
  0x33   : > { %2588 = vmatprep.subr.mxu0 %v3176_v2  ;;  %2623 = vmatprep.subr.mxu1 %v3176_v2 }
  0x34   : > { %2589 = vmatpush3.msra.mxu0 %v1997_v37  ;;  %2624 = vmatpush3.msra.mxu1 %v2013_v38  ;;  %v3124_v37 = vld [vmem:[%s3306_s16 + $0x8] ss:$8 sps:$4 sm:$0xff]   ;;  %v2037_v38 = vld [vmem:[%s4365_s1 + $0x280] sm:$0xff] }
  0x35   : > { %2590 = vmatprep.subr.mxu0 %v3176_v2  ;;  %2625 = vmatprep.subr.mxu1 %v3176_v2 }
  0x36   : > { %2591 = vmatpush3.msra.mxu0 %v1996_v39  ;;  %2626 = vmatpush3.msra.mxu1 %v2012_v40  ;;  %v3125_v39 = vld [vmem:[%s3306_s16 + $0x9] ss:$8 sps:$4 sm:$0xff]   ;;  %v2070_v40 = vld [vmem:[%s4365_s1 + $0x378] sm:$0xff] }
  0x37   : > { %2592 = vmatprep.subr.mxu0 %v3176_v2  ;;  %2627 = vmatprep.subr.mxu1 %v3176_v2 }
  0x38   : > { %2593 = vmatpush3.msra.mxu0 %v1995_v41  ;;  %2628 = vmatpush3.msra.mxu1 %v2011_v42  ;;  %v2088_v41 = vld [vmem:[%s4365_s1 + $0x3f8] sm:$0xff]  ;;  %v2069_v42 = vld [vmem:[%s4365_s1 + $0x370] sm:$0xff] }
  0x39   : > { %2594 = vmatprep.subr.mxu0 %v3176_v2  ;;  %2629 = vmatprep.subr.mxu1 %v3176_v2 }
  0x3a   : > { %2595 = vmatpush3.msra.mxu0 %v1994_v43  ;;  %2630 = vmatpush3.msra.mxu1 %v2010_v44  ;;  %v2087_v43 = vld [vmem:[%s4365_s1 + $0x3f0] sm:$0xff]  ;;  %v2068_v44 = vld [vmem:[%s4365_s1 + $0x368] sm:$0xff] }
  0x3b   : > { %2596 = vmatprep.subr.mxu0 %v3176_v2  ;;  %2631 = vmatprep.subr.mxu1 %v3176_v2 }
  0x3c   : > { %2597 = vmatpush3.msra.mxu0 %v1993_v45  ;;  %2632 = vmatpush3.msra.mxu1 %v2009_v46  ;;  %v2086_v45 = vld [vmem:[%s4365_s1 + $0x3e8] sm:$0xff]  ;;  %v2067_v46 = vld [vmem:[%s4365_s1 + $0x360] sm:$0xff] }
  0x3d   : > { %2598 = vmatprep.subr.mxu0 %v3176_v2  ;;  %2633 = vmatprep.subr.mxu1 %v3176_v2 }
  0x3e   : > { %2599 = vmatpush3.msra.mxu0 %v1992_v47  ;;  %2634 = vmatpush3.msra.mxu1 %v2008_v48  ;;  %v2085_v47 = vld [vmem:[%s4365_s1 + $0x3e0] sm:$0xff]  ;;  %v2066_v48 = vld [vmem:[%s4365_s1 + $0x358] sm:$0xff] }
  0x3f   : > { %2600 = vmatprep.subr.mxu0 %v3176_v2  ;;  %2635 = vmatprep.subr.mxu1 %v3176_v2 }
  0x40   : > { %2601 = vmatpush3.msra.mxu0 %v1991_v49  ;;  %2636 = vmatpush3.msra.mxu1 %v2007_v50  ;;  %v2084_v49 = vld [vmem:[%s4365_s1 + $0x3d8] sm:$0xff]  ;;  %v2065_v50 = vld [vmem:[%s4365_s1 + $0x350] sm:$0xff] }
  0x41   : > { %2602 = vmatprep.subr.mxu0 %v3176_v2  ;;  %2637 = vmatprep.subr.mxu1 %v3176_v2 }
  0x42   : > { %2603 = vmatpush3.msra.mxu0 %v1990_v51  ;;  %2638 = vmatpush3.msra.mxu1 %v2006_v52  ;;  %v2083_v51 = vld [vmem:[%s4365_s1 + $0x3d0] sm:$0xff]  ;;  %v2064_v52 = vld [vmem:[%s4365_s1 + $0x348] sm:$0xff] }
  0x43   : > { %2604 = vmatprep.subr.mxu0 %v3176_v2  ;;  %2639 = vmatprep.subr.mxu1 %v3176_v2 }
  0x44   : > { %2605 = vmatpush3.msra.mxu0 %v1989_v53  ;;  %2640 = vmatpush3.msra.mxu1 %v2005_v54  ;;  %v2082_v53 = vld [vmem:[%s4365_s1 + $0x3c8] sm:$0xff]  ;;  %v2063_v54 = vld [vmem:[%s4365_s1 + $0x340] sm:$0xff] }
  0x45   : > { %2606 = vmatprep.subr.mxu0 %v3176_v2  ;;  %2641 = vmatprep.subr.mxu1 %v3176_v2 }
  0x46   : > { %2607 = vmatpush3.msra.mxu0 %v1988_v55  ;;  %2642 = vmatpush3.msra.mxu1 %v2004_v56  ;;  %v2081_v55 = vld [vmem:[%s4365_s1 + $0x3c0] sm:$0xff]  ;;  %v2062_v56 = vld [vmem:[%s4365_s1 + $0x338] sm:$0xff] }
  0x47   : > { %2608 = vmatprep.subr.mxu0 %v3176_v2  ;;  %2643 = vmatprep.subr.mxu1 %v3176_v2 }
  0x48   : > { %2609 = vmatpush3.msra.mxu0 %v1987_v57  ;;  %2644 = vmatpush3.msra.mxu1 %v2003_v58  ;;  %v2080_v57 = vld [vmem:[%s4365_s1 + $0x3b8] sm:$0xff]  ;;  %v2061_v58 = vld [vmem:[%s4365_s1 + $0x330] sm:$0xff] }
  0x49   : > { %2610 = vmatprep.subr.mxu0 %v3176_v2  ;;  %2645 = vmatprep.subr.mxu1 %v3176_v2 }
  0x4a   : > { %2611 = vmatpush3.msra.mxu0 %v1986_v59  ;;  %2646 = vmatpush3.msra.mxu1 %v2002_v60  ;;  %v2079_v59 = vld [vmem:[%s4365_s1 + $0x3b0] sm:$0xff]  ;;  %v2060_v60 = vld [vmem:[%s4365_s1 + $0x328] sm:$0xff] }
  0x4b   : > { %2612 = vmatprep.subr.mxu0 %v3176_v2  ;;  %2647 = vmatprep.subr.mxu1 %v3176_v2 }
  0x4c   : > { %2613 = vmatpush3.msra.mxu0 %v1985_v61  ;;  %2648 = vmatpush3.msra.mxu1 %v2001_v62  ;;  %v2078_v61 = vld [vmem:[%s4365_s1 + $0x3a8] sm:$0xff]  ;;  %v2059_v62 = vld [vmem:[%s4365_s1 + $0x320] sm:$0xff] }
  0x4d   : > { %2614 = vmatprep.subr.mxu0 %v3176_v2  ;;  %2649 = vmatprep.subr.mxu1 %v3176_v2 }
  0x4e   : > { %2615 = vmatpush3.msra.mxu0 %v1984_v63  ;;  %2650 = vmatpush3.msra.mxu1 %v2000_v0  ;;  %v2077_v63 = vld [vmem:[%s4365_s1 + $0x3a0] sm:$0xff]  ;;  %v2058_v0 = vld [vmem:[%s4365_s1 + $0x318] sm:$0xff] }
  0x4f   : > { %2616 = vmatprep.subr.mxu0 %v3176_v2  ;;  %2651 = vmatprep.subr.mxu1 %v3176_v2 }
  0x50   : > { %2617 = vmatpush3.msra.mxu0 %v1983_v1  ;;  %2618 = vmatprep.mubr.msk.f32.mxu0 %vm3177_vm0, %v3176_v2  ;;  %v2076_v1 = vld [vmem:[%s4365_s1 + $0x398] sm:$0xff] }
  0x51   : > { %2652 = vmatpush3.msra.mxu1 %v1999_v4  ;;  %2619 = vmatmul.mubr.f32.vlgmr.msra.gmra.mxu0 %v3122_v3  ;;  %v2057_v3 = vld [vmem:[%s4365_s1 + $0x310] sm:$0xff] }
  0x52   : > { %2653 = vmatprep.mubr.msk.f32.mxu1 %vm3177_vm0, %v3176_v2  ;;  %2656 = vmatprep.subr.mxu0 %v3176_v2  ;;  %v2075_v4 = vld [vmem:[%s4365_s1 + $0x390] sm:$0xff] }
  0x53   : > { %2691 = vmatprep.subr.mxu1 %v3176_v2  ;;  %2654 = vmatmul.mubr.f32.vlgmr.msra.gmra.mxu1 %v3123_v5  ;;  %v2056_v5 = vld [vmem:[%s4365_s1 + $0x308] sm:$0xff] }
  0x54   : > { %2657 = vmatpush3.msra.mxu0 %v2034_v6  ;;  %2692 = vmatpush3.msra.mxu1 %v2052_v7  ;;  %v2074_v6 = vld [vmem:[%s4365_s1 + $0x388] sm:$0xff]  ;;  %v2055_v7 = vld [vmem:[%s4365_s1 + $0x300] sm:$0xff] }
  0x55   : > { %2658 = vmatprep.subr.mxu0 %v3176_v2  ;;  %2693 = vmatprep.subr.mxu1 %v3176_v2 }
  0x56   : > { %2659 = vmatpush3.msra.mxu0 %v2033_v8  ;;  %2694 = vmatpush3.msra.mxu1 %v2051_v9  ;;  %v3126_v8 = vld [vmem:[%s3306_s16 + $0xa] ss:$8 sps:$4 sm:$0xff]   ;;  %v2073_v9 = vld [vmem:[%s4365_s1 + $0x380] sm:$0xff] }
  0x57   : > { %2660 = vmatprep.subr.mxu0 %v3176_v2  ;;  %2695 = vmatprep.subr.mxu1 %v3176_v2 }
  0x58   : > { %2661 = vmatpush3.msra.mxu0 %v2032_v10  ;;  %2696 = vmatpush3.msra.mxu1 %v2050_v11  ;;  %v3127_v10 = vld [vmem:[%s3306_s16 + $0xb] ss:$8 sps:$4 sm:$0xff]   ;;  %v2108_v11 = vld [vmem:[%s4365_s1 + $0x478] sm:$0xff] }
  0x59   : > { %2662 = vmatprep.subr.mxu0 %v3176_v2  ;;  %2697 = vmatprep.subr.mxu1 %v3176_v2 }
  0x5a   : > { %2663 = vmatpush3.msra.mxu0 %v2031_v12  ;;  %2698 = vmatpush3.msra.mxu1 %v2049_v13  ;;  %v2126_v12 = vld [vmem:[%s4365_s1 + $0x4f8] sm:$0xff]  ;;  %v2107_v13 = vld [vmem:[%s4365_s1 + $0x470] sm:$0xff] }
  0x5b   : > { %2664 = vmatprep.subr.mxu0 %v3176_v2  ;;  %2699 = vmatprep.subr.mxu1 %v3176_v2 }
  0x5c   : > { %2665 = vmatpush3.msra.mxu0 %v2030_v14  ;;  %2700 = vmatpush3.msra.mxu1 %v2048_v15  ;;  %v2125_v14 = vld [vmem:[%s4365_s1 + $0x4f0] sm:$0xff]  ;;  %v2106_v15 = vld [vmem:[%s4365_s1 + $0x468] sm:$0xff] }
  0x5d   : > { %2666 = vmatprep.subr.mxu0 %v3176_v2  ;;  %2701 = vmatprep.subr.mxu1 %v3176_v2 }
  0x5e   : > { %2667 = vmatpush3.msra.mxu0 %v2029_v16  ;;  %2702 = vmatpush3.msra.mxu1 %v2047_v17  ;;  %v2124_v16 = vld [vmem:[%s4365_s1 + $0x4e8] sm:$0xff]  ;;  %v2105_v17 = vld [vmem:[%s4365_s1 + $0x460] sm:$0xff] }
  0x5f   : > { %2668 = vmatprep.subr.mxu0 %v3176_v2  ;;  %2703 = vmatprep.subr.mxu1 %v3176_v2 }
  0x60   : > { %2669 = vmatpush3.msra.mxu0 %v2028_v18  ;;  %2704 = vmatpush3.msra.mxu1 %v2046_v19  ;;  %v2123_v18 = vld [vmem:[%s4365_s1 + $0x4e0] sm:$0xff]  ;;  %v2104_v19 = vld [vmem:[%s4365_s1 + $0x458] sm:$0xff] }
  0x61   : > { %2670 = vmatprep.subr.mxu0 %v3176_v2  ;;  %2705 = vmatprep.subr.mxu1 %v3176_v2 }
  0x62   : > { %2671 = vmatpush3.msra.mxu0 %v2027_v20  ;;  %2706 = vmatpush3.msra.mxu1 %v2045_v21  ;;  %v2122_v20 = vld [vmem:[%s4365_s1 + $0x4d8] sm:$0xff]  ;;  %v2103_v21 = vld [vmem:[%s4365_s1 + $0x450] sm:$0xff] }
  0x63   : > { %2672 = vmatprep.subr.mxu0 %v3176_v2  ;;  %2707 = vmatprep.subr.mxu1 %v3176_v2 }
  0x64   : > { %2673 = vmatpush3.msra.mxu0 %v2026_v22  ;;  %2708 = vmatpush3.msra.mxu1 %v2044_v23  ;;  %v2121_v22 = vld [vmem:[%s4365_s1 + $0x4d0] sm:$0xff]  ;;  %v2102_v23 = vld [vmem:[%s4365_s1 + $0x448] sm:$0xff] }
  0x65   : > { %2674 = vmatprep.subr.mxu0 %v3176_v2  ;;  %2709 = vmatprep.subr.mxu1 %v3176_v2 }
  0x66   : > { %2675 = vmatpush3.msra.mxu0 %v2025_v24  ;;  %2710 = vmatpush3.msra.mxu1 %v2043_v25  ;;  %v2120_v24 = vld [vmem:[%s4365_s1 + $0x4c8] sm:$0xff]  ;;  %v2101_v25 = vld [vmem:[%s4365_s1 + $0x440] sm:$0xff] }
  0x67   : > { %2676 = vmatprep.subr.mxu0 %v3176_v2  ;;  %2711 = vmatprep.subr.mxu1 %v3176_v2 }
  0x68   : > { %2677 = vmatpush3.msra.mxu0 %v2024_v26  ;;  %2712 = vmatpush3.msra.mxu1 %v2042_v27  ;;  %v2119_v26 = vld [vmem:[%s4365_s1 + $0x4c0] sm:$0xff]  ;;  %v2100_v27 = vld [vmem:[%s4365_s1 + $0x438] sm:$0xff] }
  0x69   : > { %2678 = vmatprep.subr.mxu0 %v3176_v2  ;;  %2713 = vmatprep.subr.mxu1 %v3176_v2 }
  0x6a   : > { %2679 = vmatpush3.msra.mxu0 %v2023_v28  ;;  %2714 = vmatpush3.msra.mxu1 %v2041_v29  ;;  %v2118_v28 = vld [vmem:[%s4365_s1 + $0x4b8] sm:$0xff]  ;;  %v2099_v29 = vld [vmem:[%s4365_s1 + $0x430] sm:$0xff] }
  0x6b   : > { %2680 = vmatprep.subr.mxu0 %v3176_v2  ;;  %2715 = vmatprep.subr.mxu1 %v3176_v2 }
  0x6c   : > { %2681 = vmatpush3.msra.mxu0 %v2022_v30  ;;  %2716 = vmatpush3.msra.mxu1 %v2040_v31  ;;  %v2117_v30 = vld [vmem:[%s4365_s1 + $0x4b0] sm:$0xff]  ;;  %v2098_v31 = vld [vmem:[%s4365_s1 + $0x428] sm:$0xff] }
  0x6d   : > { %2682 = vmatprep.subr.mxu0 %v3176_v2  ;;  %2717 = vmatprep.subr.mxu1 %v3176_v2 }
  0x6e   : > { %2683 = vmatpush3.msra.mxu0 %v2021_v32  ;;  %2718 = vmatpush3.msra.mxu1 %v2039_v33  ;;  %v2116_v32 = vld [vmem:[%s4365_s1 + $0x4a8] sm:$0xff]  ;;  %v2097_v33 = vld [vmem:[%s4365_s1 + $0x420] sm:$0xff] }
  0x6f   : > { %2684 = vmatprep.subr.mxu0 %v3176_v2  ;;  %2719 = vmatprep.subr.mxu1 %v3176_v2 }
  0x70   : > { %2685 = vmatpush3.msra.mxu0 %v2020_v34  ;;  %2720 = vmatpush3.msra.mxu1 %v2038_v35  ;;  %v2115_v34 = vld [vmem:[%s4365_s1 + $0x4a0] sm:$0xff]  ;;  %v2096_v35 = vld [vmem:[%s4365_s1 + $0x418] sm:$0xff] }
  0x71   : > { %2686 = vmatprep.subr.mxu0 %v3176_v2  ;;  %2721 = vmatprep.subr.mxu1 %v3176_v2 }
  0x72   : > { %2687 = vmatpush3.msra.mxu0 %v2019_v36  ;;  %2688 = vmatprep.mubr.msk.f32.mxu0 %vm3177_vm0, %v3176_v2  ;;  %v2114_v36 = vld [vmem:[%s4365_s1 + $0x498] sm:$0xff] }
  0x73   : > { %2722 = vmatpush3.msra.mxu1 %v2037_v38  ;;  %2689 = vmatmul.mubr.f32.vlgmr.msra.gmra.mxu0 %v3124_v37  ;;  %v2095_v37 = vld [vmem:[%s4365_s1 + $0x410] sm:$0xff] }
  0x74   : > { %2723 = vmatprep.mubr.msk.f32.mxu1 %vm3177_vm0, %v3176_v2  ;;  %2726 = vmatprep.subr.mxu0 %v3176_v2  ;;  %v2113_v38 = vld [vmem:[%s4365_s1 + $0x490] sm:$0xff] }
  0x75   : > { %2761 = vmatprep.subr.mxu1 %v3176_v2  ;;  %2724 = vmatmul.mubr.f32.vlgmr.msra.gmra.mxu1 %v3125_v39  ;;  %v2094_v39 = vld [vmem:[%s4365_s1 + $0x408] sm:$0xff] }
  0x76   : > { %2727 = vmatpush3.msra.mxu0 %v2070_v40  ;;  %2762 = vmatpush3.msra.mxu1 %v2088_v41  ;;  %v2112_v40 = vld [vmem:[%s4365_s1 + $0x488] sm:$0xff]  ;;  %v2093_v41 = vld [vmem:[%s4365_s1 + $0x400] sm:$0xff] }
  0x77   : > { %2728 = vmatprep.subr.mxu0 %v3176_v2  ;;  %2763 = vmatprep.subr.mxu1 %v3176_v2 }
  0x78   : > { %2729 = vmatpush3.msra.mxu0 %v2069_v42  ;;  %2764 = vmatpush3.msra.mxu1 %v2087_v43  ;;  %v3128_v42 = vld [vmem:[%s3306_s16 + $0x10] ss:$8 sps:$4 sm:$0xff]   ;;  %v2111_v43 = vld [vmem:[%s4365_s1 + $0x480] sm:$0xff] }
  0x79   : > { %2730 = vmatprep.subr.mxu0 %v3176_v2  ;;  %2765 = vmatprep.subr.mxu1 %v3176_v2 }
  0x7a   : > { %2731 = vmatpush3.msra.mxu0 %v2068_v44  ;;  %2766 = vmatpush3.msra.mxu1 %v2086_v45  ;;  %v3129_v44 = vld [vmem:[%s3306_s16 + $0x11] ss:$8 sps:$4 sm:$0xff]  }
  0x7b   : > { %2732 = vmatprep.subr.mxu0 %v3176_v2  ;;  %2767 = vmatprep.subr.mxu1 %v3176_v2  ;;  %v2144_v45 = vld [vmem:[%s4365_s1 + $0x578] sm:$0xff] }
  0x7c   : > { %2733 = vmatpush3.msra.mxu0 %v2067_v46  ;;  %2768 = vmatpush3.msra.mxu1 %v2085_v47  ;;  %v2162_v46 = vld [vmem:[%s4365_s1 + $0x5f8] sm:$0xff]  ;;  %v2143_v47 = vld [vmem:[%s4365_s1 + $0x570] sm:$0xff] }
  0x7d   : > { %2734 = vmatprep.subr.mxu0 %v3176_v2  ;;  %2769 = vmatprep.subr.mxu1 %v3176_v2 }
  0x7e   : > { %2735 = vmatpush3.msra.mxu0 %v2066_v48  ;;  %2770 = vmatpush3.msra.mxu1 %v2084_v49  ;;  %v2161_v48 = vld [vmem:[%s4365_s1 + $0x5f0] sm:$0xff]  ;;  %v2142_v49 = vld [vmem:[%s4365_s1 + $0x568] sm:$0xff] }
  0x7f   : > { %2736 = vmatprep.subr.mxu0 %v3176_v2  ;;  %2771 = vmatprep.subr.mxu1 %v3176_v2 }
  0x80   : > { %2737 = vmatpush3.msra.mxu0 %v2065_v50  ;;  %2772 = vmatpush3.msra.mxu1 %v2083_v51  ;;  %v2160_v50 = vld [vmem:[%s4365_s1 + $0x5e8] sm:$0xff]  ;;  %v2141_v51 = vld [vmem:[%s4365_s1 + $0x560] sm:$0xff] }
  0x81   : > { %2738 = vmatprep.subr.mxu0 %v3176_v2  ;;  %2773 = vmatprep.subr.mxu1 %v3176_v2 }
  0x82   : > { %2739 = vmatpush3.msra.mxu0 %v2064_v52  ;;  %2774 = vmatpush3.msra.mxu1 %v2082_v53  ;;  %v2159_v52 = vld [vmem:[%s4365_s1 + $0x5e0] sm:$0xff]  ;;  %v2140_v53 = vld [vmem:[%s4365_s1 + $0x558] sm:$0xff] }
  0x83   : > { %2740 = vmatprep.subr.mxu0 %v3176_v2  ;;  %2775 = vmatprep.subr.mxu1 %v3176_v2 }
  0x84   : > { %2741 = vmatpush3.msra.mxu0 %v2063_v54  ;;  %2776 = vmatpush3.msra.mxu1 %v2081_v55  ;;  %v2158_v54 = vld [vmem:[%s4365_s1 + $0x5d8] sm:$0xff]  ;;  %v2139_v55 = vld [vmem:[%s4365_s1 + $0x550] sm:$0xff] }
  0x85   : > { %2742 = vmatprep.subr.mxu0 %v3176_v2  ;;  %2777 = vmatprep.subr.mxu1 %v3176_v2 }
  0x86   : > { %2743 = vmatpush3.msra.mxu0 %v2062_v56  ;;  %2778 = vmatpush3.msra.mxu1 %v2080_v57  ;;  %v2157_v56 = vld [vmem:[%s4365_s1 + $0x5d0] sm:$0xff]  ;;  %v2138_v57 = vld [vmem:[%s4365_s1 + $0x548] sm:$0xff] }
  0x87   : > { %2744 = vmatprep.subr.mxu0 %v3176_v2  ;;  %2779 = vmatprep.subr.mxu1 %v3176_v2 }
  0x88   : > { %2745 = vmatpush3.msra.mxu0 %v2061_v58  ;;  %2780 = vmatpush3.msra.mxu1 %v2079_v59  ;;  %v2156_v58 = vld [vmem:[%s4365_s1 + $0x5c8] sm:$0xff]  ;;  %v2137_v59 = vld [vmem:[%s4365_s1 + $0x540] sm:$0xff] }
  0x89   : > { %2746 = vmatprep.subr.mxu0 %v3176_v2  ;;  %2781 = vmatprep.subr.mxu1 %v3176_v2 }
  0x8a   : > { %2747 = vmatpush3.msra.mxu0 %v2060_v60  ;;  %2782 = vmatpush3.msra.mxu1 %v2078_v61  ;;  %v2155_v60 = vld [vmem:[%s4365_s1 + $0x5c0] sm:$0xff]  ;;  %v2136_v61 = vld [vmem:[%s4365_s1 + $0x538] sm:$0xff] }
  0x8b   : > { %2748 = vmatprep.subr.mxu0 %v3176_v2  ;;  %2783 = vmatprep.subr.mxu1 %v3176_v2 }
  0x8c   : > { %2749 = vmatpush3.msra.mxu0 %v2059_v62  ;;  %2784 = vmatpush3.msra.mxu1 %v2077_v63  ;;  %v2154_v62 = vld [vmem:[%s4365_s1 + $0x5b8] sm:$0xff]  ;;  %v2135_v63 = vld [vmem:[%s4365_s1 + $0x530] sm:$0xff] }
  0x8d   : > { %2750 = vmatprep.subr.mxu0 %v3176_v2  ;;  %2785 = vmatprep.subr.mxu1 %v3176_v2 }
  0x8e   : > { %2751 = vmatpush3.msra.mxu0 %v2058_v0  ;;  %2786 = vmatpush3.msra.mxu1 %v2076_v1  ;;  %v2153_v0 = vld [vmem:[%s4365_s1 + $0x5b0] sm:$0xff]  ;;  %v2134_v1 = vld [vmem:[%s4365_s1 + $0x528] sm:$0xff] }
  0x8f   : > { %2752 = vmatprep.subr.mxu0 %v3176_v2  ;;  %2787 = vmatprep.subr.mxu1 %v3176_v2 }
  0x90   : > { %2753 = vmatpush3.msra.mxu0 %v2057_v3  ;;  %2788 = vmatpush3.msra.mxu1 %v2075_v4  ;;  %v2152_v3 = vld [vmem:[%s4365_s1 + $0x5a8] sm:$0xff]  ;;  %v2133_v4 = vld [vmem:[%s4365_s1 + $0x520] sm:$0xff] }
  0x91   : > { %2754 = vmatprep.subr.mxu0 %v3176_v2  ;;  %2789 = vmatprep.subr.mxu1 %v3176_v2 }
  0x92   : > { %2755 = vmatpush3.msra.mxu0 %v2056_v5  ;;  %2790 = vmatpush3.msra.mxu1 %v2074_v6  ;;  %v2151_v5 = vld [vmem:[%s4365_s1 + $0x5a0] sm:$0xff]  ;;  %v2132_v6 = vld [vmem:[%s4365_s1 + $0x518] sm:$0xff] }
  0x93   : > { %2756 = vmatprep.subr.mxu0 %v3176_v2  ;;  %2791 = vmatprep.subr.mxu1 %v3176_v2 }
  0x94   : > { %2757 = vmatpush3.msra.mxu0 %v2055_v7  ;;  %2758 = vmatprep.mubr.msk.f32.mxu0 %vm3177_vm0, %v3176_v2  ;;  %v2150_v7 = vld [vmem:[%s4365_s1 + $0x598] sm:$0xff] }
  0x95   : > { %2792 = vmatpush3.msra.mxu1 %v2073_v9  ;;  %2759 = vmatmul.mubr.f32.vlgmr.msra.gmra.mxu0 %v3126_v8  ;;  %v2131_v8 = vld [vmem:[%s4365_s1 + $0x510] sm:$0xff] }
  0x96   : > { %2793 = vmatprep.mubr.msk.f32.mxu1 %vm3177_vm0, %v3176_v2  ;;  %2796 = vmatprep.subr.mxu0 %v3176_v2  ;;  %v2149_v9 = vld [vmem:[%s4365_s1 + $0x590] sm:$0xff] }
  0x97   : > { %2831 = vmatprep.subr.mxu1 %v3176_v2  ;;  %2794 = vmatmul.mubr.f32.vlgmr.msra.gmra.mxu1 %v3127_v10  ;;  %v2130_v10 = vld [vmem:[%s4365_s1 + $0x508] sm:$0xff] }
  0x98   : > { %2797 = vmatpush3.msra.mxu0 %v2108_v11  ;;  %2832 = vmatpush3.msra.mxu1 %v2126_v12  ;;  %v2148_v11 = vld [vmem:[%s4365_s1 + $0x588] sm:$0xff]  ;;  %v2129_v12 = vld [vmem:[%s4365_s1 + $0x500] sm:$0xff] }
  0x99   : > { %2798 = vmatprep.subr.mxu0 %v3176_v2  ;;  %2833 = vmatprep.subr.mxu1 %v3176_v2 }
  0x9a   : > { %2799 = vmatpush3.msra.mxu0 %v2107_v13  ;;  %2834 = vmatpush3.msra.mxu1 %v2125_v14  ;;  %v3130_v13 = vld [vmem:[%s3306_s16 + $0x12] ss:$8 sps:$4 sm:$0xff]   ;;  %v2147_v14 = vld [vmem:[%s4365_s1 + $0x580] sm:$0xff] }
  0x9b   : > { %2800 = vmatprep.subr.mxu0 %v3176_v2  ;;  %2835 = vmatprep.subr.mxu1 %v3176_v2 }
  0x9c   : > { %2801 = vmatpush3.msra.mxu0 %v2106_v15  ;;  %2836 = vmatpush3.msra.mxu1 %v2124_v16  ;;  %v3131_v15 = vld [vmem:[%s3306_s16 + $0x13] ss:$8 sps:$4 sm:$0xff]  }
  0x9d   : > { %2802 = vmatprep.subr.mxu0 %v3176_v2  ;;  %2837 = vmatprep.subr.mxu1 %v3176_v2  ;;  %v2182_v16 = vld [vmem:[%s4365_s1 + $0x678] sm:$0xff] }
  0x9e   : > { %2803 = vmatpush3.msra.mxu0 %v2105_v17  ;;  %2838 = vmatpush3.msra.mxu1 %v2123_v18  ;;  %v2200_v17 = vld [vmem:[%s4365_s1 + $0x6f8] sm:$0xff]  ;;  %v2181_v18 = vld [vmem:[%s4365_s1 + $0x670] sm:$0xff] }
  0x9f   : > { %2804 = vmatprep.subr.mxu0 %v3176_v2  ;;  %2839 = vmatprep.subr.mxu1 %v3176_v2 }
  0xa0   : > { %2805 = vmatpush3.msra.mxu0 %v2104_v19  ;;  %2840 = vmatpush3.msra.mxu1 %v2122_v20  ;;  %v2199_v19 = vld [vmem:[%s4365_s1 + $0x6f0] sm:$0xff]  ;;  %v2180_v20 = vld [vmem:[%s4365_s1 + $0x668] sm:$0xff] }
  0xa1   : > { %2806 = vmatprep.subr.mxu0 %v3176_v2  ;;  %2841 = vmatprep.subr.mxu1 %v3176_v2 }
  0xa2   : > { %2807 = vmatpush3.msra.mxu0 %v2103_v21  ;;  %2842 = vmatpush3.msra.mxu1 %v2121_v22  ;;  %v2198_v21 = vld [vmem:[%s4365_s1 + $0x6e8] sm:$0xff]  ;;  %v2179_v22 = vld [vmem:[%s4365_s1 + $0x660] sm:$0xff] }
  0xa3   : > { %2808 = vmatprep.subr.mxu0 %v3176_v2  ;;  %2843 = vmatprep.subr.mxu1 %v3176_v2 }
  0xa4   : > { %2809 = vmatpush3.msra.mxu0 %v2102_v23  ;;  %2844 = vmatpush3.msra.mxu1 %v2120_v24  ;;  %v2197_v23 = vld [vmem:[%s4365_s1 + $0x6e0] sm:$0xff]  ;;  %v2178_v24 = vld [vmem:[%s4365_s1 + $0x658] sm:$0xff] }
  0xa5   : > { %2810 = vmatprep.subr.mxu0 %v3176_v2  ;;  %2845 = vmatprep.subr.mxu1 %v3176_v2 }
  0xa6   : > { %2811 = vmatpush3.msra.mxu0 %v2101_v25  ;;  %2846 = vmatpush3.msra.mxu1 %v2119_v26  ;;  %v2196_v25 = vld [vmem:[%s4365_s1 + $0x6d8] sm:$0xff]  ;;  %v2177_v26 = vld [vmem:[%s4365_s1 + $0x650] sm:$0xff] }
  0xa7   : > { %2812 = vmatprep.subr.mxu0 %v3176_v2  ;;  %2847 = vmatprep.subr.mxu1 %v3176_v2 }
  0xa8   : > { %2813 = vmatpush3.msra.mxu0 %v2100_v27  ;;  %2848 = vmatpush3.msra.mxu1 %v2118_v28  ;;  %v2195_v27 = vld [vmem:[%s4365_s1 + $0x6d0] sm:$0xff]  ;;  %v2176_v28 = vld [vmem:[%s4365_s1 + $0x648] sm:$0xff] }
  0xa9   : > { %2814 = vmatprep.subr.mxu0 %v3176_v2  ;;  %2849 = vmatprep.subr.mxu1 %v3176_v2 }
  0xaa   : > { %2815 = vmatpush3.msra.mxu0 %v2099_v29  ;;  %2850 = vmatpush3.msra.mxu1 %v2117_v30  ;;  %v2194_v29 = vld [vmem:[%s4365_s1 + $0x6c8] sm:$0xff]  ;;  %v2175_v30 = vld [vmem:[%s4365_s1 + $0x640] sm:$0xff] }
  0xab   : > { %2816 = vmatprep.subr.mxu0 %v3176_v2  ;;  %2851 = vmatprep.subr.mxu1 %v3176_v2 }
  0xac   : > { %2817 = vmatpush3.msra.mxu0 %v2098_v31  ;;  %2852 = vmatpush3.msra.mxu1 %v2116_v32  ;;  %v2193_v31 = vld [vmem:[%s4365_s1 + $0x6c0] sm:$0xff]  ;;  %v2174_v32 = vld [vmem:[%s4365_s1 + $0x638] sm:$0xff] }
  0xad   : > { %2818 = vmatprep.subr.mxu0 %v3176_v2  ;;  %2853 = vmatprep.subr.mxu1 %v3176_v2 }
  0xae   : > { %2819 = vmatpush3.msra.mxu0 %v2097_v33  ;;  %2854 = vmatpush3.msra.mxu1 %v2115_v34  ;;  %v2192_v33 = vld [vmem:[%s4365_s1 + $0x6b8] sm:$0xff]  ;;  %v2173_v34 = vld [vmem:[%s4365_s1 + $0x630] sm:$0xff] }
  0xaf   : > { %2820 = vmatprep.subr.mxu0 %v3176_v2  ;;  %2855 = vmatprep.subr.mxu1 %v3176_v2 }
  0xb0   : > { %2821 = vmatpush3.msra.mxu0 %v2096_v35  ;;  %2856 = vmatpush3.msra.mxu1 %v2114_v36  ;;  %v2191_v35 = vld [vmem:[%s4365_s1 + $0x6b0] sm:$0xff]  ;;  %v2172_v36 = vld [vmem:[%s4365_s1 + $0x628] sm:$0xff] }
  0xb1   : > { %2822 = vmatprep.subr.mxu0 %v3176_v2  ;;  %2857 = vmatprep.subr.mxu1 %v3176_v2 }
  0xb2   : > { %2823 = vmatpush3.msra.mxu0 %v2095_v37  ;;  %2858 = vmatpush3.msra.mxu1 %v2113_v38  ;;  %v2190_v37 = vld [vmem:[%s4365_s1 + $0x6a8] sm:$0xff]  ;;  %v2171_v38 = vld [vmem:[%s4365_s1 + $0x620] sm:$0xff] }
  0xb3   : > { %2824 = vmatprep.subr.mxu0 %v3176_v2  ;;  %2859 = vmatprep.subr.mxu1 %v3176_v2 }
  0xb4   : > { %2825 = vmatpush3.msra.mxu0 %v2094_v39  ;;  %2860 = vmatpush3.msra.mxu1 %v2112_v40  ;;  %v2189_v39 = vld [vmem:[%s4365_s1 + $0x6a0] sm:$0xff] }
  0xb5   : > { %2826 = vmatprep.subr.mxu0 %v3176_v2  ;;  %2861 = vmatprep.subr.mxu1 %v3176_v2 }
  0xb6   : > { %2827 = vmatpush3.msra.mxu0 %v2093_v41  ;;  %2828 = vmatprep.mubr.msk.f32.mxu0 %vm3177_vm0, %v3176_v2  ;;  %v2170_v41 = vld [vmem:[%s4365_s1 + $0x618] sm:$0xff] }
  0xb7   : > { %2862 = vmatpush3.msra.mxu1 %v2111_v43  ;;  %2829 = vmatmul.mubr.f32.vlgmr.msra.gmra.mxu0 %v3128_v42  ;;  %v2188_v42 = vld [vmem:[%s4365_s1 + $0x698] sm:$0xff] }
  0xb8   : > { %2863 = vmatprep.mubr.msk.f32.mxu1 %vm3177_vm0, %v3176_v2  ;;  %2866 = vmatprep.subr.mxu0 %v3176_v2 }
  0xb9   : > { %2901 = vmatprep.subr.mxu1 %v3176_v2  ;;  %2864 = vmatmul.mubr.f32.vlgmr.msra.gmra.mxu1 %v3129_v44 }
  0xba   : > { %2867 = vmatpush3.msra.mxu0 %v2144_v45  ;;  %2902 = vmatpush3.msra.mxu1 %v2162_v46  ;;  %v2169_v46 = vld [vmem:[%s4365_s1 + $0x610] sm:$0xff] }
  0xbb   : > { %2868 = vmatprep.subr.mxu0 %v3176_v2  ;;  %2903 = vmatprep.subr.mxu1 %v3176_v2 }
  0xbc   : > { %2869 = vmatpush3.msra.mxu0 %v2143_v47  ;;  %2904 = vmatpush3.msra.mxu1 %v2161_v48  ;;  %v2187_v47 = vld [vmem:[%s4365_s1 + $0x690] sm:$0xff] }
  0xbd   : > { %2870 = vmatprep.subr.mxu0 %v3176_v2  ;;  %2905 = vmatprep.subr.mxu1 %v3176_v2 }
  0xbe   : > { %2871 = vmatpush3.msra.mxu0 %v2142_v49  ;;  %2906 = vmatpush3.msra.mxu1 %v2160_v50  ;;  %v2168_v49 = vld [vmem:[%s4365_s1 + $0x608] sm:$0xff] }
  0xbf   : > { %2872 = vmatprep.subr.mxu0 %v3176_v2  ;;  %2907 = vmatprep.subr.mxu1 %v3176_v2  ;;  %v2186_v50 = vld [vmem:[%s4365_s1 + $0x688] sm:$0xff] }
  0xc0   : > { %2873 = vmatpush3.msra.mxu0 %v2141_v51  ;;  %2908 = vmatpush3.msra.mxu1 %v2159_v52  ;;  %v2167_v51 = vld [vmem:[%s4365_s1 + $0x600] sm:$0xff] }
  0xc1   : > { %2874 = vmatprep.subr.mxu0 %v3176_v2  ;;  %2909 = vmatprep.subr.mxu1 %v3176_v2  ;;  %v3132_v52 = vld [vmem:[%s3306_s16 + $0x18] ss:$8 sps:$4 sm:$0xff]  }
  0xc2   : > { %2875 = vmatpush3.msra.mxu0 %v2140_v53  ;;  %2910 = vmatpush3.msra.mxu1 %v2158_v54  ;;  %v2185_v53 = vld [vmem:[%s4365_s1 + $0x680] sm:$0xff] }
  0xc3   : > { %2876 = vmatprep.subr.mxu0 %v3176_v2  ;;  %2911 = vmatprep.subr.mxu1 %v3176_v2  ;;  %v3133_v54 = vld [vmem:[%s3306_s16 + $0x19] ss:$8 sps:$4 sm:$0xff]  }
  0xc4   : > { %2877 = vmatpush3.msra.mxu0 %v2139_v55  ;;  %2912 = vmatpush3.msra.mxu1 %v2157_v56  ;;  %v2218_v55 = vld [vmem:[%s4365_s1 + $0x778] sm:$0xff] }
  0xc5   : > { %2878 = vmatprep.subr.mxu0 %v3176_v2  ;;  %2913 = vmatprep.subr.mxu1 %v3176_v2  ;;  %v2236_v56 = vld [vmem:[%s4365_s1 + $0x7f8] sm:$0xff] }
  0xc6   : > { %2879 = vmatpush3.msra.mxu0 %v2138_v57  ;;  %2914 = vmatpush3.msra.mxu1 %v2156_v58  ;;  %v2217_v57 = vld [vmem:[%s4365_s1 + $0x770] sm:$0xff] }
  0xc7   : > { %2880 = vmatprep.subr.mxu0 %v3176_v2  ;;  %2915 = vmatprep.subr.mxu1 %v3176_v2  ;;  %v2235_v58 = vld [vmem:[%s4365_s1 + $0x7f0] sm:$0xff] }
  0xc8   : > { %2881 = vmatpush3.msra.mxu0 %v2137_v59  ;;  %2916 = vmatpush3.msra.mxu1 %v2155_v60  ;;  %v2216_v59 = vld [vmem:[%s4365_s1 + $0x768] sm:$0xff] }
  0xc9   : > { %2882 = vmatprep.subr.mxu0 %v3176_v2  ;;  %2917 = vmatprep.subr.mxu1 %v3176_v2  ;;  %v2234_v60 = vld [vmem:[%s4365_s1 + $0x7e8] sm:$0xff] }
  0xca   : > { %2883 = vmatpush3.msra.mxu0 %v2136_v61  ;;  %2918 = vmatpush3.msra.mxu1 %v2154_v62  ;;  %v2215_v61 = vld [vmem:[%s4365_s1 + $0x760] sm:$0xff] }
  0xcb   : > { %2884 = vmatprep.subr.mxu0 %v3176_v2  ;;  %2919 = vmatprep.subr.mxu1 %v3176_v2  ;;  %v2233_v62 = vld [vmem:[%s4365_s1 + $0x7e0] sm:$0xff] }
  0xcc   : > { %2885 = vmatpush3.msra.mxu0 %v2135_v63  ;;  %2920 = vmatpush3.msra.mxu1 %v2153_v0  ;;  %v2214_v63 = vld [vmem:[%s4365_s1 + $0x758] sm:$0xff] }
  0xcd   : > { %2886 = vmatprep.subr.mxu0 %v3176_v2  ;;  %2921 = vmatprep.subr.mxu1 %v3176_v2  ;;  %v2232_v0 = vld [vmem:[%s4365_s1 + $0x7d8] sm:$0xff] }
  0xce   : > { %2887 = vmatpush3.msra.mxu0 %v2134_v1  ;;  %2922 = vmatpush3.msra.mxu1 %v2152_v3  ;;  %v2213_v1 = vld [vmem:[%s4365_s1 + $0x750] sm:$0xff] }
  0xcf   : > { %2888 = vmatprep.subr.mxu0 %v3176_v2  ;;  %2923 = vmatprep.subr.mxu1 %v3176_v2  ;;  %v2231_v3 = vld [vmem:[%s4365_s1 + $0x7d0] sm:$0xff] }
  0xd0   : > { %2889 = vmatpush3.msra.mxu0 %v2133_v4  ;;  %2924 = vmatpush3.msra.mxu1 %v2151_v5  ;;  %v2212_v4 = vld [vmem:[%s4365_s1 + $0x748] sm:$0xff] }
  0xd1   : > { %2890 = vmatprep.subr.mxu0 %v3176_v2  ;;  %2925 = vmatprep.subr.mxu1 %v3176_v2  ;;  %v2230_v5 = vld [vmem:[%s4365_s1 + $0x7c8] sm:$0xff] }
  0xd2   : > { %2891 = vmatpush3.msra.mxu0 %v2132_v6  ;;  %2926 = vmatpush3.msra.mxu1 %v2150_v7  ;;  %v2211_v6 = vld [vmem:[%s4365_s1 + $0x740] sm:$0xff] }
  0xd3   : > { %2892 = vmatprep.subr.mxu0 %v3176_v2  ;;  %2927 = vmatprep.subr.mxu1 %v3176_v2  ;;  %v2229_v7 = vld [vmem:[%s4365_s1 + $0x7c0] sm:$0xff] }
  0xd4   : > { %2893 = vmatpush3.msra.mxu0 %v2131_v8  ;;  %2928 = vmatpush3.msra.mxu1 %v2149_v9  ;;  %v2210_v8 = vld [vmem:[%s4365_s1 + $0x738] sm:$0xff] }
  0xd5   : > { %2894 = vmatprep.subr.mxu0 %v3176_v2  ;;  %2929 = vmatprep.subr.mxu1 %v3176_v2  ;;  %v2228_v9 = vld [vmem:[%s4365_s1 + $0x7b8] sm:$0xff] }
  0xd6   : > { %2895 = vmatpush3.msra.mxu0 %v2130_v10  ;;  %2930 = vmatpush3.msra.mxu1 %v2148_v11  ;;  %v2209_v10 = vld [vmem:[%s4365_s1 + $0x730] sm:$0xff] }
  0xd7   : > { %2896 = vmatprep.subr.mxu0 %v3176_v2  ;;  %2931 = vmatprep.subr.mxu1 %v3176_v2  ;;  %v2227_v11 = vld [vmem:[%s4365_s1 + $0x7b0] sm:$0xff] }
  0xd8   : > { %2897 = vmatpush3.msra.mxu0 %v2129_v12  ;;  %2898 = vmatprep.mubr.msk.f32.mxu0 %vm3177_vm0, %v3176_v2  ;;  %v2208_v12 = vld [vmem:[%s4365_s1 + $0x728] sm:$0xff] }
  0xd9   : > { %2932 = vmatpush3.msra.mxu1 %v2147_v14  ;;  %2899 = vmatmul.mubr.f32.vlgmr.msra.gmra.mxu0 %v3130_v13  ;;  %v2226_v13 = vld [vmem:[%s4365_s1 + $0x7a8] sm:$0xff]  ;;  %v2207_v14 = vld [vmem:[%s4365_s1 + $0x720] sm:$0xff] }
  0xda   : > { %2933 = vmatprep.mubr.msk.f32.mxu1 %vm3177_vm0, %v3176_v2  ;;  %2936 = vmatprep.subr.mxu0 %v3176_v2 }
  0xdb   : > { %2971 = vmatprep.subr.mxu1 %v3176_v2  ;;  %2934 = vmatmul.mubr.f32.vlgmr.msra.gmra.mxu1 %v3131_v15  ;;  %v2225_v15 = vld [vmem:[%s4365_s1 + $0x7a0] sm:$0xff] }
  0xdc   : > { %2937 = vmatpush3.msra.mxu0 %v2182_v16  ;;  %2972 = vmatpush3.msra.mxu1 %v2200_v17 }
  0xdd   : > { %2938 = vmatprep.subr.mxu0 %v3176_v2  ;;  %2973 = vmatprep.subr.mxu1 %v3176_v2 }
  0xde   : > { %2939 = vmatpush3.msra.mxu0 %v2181_v18  ;;  %2974 = vmatpush3.msra.mxu1 %v2199_v19  ;;  %v2206_v18 = vld [vmem:[%s4365_s1 + $0x718] sm:$0xff] }
  0xdf   : > { %2940 = vmatprep.subr.mxu0 %v3176_v2  ;;  %2975 = vmatprep.subr.mxu1 %v3176_v2  ;;  %v2224_v19 = vld [vmem:[%s4365_s1 + $0x798] sm:$0xff] }
  0xe0   : > { %2941 = vmatpush3.msra.mxu0 %v2180_v20  ;;  %2976 = vmatpush3.msra.mxu1 %v2198_v21 }
  0xe1   : > { %2942 = vmatprep.subr.mxu0 %v3176_v2  ;;  %2977 = vmatprep.subr.mxu1 %v3176_v2 }
  0xe2   : > { %2943 = vmatpush3.msra.mxu0 %v2179_v22  ;;  %2978 = vmatpush3.msra.mxu1 %v2197_v23  ;;  %v2205_v23 = vld [vmem:[%s4365_s1 + $0x710] sm:$0xff] }
  0xe3   : > { %2944 = vmatprep.subr.mxu0 %v3176_v2  ;;  %2979 = vmatprep.subr.mxu1 %v3176_v2 }
  0xe4   : > { %2945 = vmatpush3.msra.mxu0 %v2178_v24  ;;  %2980 = vmatpush3.msra.mxu1 %v2196_v25  ;;  %v2223_v24 = vld [vmem:[%s4365_s1 + $0x790] sm:$0xff] }
  0xe5   : > { %2946 = vmatprep.subr.mxu0 %v3176_v2  ;;  %2981 = vmatprep.subr.mxu1 %v3176_v2 }
  0xe6   : > { %2947 = vmatpush3.msra.mxu0 %v2177_v26  ;;  %2982 = vmatpush3.msra.mxu1 %v2195_v27  ;;  %v2204_v26 = vld [vmem:[%s4365_s1 + $0x708] sm:$0xff] }
  0xe7   : > { %2948 = vmatprep.subr.mxu0 %v3176_v2  ;;  %2983 = vmatprep.subr.mxu1 %v3176_v2  ;;  %v2222_v27 = vld [vmem:[%s4365_s1 + $0x788] sm:$0xff] }
  0xe8   : > { %2949 = vmatpush3.msra.mxu0 %v2176_v28  ;;  %2984 = vmatpush3.msra.mxu1 %v2194_v29  ;;  %v2203_v28 = vld [vmem:[%s4365_s1 + $0x700] sm:$0xff] }
  0xe9   : > { %2950 = vmatprep.subr.mxu0 %v3176_v2  ;;  %2985 = vmatprep.subr.mxu1 %v3176_v2  ;;  %v2221_v29 = vld [vmem:[%s4365_s1 + $0x780] sm:$0xff] }
  0xea   : > { %2951 = vmatpush3.msra.mxu0 %v2175_v30  ;;  %2986 = vmatpush3.msra.mxu1 %v2193_v31  ;;  %v3134_v30 = vld [vmem:[%s3306_s16 + $0x1a] ss:$8 sps:$4 sm:$0xff]  }
  0xeb   : > { %2952 = vmatprep.subr.mxu0 %v3176_v2  ;;  %2987 = vmatprep.subr.mxu1 %v3176_v2  ;;  %v3135_v31 = vld [vmem:[%s3306_s16 + $0x1b] ss:$8 sps:$4 sm:$0xff]   ;;  %s1962_s16 = sshll.u32 %s3158_s18, 1 }
  0xec   : > { %2953 = vmatpush3.msra.mxu0 %v2174_v32  ;;  %2988 = vmatpush3.msra.mxu1 %v2192_v33  ;;  %p252_p6 = scmp.lt.s32.totalorder %s1962_s16, 3 }
  0xed   : > { %2954 = vmatprep.subr.mxu0 %v3176_v2  ;;  %2989 = vmatprep.subr.mxu1 %v3176_v2 }
  0xee   : > { %2955 = vmatpush3.msra.mxu0 %v2173_v34  ;;  %2990 = vmatpush3.msra.mxu1 %v2191_v35  ;;  %s4383_s16 = smov (!%p252_p6, %s1962_s16), 3 }
  0xef   : > { %2956 = vmatprep.subr.mxu0 %v3176_v2  ;;  %2991 = vmatprep.subr.mxu1 %v3176_v2  ;;  %v375_v40 = vpop.f32.mrf.mxu0  ;;  %s255_s8 = sadd.s32 %s1963_s7, %s4383_s16 }
  0xf0   : > { %2957 = vmatpush3.msra.mxu0 %v2172_v36  ;;  %2992 = vmatpush3.msra.mxu1 %v2190_v37  ;;  %s1964_s9 = sshll.u32 %s255_s8, 2 }
  0xf1   : > { %2958 = vmatprep.subr.mxu0 %v3176_v2  ;;  %2993 = vmatprep.subr.mxu1 %v3176_v2  ;;  %v449_v43 = vpop.f32.mrf.mxu1  ;;  %v2550_v44 = vpop.f32.mrf.mxu0  ;;  %s257_s12 = scalar_lea.vmem %s4367_s3, %s1964_s9 }
  0xf2   : > { %2959 = vmatpush3.msra.mxu0 %v2171_v38  ;;  %2994 = vmatpush3.msra.mxu1 %v2189_v39  ;;  %v4168_v45 = vadd.f32 %v449_v43, %v375_v40 }
  0xf3   : > { %2960 = vmatprep.subr.mxu0 %v3176_v2  ;;  %2995 = vmatprep.subr.mxu1 %v3176_v2  ;;  %v2585_v48 = vpop.f32.mrf.mxu1 }
  0xf4   : > { %2961 = vmatpush3.msra.mxu0 %v2170_v41  ;;  %2996 = vmatpush3.msra.mxu1 %v2188_v42 }
  0xf5   : > { %2962 = vmatprep.subr.mxu0 %v3176_v2  ;;  %2997 = vmatprep.subr.mxu1 %v3176_v2 }
  0xf6   : > { %2963 = vmatpush3.msra.mxu0 %v2169_v46  ;;  %2998 = vmatpush3.msra.mxu1 %v2187_v47 }
  0xf7   : > { %2964 = vmatprep.subr.mxu0 %v3176_v2  ;;  %2999 = vmatprep.subr.mxu1 %v3176_v2 }
  0xf8   : > { %2965 = vmatpush3.msra.mxu0 %v2168_v49  ;;  %3000 = vmatpush3.msra.mxu1 %v2186_v50 }
  0xf9   : > { %2966 = vmatprep.subr.mxu0 %v3176_v2  ;;  %3001 = vmatprep.subr.mxu1 %v3176_v2 }
  0xfa   : > { %2967 = vmatpush3.msra.mxu0 %v2167_v51  ;;  %2968 = vmatprep.mubr.msk.f32.mxu0 %vm3177_vm0, %v3176_v2 }
  0xfb   : > { %3002 = vmatpush3.msra.mxu1 %v2185_v53  ;;  %2969 = vmatmul.mubr.f32.vlgmr.msra.gmra.mxu0 %v3132_v52 }
  0xfc   : > { %3003 = vmatprep.mubr.msk.f32.mxu1 %vm3177_vm0, %v3176_v2  ;;  %3006 = vmatprep.subr.mxu0 %v3176_v2 }
  0xfd   : > { %3041 = vmatprep.subr.mxu1 %v3176_v2  ;;  %3004 = vmatmul.mubr.f32.vlgmr.msra.gmra.mxu1 %v3133_v54 }
  0xfe   : > { %3007 = vmatpush3.msra.mxu0 %v2218_v55  ;;  %3042 = vmatpush3.msra.mxu1 %v2236_v56 }
  0xff   : > { %3008 = vmatprep.subr.mxu0 %v3176_v2  ;;  %3043 = vmatprep.subr.mxu1 %v3176_v2 }
 0x100   : > { %3009 = vmatpush3.msra.mxu0 %v2217_v57  ;;  %3044 = vmatpush3.msra.mxu1 %v2235_v58 }
 0x101   : > { %3010 = vmatprep.subr.mxu0 %v3176_v2  ;;  %3045 = vmatprep.subr.mxu1 %v3176_v2 }
 0x102   : > { %3011 = vmatpush3.msra.mxu0 %v2216_v59  ;;  %3046 = vmatpush3.msra.mxu1 %v2234_v60 }
 0x103   : > { %3012 = vmatprep.subr.mxu0 %v3176_v2  ;;  %3047 = vmatprep.subr.mxu1 %v3176_v2 }
 0x104   : > { %3013 = vmatpush3.msra.mxu0 %v2215_v61  ;;  %3048 = vmatpush3.msra.mxu1 %v2233_v62 }
 0x105   : > { %3014 = vmatprep.subr.mxu0 %v3176_v2  ;;  %3049 = vmatprep.subr.mxu1 %v3176_v2 }
 0x106   : > { %3015 = vmatpush3.msra.mxu0 %v2214_v63  ;;  %3050 = vmatpush3.msra.mxu1 %v2232_v0 }
 0x107   : > { %3016 = vmatprep.subr.mxu0 %v3176_v2  ;;  %3051 = vmatprep.subr.mxu1 %v3176_v2 }
 0x108   : > { %3017 = vmatpush3.msra.mxu0 %v2213_v1  ;;  %3052 = vmatpush3.msra.mxu1 %v2231_v3 }
 0x109   : > { %3018 = vmatprep.subr.mxu0 %v3176_v2  ;;  %3053 = vmatprep.subr.mxu1 %v3176_v2 }
 0x10a   : > { %3019 = vmatpush3.msra.mxu0 %v2212_v4  ;;  %3054 = vmatpush3.msra.mxu1 %v2230_v5 }
 0x10b   : > { %3020 = vmatprep.subr.mxu0 %v3176_v2  ;;  %3055 = vmatprep.subr.mxu1 %v3176_v2 }
 0x10c   : > { %3021 = vmatpush3.msra.mxu0 %v2211_v6  ;;  %3056 = vmatpush3.msra.mxu1 %v2229_v7 }
 0x10d   : > { %3022 = vmatprep.subr.mxu0 %v3176_v2  ;;  %3057 = vmatprep.subr.mxu1 %v3176_v2 }
 0x10e   : > { %3023 = vmatpush3.msra.mxu0 %v2210_v8  ;;  %3058 = vmatpush3.msra.mxu1 %v2228_v9 }
 0x10f   : > { %3024 = vmatprep.subr.mxu0 %v3176_v2  ;;  %3059 = vmatprep.subr.mxu1 %v3176_v2 }
 0x110   : > { %3025 = vmatpush3.msra.mxu0 %v2209_v10  ;;  %3060 = vmatpush3.msra.mxu1 %v2227_v11 }
 0x111   : > { %3026 = vmatprep.subr.mxu0 %v3176_v2  ;;  %3061 = vmatprep.subr.mxu1 %v3176_v2  ;;  %v542_v16 = vpop.f32.mrf.mxu0 }
 0x112   : > { %3027 = vmatpush3.msra.mxu0 %v2208_v12  ;;  %3062 = vmatpush3.msra.mxu1 %v2226_v13  ;;  %v546_v17 = vadd.f32 %v542_v16, %v4168_v45 }
 0x113   : > { %3028 = vmatprep.subr.mxu0 %v3176_v2  ;;  %3063 = vmatprep.subr.mxu1 %v3176_v2  ;;  %v636_v20 = vpop.f32.mrf.mxu1  ;;  %v2620_v21 = vpop.f32.mrf.mxu0 }
 0x114   : > { %3029 = vmatpush3.msra.mxu0 %v2207_v14  ;;  %3064 = vmatpush3.msra.mxu1 %v2225_v15  ;;  %v640_v22 = vadd.f32 %v636_v20, %v546_v17 }
 0x115   : > { %3030 = vmatprep.subr.mxu0 %v3176_v2  ;;  %3065 = vmatprep.subr.mxu1 %v3176_v2  ;;  %v2655_v25 = vpop.f32.mrf.mxu1 }
 0x116   : > { %3031 = vmatpush3.msra.mxu0 %v2206_v18  ;;  %3066 = vmatpush3.msra.mxu1 %v2224_v19 }
 0x117   : > { %3032 = vmatprep.subr.mxu0 %v3176_v2  ;;  %3067 = vmatprep.subr.mxu1 %v3176_v2 }
 0x118   : > { %3033 = vmatpush3.msra.mxu0 %v2205_v23  ;;  %3068 = vmatpush3.msra.mxu1 %v2223_v24 }
 0x119   : > { %3034 = vmatprep.subr.mxu0 %v3176_v2  ;;  %3069 = vmatprep.subr.mxu1 %v3176_v2 }
 0x11a   : > { %3035 = vmatpush3.msra.mxu0 %v2204_v26  ;;  %3070 = vmatpush3.msra.mxu1 %v2222_v27 }
 0x11b   : > { %3036 = vmatprep.subr.mxu0 %v3176_v2  ;;  %3071 = vmatprep.subr.mxu1 %v3176_v2 }
 0x11c   : > { %3037 = vmatpush3.msra.mxu0 %v2203_v28  ;;  %3038 = vmatprep.mubr.msk.f32.mxu0 %vm3177_vm0, %v3176_v2 }
 0x11d   : > { %3072 = vmatpush3.msra.mxu1 %v2221_v29  ;;  %3073 = vmatprep.mubr.msk.f32.mxu1 %vm3177_vm0, %v3176_v2 }
 0x11e   : > { %3039 = vmatmul.mubr.f32.vlgmr.msra.gmra.mxu0 %v3134_v30  ;;  %3074 = vmatmul.mubr.f32.vlgmr.msra.gmra.mxu1 %v3135_v31 }
 0x133   : > { %v733_v32 = vpop.f32.mrf.mxu0 }
 0x134   : > { %v737_v33 = vadd.f32 %v733_v32, %v640_v22 }
 0x135   : > { %v827_v34 = vpop.f32.mrf.mxu1  ;;  %v2690_v35 = vpop.f32.mrf.mxu0 }
 0x136   : > { %v831_v36 = vadd.f32 %v827_v34, %v737_v33 }
 0x137   : > { %v2725_v37 = vpop.f32.mrf.mxu1 }
 0x155   : > { %v921_v38 = vpop.f32.mrf.mxu0 }
 0x156   : > { %v925_v39 = vadd.f32 %v921_v38, %v831_v36 }
 0x157   : > { %v1015_v40 = vpop.f32.mrf.mxu1  ;;  %v2760_v41 = vpop.f32.mrf.mxu0 }
 0x158   : > { %v1019_v42 = vadd.f32 %v1015_v40, %v925_v39 }
 0x159   : > { %v2795_v43 = vpop.f32.mrf.mxu1 }
 0x177   : > { %v1112_v44 = vpop.f32.mrf.mxu0 }
 0x178   : > { %v1116_v45 = vadd.f32 %v1112_v44, %v1019_v42 }
 0x179   : > { %v1206_v46 = vpop.f32.mrf.mxu1  ;;  %v2830_v47 = vpop.f32.mrf.mxu0 }
 0x17a   : > { %v1210_v2 = vadd.f32 %v1206_v46, %v1116_v45 }
 0x17b   : > { %v2865_v48 = vpop.f32.mrf.mxu1 }
 0x199   : > { %v1300_v49 = vpop.f32.mrf.mxu0 }
 0x19a   : > { %v1304_v57 = vadd.f32 %v1300_v49, %v1210_v2 }
 0x19b   : > { %v1394_v50 = vpop.f32.mrf.mxu1  ;;  %v2900_v51 = vpop.f32.mrf.mxu0 }
 0x19c   : > { %v1398_v58 = vadd.f32 %v1394_v50, %v1304_v57 }
 0x19d   : > { %v2935_v52 = vpop.f32.mrf.mxu1 }
 0x1bb   : > { %v1491_v53 = vpop.f32.mrf.mxu0 }
 0x1bc   : > { %v1495_v59 = vadd.f32 %v1491_v53, %v1398_v58 }
 0x1bd   : > { %v1585_v54 = vpop.f32.mrf.mxu1  ;;  %v2970_v55 = vpop.f32.mrf.mxu0 }
 0x1be   : > { %v1589_v60 = vadd.f32 %v1585_v54, %v1495_v59 }
 0x1bf   : > { %v3005_v56 = vpop.f32.mrf.mxu1 }
 0x1de   : > { %v1679_v61 = vpop.f32.mrf.mxu0  ;;  %v1773_v62 = vpop.f32.mrf.mxu1 }
 0x1df   : > { %v1683_v63 = vadd.f32 %v1679_v61, %v1589_v60 }
 0x1e0   : > { %v3040_v0 = vpop.f32.mrf.mxu0  ;;  %v3075_v1 = vpop.f32.mrf.mxu1 }
 0x1e1   : > { %v1777_v3 = vadd.f32 %v1773_v62, %v1683_v63  ;;  %1786 = sbr.rel (%p2237_p7) target bundleno = 488 (0x1e8), region = 36 }
 0x1e3   : > { %v1779_v4 = vcombine.high %v1777_v3, %v1777_v3  ;;  %1781 = vst [vmem:[%s257_s12] sm:$0xf] %v1777_v3 }
 0x1e5   : > { %1782 = vst [vmem:[%s257_s12 + $0x4] sm:$0xf] %v1779_v4 }
 0x1e6   : > { %v3178_v5 = vmov 0.0  }
 0x1e7   : > { %1787 = vst [vmem:[%s3270_s14] sm:$0x1] %v3178_v5  ;;  %1788 = vst [vmem:[%s3284_s27] sm:$0x1] %v3178_v5 }
 0x1e8 PF: > { %v1790_v6 = vrot.slane %v1777_v3, 4  ;;  %v1799_v7 = vmul.f32 %v1777_v3, %v1777_v3 }
 0x1ea   : > { %v1791_v8 = vadd.f32 %v1790_v6, %v1777_v3  ;;  %v1800_v9 = vrot.slane %v1799_v7, 4 }
 0x1ec   : > { %v1792_v10 = vrot.slane %v1791_v8, 2  ;;  %v1801_v11 = vadd.f32 %v1800_v9, %v1799_v7 }
 0x1ee   : > { %v1793_v12 = vadd.f32 %v1792_v10, %v1791_v8  ;;  %v1802_v13 = vrot.slane %v1801_v11, 2  ;;  %v1789_v16 = vld [vmem:[%s3270_s14] sm:$0x1] }
 0x1ef   : > { %v1798_v19 = vld [vmem:[%s3284_s27] sm:$0x1] }
 0x1f0   : > { %v1794_v14 = vrot.slane %v1793_v12, 1  ;;  %v1803_v15 = vadd.f32 %v1802_v13, %v1801_v11 }
 0x1f2   : > { %v1795_v17 = vadd.f32 %v1794_v14, %v1793_v12  ;;  %v1804_v18 = vrot.slane %v1803_v15, 1 }
 0x1f4   : > { %v1796_v20 = vadd.f32 %v1795_v17, %v1789_v16  ;;  %v1805_v21 = vadd.f32 %v1804_v18, %v1803_v15 }
 0x1f6   : > { %1797 = vst [vmem:[%s3270_s14] sm:$0x1] %v1796_v20  ;;  %v1806_v22 = vadd.f32 %v1805_v21, %v1798_v19 }
 0x1f8   : > { %1807 = vst [vmem:[%s3284_s27] sm:$0x1] %v1806_v22 }
 0x1f9 PF: > { %s16_s22 = sadd.s32 1, %s3174_s22   ;;  %s4370_s18 = smov %s3166_s20 }
 0x1fa   : > { %p13_p8 = scmp.ge.s32.totalorder %s16_s22, 6   ;;  %s4371_s19 = smov %s3170_s21 }
 0x1fb   : > { %s4372_s20 = smov %s4375_s2  ;;  %s4373_s21 = smov %s4379_s23 }
 0x1fc   :  { %15 = sbr.rel (!%p13_p8) target bundleno = 3 (0x3), region = 109 }

// kernel: cycle_d_sn_forward.15
= control target key start
LH: loop header
LB: loop body
LE: loop exit
PB: predicated region body
PF: predicated region fallthrough
CT: control target
= control target key end

     0   :  { %s2929_s12 = smov 0   ;;  %s2931_s13 = smov 0   ;;  %s4070_s0 = inlined_call_operand.vmem [shape: f32[2,8,8,128], index: 0, kind: input, shape index: {}]   ;;  %s4071_s1 = inlined_call_operand.vmem [shape: f32[16,128,128], index: 1, kind: input, shape index: {}]   ;;  %s4072_s2 = inlined_call_operand.vmem [shape: f32[1,128], index: 2, kind: input, shape index: {}]   ;;  %s4073_s3 = inlined_call_operand.vmem [shape: f32[2,5,5,128], index: 3, kind: output, shape index: {}]  }
   0x1   :  { %s2933_s14 = smov 0   ;;  %s2935_s15 = smov 0  }
   0x2   :  { %s2937_s16 = smov 0  }
   0x3 LB: > { %s22_s2 = sadd.s32 1, %s2897_s14  ;;  %s25_s17 = sadd.s32 1, %s2901_s15  ;;  %s2905_s16 = sphi %s2937_s16, %s13_s16   ;;  %s2901_s15 = sphi %s2935_s15, %s4077_s15   ;;  %s2897_s14 = sphi %s2933_s14, %s4076_s14   ;;  %s2893_s13 = sphi %s2931_s13, %s4075_s13   ;;  %s2889_s12 = sphi %s2929_s12, %s4074_s12  }
   0x4   : > { %p23_p0 = scmp.ge.s32.totalorder %s22_s2, 5  ;;  %p1725_p1 = scmp.ge.s32.totalorder %s2905_s16, 1 }
   0x5   : > { %p151_p2 = scmp.lt.s32.totalorder %s2905_s16, 11 }
   0x6   : > { %s4079_s2 = smov (%p23_p0, %s22_s2), 0  ;;  %s4081_s17 = smov (!%p23_p0, %s25_s17), %s2901_s15 }
   0x7   : > { %p152_p3 = pnand %p1725_p1, %p151_p2  ;;  %p27_p4 = scmp.ge.s32.totalorder %s4081_s17, 2 }
   0x8   : > { %p178_p5 = scmp.lt.s32.totalorder (!%p152_p3), %s2893_s13, 1  ;;  %s1729_s5 = sshll.u32 (!%p152_p3), %s2889_s12, 3 }
   0x9   : > { %s4083_s17 = smov (%p27_p4, %s4081_s17), 0  ;;  %155 = sbr.rel (%p152_p3) target bundleno = 518 (0x206), region = 32 }
   0xa   : > { %p185_p6 = scmp.lt.s32.totalorder (!%p152_p3), %s2889_s12, 4 }
   0xe   : > { %v1745_v0 = vld [vmem:[%s4071_s1 + $0xf8] sm:$0xff]  ;;  %v2907_v2 = vmov 0.0   ;;  %v1744_v3 = vld [vmem:[%s4071_s1 + $0xf0] sm:$0xff]  ;;  %v1743_v5 = vld [vmem:[%s4071_s1 + $0xe8] sm:$0xff]  ;;  %s4085_s13 = smov (!%p178_p5, %s2893_s13), 1  ;;  %vm2908_vm0 = vmmov 0  }
   0xf   : > { %v209_v1 = vld [vmem:[%s4071_s1 + $0x78] sm:$0xff]  ;;  %2260 = vmatprep.subr.mxu0 %v2907_v2  ;;  %2295 = vmatprep.subr.mxu1 %v2907_v2  ;;  %v208_v4 = vld [vmem:[%s4071_s1 + $0x70] sm:$0xff]  ;;  %v207_v6 = vld [vmem:[%s4071_s1 + $0x68] sm:$0xff]  ;;  %s1987_s24 = sshll.u32 %s4085_s13, 6  ;;  %s4087_s12 = smov (!%p185_p6, %s2889_s12), 4 }
  0x10   : > { %2261 = vmatpush3.msra.mxu0 %v1745_v0  ;;  %2296 = vmatpush3.msra.mxu1 %v209_v1  ;;  %v1742_v7 = vld [vmem:[%s4071_s1 + $0xe0] sm:$0xff]  ;;  %v1741_v9 = vld [vmem:[%s4071_s1 + $0xd8] sm:$0xff]  ;;  %v1740_v11 = vld [vmem:[%s4071_s1 + $0xd0] sm:$0xff]  ;;  %s182_s4 = scalar_lea.vmem %s4070_s0, %s1987_s24 }
  0x11   : > { %2262 = vmatprep.subr.mxu0 %v2907_v2  ;;  %2297 = vmatprep.subr.mxu1 %v2907_v2  ;;  %v206_v8 = vld [vmem:[%s4071_s1 + $0x60] sm:$0xff]  ;;  %v205_v10 = vld [vmem:[%s4071_s1 + $0x58] sm:$0xff]  ;;  %v204_v12 = vld [vmem:[%s4071_s1 + $0x50] sm:$0xff]  ;;  %s3090_s20 = scalar_lea.vmem %s182_s4, %s1729_s5 }
  0x12   : > { %2263 = vmatpush3.msra.mxu0 %v1744_v3  ;;  %2298 = vmatpush3.msra.mxu1 %v208_v4  ;;  %v1739_v13 = vld [vmem:[%s4071_s1 + $0xc8] sm:$0xff]  ;;  %v1738_v15 = vld [vmem:[%s4071_s1 + $0xc0] sm:$0xff]  ;;  %v1737_v17 = vld [vmem:[%s4071_s1 + $0xb8] sm:$0xff] }
  0x13   : > { %2264 = vmatprep.subr.mxu0 %v2907_v2  ;;  %2299 = vmatprep.subr.mxu1 %v2907_v2  ;;  %v203_v14 = vld [vmem:[%s4071_s1 + $0x48] sm:$0xff]  ;;  %v202_v16 = vld [vmem:[%s4071_s1 + $0x40] sm:$0xff]  ;;  %v201_v18 = vld [vmem:[%s4071_s1 + $0x38] sm:$0xff] }
  0x14   : > { %2265 = vmatpush3.msra.mxu0 %v1743_v5  ;;  %2300 = vmatpush3.msra.mxu1 %v207_v6  ;;  %v1736_v19 = vld [vmem:[%s4071_s1 + $0xb0] sm:$0xff]  ;;  %v1735_v21 = vld [vmem:[%s4071_s1 + $0xa8] sm:$0xff]  ;;  %v1734_v23 = vld [vmem:[%s4071_s1 + $0xa0] sm:$0xff] }
  0x15   : > { %2266 = vmatprep.subr.mxu0 %v2907_v2  ;;  %2301 = vmatprep.subr.mxu1 %v2907_v2  ;;  %v200_v20 = vld [vmem:[%s4071_s1 + $0x30] sm:$0xff]  ;;  %v199_v22 = vld [vmem:[%s4071_s1 + $0x28] sm:$0xff]  ;;  %v198_v24 = vld [vmem:[%s4071_s1 + $0x20] sm:$0xff] }
  0x16   : > { %2267 = vmatpush3.msra.mxu0 %v1742_v7  ;;  %2302 = vmatpush3.msra.mxu1 %v206_v8  ;;  %v1733_v25 = vld [vmem:[%s4071_s1 + $0x98] sm:$0xff]  ;;  %v1732_v27 = vld [vmem:[%s4071_s1 + $0x90] sm:$0xff]  ;;  %v1731_v29 = vld [vmem:[%s4071_s1 + $0x88] sm:$0xff] }
  0x17   : > { %2268 = vmatprep.subr.mxu0 %v2907_v2  ;;  %2303 = vmatprep.subr.mxu1 %v2907_v2  ;;  %v197_v26 = vld [vmem:[%s4071_s1 + $0x18] sm:$0xff]  ;;  %v196_v28 = vld [vmem:[%s4071_s1 + $0x10] sm:$0xff]  ;;  %v195_v30 = vld [vmem:[%s4071_s1 + $0x8] sm:$0xff] }
  0x18   : > { %2269 = vmatpush3.msra.mxu0 %v1741_v9  ;;  %2304 = vmatpush3.msra.mxu1 %v205_v10  ;;  %v1730_v31 = vld [vmem:[%s4071_s1 + $0x80] sm:$0xff]  ;;  %v1761_v35 = vld [vmem:[%s4071_s1 + $0x178] sm:$0xff]  ;;  %v1760_v37 = vld [vmem:[%s4071_s1 + $0x170] sm:$0xff] }
  0x19   : > { %2270 = vmatprep.subr.mxu0 %v2907_v2  ;;  %2305 = vmatprep.subr.mxu1 %v2907_v2  ;;  %v194_v32 = vld [vmem:[%s4071_s1] sm:$0xff]  ;;  %v1777_v36 = vld [vmem:[%s4071_s1 + $0x1f8] sm:$0xff]  ;;  %v1776_v38 = vld [vmem:[%s4071_s1 + $0x1f0] sm:$0xff] }
  0x1a   : > { %2271 = vmatpush3.msra.mxu0 %v1740_v11  ;;  %2306 = vmatpush3.msra.mxu1 %v204_v12  ;;  %v210_v33 = vld [vmem:[%s3090_s20 + $0x1] sm:$0x1f]  ;;  %v1759_v39 = vld [vmem:[%s4071_s1 + $0x168] sm:$0xff]  ;;  %v1757_v43 = vld [vmem:[%s4071_s1 + $0x158] sm:$0xff] }
  0x1b   : > { %2272 = vmatprep.subr.mxu0 %v2907_v2  ;;  %2307 = vmatprep.subr.mxu1 %v2907_v2  ;;  %v193_v34 = vld [vmem:[%s3090_s20] sm:$0x1f]  ;;  %v1775_v40 = vld [vmem:[%s4071_s1 + $0x1e8] sm:$0xff]  ;;  %v1773_v44 = vld [vmem:[%s4071_s1 + $0x1d8] sm:$0xff] }
  0x1c   : > { %2273 = vmatpush3.msra.mxu0 %v1739_v13  ;;  %2308 = vmatpush3.msra.mxu1 %v203_v14  ;;  %v1758_v41 = vld [vmem:[%s4071_s1 + $0x160] sm:$0xff]  ;;  %v1756_v45 = vld [vmem:[%s4071_s1 + $0x150] sm:$0xff]  ;;  %v1755_v47 = vld [vmem:[%s4071_s1 + $0x148] sm:$0xff] }
  0x1d   : > { %2274 = vmatprep.subr.mxu0 %v2907_v2  ;;  %2309 = vmatprep.subr.mxu1 %v2907_v2  ;;  %v1774_v42 = vld [vmem:[%s4071_s1 + $0x1e0] sm:$0xff]  ;;  %v1772_v46 = vld [vmem:[%s4071_s1 + $0x1d0] sm:$0xff]  ;;  %v1771_v48 = vld [vmem:[%s4071_s1 + $0x1c8] sm:$0xff] }
  0x1e   : > { %2275 = vmatpush3.msra.mxu0 %v1738_v15  ;;  %2310 = vmatpush3.msra.mxu1 %v202_v16  ;;  %v1754_v49 = vld [vmem:[%s4071_s1 + $0x140] sm:$0xff]  ;;  %v1753_v51 = vld [vmem:[%s4071_s1 + $0x138] sm:$0xff]  ;;  %v1752_v53 = vld [vmem:[%s4071_s1 + $0x130] sm:$0xff] }
  0x1f   : > { %2276 = vmatprep.subr.mxu0 %v2907_v2  ;;  %2311 = vmatprep.subr.mxu1 %v2907_v2  ;;  %v1770_v50 = vld [vmem:[%s4071_s1 + $0x1c0] sm:$0xff]  ;;  %v1769_v52 = vld [vmem:[%s4071_s1 + $0x1b8] sm:$0xff]  ;;  %v1768_v54 = vld [vmem:[%s4071_s1 + $0x1b0] sm:$0xff] }
  0x20   : > { %2277 = vmatpush3.msra.mxu0 %v1737_v17  ;;  %2312 = vmatpush3.msra.mxu1 %v201_v18  ;;  %v1751_v55 = vld [vmem:[%s4071_s1 + $0x128] sm:$0xff]  ;;  %v1750_v57 = vld [vmem:[%s4071_s1 + $0x120] sm:$0xff]  ;;  %v1749_v59 = vld [vmem:[%s4071_s1 + $0x118] sm:$0xff] }
  0x21   : > { %2278 = vmatprep.subr.mxu0 %v2907_v2  ;;  %2313 = vmatprep.subr.mxu1 %v2907_v2  ;;  %v1767_v56 = vld [vmem:[%s4071_s1 + $0x1a8] sm:$0xff]  ;;  %v1766_v58 = vld [vmem:[%s4071_s1 + $0x1a0] sm:$0xff]  ;;  %v1765_v60 = vld [vmem:[%s4071_s1 + $0x198] sm:$0xff] }
  0x22   : > { %2279 = vmatpush3.msra.mxu0 %v1736_v19  ;;  %2314 = vmatpush3.msra.mxu1 %v200_v20  ;;  %v1748_v61 = vld [vmem:[%s4071_s1 + $0x110] sm:$0xff]  ;;  %v1747_v63 = vld [vmem:[%s4071_s1 + $0x108] sm:$0xff]  ;;  %v1746_v1 = vld [vmem:[%s4071_s1 + $0x100] sm:$0xff] }
  0x23   : > { %2280 = vmatprep.subr.mxu0 %v2907_v2  ;;  %2315 = vmatprep.subr.mxu1 %v2907_v2  ;;  %v1764_v62 = vld [vmem:[%s4071_s1 + $0x190] sm:$0xff]  ;;  %v1763_v0 = vld [vmem:[%s4071_s1 + $0x188] sm:$0xff]  ;;  %v1762_v3 = vld [vmem:[%s4071_s1 + $0x180] sm:$0xff] }
  0x24   : > { %2281 = vmatpush3.msra.mxu0 %v1735_v21  ;;  %2316 = vmatpush3.msra.mxu1 %v199_v22  ;;  %v368_v4 = vld [vmem:[%s3090_s20 + $0x2] sm:$0x1f]  ;;  %v1795_v6 = vld [vmem:[%s4071_s1 + $0x278] sm:$0xff]  ;;  %v1794_v8 = vld [vmem:[%s4071_s1 + $0x270] sm:$0xff] }
  0x25   : > { %2282 = vmatprep.subr.mxu0 %v2907_v2  ;;  %2317 = vmatprep.subr.mxu1 %v2907_v2  ;;  %v457_v5 = vld [vmem:[%s3090_s20 + $0x3] sm:$0x1f]  ;;  %v1812_v7 = vld [vmem:[%s4071_s1 + $0x2f8] sm:$0xff]  ;;  %v1811_v9 = vld [vmem:[%s4071_s1 + $0x2f0] sm:$0xff] }
  0x26   : > { %2283 = vmatpush3.msra.mxu0 %v1734_v23  ;;  %2318 = vmatpush3.msra.mxu1 %v198_v24  ;;  %v1793_v10 = vld [vmem:[%s4071_s1 + $0x268] sm:$0xff]  ;;  %v1792_v12 = vld [vmem:[%s4071_s1 + $0x260] sm:$0xff]  ;;  %v1791_v14 = vld [vmem:[%s4071_s1 + $0x258] sm:$0xff] }
  0x27   : > { %2284 = vmatprep.subr.mxu0 %v2907_v2  ;;  %2319 = vmatprep.subr.mxu1 %v2907_v2  ;;  %v1810_v11 = vld [vmem:[%s4071_s1 + $0x2e8] sm:$0xff]  ;;  %v1809_v13 = vld [vmem:[%s4071_s1 + $0x2e0] sm:$0xff]  ;;  %v1808_v15 = vld [vmem:[%s4071_s1 + $0x2d8] sm:$0xff] }
  0x28   : > { %2285 = vmatpush3.msra.mxu0 %v1733_v25  ;;  %2320 = vmatpush3.msra.mxu1 %v197_v26  ;;  %v1790_v16 = vld [vmem:[%s4071_s1 + $0x250] sm:$0xff]  ;;  %v1789_v18 = vld [vmem:[%s4071_s1 + $0x248] sm:$0xff]  ;;  %v1788_v20 = vld [vmem:[%s4071_s1 + $0x240] sm:$0xff] }
  0x29   : > { %2286 = vmatprep.subr.mxu0 %v2907_v2  ;;  %2321 = vmatprep.subr.mxu1 %v2907_v2  ;;  %v1807_v17 = vld [vmem:[%s4071_s1 + $0x2d0] sm:$0xff]  ;;  %v1806_v19 = vld [vmem:[%s4071_s1 + $0x2c8] sm:$0xff]  ;;  %v1805_v21 = vld [vmem:[%s4071_s1 + $0x2c0] sm:$0xff] }
  0x2a   : > { %2287 = vmatpush3.msra.mxu0 %v1732_v27  ;;  %2322 = vmatpush3.msra.mxu1 %v196_v28  ;;  %v1787_v22 = vld [vmem:[%s4071_s1 + $0x238] sm:$0xff]  ;;  %v1786_v24 = vld [vmem:[%s4071_s1 + $0x230] sm:$0xff]  ;;  %v1785_v26 = vld [vmem:[%s4071_s1 + $0x228] sm:$0xff] }
  0x2b   : > { %2288 = vmatprep.subr.mxu0 %v2907_v2  ;;  %2323 = vmatprep.subr.mxu1 %v2907_v2  ;;  %v1804_v23 = vld [vmem:[%s4071_s1 + $0x2b8] sm:$0xff]  ;;  %v1803_v25 = vld [vmem:[%s4071_s1 + $0x2b0] sm:$0xff]  ;;  %v1802_v27 = vld [vmem:[%s4071_s1 + $0x2a8] sm:$0xff] }
  0x2c   : > { %2289 = vmatpush3.msra.mxu0 %v1731_v29  ;;  %2324 = vmatpush3.msra.mxu1 %v195_v30  ;;  %v1784_v28 = vld [vmem:[%s4071_s1 + $0x220] sm:$0xff]  ;;  %v1783_v30 = vld [vmem:[%s4071_s1 + $0x218] sm:$0xff] }
  0x2d   : > { %2290 = vmatprep.subr.mxu0 %v2907_v2  ;;  %2325 = vmatprep.subr.mxu1 %v2907_v2  ;;  %v1801_v29 = vld [vmem:[%s4071_s1 + $0x2a0] sm:$0xff] }
  0x2e   : > { %2291 = vmatpush3.msra.mxu0 %v1730_v31  ;;  %2292 = vmatprep.mubr.msk.f32.mxu0 %vm2908_vm0, %v2907_v2  ;;  %v1800_v31 = vld [vmem:[%s4071_s1 + $0x298] sm:$0xff] }
  0x2f   : > { %2326 = vmatpush3.msra.mxu1 %v194_v32  ;;  %2293 = vmatmul.mubr.f32.vlgmr.msra.gmra.mxu0 %v210_v33  ;;  %v1782_v32 = vld [vmem:[%s4071_s1 + $0x210] sm:$0xff] }
  0x30   : > { %2327 = vmatprep.mubr.msk.f32.mxu1 %vm2908_vm0, %v2907_v2  ;;  %2330 = vmatprep.subr.mxu0 %v2907_v2  ;;  %v1799_v33 = vld [vmem:[%s4071_s1 + $0x290] sm:$0xff] }
  0x31   : > { %2365 = vmatprep.subr.mxu1 %v2907_v2  ;;  %2328 = vmatmul.mubr.f32.vlgmr.msra.gmra.mxu1 %v193_v34  ;;  %v1781_v34 = vld [vmem:[%s4071_s1 + $0x208] sm:$0xff] }
  0x32   : > { %2331 = vmatpush3.msra.mxu0 %v1761_v35  ;;  %2366 = vmatpush3.msra.mxu1 %v1777_v36  ;;  %v1798_v35 = vld [vmem:[%s4071_s1 + $0x288] sm:$0xff]  ;;  %v1780_v36 = vld [vmem:[%s4071_s1 + $0x200] sm:$0xff] }
  0x33   : > { %2332 = vmatprep.subr.mxu0 %v2907_v2  ;;  %2367 = vmatprep.subr.mxu1 %v2907_v2 }
  0x34   : > { %2333 = vmatpush3.msra.mxu0 %v1760_v37  ;;  %2368 = vmatpush3.msra.mxu1 %v1776_v38  ;;  %v1797_v37 = vld [vmem:[%s4071_s1 + $0x280] sm:$0xff]  ;;  %v1779_v38 = vld [vmem:[%s3090_s20 + $0x8] sm:$0x1f] }
  0x35   : > { %2334 = vmatprep.subr.mxu0 %v2907_v2  ;;  %2369 = vmatprep.subr.mxu1 %v2907_v2 }
  0x36   : > { %2335 = vmatpush3.msra.mxu0 %v1759_v39  ;;  %2370 = vmatpush3.msra.mxu1 %v1775_v40  ;;  %v1796_v39 = vld [vmem:[%s3090_s20 + $0x9] sm:$0x1f]  ;;  %v1829_v40 = vld [vmem:[%s4071_s1 + $0x378] sm:$0xff] }
  0x37   : > { %2336 = vmatprep.subr.mxu0 %v2907_v2  ;;  %2371 = vmatprep.subr.mxu1 %v2907_v2 }
  0x38   : > { %2337 = vmatpush3.msra.mxu0 %v1758_v41  ;;  %2372 = vmatpush3.msra.mxu1 %v1774_v42  ;;  %v1846_v41 = vld [vmem:[%s4071_s1 + $0x3f8] sm:$0xff]  ;;  %v1828_v42 = vld [vmem:[%s4071_s1 + $0x370] sm:$0xff] }
  0x39   : > { %2338 = vmatprep.subr.mxu0 %v2907_v2  ;;  %2373 = vmatprep.subr.mxu1 %v2907_v2 }
  0x3a   : > { %2339 = vmatpush3.msra.mxu0 %v1757_v43  ;;  %2374 = vmatpush3.msra.mxu1 %v1773_v44  ;;  %v1845_v43 = vld [vmem:[%s4071_s1 + $0x3f0] sm:$0xff]  ;;  %v1827_v44 = vld [vmem:[%s4071_s1 + $0x368] sm:$0xff] }
  0x3b   : > { %2340 = vmatprep.subr.mxu0 %v2907_v2  ;;  %2375 = vmatprep.subr.mxu1 %v2907_v2 }
  0x3c   : > { %2341 = vmatpush3.msra.mxu0 %v1756_v45  ;;  %2376 = vmatpush3.msra.mxu1 %v1772_v46  ;;  %v1844_v45 = vld [vmem:[%s4071_s1 + $0x3e8] sm:$0xff]  ;;  %v1826_v46 = vld [vmem:[%s4071_s1 + $0x360] sm:$0xff] }
  0x3d   : > { %2342 = vmatprep.subr.mxu0 %v2907_v2  ;;  %2377 = vmatprep.subr.mxu1 %v2907_v2 }
  0x3e   : > { %2343 = vmatpush3.msra.mxu0 %v1755_v47  ;;  %2378 = vmatpush3.msra.mxu1 %v1771_v48  ;;  %v1843_v47 = vld [vmem:[%s4071_s1 + $0x3e0] sm:$0xff]  ;;  %v1825_v48 = vld [vmem:[%s4071_s1 + $0x358] sm:$0xff] }
  0x3f   : > { %2344 = vmatprep.subr.mxu0 %v2907_v2  ;;  %2379 = vmatprep.subr.mxu1 %v2907_v2 }
  0x40   : > { %2345 = vmatpush3.msra.mxu0 %v1754_v49  ;;  %2380 = vmatpush3.msra.mxu1 %v1770_v50  ;;  %v1842_v49 = vld [vmem:[%s4071_s1 + $0x3d8] sm:$0xff]  ;;  %v1824_v50 = vld [vmem:[%s4071_s1 + $0x350] sm:$0xff] }
  0x41   : > { %2346 = vmatprep.subr.mxu0 %v2907_v2  ;;  %2381 = vmatprep.subr.mxu1 %v2907_v2 }
  0x42   : > { %2347 = vmatpush3.msra.mxu0 %v1753_v51  ;;  %2382 = vmatpush3.msra.mxu1 %v1769_v52  ;;  %v1841_v51 = vld [vmem:[%s4071_s1 + $0x3d0] sm:$0xff]  ;;  %v1823_v52 = vld [vmem:[%s4071_s1 + $0x348] sm:$0xff] }
  0x43   : > { %2348 = vmatprep.subr.mxu0 %v2907_v2  ;;  %2383 = vmatprep.subr.mxu1 %v2907_v2 }
  0x44   : > { %2349 = vmatpush3.msra.mxu0 %v1752_v53  ;;  %2384 = vmatpush3.msra.mxu1 %v1768_v54  ;;  %v1840_v53 = vld [vmem:[%s4071_s1 + $0x3c8] sm:$0xff]  ;;  %v1822_v54 = vld [vmem:[%s4071_s1 + $0x340] sm:$0xff] }
  0x45   : > { %2350 = vmatprep.subr.mxu0 %v2907_v2  ;;  %2385 = vmatprep.subr.mxu1 %v2907_v2 }
  0x46   : > { %2351 = vmatpush3.msra.mxu0 %v1751_v55  ;;  %2386 = vmatpush3.msra.mxu1 %v1767_v56  ;;  %v1839_v55 = vld [vmem:[%s4071_s1 + $0x3c0] sm:$0xff]  ;;  %v1821_v56 = vld [vmem:[%s4071_s1 + $0x338] sm:$0xff] }
  0x47   : > { %2352 = vmatprep.subr.mxu0 %v2907_v2  ;;  %2387 = vmatprep.subr.mxu1 %v2907_v2 }
  0x48   : > { %2353 = vmatpush3.msra.mxu0 %v1750_v57  ;;  %2388 = vmatpush3.msra.mxu1 %v1766_v58  ;;  %v1838_v57 = vld [vmem:[%s4071_s1 + $0x3b8] sm:$0xff]  ;;  %v1820_v58 = vld [vmem:[%s4071_s1 + $0x330] sm:$0xff] }
  0x49   : > { %2354 = vmatprep.subr.mxu0 %v2907_v2  ;;  %2389 = vmatprep.subr.mxu1 %v2907_v2 }
  0x4a   : > { %2355 = vmatpush3.msra.mxu0 %v1749_v59  ;;  %2390 = vmatpush3.msra.mxu1 %v1765_v60  ;;  %v1837_v59 = vld [vmem:[%s4071_s1 + $0x3b0] sm:$0xff]  ;;  %v1819_v60 = vld [vmem:[%s4071_s1 + $0x328] sm:$0xff] }
  0x4b   : > { %2356 = vmatprep.subr.mxu0 %v2907_v2  ;;  %2391 = vmatprep.subr.mxu1 %v2907_v2 }
  0x4c   : > { %2357 = vmatpush3.msra.mxu0 %v1748_v61  ;;  %2392 = vmatpush3.msra.mxu1 %v1764_v62  ;;  %v1836_v61 = vld [vmem:[%s4071_s1 + $0x3a8] sm:$0xff]  ;;  %v1818_v62 = vld [vmem:[%s4071_s1 + $0x320] sm:$0xff] }
  0x4d   : > { %2358 = vmatprep.subr.mxu0 %v2907_v2  ;;  %2393 = vmatprep.subr.mxu1 %v2907_v2 }
  0x4e   : > { %2359 = vmatpush3.msra.mxu0 %v1747_v63  ;;  %2394 = vmatpush3.msra.mxu1 %v1763_v0  ;;  %v1835_v63 = vld [vmem:[%s4071_s1 + $0x3a0] sm:$0xff]  ;;  %v1817_v0 = vld [vmem:[%s4071_s1 + $0x318] sm:$0xff] }
  0x4f   : > { %2360 = vmatprep.subr.mxu0 %v2907_v2  ;;  %2395 = vmatprep.subr.mxu1 %v2907_v2 }
  0x50   : > { %2361 = vmatpush3.msra.mxu0 %v1746_v1  ;;  %2362 = vmatprep.mubr.msk.f32.mxu0 %vm2908_vm0, %v2907_v2  ;;  %v1834_v1 = vld [vmem:[%s4071_s1 + $0x398] sm:$0xff] }
  0x51   : > { %2396 = vmatpush3.msra.mxu1 %v1762_v3  ;;  %2363 = vmatmul.mubr.f32.vlgmr.msra.gmra.mxu0 %v368_v4  ;;  %v1816_v3 = vld [vmem:[%s4071_s1 + $0x310] sm:$0xff] }
  0x52   : > { %2397 = vmatprep.mubr.msk.f32.mxu1 %vm2908_vm0, %v2907_v2  ;;  %2400 = vmatprep.subr.mxu0 %v2907_v2  ;;  %v1833_v4 = vld [vmem:[%s4071_s1 + $0x390] sm:$0xff] }
  0x53   : > { %2435 = vmatprep.subr.mxu1 %v2907_v2  ;;  %2398 = vmatmul.mubr.f32.vlgmr.msra.gmra.mxu1 %v457_v5  ;;  %v1815_v5 = vld [vmem:[%s4071_s1 + $0x308] sm:$0xff] }
  0x54   : > { %2401 = vmatpush3.msra.mxu0 %v1795_v6  ;;  %2436 = vmatpush3.msra.mxu1 %v1812_v7  ;;  %v1832_v6 = vld [vmem:[%s4071_s1 + $0x388] sm:$0xff]  ;;  %v1814_v7 = vld [vmem:[%s4071_s1 + $0x300] sm:$0xff] }
  0x55   : > { %2402 = vmatprep.subr.mxu0 %v2907_v2  ;;  %2437 = vmatprep.subr.mxu1 %v2907_v2 }
  0x56   : > { %2403 = vmatpush3.msra.mxu0 %v1794_v8  ;;  %2438 = vmatpush3.msra.mxu1 %v1811_v9  ;;  %v1831_v8 = vld [vmem:[%s4071_s1 + $0x380] sm:$0xff]  ;;  %v1813_v9 = vld [vmem:[%s3090_s20 + $0xa] sm:$0x1f] }
  0x57   : > { %2404 = vmatprep.subr.mxu0 %v2907_v2  ;;  %2439 = vmatprep.subr.mxu1 %v2907_v2 }
  0x58   : > { %2405 = vmatpush3.msra.mxu0 %v1793_v10  ;;  %2440 = vmatpush3.msra.mxu1 %v1810_v11  ;;  %v1830_v10 = vld [vmem:[%s3090_s20 + $0xb] sm:$0x1f]  ;;  %v1864_v11 = vld [vmem:[%s4071_s1 + $0x478] sm:$0xff] }
  0x59   : > { %2406 = vmatprep.subr.mxu0 %v2907_v2  ;;  %2441 = vmatprep.subr.mxu1 %v2907_v2 }
  0x5a   : > { %2407 = vmatpush3.msra.mxu0 %v1792_v12  ;;  %2442 = vmatpush3.msra.mxu1 %v1809_v13  ;;  %v1881_v12 = vld [vmem:[%s4071_s1 + $0x4f8] sm:$0xff]  ;;  %v1863_v13 = vld [vmem:[%s4071_s1 + $0x470] sm:$0xff] }
  0x5b   : > { %2408 = vmatprep.subr.mxu0 %v2907_v2  ;;  %2443 = vmatprep.subr.mxu1 %v2907_v2 }
  0x5c   : > { %2409 = vmatpush3.msra.mxu0 %v1791_v14  ;;  %2444 = vmatpush3.msra.mxu1 %v1808_v15  ;;  %v1880_v14 = vld [vmem:[%s4071_s1 + $0x4f0] sm:$0xff]  ;;  %v1862_v15 = vld [vmem:[%s4071_s1 + $0x468] sm:$0xff] }
  0x5d   : > { %2410 = vmatprep.subr.mxu0 %v2907_v2  ;;  %2445 = vmatprep.subr.mxu1 %v2907_v2 }
  0x5e   : > { %2411 = vmatpush3.msra.mxu0 %v1790_v16  ;;  %2446 = vmatpush3.msra.mxu1 %v1807_v17  ;;  %v1879_v16 = vld [vmem:[%s4071_s1 + $0x4e8] sm:$0xff]  ;;  %v1861_v17 = vld [vmem:[%s4071_s1 + $0x460] sm:$0xff] }
  0x5f   : > { %2412 = vmatprep.subr.mxu0 %v2907_v2  ;;  %2447 = vmatprep.subr.mxu1 %v2907_v2 }
  0x60   : > { %2413 = vmatpush3.msra.mxu0 %v1789_v18  ;;  %2448 = vmatpush3.msra.mxu1 %v1806_v19  ;;  %v1878_v18 = vld [vmem:[%s4071_s1 + $0x4e0] sm:$0xff]  ;;  %v1860_v19 = vld [vmem:[%s4071_s1 + $0x458] sm:$0xff] }
  0x61   : > { %2414 = vmatprep.subr.mxu0 %v2907_v2  ;;  %2449 = vmatprep.subr.mxu1 %v2907_v2 }
  0x62   : > { %2415 = vmatpush3.msra.mxu0 %v1788_v20  ;;  %2450 = vmatpush3.msra.mxu1 %v1805_v21  ;;  %v1877_v20 = vld [vmem:[%s4071_s1 + $0x4d8] sm:$0xff]  ;;  %v1859_v21 = vld [vmem:[%s4071_s1 + $0x450] sm:$0xff] }
  0x63   : > { %2416 = vmatprep.subr.mxu0 %v2907_v2  ;;  %2451 = vmatprep.subr.mxu1 %v2907_v2 }
  0x64   : > { %2417 = vmatpush3.msra.mxu0 %v1787_v22  ;;  %2452 = vmatpush3.msra.mxu1 %v1804_v23  ;;  %v1876_v22 = vld [vmem:[%s4071_s1 + $0x4d0] sm:$0xff]  ;;  %v1858_v23 = vld [vmem:[%s4071_s1 + $0x448] sm:$0xff] }
  0x65   : > { %2418 = vmatprep.subr.mxu0 %v2907_v2  ;;  %2453 = vmatprep.subr.mxu1 %v2907_v2 }
  0x66   : > { %2419 = vmatpush3.msra.mxu0 %v1786_v24  ;;  %2454 = vmatpush3.msra.mxu1 %v1803_v25  ;;  %v1875_v24 = vld [vmem:[%s4071_s1 + $0x4c8] sm:$0xff]  ;;  %v1857_v25 = vld [vmem:[%s4071_s1 + $0x440] sm:$0xff] }
  0x67   : > { %2420 = vmatprep.subr.mxu0 %v2907_v2  ;;  %2455 = vmatprep.subr.mxu1 %v2907_v2 }
  0x68   : > { %2421 = vmatpush3.msra.mxu0 %v1785_v26  ;;  %2456 = vmatpush3.msra.mxu1 %v1802_v27  ;;  %v1874_v26 = vld [vmem:[%s4071_s1 + $0x4c0] sm:$0xff]  ;;  %v1856_v27 = vld [vmem:[%s4071_s1 + $0x438] sm:$0xff] }
  0x69   : > { %2422 = vmatprep.subr.mxu0 %v2907_v2  ;;  %2457 = vmatprep.subr.mxu1 %v2907_v2 }
  0x6a   : > { %2423 = vmatpush3.msra.mxu0 %v1784_v28  ;;  %2458 = vmatpush3.msra.mxu1 %v1801_v29  ;;  %v1873_v28 = vld [vmem:[%s4071_s1 + $0x4b8] sm:$0xff]  ;;  %v1855_v29 = vld [vmem:[%s4071_s1 + $0x430] sm:$0xff] }
  0x6b   : > { %2424 = vmatprep.subr.mxu0 %v2907_v2  ;;  %2459 = vmatprep.subr.mxu1 %v2907_v2 }
  0x6c   : > { %2425 = vmatpush3.msra.mxu0 %v1783_v30  ;;  %2460 = vmatpush3.msra.mxu1 %v1800_v31  ;;  %v1872_v30 = vld [vmem:[%s4071_s1 + $0x4b0] sm:$0xff]  ;;  %v1854_v31 = vld [vmem:[%s4071_s1 + $0x428] sm:$0xff] }
  0x6d   : > { %2426 = vmatprep.subr.mxu0 %v2907_v2  ;;  %2461 = vmatprep.subr.mxu1 %v2907_v2 }
  0x6e   : > { %2427 = vmatpush3.msra.mxu0 %v1782_v32  ;;  %2462 = vmatpush3.msra.mxu1 %v1799_v33  ;;  %v1871_v32 = vld [vmem:[%s4071_s1 + $0x4a8] sm:$0xff]  ;;  %v1853_v33 = vld [vmem:[%s4071_s1 + $0x420] sm:$0xff] }
  0x6f   : > { %2428 = vmatprep.subr.mxu0 %v2907_v2  ;;  %2463 = vmatprep.subr.mxu1 %v2907_v2 }
  0x70   : > { %2429 = vmatpush3.msra.mxu0 %v1781_v34  ;;  %2464 = vmatpush3.msra.mxu1 %v1798_v35  ;;  %v1870_v34 = vld [vmem:[%s4071_s1 + $0x4a0] sm:$0xff]  ;;  %v1852_v35 = vld [vmem:[%s4071_s1 + $0x418] sm:$0xff] }
  0x71   : > { %2430 = vmatprep.subr.mxu0 %v2907_v2  ;;  %2465 = vmatprep.subr.mxu1 %v2907_v2 }
  0x72   : > { %2431 = vmatpush3.msra.mxu0 %v1780_v36  ;;  %2432 = vmatprep.mubr.msk.f32.mxu0 %vm2908_vm0, %v2907_v2  ;;  %v1869_v36 = vld [vmem:[%s4071_s1 + $0x498] sm:$0xff] }
  0x73   : > { %2466 = vmatpush3.msra.mxu1 %v1797_v37  ;;  %2433 = vmatmul.mubr.f32.vlgmr.msra.gmra.mxu0 %v1779_v38  ;;  %v1851_v37 = vld [vmem:[%s4071_s1 + $0x410] sm:$0xff] }
  0x74   : > { %2467 = vmatprep.mubr.msk.f32.mxu1 %vm2908_vm0, %v2907_v2  ;;  %2470 = vmatprep.subr.mxu0 %v2907_v2  ;;  %v1868_v38 = vld [vmem:[%s4071_s1 + $0x490] sm:$0xff] }
  0x75   : > { %2505 = vmatprep.subr.mxu1 %v2907_v2  ;;  %2468 = vmatmul.mubr.f32.vlgmr.msra.gmra.mxu1 %v1796_v39  ;;  %v1850_v39 = vld [vmem:[%s4071_s1 + $0x408] sm:$0xff] }
  0x76   : > { %2471 = vmatpush3.msra.mxu0 %v1829_v40  ;;  %2506 = vmatpush3.msra.mxu1 %v1846_v41  ;;  %v1867_v40 = vld [vmem:[%s4071_s1 + $0x488] sm:$0xff]  ;;  %v1849_v41 = vld [vmem:[%s4071_s1 + $0x400] sm:$0xff] }
  0x77   : > { %2472 = vmatprep.subr.mxu0 %v2907_v2  ;;  %2507 = vmatprep.subr.mxu1 %v2907_v2 }
  0x78   : > { %2473 = vmatpush3.msra.mxu0 %v1828_v42  ;;  %2508 = vmatpush3.msra.mxu1 %v1845_v43  ;;  %v1866_v42 = vld [vmem:[%s4071_s1 + $0x480] sm:$0xff]  ;;  %v1848_v43 = vld [vmem:[%s3090_s20 + $0x10] sm:$0x1f] }
  0x79   : > { %2474 = vmatprep.subr.mxu0 %v2907_v2  ;;  %2509 = vmatprep.subr.mxu1 %v2907_v2 }
  0x7a   : > { %2475 = vmatpush3.msra.mxu0 %v1827_v44  ;;  %2510 = vmatpush3.msra.mxu1 %v1844_v45  ;;  %v1865_v44 = vld [vmem:[%s3090_s20 + $0x11] sm:$0x1f]  ;;  %v1898_v45 = vld [vmem:[%s4071_s1 + $0x578] sm:$0xff] }
  0x7b   : > { %2476 = vmatprep.subr.mxu0 %v2907_v2  ;;  %2511 = vmatprep.subr.mxu1 %v2907_v2 }
  0x7c   : > { %2477 = vmatpush3.msra.mxu0 %v1826_v46  ;;  %2512 = vmatpush3.msra.mxu1 %v1843_v47  ;;  %v1915_v46 = vld [vmem:[%s4071_s1 + $0x5f8] sm:$0xff]  ;;  %v1897_v47 = vld [vmem:[%s4071_s1 + $0x570] sm:$0xff] }
  0x7d   : > { %2478 = vmatprep.subr.mxu0 %v2907_v2  ;;  %2513 = vmatprep.subr.mxu1 %v2907_v2 }
  0x7e   : > { %2479 = vmatpush3.msra.mxu0 %v1825_v48  ;;  %2514 = vmatpush3.msra.mxu1 %v1842_v49  ;;  %v1914_v48 = vld [vmem:[%s4071_s1 + $0x5f0] sm:$0xff]  ;;  %v1896_v49 = vld [vmem:[%s4071_s1 + $0x568] sm:$0xff] }
  0x7f   : > { %2480 = vmatprep.subr.mxu0 %v2907_v2  ;;  %2515 = vmatprep.subr.mxu1 %v2907_v2 }
  0x80   : > { %2481 = vmatpush3.msra.mxu0 %v1824_v50  ;;  %2516 = vmatpush3.msra.mxu1 %v1841_v51  ;;  %v1913_v50 = vld [vmem:[%s4071_s1 + $0x5e8] sm:$0xff]  ;;  %v1895_v51 = vld [vmem:[%s4071_s1 + $0x560] sm:$0xff] }
  0x81   : > { %2482 = vmatprep.subr.mxu0 %v2907_v2  ;;  %2517 = vmatprep.subr.mxu1 %v2907_v2 }
  0x82   : > { %2483 = vmatpush3.msra.mxu0 %v1823_v52  ;;  %2518 = vmatpush3.msra.mxu1 %v1840_v53  ;;  %v1912_v52 = vld [vmem:[%s4071_s1 + $0x5e0] sm:$0xff]  ;;  %v1894_v53 = vld [vmem:[%s4071_s1 + $0x558] sm:$0xff] }
  0x83   : > { %2484 = vmatprep.subr.mxu0 %v2907_v2  ;;  %2519 = vmatprep.subr.mxu1 %v2907_v2 }
  0x84   : > { %2485 = vmatpush3.msra.mxu0 %v1822_v54  ;;  %2520 = vmatpush3.msra.mxu1 %v1839_v55  ;;  %v1911_v54 = vld [vmem:[%s4071_s1 + $0x5d8] sm:$0xff]  ;;  %v1893_v55 = vld [vmem:[%s4071_s1 + $0x550] sm:$0xff] }
  0x85   : > { %2486 = vmatprep.subr.mxu0 %v2907_v2  ;;  %2521 = vmatprep.subr.mxu1 %v2907_v2 }
  0x86   : > { %2487 = vmatpush3.msra.mxu0 %v1821_v56  ;;  %2522 = vmatpush3.msra.mxu1 %v1838_v57  ;;  %v1910_v56 = vld [vmem:[%s4071_s1 + $0x5d0] sm:$0xff]  ;;  %v1892_v57 = vld [vmem:[%s4071_s1 + $0x548] sm:$0xff] }
  0x87   : > { %2488 = vmatprep.subr.mxu0 %v2907_v2  ;;  %2523 = vmatprep.subr.mxu1 %v2907_v2 }
  0x88   : > { %2489 = vmatpush3.msra.mxu0 %v1820_v58  ;;  %2524 = vmatpush3.msra.mxu1 %v1837_v59  ;;  %v1909_v58 = vld [vmem:[%s4071_s1 + $0x5c8] sm:$0xff]  ;;  %v1891_v59 = vld [vmem:[%s4071_s1 + $0x540] sm:$0xff] }
  0x89   : > { %2490 = vmatprep.subr.mxu0 %v2907_v2  ;;  %2525 = vmatprep.subr.mxu1 %v2907_v2 }
  0x8a   : > { %2491 = vmatpush3.msra.mxu0 %v1819_v60  ;;  %2526 = vmatpush3.msra.mxu1 %v1836_v61  ;;  %v1908_v60 = vld [vmem:[%s4071_s1 + $0x5c0] sm:$0xff]  ;;  %v1890_v61 = vld [vmem:[%s4071_s1 + $0x538] sm:$0xff] }
  0x8b   : > { %2492 = vmatprep.subr.mxu0 %v2907_v2  ;;  %2527 = vmatprep.subr.mxu1 %v2907_v2 }
  0x8c   : > { %2493 = vmatpush3.msra.mxu0 %v1818_v62  ;;  %2528 = vmatpush3.msra.mxu1 %v1835_v63  ;;  %v1907_v62 = vld [vmem:[%s4071_s1 + $0x5b8] sm:$0xff]  ;;  %v1889_v63 = vld [vmem:[%s4071_s1 + $0x530] sm:$0xff] }
  0x8d   : > { %2494 = vmatprep.subr.mxu0 %v2907_v2  ;;  %2529 = vmatprep.subr.mxu1 %v2907_v2 }
  0x8e   : > { %2495 = vmatpush3.msra.mxu0 %v1817_v0  ;;  %2530 = vmatpush3.msra.mxu1 %v1834_v1  ;;  %v1906_v0 = vld [vmem:[%s4071_s1 + $0x5b0] sm:$0xff]  ;;  %v1888_v1 = vld [vmem:[%s4071_s1 + $0x528] sm:$0xff] }
  0x8f   : > { %2496 = vmatprep.subr.mxu0 %v2907_v2  ;;  %2531 = vmatprep.subr.mxu1 %v2907_v2 }
  0x90   : > { %2497 = vmatpush3.msra.mxu0 %v1816_v3  ;;  %2532 = vmatpush3.msra.mxu1 %v1833_v4  ;;  %v1905_v3 = vld [vmem:[%s4071_s1 + $0x5a8] sm:$0xff]  ;;  %v1887_v4 = vld [vmem:[%s4071_s1 + $0x520] sm:$0xff] }
  0x91   : > { %2498 = vmatprep.subr.mxu0 %v2907_v2  ;;  %2533 = vmatprep.subr.mxu1 %v2907_v2 }
  0x92   : > { %2499 = vmatpush3.msra.mxu0 %v1815_v5  ;;  %2534 = vmatpush3.msra.mxu1 %v1832_v6  ;;  %v1904_v5 = vld [vmem:[%s4071_s1 + $0x5a0] sm:$0xff]  ;;  %v1886_v6 = vld [vmem:[%s4071_s1 + $0x518] sm:$0xff] }
  0x93   : > { %2500 = vmatprep.subr.mxu0 %v2907_v2  ;;  %2535 = vmatprep.subr.mxu1 %v2907_v2 }
  0x94   : > { %2501 = vmatpush3.msra.mxu0 %v1814_v7  ;;  %2502 = vmatprep.mubr.msk.f32.mxu0 %vm2908_vm0, %v2907_v2  ;;  %v1903_v7 = vld [vmem:[%s4071_s1 + $0x598] sm:$0xff] }
  0x95   : > { %2536 = vmatpush3.msra.mxu1 %v1831_v8  ;;  %2503 = vmatmul.mubr.f32.vlgmr.msra.gmra.mxu0 %v1813_v9  ;;  %v1885_v8 = vld [vmem:[%s4071_s1 + $0x510] sm:$0xff] }
  0x96   : > { %2537 = vmatprep.mubr.msk.f32.mxu1 %vm2908_vm0, %v2907_v2  ;;  %2540 = vmatprep.subr.mxu0 %v2907_v2  ;;  %v1902_v9 = vld [vmem:[%s4071_s1 + $0x590] sm:$0xff] }
  0x97   : > { %2575 = vmatprep.subr.mxu1 %v2907_v2  ;;  %2538 = vmatmul.mubr.f32.vlgmr.msra.gmra.mxu1 %v1830_v10  ;;  %v1884_v10 = vld [vmem:[%s4071_s1 + $0x508] sm:$0xff] }
  0x98   : > { %2541 = vmatpush3.msra.mxu0 %v1864_v11  ;;  %2576 = vmatpush3.msra.mxu1 %v1881_v12  ;;  %v1901_v11 = vld [vmem:[%s4071_s1 + $0x588] sm:$0xff]  ;;  %v1883_v12 = vld [vmem:[%s4071_s1 + $0x500] sm:$0xff] }
  0x99   : > { %2542 = vmatprep.subr.mxu0 %v2907_v2  ;;  %2577 = vmatprep.subr.mxu1 %v2907_v2 }
  0x9a   : > { %2543 = vmatpush3.msra.mxu0 %v1863_v13  ;;  %2578 = vmatpush3.msra.mxu1 %v1880_v14  ;;  %v1900_v13 = vld [vmem:[%s4071_s1 + $0x580] sm:$0xff]  ;;  %v1882_v14 = vld [vmem:[%s3090_s20 + $0x12] sm:$0x1f] }
  0x9b   : > { %2544 = vmatprep.subr.mxu0 %v2907_v2  ;;  %2579 = vmatprep.subr.mxu1 %v2907_v2 }
  0x9c   : > { %2545 = vmatpush3.msra.mxu0 %v1862_v15  ;;  %2580 = vmatpush3.msra.mxu1 %v1879_v16  ;;  %v1899_v15 = vld [vmem:[%s3090_s20 + $0x13] sm:$0x1f]  ;;  %v1933_v16 = vld [vmem:[%s4071_s1 + $0x678] sm:$0xff] }
  0x9d   : > { %2546 = vmatprep.subr.mxu0 %v2907_v2  ;;  %2581 = vmatprep.subr.mxu1 %v2907_v2 }
  0x9e   : > { %2547 = vmatpush3.msra.mxu0 %v1861_v17  ;;  %2582 = vmatpush3.msra.mxu1 %v1878_v18  ;;  %v1950_v17 = vld [vmem:[%s4071_s1 + $0x6f8] sm:$0xff]  ;;  %v1932_v18 = vld [vmem:[%s4071_s1 + $0x670] sm:$0xff] }
  0x9f   : > { %2548 = vmatprep.subr.mxu0 %v2907_v2  ;;  %2583 = vmatprep.subr.mxu1 %v2907_v2 }
  0xa0   : > { %2549 = vmatpush3.msra.mxu0 %v1860_v19  ;;  %2584 = vmatpush3.msra.mxu1 %v1877_v20  ;;  %v1949_v19 = vld [vmem:[%s4071_s1 + $0x6f0] sm:$0xff]  ;;  %v1931_v20 = vld [vmem:[%s4071_s1 + $0x668] sm:$0xff] }
  0xa1   : > { %2550 = vmatprep.subr.mxu0 %v2907_v2  ;;  %2585 = vmatprep.subr.mxu1 %v2907_v2 }
  0xa2   : > { %2551 = vmatpush3.msra.mxu0 %v1859_v21  ;;  %2586 = vmatpush3.msra.mxu1 %v1876_v22  ;;  %v1948_v21 = vld [vmem:[%s4071_s1 + $0x6e8] sm:$0xff]  ;;  %v1930_v22 = vld [vmem:[%s4071_s1 + $0x660] sm:$0xff] }
  0xa3   : > { %2552 = vmatprep.subr.mxu0 %v2907_v2  ;;  %2587 = vmatprep.subr.mxu1 %v2907_v2 }
  0xa4   : > { %2553 = vmatpush3.msra.mxu0 %v1858_v23  ;;  %2588 = vmatpush3.msra.mxu1 %v1875_v24  ;;  %v1947_v23 = vld [vmem:[%s4071_s1 + $0x6e0] sm:$0xff]  ;;  %v1929_v24 = vld [vmem:[%s4071_s1 + $0x658] sm:$0xff] }
  0xa5   : > { %2554 = vmatprep.subr.mxu0 %v2907_v2  ;;  %2589 = vmatprep.subr.mxu1 %v2907_v2 }
  0xa6   : > { %2555 = vmatpush3.msra.mxu0 %v1857_v25  ;;  %2590 = vmatpush3.msra.mxu1 %v1874_v26  ;;  %v1946_v25 = vld [vmem:[%s4071_s1 + $0x6d8] sm:$0xff]  ;;  %v1928_v26 = vld [vmem:[%s4071_s1 + $0x650] sm:$0xff] }
  0xa7   : > { %2556 = vmatprep.subr.mxu0 %v2907_v2  ;;  %2591 = vmatprep.subr.mxu1 %v2907_v2 }
  0xa8   : > { %2557 = vmatpush3.msra.mxu0 %v1856_v27  ;;  %2592 = vmatpush3.msra.mxu1 %v1873_v28  ;;  %v1945_v27 = vld [vmem:[%s4071_s1 + $0x6d0] sm:$0xff]  ;;  %v1927_v28 = vld [vmem:[%s4071_s1 + $0x648] sm:$0xff] }
  0xa9   : > { %2558 = vmatprep.subr.mxu0 %v2907_v2  ;;  %2593 = vmatprep.subr.mxu1 %v2907_v2 }
  0xaa   : > { %2559 = vmatpush3.msra.mxu0 %v1855_v29  ;;  %2594 = vmatpush3.msra.mxu1 %v1872_v30  ;;  %v1944_v29 = vld [vmem:[%s4071_s1 + $0x6c8] sm:$0xff]  ;;  %v1926_v30 = vld [vmem:[%s4071_s1 + $0x640] sm:$0xff] }
  0xab   : > { %2560 = vmatprep.subr.mxu0 %v2907_v2  ;;  %2595 = vmatprep.subr.mxu1 %v2907_v2 }
  0xac   : > { %2561 = vmatpush3.msra.mxu0 %v1854_v31  ;;  %2596 = vmatpush3.msra.mxu1 %v1871_v32  ;;  %v1943_v31 = vld [vmem:[%s4071_s1 + $0x6c0] sm:$0xff]  ;;  %v1925_v32 = vld [vmem:[%s4071_s1 + $0x638] sm:$0xff] }
  0xad   : > { %2562 = vmatprep.subr.mxu0 %v2907_v2  ;;  %2597 = vmatprep.subr.mxu1 %v2907_v2 }
  0xae   : > { %2563 = vmatpush3.msra.mxu0 %v1853_v33  ;;  %2598 = vmatpush3.msra.mxu1 %v1870_v34  ;;  %v1942_v33 = vld [vmem:[%s4071_s1 + $0x6b8] sm:$0xff]  ;;  %v1924_v34 = vld [vmem:[%s4071_s1 + $0x630] sm:$0xff] }
  0xaf   : > { %2564 = vmatprep.subr.mxu0 %v2907_v2  ;;  %2599 = vmatprep.subr.mxu1 %v2907_v2 }
  0xb0   : > { %2565 = vmatpush3.msra.mxu0 %v1852_v35  ;;  %2600 = vmatpush3.msra.mxu1 %v1869_v36  ;;  %v1941_v35 = vld [vmem:[%s4071_s1 + $0x6b0] sm:$0xff]  ;;  %v1923_v36 = vld [vmem:[%s4071_s1 + $0x628] sm:$0xff] }
  0xb1   : > { %2566 = vmatprep.subr.mxu0 %v2907_v2  ;;  %2601 = vmatprep.subr.mxu1 %v2907_v2 }
  0xb2   : > { %2567 = vmatpush3.msra.mxu0 %v1851_v37  ;;  %2602 = vmatpush3.msra.mxu1 %v1868_v38  ;;  %v1940_v37 = vld [vmem:[%s4071_s1 + $0x6a8] sm:$0xff]  ;;  %v1922_v38 = vld [vmem:[%s4071_s1 + $0x620] sm:$0xff] }
  0xb3   : > { %2568 = vmatprep.subr.mxu0 %v2907_v2  ;;  %2603 = vmatprep.subr.mxu1 %v2907_v2 }
  0xb4   : > { %2569 = vmatpush3.msra.mxu0 %v1850_v39  ;;  %2604 = vmatpush3.msra.mxu1 %v1867_v40  ;;  %v1939_v39 = vld [vmem:[%s4071_s1 + $0x6a0] sm:$0xff] }
  0xb5   : > { %2570 = vmatprep.subr.mxu0 %v2907_v2  ;;  %2605 = vmatprep.subr.mxu1 %v2907_v2 }
  0xb6   : > { %2571 = vmatpush3.msra.mxu0 %v1849_v41  ;;  %2572 = vmatprep.mubr.msk.f32.mxu0 %vm2908_vm0, %v2907_v2  ;;  %v1921_v41 = vld [vmem:[%s4071_s1 + $0x618] sm:$0xff] }
  0xb7   : > { %2606 = vmatpush3.msra.mxu1 %v1866_v42  ;;  %2573 = vmatmul.mubr.f32.vlgmr.msra.gmra.mxu0 %v1848_v43  ;;  %v1938_v42 = vld [vmem:[%s4071_s1 + $0x698] sm:$0xff] }
  0xb8   : > { %2607 = vmatprep.mubr.msk.f32.mxu1 %vm2908_vm0, %v2907_v2  ;;  %2610 = vmatprep.subr.mxu0 %v2907_v2 }
  0xb9   : > { %2645 = vmatprep.subr.mxu1 %v2907_v2  ;;  %2608 = vmatmul.mubr.f32.vlgmr.msra.gmra.mxu1 %v1865_v44 }
  0xba   : > { %2611 = vmatpush3.msra.mxu0 %v1898_v45  ;;  %2646 = vmatpush3.msra.mxu1 %v1915_v46  ;;  %v1920_v46 = vld [vmem:[%s4071_s1 + $0x610] sm:$0xff] }
  0xbb   : > { %2612 = vmatprep.subr.mxu0 %v2907_v2  ;;  %2647 = vmatprep.subr.mxu1 %v2907_v2 }
  0xbc   : > { %2613 = vmatpush3.msra.mxu0 %v1897_v47  ;;  %2648 = vmatpush3.msra.mxu1 %v1914_v48  ;;  %v1937_v47 = vld [vmem:[%s4071_s1 + $0x690] sm:$0xff] }
  0xbd   : > { %2614 = vmatprep.subr.mxu0 %v2907_v2  ;;  %2649 = vmatprep.subr.mxu1 %v2907_v2 }
  0xbe   : > { %2615 = vmatpush3.msra.mxu0 %v1896_v49  ;;  %2650 = vmatpush3.msra.mxu1 %v1913_v50  ;;  %v1919_v49 = vld [vmem:[%s4071_s1 + $0x608] sm:$0xff] }
  0xbf   : > { %2616 = vmatprep.subr.mxu0 %v2907_v2  ;;  %2651 = vmatprep.subr.mxu1 %v2907_v2  ;;  %v1936_v50 = vld [vmem:[%s4071_s1 + $0x688] sm:$0xff] }
  0xc0   : > { %2617 = vmatpush3.msra.mxu0 %v1895_v51  ;;  %2652 = vmatpush3.msra.mxu1 %v1912_v52  ;;  %v1918_v51 = vld [vmem:[%s4071_s1 + $0x600] sm:$0xff] }
  0xc1   : > { %2618 = vmatprep.subr.mxu0 %v2907_v2  ;;  %2653 = vmatprep.subr.mxu1 %v2907_v2  ;;  %v1935_v52 = vld [vmem:[%s4071_s1 + $0x680] sm:$0xff] }
  0xc2   : > { %2619 = vmatpush3.msra.mxu0 %v1894_v53  ;;  %2654 = vmatpush3.msra.mxu1 %v1911_v54  ;;  %v1917_v53 = vld [vmem:[%s3090_s20 + $0x18] sm:$0x1f] }
  0xc3   : > { %2620 = vmatprep.subr.mxu0 %v2907_v2  ;;  %2655 = vmatprep.subr.mxu1 %v2907_v2  ;;  %v1934_v54 = vld [vmem:[%s3090_s20 + $0x19] sm:$0x1f] }
  0xc4   : > { %2621 = vmatpush3.msra.mxu0 %v1893_v55  ;;  %2656 = vmatpush3.msra.mxu1 %v1910_v56  ;;  %v1967_v55 = vld [vmem:[%s4071_s1 + $0x778] sm:$0xff] }
  0xc5   : > { %2622 = vmatprep.subr.mxu0 %v2907_v2  ;;  %2657 = vmatprep.subr.mxu1 %v2907_v2  ;;  %v1984_v56 = vld [vmem:[%s4071_s1 + $0x7f8] sm:$0xff] }
  0xc6   : > { %2623 = vmatpush3.msra.mxu0 %v1892_v57  ;;  %2658 = vmatpush3.msra.mxu1 %v1909_v58  ;;  %v1966_v57 = vld [vmem:[%s4071_s1 + $0x770] sm:$0xff] }
  0xc7   : > { %2624 = vmatprep.subr.mxu0 %v2907_v2  ;;  %2659 = vmatprep.subr.mxu1 %v2907_v2  ;;  %v1983_v58 = vld [vmem:[%s4071_s1 + $0x7f0] sm:$0xff] }
  0xc8   : > { %2625 = vmatpush3.msra.mxu0 %v1891_v59  ;;  %2660 = vmatpush3.msra.mxu1 %v1908_v60  ;;  %v1965_v59 = vld [vmem:[%s4071_s1 + $0x768] sm:$0xff] }
  0xc9   : > { %2626 = vmatprep.subr.mxu0 %v2907_v2  ;;  %2661 = vmatprep.subr.mxu1 %v2907_v2  ;;  %v1982_v60 = vld [vmem:[%s4071_s1 + $0x7e8] sm:$0xff] }
  0xca   : > { %2627 = vmatpush3.msra.mxu0 %v1890_v61  ;;  %2662 = vmatpush3.msra.mxu1 %v1907_v62  ;;  %v1964_v61 = vld [vmem:[%s4071_s1 + $0x760] sm:$0xff] }
  0xcb   : > { %2628 = vmatprep.subr.mxu0 %v2907_v2  ;;  %2663 = vmatprep.subr.mxu1 %v2907_v2  ;;  %v1981_v62 = vld [vmem:[%s4071_s1 + $0x7e0] sm:$0xff] }
  0xcc   : > { %2629 = vmatpush3.msra.mxu0 %v1889_v63  ;;  %2664 = vmatpush3.msra.mxu1 %v1906_v0  ;;  %v1963_v63 = vld [vmem:[%s4071_s1 + $0x758] sm:$0xff] }
  0xcd   : > { %2630 = vmatprep.subr.mxu0 %v2907_v2  ;;  %2665 = vmatprep.subr.mxu1 %v2907_v2  ;;  %v1980_v0 = vld [vmem:[%s4071_s1 + $0x7d8] sm:$0xff] }
  0xce   : > { %2631 = vmatpush3.msra.mxu0 %v1888_v1  ;;  %2666 = vmatpush3.msra.mxu1 %v1905_v3  ;;  %v1962_v1 = vld [vmem:[%s4071_s1 + $0x750] sm:$0xff] }
  0xcf   : > { %2632 = vmatprep.subr.mxu0 %v2907_v2  ;;  %2667 = vmatprep.subr.mxu1 %v2907_v2  ;;  %v1979_v3 = vld [vmem:[%s4071_s1 + $0x7d0] sm:$0xff] }
  0xd0   : > { %2633 = vmatpush3.msra.mxu0 %v1887_v4  ;;  %2668 = vmatpush3.msra.mxu1 %v1904_v5  ;;  %v1961_v4 = vld [vmem:[%s4071_s1 + $0x748] sm:$0xff] }
  0xd1   : > { %2634 = vmatprep.subr.mxu0 %v2907_v2  ;;  %2669 = vmatprep.subr.mxu1 %v2907_v2  ;;  %v1978_v5 = vld [vmem:[%s4071_s1 + $0x7c8] sm:$0xff] }
  0xd2   : > { %2635 = vmatpush3.msra.mxu0 %v1886_v6  ;;  %2670 = vmatpush3.msra.mxu1 %v1903_v7  ;;  %v1960_v6 = vld [vmem:[%s4071_s1 + $0x740] sm:$0xff] }
  0xd3   : > { %2636 = vmatprep.subr.mxu0 %v2907_v2  ;;  %2671 = vmatprep.subr.mxu1 %v2907_v2  ;;  %v1977_v7 = vld [vmem:[%s4071_s1 + $0x7c0] sm:$0xff] }
  0xd4   : > { %2637 = vmatpush3.msra.mxu0 %v1885_v8  ;;  %2672 = vmatpush3.msra.mxu1 %v1902_v9  ;;  %v1959_v8 = vld [vmem:[%s4071_s1 + $0x738] sm:$0xff] }
  0xd5   : > { %2638 = vmatprep.subr.mxu0 %v2907_v2  ;;  %2673 = vmatprep.subr.mxu1 %v2907_v2  ;;  %v1976_v9 = vld [vmem:[%s4071_s1 + $0x7b8] sm:$0xff] }
  0xd6   : > { %2639 = vmatpush3.msra.mxu0 %v1884_v10  ;;  %2674 = vmatpush3.msra.mxu1 %v1901_v11  ;;  %v1958_v10 = vld [vmem:[%s4071_s1 + $0x730] sm:$0xff] }
  0xd7   : > { %2640 = vmatprep.subr.mxu0 %v2907_v2  ;;  %2675 = vmatprep.subr.mxu1 %v2907_v2  ;;  %v1975_v11 = vld [vmem:[%s4071_s1 + $0x7b0] sm:$0xff] }
  0xd8   : > { %2641 = vmatpush3.msra.mxu0 %v1883_v12  ;;  %2642 = vmatprep.mubr.msk.f32.mxu0 %vm2908_vm0, %v2907_v2  ;;  %v1957_v12 = vld [vmem:[%s4071_s1 + $0x728] sm:$0xff] }
  0xd9   : > { %2676 = vmatpush3.msra.mxu1 %v1900_v13  ;;  %2643 = vmatmul.mubr.f32.vlgmr.msra.gmra.mxu0 %v1882_v14  ;;  %v1974_v13 = vld [vmem:[%s4071_s1 + $0x7a8] sm:$0xff]  ;;  %v1956_v14 = vld [vmem:[%s4071_s1 + $0x720] sm:$0xff] }
  0xda   : > { %2677 = vmatprep.mubr.msk.f32.mxu1 %vm2908_vm0, %v2907_v2  ;;  %2680 = vmatprep.subr.mxu0 %v2907_v2 }
  0xdb   : > { %2715 = vmatprep.subr.mxu1 %v2907_v2  ;;  %2678 = vmatmul.mubr.f32.vlgmr.msra.gmra.mxu1 %v1899_v15  ;;  %v1973_v15 = vld [vmem:[%s4071_s1 + $0x7a0] sm:$0xff] }
  0xdc   : > { %2681 = vmatpush3.msra.mxu0 %v1933_v16  ;;  %2716 = vmatpush3.msra.mxu1 %v1950_v17 }
  0xdd   : > { %2682 = vmatprep.subr.mxu0 %v2907_v2  ;;  %2717 = vmatprep.subr.mxu1 %v2907_v2 }
  0xde   : > { %2683 = vmatpush3.msra.mxu0 %v1932_v18  ;;  %2718 = vmatpush3.msra.mxu1 %v1949_v19  ;;  %v1955_v18 = vld [vmem:[%s4071_s1 + $0x718] sm:$0xff] }
  0xdf   : > { %2684 = vmatprep.subr.mxu0 %v2907_v2  ;;  %2719 = vmatprep.subr.mxu1 %v2907_v2  ;;  %v1972_v19 = vld [vmem:[%s4071_s1 + $0x798] sm:$0xff] }
  0xe0   : > { %2685 = vmatpush3.msra.mxu0 %v1931_v20  ;;  %2720 = vmatpush3.msra.mxu1 %v1948_v21 }
  0xe1   : > { %2686 = vmatprep.subr.mxu0 %v2907_v2  ;;  %2721 = vmatprep.subr.mxu1 %v2907_v2 }
  0xe2   : > { %2687 = vmatpush3.msra.mxu0 %v1930_v22  ;;  %2722 = vmatpush3.msra.mxu1 %v1947_v23  ;;  %v1954_v23 = vld [vmem:[%s4071_s1 + $0x710] sm:$0xff] }
  0xe3   : > { %2688 = vmatprep.subr.mxu0 %v2907_v2  ;;  %2723 = vmatprep.subr.mxu1 %v2907_v2 }
  0xe4   : > { %2689 = vmatpush3.msra.mxu0 %v1929_v24  ;;  %2724 = vmatpush3.msra.mxu1 %v1946_v25  ;;  %v1971_v24 = vld [vmem:[%s4071_s1 + $0x790] sm:$0xff] }
  0xe5   : > { %2690 = vmatprep.subr.mxu0 %v2907_v2  ;;  %2725 = vmatprep.subr.mxu1 %v2907_v2 }
  0xe6   : > { %2691 = vmatpush3.msra.mxu0 %v1928_v26  ;;  %2726 = vmatpush3.msra.mxu1 %v1945_v27  ;;  %v1953_v26 = vld [vmem:[%s4071_s1 + $0x708] sm:$0xff] }
  0xe7   : > { %2692 = vmatprep.subr.mxu0 %v2907_v2  ;;  %2727 = vmatprep.subr.mxu1 %v2907_v2  ;;  %v1970_v27 = vld [vmem:[%s4071_s1 + $0x788] sm:$0xff] }
  0xe8   : > { %2693 = vmatpush3.msra.mxu0 %v1927_v28  ;;  %2728 = vmatpush3.msra.mxu1 %v1944_v29  ;;  %v1952_v28 = vld [vmem:[%s4071_s1 + $0x700] sm:$0xff] }
  0xe9   : > { %2694 = vmatprep.subr.mxu0 %v2907_v2  ;;  %2729 = vmatprep.subr.mxu1 %v2907_v2  ;;  %v1969_v29 = vld [vmem:[%s4071_s1 + $0x780] sm:$0xff] }
  0xea   : > { %2695 = vmatpush3.msra.mxu0 %v1926_v30  ;;  %2730 = vmatpush3.msra.mxu1 %v1943_v31  ;;  %v1951_v30 = vld [vmem:[%s3090_s20 + $0x1a] sm:$0x1f] }
  0xeb   : > { %2696 = vmatprep.subr.mxu0 %v2907_v2  ;;  %2731 = vmatprep.subr.mxu1 %v2907_v2  ;;  %v1968_v31 = vld [vmem:[%s3090_s20 + $0x1b] sm:$0x1f]  ;;  %s2820_s20 = smul.u32 5, %s4085_s13 }
  0xec   : > { %2697 = vmatpush3.msra.mxu0 %v1925_v32  ;;  %2732 = vmatpush3.msra.mxu1 %v1942_v33 }
  0xed   : > { %2698 = vmatprep.subr.mxu0 %v2907_v2  ;;  %2733 = vmatprep.subr.mxu1 %v2907_v2  ;;  %s188_s6 = sadd.s32 %s2820_s20, %s4087_s12 }
  0xee   : > { %2699 = vmatpush3.msra.mxu0 %v1924_v34  ;;  %2734 = vmatpush3.msra.mxu1 %v1941_v35  ;;  %s1728_s7 = sshll.u32 %s188_s6, 3 }
  0xef   : > { %2700 = vmatprep.subr.mxu0 %v2907_v2  ;;  %2735 = vmatprep.subr.mxu1 %v2907_v2  ;;  %v294_v40 = vpop.f32.mrf.mxu0  ;;  %s190_s10 = scalar_lea.vmem %s4073_s3, %s1728_s7 }
  0xf0   : > { %2701 = vmatpush3.msra.mxu0 %v1923_v36  ;;  %2736 = vmatpush3.msra.mxu1 %v1940_v37 }
  0xf1   : > { %2702 = vmatprep.subr.mxu0 %v2907_v2  ;;  %2737 = vmatprep.subr.mxu1 %v2907_v2  ;;  %v364_v43 = vpop.f32.mrf.mxu1  ;;  %v2294_v44 = vpop.f32.mrf.mxu0 }
  0xf2   : > { %2703 = vmatpush3.msra.mxu0 %v1922_v38  ;;  %2738 = vmatpush3.msra.mxu1 %v1939_v39  ;;  %v3880_v45 = vadd.f32 %v364_v43, %v294_v40 }
  0xf3   : > { %2704 = vmatprep.subr.mxu0 %v2907_v2  ;;  %2739 = vmatprep.subr.mxu1 %v2907_v2  ;;  %v2329_v48 = vpop.f32.mrf.mxu1 }
  0xf4   : > { %2705 = vmatpush3.msra.mxu0 %v1921_v41  ;;  %2740 = vmatpush3.msra.mxu1 %v1938_v42 }
  0xf5   : > { %2706 = vmatprep.subr.mxu0 %v2907_v2  ;;  %2741 = vmatprep.subr.mxu1 %v2907_v2 }
  0xf6   : > { %2707 = vmatpush3.msra.mxu0 %v1920_v46  ;;  %2742 = vmatpush3.msra.mxu1 %v1937_v47 }
  0xf7   : > { %2708 = vmatprep.subr.mxu0 %v2907_v2  ;;  %2743 = vmatprep.subr.mxu1 %v2907_v2 }
  0xf8   : > { %2709 = vmatpush3.msra.mxu0 %v1919_v49  ;;  %2744 = vmatpush3.msra.mxu1 %v1936_v50 }
  0xf9   : > { %2710 = vmatprep.subr.mxu0 %v2907_v2  ;;  %2745 = vmatprep.subr.mxu1 %v2907_v2 }
  0xfa   : > { %2711 = vmatpush3.msra.mxu0 %v1918_v51  ;;  %2712 = vmatprep.mubr.msk.f32.mxu0 %vm2908_vm0, %v2907_v2 }
  0xfb   : > { %2746 = vmatpush3.msra.mxu1 %v1935_v52  ;;  %2713 = vmatmul.mubr.f32.vlgmr.msra.gmra.mxu0 %v1917_v53 }
  0xfc   : > { %2747 = vmatprep.mubr.msk.f32.mxu1 %vm2908_vm0, %v2907_v2  ;;  %2750 = vmatprep.subr.mxu0 %v2907_v2 }
  0xfd   : > { %2785 = vmatprep.subr.mxu1 %v2907_v2  ;;  %2748 = vmatmul.mubr.f32.vlgmr.msra.gmra.mxu1 %v1934_v54 }
  0xfe   : > { %2751 = vmatpush3.msra.mxu0 %v1967_v55  ;;  %2786 = vmatpush3.msra.mxu1 %v1984_v56 }
  0xff   : > { %2752 = vmatprep.subr.mxu0 %v2907_v2  ;;  %2787 = vmatprep.subr.mxu1 %v2907_v2 }
 0x100   : > { %2753 = vmatpush3.msra.mxu0 %v1966_v57  ;;  %2788 = vmatpush3.msra.mxu1 %v1983_v58 }
 0x101   : > { %2754 = vmatprep.subr.mxu0 %v2907_v2  ;;  %2789 = vmatprep.subr.mxu1 %v2907_v2 }
 0x102   : > { %2755 = vmatpush3.msra.mxu0 %v1965_v59  ;;  %2790 = vmatpush3.msra.mxu1 %v1982_v60 }
 0x103   : > { %2756 = vmatprep.subr.mxu0 %v2907_v2  ;;  %2791 = vmatprep.subr.mxu1 %v2907_v2 }
 0x104   : > { %2757 = vmatpush3.msra.mxu0 %v1964_v61  ;;  %2792 = vmatpush3.msra.mxu1 %v1981_v62 }
 0x105   : > { %2758 = vmatprep.subr.mxu0 %v2907_v2  ;;  %2793 = vmatprep.subr.mxu1 %v2907_v2 }
 0x106   : > { %2759 = vmatpush3.msra.mxu0 %v1963_v63  ;;  %2794 = vmatpush3.msra.mxu1 %v1980_v0 }
 0x107   : > { %2760 = vmatprep.subr.mxu0 %v2907_v2  ;;  %2795 = vmatprep.subr.mxu1 %v2907_v2 }
 0x108   : > { %2761 = vmatpush3.msra.mxu0 %v1962_v1  ;;  %2796 = vmatpush3.msra.mxu1 %v1979_v3 }
 0x109   : > { %2762 = vmatprep.subr.mxu0 %v2907_v2  ;;  %2797 = vmatprep.subr.mxu1 %v2907_v2 }
 0x10a   : > { %2763 = vmatpush3.msra.mxu0 %v1961_v4  ;;  %2798 = vmatpush3.msra.mxu1 %v1978_v5 }
 0x10b   : > { %2764 = vmatprep.subr.mxu0 %v2907_v2  ;;  %2799 = vmatprep.subr.mxu1 %v2907_v2 }
 0x10c   : > { %2765 = vmatpush3.msra.mxu0 %v1960_v6  ;;  %2800 = vmatpush3.msra.mxu1 %v1977_v7 }
 0x10d   : > { %2766 = vmatprep.subr.mxu0 %v2907_v2  ;;  %2801 = vmatprep.subr.mxu1 %v2907_v2 }
 0x10e   : > { %2767 = vmatpush3.msra.mxu0 %v1959_v8  ;;  %2802 = vmatpush3.msra.mxu1 %v1976_v9 }
 0x10f   : > { %2768 = vmatprep.subr.mxu0 %v2907_v2  ;;  %2803 = vmatprep.subr.mxu1 %v2907_v2 }
 0x110   : > { %2769 = vmatpush3.msra.mxu0 %v1958_v10  ;;  %2804 = vmatpush3.msra.mxu1 %v1975_v11 }
 0x111   : > { %2770 = vmatprep.subr.mxu0 %v2907_v2  ;;  %2805 = vmatprep.subr.mxu1 %v2907_v2  ;;  %v452_v16 = vpop.f32.mrf.mxu0 }
 0x112   : > { %2771 = vmatpush3.msra.mxu0 %v1957_v12  ;;  %2806 = vmatpush3.msra.mxu1 %v1974_v13  ;;  %v456_v17 = vadd.f32 %v452_v16, %v3880_v45 }
 0x113   : > { %2772 = vmatprep.subr.mxu0 %v2907_v2  ;;  %2807 = vmatprep.subr.mxu1 %v2907_v2  ;;  %v541_v20 = vpop.f32.mrf.mxu1  ;;  %v2364_v21 = vpop.f32.mrf.mxu0 }
 0x114   : > { %2773 = vmatpush3.msra.mxu0 %v1956_v14  ;;  %2808 = vmatpush3.msra.mxu1 %v1973_v15  ;;  %v545_v22 = vadd.f32 %v541_v20, %v456_v17 }
 0x115   : > { %2774 = vmatprep.subr.mxu0 %v2907_v2  ;;  %2809 = vmatprep.subr.mxu1 %v2907_v2  ;;  %v2399_v25 = vpop.f32.mrf.mxu1 }
 0x116   : > { %2775 = vmatpush3.msra.mxu0 %v1955_v18  ;;  %2810 = vmatpush3.msra.mxu1 %v1972_v19 }
 0x117   : > { %2776 = vmatprep.subr.mxu0 %v2907_v2  ;;  %2811 = vmatprep.subr.mxu1 %v2907_v2 }
 0x118   : > { %2777 = vmatpush3.msra.mxu0 %v1954_v23  ;;  %2812 = vmatpush3.msra.mxu1 %v1971_v24 }
 0x119   : > { %2778 = vmatprep.subr.mxu0 %v2907_v2  ;;  %2813 = vmatprep.subr.mxu1 %v2907_v2 }
 0x11a   : > { %2779 = vmatpush3.msra.mxu0 %v1953_v26  ;;  %2814 = vmatpush3.msra.mxu1 %v1970_v27 }
 0x11b   : > { %2780 = vmatprep.subr.mxu0 %v2907_v2  ;;  %2815 = vmatprep.subr.mxu1 %v2907_v2 }
 0x11c   : > { %2781 = vmatpush3.msra.mxu0 %v1952_v28  ;;  %2782 = vmatprep.mubr.msk.f32.mxu0 %vm2908_vm0, %v2907_v2 }
 0x11d   : > { %2816 = vmatpush3.msra.mxu1 %v1969_v29  ;;  %2817 = vmatprep.mubr.msk.f32.mxu1 %vm2908_vm0, %v2907_v2 }
 0x11e   : > { %2783 = vmatmul.mubr.f32.vlgmr.msra.gmra.mxu0 %v1951_v30  ;;  %2818 = vmatmul.mubr.f32.vlgmr.msra.gmra.mxu1 %v1968_v31 }
 0x133   : > { %v633_v32 = vpop.f32.mrf.mxu0 }
 0x134   : > { %v637_v33 = vadd.f32 %v633_v32, %v545_v22 }
 0x135   : > { %v722_v34 = vpop.f32.mrf.mxu1  ;;  %v2434_v35 = vpop.f32.mrf.mxu0 }
 0x136   : > { %v726_v36 = vadd.f32 %v722_v34, %v637_v33 }
 0x137   : > { %v2469_v37 = vpop.f32.mrf.mxu1 }
 0x155   : > { %v811_v38 = vpop.f32.mrf.mxu0 }
 0x156   : > { %v815_v39 = vadd.f32 %v811_v38, %v726_v36 }
 0x157   : > { %v900_v40 = vpop.f32.mrf.mxu1  ;;  %v2504_v41 = vpop.f32.mrf.mxu0 }
 0x158   : > { %v904_v42 = vadd.f32 %v900_v40, %v815_v39 }
 0x159   : > { %v2539_v43 = vpop.f32.mrf.mxu1 }
 0x177   : > { %v992_v44 = vpop.f32.mrf.mxu0 }
 0x178   : > { %v996_v45 = vadd.f32 %v992_v44, %v904_v42 }
 0x179   : > { %v1081_v46 = vpop.f32.mrf.mxu1  ;;  %v2574_v47 = vpop.f32.mrf.mxu0 }
 0x17a   : > { %v1085_v48 = vadd.f32 %v1081_v46, %v996_v45 }
 0x17b   : > { %v2609_v2 = vpop.f32.mrf.mxu1 }
 0x199   : > { %v1170_v49 = vpop.f32.mrf.mxu0 }
 0x19a   : > { %v1174_v57 = vadd.f32 %v1170_v49, %v1085_v48 }
 0x19b   : > { %v1259_v50 = vpop.f32.mrf.mxu1  ;;  %v2644_v51 = vpop.f32.mrf.mxu0 }
 0x19c   : > { %v1263_v58 = vadd.f32 %v1259_v50, %v1174_v57 }
 0x19d   : > { %v2679_v52 = vpop.f32.mrf.mxu1 }
 0x1bb   : > { %v1351_v53 = vpop.f32.mrf.mxu0 }
 0x1bc   : > { %v1355_v59 = vadd.f32 %v1351_v53, %v1263_v58 }
 0x1bd   : > { %v1440_v54 = vpop.f32.mrf.mxu1  ;;  %v2714_v55 = vpop.f32.mrf.mxu0 }
 0x1be   : > { %v1444_v60 = vadd.f32 %v1440_v54, %v1355_v59 }
 0x1bf   : > { %v2749_v56 = vpop.f32.mrf.mxu1 }
 0x1de   : > { %v1529_v61 = vpop.f32.mrf.mxu0  ;;  %v1618_v62 = vpop.f32.mrf.mxu1 }
 0x1df   : > { %v1533_v63 = vadd.f32 %v1529_v61, %v1444_v60 }
 0x1e0   : > { %v2784_v0 = vpop.f32.mrf.mxu0  ;;  %v2819_v1 = vpop.f32.mrf.mxu1 }
 0x1e1   : > { %v1622_v3 = vadd.f32 %v1618_v62, %v1533_v63 }
 0x1e3   : > { %v1623_v4 = vsub.f32 0.0, %v1622_v3 }
 0x1e5   : > { %v1624_v5 = vmul.f32 1.442695, %v1623_v4 }
 0x1e7   : > { %2863 = vpow2.f32 %v1624_v5 }
 0x1f4   : > { %v2864_v6 = vpop.eup %2863 }
 0x1f5   : > { %v1626_v7 = vadd.f32 1.0, %v2864_v6 }
 0x1f7   : > { %2865 = vrcp.f32 %v1626_v7 }
 0x204   : > { %v2866_v8 = vpop.eup %2865 }
 0x205   : > { %1629 = vst [vmem:[%s190_s10] sm:$0x1f] %v2866_v8 }
 0x206 PF: > { %s13_s16 = sadd.s32 1, %s2905_s16   ;;  %s4074_s12 = smov %s2897_s14 }
 0x207   : > { %p10_p7 = scmp.ge.s32.totalorder %s13_s16, 12   ;;  %s4075_s13 = smov %s2901_s15 }
 0x208   : > { %s4076_s14 = smov %s4079_s2  ;;  %s4077_s15 = smov %s4083_s17 }
 0x209   :  { %12 = sbr.rel (!%p10_p7) target bundleno = 3 (0x3), region = 81 }

</bundles_post_ra>
